<compile_context>
chip_gen: v5e
topology: v5e:2x2
jax: 0.10.0
libtpu: 0.0.40
codegen_flags: <defaults>
</compile_context>

<pallas_src>
import functools

import jax
import jax.numpy as jnp
from jax import lax
from jax.experimental import pallas as pl
from jax.experimental.pallas import tpu as pltpu


_ENC_PARAM_NAMES = (
    "wq", "bq", "wk", "bk", "wv", "bv", "wo", "bo", "g1", "c1",
    "w1", "b1", "w2", "b2", "g2", "c2",
)
_DEC_PARAM_NAMES = (
    "wq", "bq", "wk", "bk", "wv", "bv", "wo", "bo", "g1", "c1",
    "wq_c", "bq_c", "wk_c", "bk_c", "wv_c", "bv_c", "wo_c", "bo_c", "g2", "c2",
    "w1", "b1", "w2", "b2", "g3", "c3",
)


# ----------------------------- in-kernel helpers ---------------------------

def _ln(x, g, b, eps=1e-5):
    """Row-wise LayerNorm (biased variance, PyTorch semantics)."""
    mu = jnp.mean(x, axis=-1, keepdims=True)
    var = jnp.mean(jnp.square(x - mu), axis=-1, keepdims=True)
    return (x - mu) * lax.rsqrt(var + eps) * g + b


def _softmax_rows(s):
    m = jnp.max(s, axis=-1, keepdims=True)
    p = jnp.exp(s - m)
    return p / jnp.sum(p, axis=-1, keepdims=True)   # exact divide (PyTorch parity)


def _proj(x, w, b):
    return jnp.dot(x, w, preferred_element_type=jnp.float32) + b


def _mha(q, k, v, wo, bo, *, H, scale):
    """Multi-head attention on VMEM-resident 2-D slabs.

    q: (Tq, D), k/v: (Tk, D). Heads are static column blocks; per-head outputs
    are written back as column blocks of one (Tq, D) context slab and the output
    projection is a single K=D matmul.
    """
    D = q.shape[-1]
    hd = D // H
    heads = []
    for h in range(H):                          # short static unroll (H small)
        cs = slice(h * hd, (h + 1) * hd)
        qh = q[:, cs]
        kh = k[:, cs]
        vh = v[:, cs]
        # contract head dim directly (q @ k^T, no explicit transpose)
        s = lax.dot_general(qh, kh, (((1,), (1,)), ((), ())),
                            preferred_element_type=jnp.float32) * scale
        p = _softmax_rows(s)                    # (Tq, Tk)
        heads.append(jnp.dot(p, vh, preferred_element_type=jnp.float32))
    ctx = jnp.concatenate(heads, axis=-1)       # (Tq, D) — heads as column blocks
    return jnp.dot(ctx, wo, preferred_element_type=jnp.float32) + bo


def _encoder_layer(x, P, l, H):
    D = x.shape[-1]
    scale = 1.0 / float(D // H) ** 0.5
    q = _proj(x, P["wq"][l], P["bq"][l])
    k = _proj(x, P["wk"][l], P["bk"][l])
    v = _proj(x, P["wv"][l], P["bv"][l])
    a = _mha(q, k, v, P["wo"][l], P["bo"][l], H=H, scale=scale)
    y = _ln(x + a, P["g1"][l], P["c1"][l])                      # norm1(x + SA)
    h = jnp.maximum(_proj(y, P["w1"][l], P["b1"][l]), 0.0)      # FFN stays in VMEM
    f = _proj(h, P["w2"][l], P["b2"][l])
    return _ln(y + f, P["g2"][l], P["c2"][l])                   # norm2(y + FF)


def _decoder_layer(x, mem, P, l, H):
    D = x.shape[-1]
    scale = 1.0 / float(D // H) ** 0.5
    # self-attention (no causal mask — matches the reference forward)
    q = _proj(x, P["wq"][l], P["bq"][l])
    k = _proj(x, P["wk"][l], P["bk"][l])
    v = _proj(x, P["wv"][l], P["bv"][l])
    a = _mha(q, k, v, P["wo"][l], P["bo"][l], H=H, scale=scale)
    y = _ln(x + a, P["g1"][l], P["c1"][l])
    # cross-attention over the VMEM-resident encoder memory
    qc = _proj(y, P["wq_c"][l], P["bq_c"][l])
    kc = _proj(mem, P["wk_c"][l], P["bk_c"][l])
    vc = _proj(mem, P["wv_c"][l], P["bv_c"][l])
    a = _mha(qc, kc, vc, P["wo_c"][l], P["bo_c"][l], H=H, scale=scale)
    y = _ln(y + a, P["g2"][l], P["c2"][l])
    h = jnp.maximum(_proj(y, P["w1"][l], P["b1"][l]), 0.0)
    f = _proj(h, P["w2"][l], P["b2"][l])
    return _ln(y + f, P["g3"][l], P["c3"][l])


def _make_forward_kernel(n_enc, n_dec, num_heads):
    """Whole SimpleTransformer forward for one batch element (one grid step)."""

    def kernel(*refs):
        it = iter(refs)
        src_ref = next(it)                      # (S, input_dim)
        tgt_ref = next(it)                      # (T, input_dim)
        inw_ref = next(it)                      # (input_dim, D)
        inb_ref = next(it)                      # (1, D)
        enc = {n: next(it) for n in _ENC_PARAM_NAMES}
        encg_ref = next(it)
        encc_ref = next(it)
        dec = {n: next(it) for n in _DEC_PARAM_NAMES}
        decg_ref = next(it)
        decc_ref = next(it)
        outw_ref = next(it)                     # (D, out_pad)
        outb_ref = next(it)                     # (1, out_pad)
        o_ref = next(it)                        # (T, out_pad)

        w_in = inw_ref[...]
        b_in = inb_ref[...]
        mem = _proj(src_ref[...], w_in, b_in)   # (S, D)
        out = _proj(tgt_ref[...], w_in, b_in)   # (T, D)

        for l in range(n_enc):                  # static unroll over layers
            mem = _encoder_layer(mem, enc, l, num_heads)
        mem = _ln(mem, encg_ref[...], encc_ref[...])     # encoder final norm

        for l in range(n_dec):
            out = _decoder_layer(out, mem, dec, l, num_heads)
        out = _ln(out, decg_ref[...], decc_ref[...])     # decoder final norm

        # output Linear, padded to 128 lanes -> unmasked lane-dense store
        o_ref[...] = _proj(out, outw_ref[...], outb_ref[...])

    return kernel


# ------------------------------ full forward --------------------------------

@functools.partial(jax.jit, static_argnames=("num_heads",))
def simple_transformer_forward(params, src, tgt, *, num_heads):
    """src: (S, B, input_dim), tgt: (T, B, input_dim) -> (T, B, output_dim)."""
    S, B, in_dim = src.shape
    T = tgt.shape[0]
    out_dim = params["output_w"].shape[1]
    n_enc = params["enc"]["wq"].shape[0]
    n_dec = params["dec"]["wq"].shape[0]

    # Batch-major 3-D layout; the kernel grids over the batch axis.
    src_b = jnp.transpose(src, (1, 0, 2))           # (B, S, in_dim)
    tgt_b = jnp.transpose(tgt, (1, 0, 2))           # (B, T, in_dim)

    # Pad the output Linear to a 128-lane-dense slab; sliced back below.
    out_pad = ((out_dim + 127) // 128) * 128
    out_w = jnp.pad(params["output_w"], ((0, 0), (0, out_pad - out_dim)))
    out_b = jnp.pad(params["output_b"], ((0, 0), (0, out_pad - out_dim)))

    flat_inputs = [src_b, tgt_b, params["input_w"], params["input_b"]]
    flat_inputs += [params["enc"][n] for n in _ENC_PARAM_NAMES]
    flat_inputs += [params["enc_norm_g"], params["enc_norm_c"]]
    flat_inputs += [params["dec"][n] for n in _DEC_PARAM_NAMES]
    flat_inputs += [params["dec_norm_g"], params["dec_norm_c"]]
    flat_inputs += [out_w, out_b]

    def _resident(arr):
        # whole array, same block for every grid step -> DMA'd once, VMEM-resident
        return pl.BlockSpec(arr.shape, lambda b, _n=arr.ndim: (0,) * _n)

    in_specs = (
        [pl.BlockSpec((None, S, in_dim), lambda b: (b, 0, 0)),
         pl.BlockSpec((None, T, in_dim), lambda b: (b, 0, 0))]
        + [_resident(a) for a in flat_inputs[2:]]
    )
    out_specs = pl.BlockSpec((None, T, out_pad), lambda b: (b, 0, 0))

    out = pl.pallas_call(
        _make_forward_kernel(n_enc, n_dec, num_heads),
        out_shape=jax.ShapeDtypeStruct((B, T, out_pad), jnp.float32),
        grid=(B,),
        in_specs=in_specs,
        out_specs=out_specs,
        compiler_params=pltpu.CompilerParams(
            dimension_semantics=("parallel",)),   # v7x: one batch element per TC
    )(*flat_inputs)

    return jnp.transpose(out[:, :, :out_dim], (1, 0, 2))   # (T, B, out_dim)


# ----------------------- deterministic parameter init ----------------------

class _KeyGen:
    def __init__(self, key):
        self._key = key
        self._i = 0

    def __call__(self):
        self._i += 1
        return jax.random.fold_in(self._key, self._i)


def _dense(key, d_in, d_out, scale=0.02):
    return jax.random.normal(key, (d_in, d_out), jnp.float32) * scale


def _zeros(n):
    return jnp.zeros((1, n), jnp.float32)


def _ones(n):
    return jnp.ones((1, n), jnp.float32)


def _stack(layer_dicts):
    return {k: jnp.stack([d[k] for d in layer_dicts]) for k in layer_dicts[0]}


def make_params(key, input_dim, output_dim, d_model, dff, n_enc, n_dec):
    kg = _KeyGen(key)

    def enc_layer():
        return dict(
            wq=_dense(kg(), d_model, d_model), bq=_zeros(d_model),
            wk=_dense(kg(), d_model, d_model), bk=_zeros(d_model),
            wv=_dense(kg(), d_model, d_model), bv=_zeros(d_model),
            wo=_dense(kg(), d_model, d_model), bo=_zeros(d_model),
            g1=_ones(d_model), c1=_zeros(d_model),
            w1=_dense(kg(), d_model, dff), b1=_zeros(dff),
            w2=_dense(kg(), dff, d_model), b2=_zeros(d_model),
            g2=_ones(d_model), c2=_zeros(d_model))

    def dec_layer():
        return dict(
            wq=_dense(kg(), d_model, d_model), bq=_zeros(d_model),
            wk=_dense(kg(), d_model, d_model), bk=_zeros(d_model),
            wv=_dense(kg(), d_model, d_model), bv=_zeros(d_model),
            wo=_dense(kg(), d_model, d_model), bo=_zeros(d_model),
            g1=_ones(d_model), c1=_zeros(d_model),
            wq_c=_dense(kg(), d_model, d_model), bq_c=_zeros(d_model),
            wk_c=_dense(kg(), d_model, d_model), bk_c=_zeros(d_model),
            wv_c=_dense(kg(), d_model, d_model), bv_c=_zeros(d_model),
            wo_c=_dense(kg(), d_model, d_model), bo_c=_zeros(d_model),
            g2=_ones(d_model), c2=_zeros(d_model),
            w1=_dense(kg(), d_model, dff), b1=_zeros(dff),
            w2=_dense(kg(), dff, d_model), b2=_zeros(d_model),
            g3=_ones(d_model), c3=_zeros(d_model))

    return dict(
        input_w=_dense(kg(), input_dim, d_model), input_b=_zeros(d_model),
        output_w=_dense(kg(), d_model, output_dim), output_b=_zeros(output_dim),
        enc=_stack([enc_layer() for _ in range(n_enc)]),
        dec=_stack([dec_layer() for _ in range(n_dec)]),
        enc_norm_g=_ones(d_model), enc_norm_c=_zeros(d_model),
        dec_norm_g=_ones(d_model), dec_norm_c=_zeros(d_model),
    )


# ----------------------- pure-JAX reference (correctness) ------------------

def _ref_forward(params, src, tgt, *, num_heads):
    hp = lax.Precision.HIGHEST

    def proj(x, w, b):
        return jnp.dot(x, w, precision=hp) + b

    def ln(x, g, b, eps=1e-5):
        mu = jnp.mean(x, axis=-1, keepdims=True)
        var = jnp.mean(jnp.square(x - mu), axis=-1, keepdims=True)
        return (x - mu) / jnp.sqrt(var + eps) * g + b

    def mha(q, k, v, wo, bo):
        Bq, Tq, D = q.shape
        H = num_heads
        hd = D // H
        qh = q.reshape(Bq, Tq, H, hd).transpose(0, 2, 1, 3)
        kh = k.reshape(Bq, -1, H, hd).transpose(0, 2, 1, 3)
        vh = v.reshape(Bq, -1, H, hd).transpose(0, 2, 1, 3)
        s = jnp.einsum("bhqd,bhkd->bhqk", qh, kh, precision=hp) / jnp.sqrt(float(hd))
        p = jax.nn.softmax(s, axis=-1)
        o = jnp.einsum("bhqk,bhkd->bhqd", p, vh, precision=hp)
        o = o.transpose(0, 2, 1, 3).reshape(Bq, Tq, D)
        return jnp.einsum("bqd,de->bqe", o, wo, precision=hp) + bo

    src_b = jnp.transpose(src, (1, 0, 2))
    tgt_b = jnp.transpose(tgt, (1, 0, 2))
    mem = proj(src_b, params["input_w"], params["input_b"])
    out = proj(tgt_b, params["input_w"], params["input_b"])

    enc = params["enc"]
    for l in range(enc["wq"].shape[0]):
        q = proj(mem, enc["wq"][l], enc["bq"][l])
        k = proj(mem, enc["wk"][l], enc["bk"][l])
        v = proj(mem, enc["wv"][l], enc["bv"][l])
        a = mha(q, k, v, enc["wo"][l], enc["bo"][l])
        y = ln(mem + a, enc["g1"][l], enc["c1"][l])
        h = jax.nn.relu(proj(y, enc["w1"][l], enc["b1"][l]))
        f = proj(h, enc["w2"][l], enc["b2"][l])
        mem = ln(y + f, enc["g2"][l], enc["c2"][l])
    mem = ln(mem, params["enc_norm_g"], params["enc_norm_c"])

    dec = params["dec"]
    for l in range(dec["wq"].shape[0]):
        q = proj(out, dec["wq"][l], dec["bq"][l])
        k = proj(out, dec["wk"][l], dec["bk"][l])
        v = proj(out, dec["wv"][l], dec["bv"][l])
        a = mha(q, k, v, dec["wo"][l], dec["bo"][l])
        y = ln(out + a, dec["g1"][l], dec["c1"][l])
        qc = proj(y, dec["wq_c"][l], dec["bq_c"][l])
        kc = proj(mem, dec["wk_c"][l], dec["bk_c"][l])
        vc = proj(mem, dec["wv_c"][l], dec["bv_c"][l])
        a = mha(qc, kc, vc, dec["wo_c"][l], dec["bo_c"][l])
        y = ln(y + a, dec["g2"][l], dec["c2"][l])
        h = jax.nn.relu(proj(y, dec["w1"][l], dec["b1"][l]))
        f = proj(h, dec["w2"][l], dec["b2"][l])
        out = ln(y + f, dec["g3"][l], dec["c3"][l])
    out = ln(out, params["dec_norm_g"], params["dec_norm_c"])
    out = proj(out, params["output_w"], params["output_b"])
    return jnp.transpose(out, (1, 0, 2))


# --------------------------------- main ------------------------------------

if __name__ == "__main__":
    INPUT_DIM = 32
    OUTPUT_DIM = 16
    D_MODEL = 32
    N_HEADS = 4
    N_ENC = 2
    N_DEC = 2
    DFF = 64            # TODO(synk): PyTorch default dim_feedforward=2048; kept small here.
    S, T, B = 8, 16, 2  # src seq, tgt seq, batch (seq-first like the PyTorch spec)

    key = jax.random.PRNGKey(0)
    kp, ks, kt = jax.random.split(key, 3)
    params = make_params(kp, INPUT_DIM, OUTPUT_DIM, D_MODEL, DFF, N_ENC, N_DEC)
    src = jax.random.uniform(ks, (S, B, INPUT_DIM), jnp.float32)
    tgt = jax.random.uniform(kt, (T, B, INPUT_DIM), jnp.float32)

    out = simple_transformer_forward(params, src, tgt, num_heads=N_HEADS)
    out = jax.block_until_ready(out)
    assert out.shape == (T, B, OUTPUT_DIM), out.shape
    assert bool(jnp.all(jnp.isfinite(out)))

    ref = _ref_forward(params, src, tgt, num_heads=N_HEADS)
    max_err = float(jnp.max(jnp.abs(out - ref)))
    assert max_err < 1e-2, f"max abs err vs reference: {max_err}"

    print("KERNEL_OK")
</pallas_src>

<mosaic_0001>
module attributes {stable_mosaic.version = 11 : i64} {
  func.func @kernel(%arg0: i32, %arg1: memref<1x8x32xf32, #tpu.memory_space<vmem>>, %arg2: memref<1x16x32xf32, #tpu.memory_space<vmem>>, %arg3: memref<32x32xf32, #tpu.memory_space<vmem>>, %arg4: memref<1x32xf32, #tpu.memory_space<vmem>>, %arg5: memref<2x32x32xf32, #tpu.memory_space<vmem>>, %arg6: memref<2x1x32xf32, #tpu.memory_space<vmem>>, %arg7: memref<2x32x32xf32, #tpu.memory_space<vmem>>, %arg8: memref<2x1x32xf32, #tpu.memory_space<vmem>>, %arg9: memref<2x32x32xf32, #tpu.memory_space<vmem>>, %arg10: memref<2x1x32xf32, #tpu.memory_space<vmem>>, %arg11: memref<2x32x32xf32, #tpu.memory_space<vmem>>, %arg12: memref<2x1x32xf32, #tpu.memory_space<vmem>>, %arg13: memref<2x1x32xf32, #tpu.memory_space<vmem>>, %arg14: memref<2x1x32xf32, #tpu.memory_space<vmem>>, %arg15: memref<2x32x64xf32, #tpu.memory_space<vmem>>, %arg16: memref<2x1x64xf32, #tpu.memory_space<vmem>>, %arg17: memref<2x64x32xf32, #tpu.memory_space<vmem>>, %arg18: memref<2x1x32xf32, #tpu.memory_space<vmem>>, %arg19: memref<2x1x32xf32, #tpu.memory_space<vmem>>, %arg20: memref<2x1x32xf32, #tpu.memory_space<vmem>>, %arg21: memref<1x32xf32, #tpu.memory_space<vmem>>, %arg22: memref<1x32xf32, #tpu.memory_space<vmem>>, %arg23: memref<2x32x32xf32, #tpu.memory_space<vmem>>, %arg24: memref<2x1x32xf32, #tpu.memory_space<vmem>>, %arg25: memref<2x32x32xf32, #tpu.memory_space<vmem>>, %arg26: memref<2x1x32xf32, #tpu.memory_space<vmem>>, %arg27: memref<2x32x32xf32, #tpu.memory_space<vmem>>, %arg28: memref<2x1x32xf32, #tpu.memory_space<vmem>>, %arg29: memref<2x32x32xf32, #tpu.memory_space<vmem>>, %arg30: memref<2x1x32xf32, #tpu.memory_space<vmem>>, %arg31: memref<2x1x32xf32, #tpu.memory_space<vmem>>, %arg32: memref<2x1x32xf32, #tpu.memory_space<vmem>>, %arg33: memref<2x32x32xf32, #tpu.memory_space<vmem>>, %arg34: memref<2x1x32xf32, #tpu.memory_space<vmem>>, %arg35: memref<2x32x32xf32, #tpu.memory_space<vmem>>, %arg36: memref<2x1x32xf32, #tpu.memory_space<vmem>>, %arg37: memref<2x32x32xf32, #tpu.memory_space<vmem>>, %arg38: memref<2x1x32xf32, #tpu.memory_space<vmem>>, %arg39: memref<2x32x32xf32, #tpu.memory_space<vmem>>, %arg40: memref<2x1x32xf32, #tpu.memory_space<vmem>>, %arg41: memref<2x1x32xf32, #tpu.memory_space<vmem>>, %arg42: memref<2x1x32xf32, #tpu.memory_space<vmem>>, %arg43: memref<2x32x64xf32, #tpu.memory_space<vmem>>, %arg44: memref<2x1x64xf32, #tpu.memory_space<vmem>>, %arg45: memref<2x64x32xf32, #tpu.memory_space<vmem>>, %arg46: memref<2x1x32xf32, #tpu.memory_space<vmem>>, %arg47: memref<2x1x32xf32, #tpu.memory_space<vmem>>, %arg48: memref<2x1x32xf32, #tpu.memory_space<vmem>>, %arg49: memref<1x32xf32, #tpu.memory_space<vmem>>, %arg50: memref<1x32xf32, #tpu.memory_space<vmem>>, %arg51: memref<32x128xf32, #tpu.memory_space<vmem>>, %arg52: memref<1x128xf32, #tpu.memory_space<vmem>>, %arg53: memref<1x16x128xf32, #tpu.memory_space<vmem>>) attributes {dimension_semantics = [#tpu.dimension_semantics<parallel>], iteration_bounds = array<i64: 2>, scalar_prefetch = 0 : i64, scratch_operands = 0 : i64, tpu.core_type = #tpu.core_type<tc>, window_params = [{transform_indices = @transform_0, window_bounds = array<i64: 1, 8, 32>}, {transform_indices = @transform_1, window_bounds = array<i64: 1, 16, 32>}, {pipeline_mode = #tpu.pipeline_mode<synchronous>, transform_indices = @transform_2, window_bounds = array<i64: 32, 32>}, {pipeline_mode = #tpu.pipeline_mode<synchronous>, transform_indices = @transform_3, window_bounds = array<i64: 1, 32>}, {pipeline_mode = #tpu.pipeline_mode<synchronous>, transform_indices = @transform_4, window_bounds = array<i64: 2, 32, 32>}, {pipeline_mode = #tpu.pipeline_mode<synchronous>, transform_indices = @transform_5, window_bounds = array<i64: 2, 1, 32>}, {pipeline_mode = #tpu.pipeline_mode<synchronous>, transform_indices = @transform_6, window_bounds = array<i64: 2, 32, 32>}, {pipeline_mode = #tpu.pipeline_mode<synchronous>, transform_indices = @transform_7, window_bounds = array<i64: 2, 1, 32>}, {pipeline_mode = #tpu.pipeline_mode<synchronous>, transform_indices = @transform_8, window_bounds = array<i64: 2, 32, 32>}, {pipeline_mode = #tpu.pipeline_mode<synchronous>, transform_indices = @transform_9, window_bounds = array<i64: 2, 1, 32>}, {pipeline_mode = #tpu.pipeline_mode<synchronous>, transform_indices = @transform_10, window_bounds = array<i64: 2, 32, 32>}, {pipeline_mode = #tpu.pipeline_mode<synchronous>, transform_indices = @transform_11, window_bounds = array<i64: 2, 1, 32>}, {pipeline_mode = #tpu.pipeline_mode<synchronous>, transform_indices = @transform_12, window_bounds = array<i64: 2, 1, 32>}, {pipeline_mode = #tpu.pipeline_mode<synchronous>, transform_indices = @transform_13, window_bounds = array<i64: 2, 1, 32>}, {pipeline_mode = #tpu.pipeline_mode<synchronous>, transform_indices = @transform_14, window_bounds = array<i64: 2, 32, 64>}, {pipeline_mode = #tpu.pipeline_mode<synchronous>, transform_indices = @transform_15, window_bounds = array<i64: 2, 1, 64>}, {pipeline_mode = #tpu.pipeline_mode<synchronous>, transform_indices = @transform_16, window_bounds = array<i64: 2, 64, 32>}, {pipeline_mode = #tpu.pipeline_mode<synchronous>, transform_indices = @transform_17, window_bounds = array<i64: 2, 1, 32>}, {pipeline_mode = #tpu.pipeline_mode<synchronous>, transform_indices = @transform_18, window_bounds = array<i64: 2, 1, 32>}, {pipeline_mode = #tpu.pipeline_mode<synchronous>, transform_indices = @transform_19, window_bounds = array<i64: 2, 1, 32>}, {pipeline_mode = #tpu.pipeline_mode<synchronous>, transform_indices = @transform_20, window_bounds = array<i64: 1, 32>}, {pipeline_mode = #tpu.pipeline_mode<synchronous>, transform_indices = @transform_21, window_bounds = array<i64: 1, 32>}, {pipeline_mode = #tpu.pipeline_mode<synchronous>, transform_indices = @transform_22, window_bounds = array<i64: 2, 32, 32>}, {pipeline_mode = #tpu.pipeline_mode<synchronous>, transform_indices = @transform_23, window_bounds = array<i64: 2, 1, 32>}, {pipeline_mode = #tpu.pipeline_mode<synchronous>, transform_indices = @transform_24, window_bounds = array<i64: 2, 32, 32>}, {pipeline_mode = #tpu.pipeline_mode<synchronous>, transform_indices = @transform_25, window_bounds = array<i64: 2, 1, 32>}, {pipeline_mode = #tpu.pipeline_mode<synchronous>, transform_indices = @transform_26, window_bounds = array<i64: 2, 32, 32>}, {pipeline_mode = #tpu.pipeline_mode<synchronous>, transform_indices = @transform_27, window_bounds = array<i64: 2, 1, 32>}, {pipeline_mode = #tpu.pipeline_mode<synchronous>, transform_indices = @transform_28, window_bounds = array<i64: 2, 32, 32>}, {pipeline_mode = #tpu.pipeline_mode<synchronous>, transform_indices = @transform_29, window_bounds = array<i64: 2, 1, 32>}, {pipeline_mode = #tpu.pipeline_mode<synchronous>, transform_indices = @transform_30, window_bounds = array<i64: 2, 1, 32>}, {pipeline_mode = #tpu.pipeline_mode<synchronous>, transform_indices = @transform_31, window_bounds = array<i64: 2, 1, 32>}, {pipeline_mode = #tpu.pipeline_mode<synchronous>, transform_indices = @transform_32, window_bounds = array<i64: 2, 32, 32>}, {pipeline_mode = #tpu.pipeline_mode<synchronous>, transform_indices = @transform_33, window_bounds = array<i64: 2, 1, 32>}, {pipeline_mode = #tpu.pipeline_mode<synchronous>, transform_indices = @transform_34, window_bounds = array<i64: 2, 32, 32>}, {pipeline_mode = #tpu.pipeline_mode<synchronous>, transform_indices = @transform_35, window_bounds = array<i64: 2, 1, 32>}, {pipeline_mode = #tpu.pipeline_mode<synchronous>, transform_indices = @transform_36, window_bounds = array<i64: 2, 32, 32>}, {pipeline_mode = #tpu.pipeline_mode<synchronous>, transform_indices = @transform_37, window_bounds = array<i64: 2, 1, 32>}, {pipeline_mode = #tpu.pipeline_mode<synchronous>, transform_indices = @transform_38, window_bounds = array<i64: 2, 32, 32>}, {pipeline_mode = #tpu.pipeline_mode<synchronous>, transform_indices = @transform_39, window_bounds = array<i64: 2, 1, 32>}, {pipeline_mode = #tpu.pipeline_mode<synchronous>, transform_indices = @transform_40, window_bounds = array<i64: 2, 1, 32>}, {pipeline_mode = #tpu.pipeline_mode<synchronous>, transform_indices = @transform_41, window_bounds = array<i64: 2, 1, 32>}, {pipeline_mode = #tpu.pipeline_mode<synchronous>, transform_indices = @transform_42, window_bounds = array<i64: 2, 32, 64>}, {pipeline_mode = #tpu.pipeline_mode<synchronous>, transform_indices = @transform_43, window_bounds = array<i64: 2, 1, 64>}, {pipeline_mode = #tpu.pipeline_mode<synchronous>, transform_indices = @transform_44, window_bounds = array<i64: 2, 64, 32>}, {pipeline_mode = #tpu.pipeline_mode<synchronous>, transform_indices = @transform_45, window_bounds = array<i64: 2, 1, 32>}, {pipeline_mode = #tpu.pipeline_mode<synchronous>, transform_indices = @transform_46, window_bounds = array<i64: 2, 1, 32>}, {pipeline_mode = #tpu.pipeline_mode<synchronous>, transform_indices = @transform_47, window_bounds = array<i64: 2, 1, 32>}, {pipeline_mode = #tpu.pipeline_mode<synchronous>, transform_indices = @transform_48, window_bounds = array<i64: 1, 32>}, {pipeline_mode = #tpu.pipeline_mode<synchronous>, transform_indices = @transform_49, window_bounds = array<i64: 1, 32>}, {pipeline_mode = #tpu.pipeline_mode<synchronous>, transform_indices = @transform_50, window_bounds = array<i64: 32, 128>}, {pipeline_mode = #tpu.pipeline_mode<synchronous>, transform_indices = @transform_51, window_bounds = array<i64: 1, 128>}, {transform_indices = @transform_52, window_bounds = array<i64: 1, 16, 128>}]} {
    %c0 = arith.constant 0 : index
    %c0_0 = arith.constant 0 : index
    %0 = vector.load %arg3[%c0, %c0_0] : memref<32x32xf32, #tpu.memory_space<vmem>>, vector<32x32xf32>
    %c0_1 = arith.constant 0 : index
    %c0_2 = arith.constant 0 : index
    %1 = vector.load %arg4[%c0_1, %c0_2] : memref<1x32xf32, #tpu.memory_space<vmem>>, vector<1x32xf32>
    %c0_3 = arith.constant 0 : index
    %c0_4 = arith.constant 0 : index
    %c0_5 = arith.constant 0 : index
    %2 = vector.load %arg1[%c0_3, %c0_4, %c0_5] : memref<1x8x32xf32, #tpu.memory_space<vmem>>, vector<1x8x32xf32>
    %3 = vector.shape_cast %2 : vector<1x8x32xf32> to vector<8x32xf32>
    %cst = arith.constant dense<0.000000e+00> : vector<8x32xf32>
    %4 = tpu.matmul %3, %0, %cst {dimension_numbers = #tpu.dot_dimension_numbers<[1], [0], [0], [1], [0, 0, 1, 1], [], []>} : vector<8x32xf32>, vector<32x32xf32>, vector<8x32xf32> -> vector<8x32xf32>
    %5 = vector.broadcast %1 : vector<1x32xf32> to vector<8x32xf32>
    %6 = arith.addf %4, %5 : vector<8x32xf32>
    %c0_6 = arith.constant 0 : index
    %c0_7 = arith.constant 0 : index
    %c0_8 = arith.constant 0 : index
    %7 = vector.load %arg2[%c0_6, %c0_7, %c0_8] : memref<1x16x32xf32, #tpu.memory_space<vmem>>, vector<1x16x32xf32>
    %8 = vector.shape_cast %7 : vector<1x16x32xf32> to vector<16x32xf32>
    %cst_9 = arith.constant dense<0.000000e+00> : vector<16x32xf32>
    %9 = tpu.matmul %8, %0, %cst_9 {dimension_numbers = #tpu.dot_dimension_numbers<[1], [0], [0], [1], [0, 0, 1, 1], [], []>} : vector<16x32xf32>, vector<32x32xf32>, vector<16x32xf32> -> vector<16x32xf32>
    %10 = vector.broadcast %1 : vector<1x32xf32> to vector<16x32xf32>
    %11 = arith.addf %9, %10 : vector<16x32xf32>
    %c0_10 = arith.constant 0 : index
    %c0_11 = arith.constant 0 : index
    %c0_12 = arith.constant 0 : index
    %12 = vector.load %arg5[%c0_10, %c0_11, %c0_12] : memref<2x32x32xf32, #tpu.memory_space<vmem>>, vector<1x32x32xf32>
    %13 = vector.shape_cast %12 : vector<1x32x32xf32> to vector<32x32xf32>
    %c0_13 = arith.constant 0 : index
    %c0_14 = arith.constant 0 : index
    %c0_15 = arith.constant 0 : index
    %14 = vector.load %arg6[%c0_13, %c0_14, %c0_15] : memref<2x1x32xf32, #tpu.memory_space<vmem>>, vector<1x1x32xf32>
    %15 = vector.shape_cast %14 : vector<1x1x32xf32> to vector<1x32xf32>
    %cst_16 = arith.constant dense<0.000000e+00> : vector<8x32xf32>
    %16 = tpu.matmul %6, %13, %cst_16 {dimension_numbers = #tpu.dot_dimension_numbers<[1], [0], [0], [1], [0, 0, 1, 1], [], []>} : vector<8x32xf32>, vector<32x32xf32>, vector<8x32xf32> -> vector<8x32xf32>
    %17 = vector.broadcast %15 : vector<1x32xf32> to vector<8x32xf32>
    %18 = arith.addf %16, %17 : vector<8x32xf32>
    %c0_17 = arith.constant 0 : index
    %c0_18 = arith.constant 0 : index
    %c0_19 = arith.constant 0 : index
    %19 = vector.load %arg7[%c0_17, %c0_18, %c0_19] : memref<2x32x32xf32, #tpu.memory_space<vmem>>, vector<1x32x32xf32>
    %20 = vector.shape_cast %19 : vector<1x32x32xf32> to vector<32x32xf32>
    %c0_20 = arith.constant 0 : index
    %c0_21 = arith.constant 0 : index
    %c0_22 = arith.constant 0 : index
    %21 = vector.load %arg8[%c0_20, %c0_21, %c0_22] : memref<2x1x32xf32, #tpu.memory_space<vmem>>, vector<1x1x32xf32>
    %22 = vector.shape_cast %21 : vector<1x1x32xf32> to vector<1x32xf32>
    %cst_23 = arith.constant dense<0.000000e+00> : vector<8x32xf32>
    %23 = tpu.matmul %6, %20, %cst_23 {dimension_numbers = #tpu.dot_dimension_numbers<[1], [0], [0], [1], [0, 0, 1, 1], [], []>} : vector<8x32xf32>, vector<32x32xf32>, vector<8x32xf32> -> vector<8x32xf32>
    %24 = vector.broadcast %22 : vector<1x32xf32> to vector<8x32xf32>
    %25 = arith.addf %23, %24 : vector<8x32xf32>
    %c0_24 = arith.constant 0 : index
    %c0_25 = arith.constant 0 : index
    %c0_26 = arith.constant 0 : index
    %26 = vector.load %arg9[%c0_24, %c0_25, %c0_26] : memref<2x32x32xf32, #tpu.memory_space<vmem>>, vector<1x32x32xf32>
    %27 = vector.shape_cast %26 : vector<1x32x32xf32> to vector<32x32xf32>
    %c0_27 = arith.constant 0 : index
    %c0_28 = arith.constant 0 : index
    %c0_29 = arith.constant 0 : index
    %28 = vector.load %arg10[%c0_27, %c0_28, %c0_29] : memref<2x1x32xf32, #tpu.memory_space<vmem>>, vector<1x1x32xf32>
    %29 = vector.shape_cast %28 : vector<1x1x32xf32> to vector<1x32xf32>
    %cst_30 = arith.constant dense<0.000000e+00> : vector<8x32xf32>
    %30 = tpu.matmul %6, %27, %cst_30 {dimension_numbers = #tpu.dot_dimension_numbers<[1], [0], [0], [1], [0, 0, 1, 1], [], []>} : vector<8x32xf32>, vector<32x32xf32>, vector<8x32xf32> -> vector<8x32xf32>
    %31 = vector.broadcast %29 : vector<1x32xf32> to vector<8x32xf32>
    %32 = arith.addf %30, %31 : vector<8x32xf32>
    %c0_31 = arith.constant 0 : index
    %c0_32 = arith.constant 0 : index
    %c0_33 = arith.constant 0 : index
    %33 = vector.load %arg11[%c0_31, %c0_32, %c0_33] : memref<2x32x32xf32, #tpu.memory_space<vmem>>, vector<1x32x32xf32>
    %34 = vector.shape_cast %33 : vector<1x32x32xf32> to vector<32x32xf32>
    %c0_34 = arith.constant 0 : index
    %c0_35 = arith.constant 0 : index
    %c0_36 = arith.constant 0 : index
    %35 = vector.load %arg12[%c0_34, %c0_35, %c0_36] : memref<2x1x32xf32, #tpu.memory_space<vmem>>, vector<1x1x32xf32>
    %36 = vector.shape_cast %35 : vector<1x1x32xf32> to vector<1x32xf32>
    %37 = vector.extract_strided_slice %18 {offsets = [0, 0], sizes = [8, 8], strides = [1, 1]} : vector<8x32xf32> to vector<8x8xf32>
    %38 = vector.extract_strided_slice %25 {offsets = [0, 0], sizes = [8, 8], strides = [1, 1]} : vector<8x32xf32> to vector<8x8xf32>
    %39 = vector.extract_strided_slice %32 {offsets = [0, 0], sizes = [8, 8], strides = [1, 1]} : vector<8x32xf32> to vector<8x8xf32>
    %cst_37 = arith.constant dense<0.000000e+00> : vector<8x8xf32>
    %40 = tpu.matmul %37, %38, %cst_37 {dimension_numbers = #tpu.dot_dimension_numbers<[1], [1], [0], [0], [0, 0, 1, 0], [], []>} : vector<8x8xf32>, vector<8x8xf32>, vector<8x8xf32> -> vector<8x8xf32>
    %cst_38 = arith.constant 0.353553385 : f32
    %41 = vector.broadcast %cst_38 : f32 to vector<8x8xf32>
    %42 = arith.mulf %40, %41 : vector<8x8xf32>
    %cst_39 = arith.constant dense<0xFF800000> : vector<8xf32>
    %43 = vector.multi_reduction <maximumf>, %42, %cst_39 [1] : vector<8x8xf32> to vector<8xf32>
    %44 = vector.shape_cast %43 : vector<8xf32> to vector<8x1xf32>
    %45 = vector.broadcast %44 : vector<8x1xf32> to vector<8x8xf32>
    %46 = arith.subf %42, %45 : vector<8x8xf32>
    %47 = math.exp %46 : vector<8x8xf32>
    %cst_40 = arith.constant dense<0.000000e+00> : vector<8xf32>
    %48 = vector.multi_reduction <add>, %47, %cst_40 [1] : vector<8x8xf32> to vector<8xf32>
    %49 = vector.shape_cast %48 : vector<8xf32> to vector<8x1xf32>
    %50 = vector.broadcast %49 : vector<8x1xf32> to vector<8x8xf32>
    %51 = arith.divf %47, %50 : vector<8x8xf32>
    %cst_41 = arith.constant dense<0.000000e+00> : vector<8x8xf32>
    %52 = tpu.matmul %51, %39, %cst_41 {dimension_numbers = #tpu.dot_dimension_numbers<[1], [0], [0], [1], [0, 0, 1, 1], [], []>} : vector<8x8xf32>, vector<8x8xf32>, vector<8x8xf32> -> vector<8x8xf32>
    %53 = vector.extract_strided_slice %18 {offsets = [0, 8], sizes = [8, 8], strides = [1, 1]} : vector<8x32xf32> to vector<8x8xf32>
    %54 = vector.extract_strided_slice %25 {offsets = [0, 8], sizes = [8, 8], strides = [1, 1]} : vector<8x32xf32> to vector<8x8xf32>
    %55 = vector.extract_strided_slice %32 {offsets = [0, 8], sizes = [8, 8], strides = [1, 1]} : vector<8x32xf32> to vector<8x8xf32>
    %cst_42 = arith.constant dense<0.000000e+00> : vector<8x8xf32>
    %56 = tpu.matmul %53, %54, %cst_42 {dimension_numbers = #tpu.dot_dimension_numbers<[1], [1], [0], [0], [0, 0, 1, 0], [], []>} : vector<8x8xf32>, vector<8x8xf32>, vector<8x8xf32> -> vector<8x8xf32>
    %cst_43 = arith.constant 0.353553385 : f32
    %57 = vector.broadcast %cst_43 : f32 to vector<8x8xf32>
    %58 = arith.mulf %56, %57 : vector<8x8xf32>
    %cst_44 = arith.constant dense<0xFF800000> : vector<8xf32>
    %59 = vector.multi_reduction <maximumf>, %58, %cst_44 [1] : vector<8x8xf32> to vector<8xf32>
    %60 = vector.shape_cast %59 : vector<8xf32> to vector<8x1xf32>
    %61 = vector.broadcast %60 : vector<8x1xf32> to vector<8x8xf32>
    %62 = arith.subf %58, %61 : vector<8x8xf32>
    %63 = math.exp %62 : vector<8x8xf32>
    %cst_45 = arith.constant dense<0.000000e+00> : vector<8xf32>
    %64 = vector.multi_reduction <add>, %63, %cst_45 [1] : vector<8x8xf32> to vector<8xf32>
    %65 = vector.shape_cast %64 : vector<8xf32> to vector<8x1xf32>
    %66 = vector.broadcast %65 : vector<8x1xf32> to vector<8x8xf32>
    %67 = arith.divf %63, %66 : vector<8x8xf32>
    %cst_46 = arith.constant dense<0.000000e+00> : vector<8x8xf32>
    %68 = tpu.matmul %67, %55, %cst_46 {dimension_numbers = #tpu.dot_dimension_numbers<[1], [0], [0], [1], [0, 0, 1, 1], [], []>} : vector<8x8xf32>, vector<8x8xf32>, vector<8x8xf32> -> vector<8x8xf32>
    %69 = vector.extract_strided_slice %18 {offsets = [0, 16], sizes = [8, 8], strides = [1, 1]} : vector<8x32xf32> to vector<8x8xf32>
    %70 = vector.extract_strided_slice %25 {offsets = [0, 16], sizes = [8, 8], strides = [1, 1]} : vector<8x32xf32> to vector<8x8xf32>
    %71 = vector.extract_strided_slice %32 {offsets = [0, 16], sizes = [8, 8], strides = [1, 1]} : vector<8x32xf32> to vector<8x8xf32>
    %cst_47 = arith.constant dense<0.000000e+00> : vector<8x8xf32>
    %72 = tpu.matmul %69, %70, %cst_47 {dimension_numbers = #tpu.dot_dimension_numbers<[1], [1], [0], [0], [0, 0, 1, 0], [], []>} : vector<8x8xf32>, vector<8x8xf32>, vector<8x8xf32> -> vector<8x8xf32>
    %cst_48 = arith.constant 0.353553385 : f32
    %73 = vector.broadcast %cst_48 : f32 to vector<8x8xf32>
    %74 = arith.mulf %72, %73 : vector<8x8xf32>
    %cst_49 = arith.constant dense<0xFF800000> : vector<8xf32>
    %75 = vector.multi_reduction <maximumf>, %74, %cst_49 [1] : vector<8x8xf32> to vector<8xf32>
    %76 = vector.shape_cast %75 : vector<8xf32> to vector<8x1xf32>
    %77 = vector.broadcast %76 : vector<8x1xf32> to vector<8x8xf32>
    %78 = arith.subf %74, %77 : vector<8x8xf32>
    %79 = math.exp %78 : vector<8x8xf32>
    %cst_50 = arith.constant dense<0.000000e+00> : vector<8xf32>
    %80 = vector.multi_reduction <add>, %79, %cst_50 [1] : vector<8x8xf32> to vector<8xf32>
    %81 = vector.shape_cast %80 : vector<8xf32> to vector<8x1xf32>
    %82 = vector.broadcast %81 : vector<8x1xf32> to vector<8x8xf32>
    %83 = arith.divf %79, %82 : vector<8x8xf32>
    %cst_51 = arith.constant dense<0.000000e+00> : vector<8x8xf32>
    %84 = tpu.matmul %83, %71, %cst_51 {dimension_numbers = #tpu.dot_dimension_numbers<[1], [0], [0], [1], [0, 0, 1, 1], [], []>} : vector<8x8xf32>, vector<8x8xf32>, vector<8x8xf32> -> vector<8x8xf32>
    %85 = vector.extract_strided_slice %18 {offsets = [0, 24], sizes = [8, 8], strides = [1, 1]} : vector<8x32xf32> to vector<8x8xf32>
    %86 = vector.extract_strided_slice %25 {offsets = [0, 24], sizes = [8, 8], strides = [1, 1]} : vector<8x32xf32> to vector<8x8xf32>
    %87 = vector.extract_strided_slice %32 {offsets = [0, 24], sizes = [8, 8], strides = [1, 1]} : vector<8x32xf32> to vector<8x8xf32>
    %cst_52 = arith.constant dense<0.000000e+00> : vector<8x8xf32>
    %88 = tpu.matmul %85, %86, %cst_52 {dimension_numbers = #tpu.dot_dimension_numbers<[1], [1], [0], [0], [0, 0, 1, 0], [], []>} : vector<8x8xf32>, vector<8x8xf32>, vector<8x8xf32> -> vector<8x8xf32>
    %cst_53 = arith.constant 0.353553385 : f32
    %89 = vector.broadcast %cst_53 : f32 to vector<8x8xf32>
    %90 = arith.mulf %88, %89 : vector<8x8xf32>
    %cst_54 = arith.constant dense<0xFF800000> : vector<8xf32>
    %91 = vector.multi_reduction <maximumf>, %90, %cst_54 [1] : vector<8x8xf32> to vector<8xf32>
    %92 = vector.shape_cast %91 : vector<8xf32> to vector<8x1xf32>
    %93 = vector.broadcast %92 : vector<8x1xf32> to vector<8x8xf32>
    %94 = arith.subf %90, %93 : vector<8x8xf32>
    %95 = math.exp %94 : vector<8x8xf32>
    %cst_55 = arith.constant dense<0.000000e+00> : vector<8xf32>
    %96 = vector.multi_reduction <add>, %95, %cst_55 [1] : vector<8x8xf32> to vector<8xf32>
    %97 = vector.shape_cast %96 : vector<8xf32> to vector<8x1xf32>
    %98 = vector.broadcast %97 : vector<8x1xf32> to vector<8x8xf32>
    %99 = arith.divf %95, %98 : vector<8x8xf32>
    %cst_56 = arith.constant dense<0.000000e+00> : vector<8x8xf32>
    %100 = tpu.matmul %99, %87, %cst_56 {dimension_numbers = #tpu.dot_dimension_numbers<[1], [0], [0], [1], [0, 0, 1, 1], [], []>} : vector<8x8xf32>, vector<8x8xf32>, vector<8x8xf32> -> vector<8x8xf32>
    %101 = tpu.concatenate %52, %68, %84, %100 in 1 : vector<8x8xf32>, vector<8x8xf32>, vector<8x8xf32>, vector<8x8xf32> -> vector<8x32xf32>
    %cst_57 = arith.constant dense<0.000000e+00> : vector<8x32xf32>
    %102 = tpu.matmul %101, %34, %cst_57 {dimension_numbers = #tpu.dot_dimension_numbers<[1], [0], [0], [1], [0, 0, 1, 1], [], []>} : vector<8x32xf32>, vector<32x32xf32>, vector<8x32xf32> -> vector<8x32xf32>
    %103 = vector.broadcast %36 : vector<1x32xf32> to vector<8x32xf32>
    %104 = arith.addf %102, %103 : vector<8x32xf32>
    %105 = arith.addf %6, %104 : vector<8x32xf32>
    %c0_58 = arith.constant 0 : index
    %c0_59 = arith.constant 0 : index
    %c0_60 = arith.constant 0 : index
    %106 = vector.load %arg13[%c0_58, %c0_59, %c0_60] : memref<2x1x32xf32, #tpu.memory_space<vmem>>, vector<1x1x32xf32>
    %107 = vector.shape_cast %106 : vector<1x1x32xf32> to vector<1x32xf32>
    %c0_61 = arith.constant 0 : index
    %c0_62 = arith.constant 0 : index
    %c0_63 = arith.constant 0 : index
    %108 = vector.load %arg14[%c0_61, %c0_62, %c0_63] : memref<2x1x32xf32, #tpu.memory_space<vmem>>, vector<1x1x32xf32>
    %109 = vector.shape_cast %108 : vector<1x1x32xf32> to vector<1x32xf32>
    %cst_64 = arith.constant dense<0.000000e+00> : vector<8xf32>
    %110 = vector.multi_reduction <add>, %105, %cst_64 [1] : vector<8x32xf32> to vector<8xf32>
    %111 = vector.shape_cast %110 : vector<8xf32> to vector<8x1xf32>
    %cst_65 = arith.constant 3.200000e+01 : f32
    %112 = vector.broadcast %cst_65 : f32 to vector<8x1xf32>
    %113 = arith.divf %111, %112 : vector<8x1xf32>
    %114 = vector.broadcast %113 : vector<8x1xf32> to vector<8x32xf32>
    %115 = arith.subf %105, %114 : vector<8x32xf32>
    %116 = arith.mulf %115, %115 : vector<8x32xf32>
    %cst_66 = arith.constant dense<0.000000e+00> : vector<8xf32>
    %117 = vector.multi_reduction <add>, %116, %cst_66 [1] : vector<8x32xf32> to vector<8xf32>
    %118 = vector.shape_cast %117 : vector<8xf32> to vector<8x1xf32>
    %cst_67 = arith.constant 3.200000e+01 : f32
    %119 = vector.broadcast %cst_67 : f32 to vector<8x1xf32>
    %120 = arith.divf %118, %119 : vector<8x1xf32>
    %121 = vector.broadcast %113 : vector<8x1xf32> to vector<8x32xf32>
    %122 = arith.subf %105, %121 : vector<8x32xf32>
    %cst_68 = arith.constant 9.99999974E-6 : f32
    %123 = vector.broadcast %cst_68 : f32 to vector<8x1xf32>
    %124 = arith.addf %120, %123 : vector<8x1xf32>
    %125 = math.rsqrt %124 : vector<8x1xf32>
    %126 = vector.broadcast %125 : vector<8x1xf32> to vector<8x32xf32>
    %127 = arith.mulf %122, %126 : vector<8x32xf32>
    %128 = vector.broadcast %107 : vector<1x32xf32> to vector<8x32xf32>
    %129 = arith.mulf %127, %128 : vector<8x32xf32>
    %130 = vector.broadcast %109 : vector<1x32xf32> to vector<8x32xf32>
    %131 = arith.addf %129, %130 : vector<8x32xf32>
    %c0_69 = arith.constant 0 : index
    %c0_70 = arith.constant 0 : index
    %c0_71 = arith.constant 0 : index
    %132 = vector.load %arg15[%c0_69, %c0_70, %c0_71] : memref<2x32x64xf32, #tpu.memory_space<vmem>>, vector<1x32x64xf32>
    %133 = vector.shape_cast %132 : vector<1x32x64xf32> to vector<32x64xf32>
    %c0_72 = arith.constant 0 : index
    %c0_73 = arith.constant 0 : index
    %c0_74 = arith.constant 0 : index
    %134 = vector.load %arg16[%c0_72, %c0_73, %c0_74] : memref<2x1x64xf32, #tpu.memory_space<vmem>>, vector<1x1x64xf32>
    %135 = vector.shape_cast %134 : vector<1x1x64xf32> to vector<1x64xf32>
    %cst_75 = arith.constant dense<0.000000e+00> : vector<8x64xf32>
    %136 = tpu.matmul %131, %133, %cst_75 {dimension_numbers = #tpu.dot_dimension_numbers<[1], [0], [0], [1], [0, 0, 1, 1], [], []>} : vector<8x32xf32>, vector<32x64xf32>, vector<8x64xf32> -> vector<8x64xf32>
    %137 = vector.broadcast %135 : vector<1x64xf32> to vector<8x64xf32>
    %138 = arith.addf %136, %137 : vector<8x64xf32>
    %cst_76 = arith.constant 0.000000e+00 : f32
    %139 = vector.broadcast %cst_76 : f32 to vector<8x64xf32>
    %140 = arith.maximumf %138, %139 : vector<8x64xf32>
    %c0_77 = arith.constant 0 : index
    %c0_78 = arith.constant 0 : index
    %c0_79 = arith.constant 0 : index
    %141 = vector.load %arg17[%c0_77, %c0_78, %c0_79] : memref<2x64x32xf32, #tpu.memory_space<vmem>>, vector<1x64x32xf32>
    %142 = vector.shape_cast %141 : vector<1x64x32xf32> to vector<64x32xf32>
    %c0_80 = arith.constant 0 : index
    %c0_81 = arith.constant 0 : index
    %c0_82 = arith.constant 0 : index
    %143 = vector.load %arg18[%c0_80, %c0_81, %c0_82] : memref<2x1x32xf32, #tpu.memory_space<vmem>>, vector<1x1x32xf32>
    %144 = vector.shape_cast %143 : vector<1x1x32xf32> to vector<1x32xf32>
    %cst_83 = arith.constant dense<0.000000e+00> : vector<8x32xf32>
    %145 = tpu.matmul %140, %142, %cst_83 {dimension_numbers = #tpu.dot_dimension_numbers<[1], [0], [0], [1], [0, 0, 1, 1], [], []>} : vector<8x64xf32>, vector<64x32xf32>, vector<8x32xf32> -> vector<8x32xf32>
    %146 = vector.broadcast %144 : vector<1x32xf32> to vector<8x32xf32>
    %147 = arith.addf %145, %146 : vector<8x32xf32>
    %148 = arith.addf %131, %147 : vector<8x32xf32>
    %c0_84 = arith.constant 0 : index
    %c0_85 = arith.constant 0 : index
    %c0_86 = arith.constant 0 : index
    %149 = vector.load %arg19[%c0_84, %c0_85, %c0_86] : memref<2x1x32xf32, #tpu.memory_space<vmem>>, vector<1x1x32xf32>
    %150 = vector.shape_cast %149 : vector<1x1x32xf32> to vector<1x32xf32>
    %c0_87 = arith.constant 0 : index
    %c0_88 = arith.constant 0 : index
    %c0_89 = arith.constant 0 : index
    %151 = vector.load %arg20[%c0_87, %c0_88, %c0_89] : memref<2x1x32xf32, #tpu.memory_space<vmem>>, vector<1x1x32xf32>
    %152 = vector.shape_cast %151 : vector<1x1x32xf32> to vector<1x32xf32>
    %cst_90 = arith.constant dense<0.000000e+00> : vector<8xf32>
    %153 = vector.multi_reduction <add>, %148, %cst_90 [1] : vector<8x32xf32> to vector<8xf32>
    %154 = vector.shape_cast %153 : vector<8xf32> to vector<8x1xf32>
    %cst_91 = arith.constant 3.200000e+01 : f32
    %155 = vector.broadcast %cst_91 : f32 to vector<8x1xf32>
    %156 = arith.divf %154, %155 : vector<8x1xf32>
    %157 = vector.broadcast %156 : vector<8x1xf32> to vector<8x32xf32>
    %158 = arith.subf %148, %157 : vector<8x32xf32>
    %159 = arith.mulf %158, %158 : vector<8x32xf32>
    %cst_92 = arith.constant dense<0.000000e+00> : vector<8xf32>
    %160 = vector.multi_reduction <add>, %159, %cst_92 [1] : vector<8x32xf32> to vector<8xf32>
    %161 = vector.shape_cast %160 : vector<8xf32> to vector<8x1xf32>
    %cst_93 = arith.constant 3.200000e+01 : f32
    %162 = vector.broadcast %cst_93 : f32 to vector<8x1xf32>
    %163 = arith.divf %161, %162 : vector<8x1xf32>
    %164 = vector.broadcast %156 : vector<8x1xf32> to vector<8x32xf32>
    %165 = arith.subf %148, %164 : vector<8x32xf32>
    %cst_94 = arith.constant 9.99999974E-6 : f32
    %166 = vector.broadcast %cst_94 : f32 to vector<8x1xf32>
    %167 = arith.addf %163, %166 : vector<8x1xf32>
    %168 = math.rsqrt %167 : vector<8x1xf32>
    %169 = vector.broadcast %168 : vector<8x1xf32> to vector<8x32xf32>
    %170 = arith.mulf %165, %169 : vector<8x32xf32>
    %171 = vector.broadcast %150 : vector<1x32xf32> to vector<8x32xf32>
    %172 = arith.mulf %170, %171 : vector<8x32xf32>
    %173 = vector.broadcast %152 : vector<1x32xf32> to vector<8x32xf32>
    %174 = arith.addf %172, %173 : vector<8x32xf32>
    %c1 = arith.constant 1 : index
    %c0_95 = arith.constant 0 : index
    %c0_96 = arith.constant 0 : index
    %175 = vector.load %arg5[%c1, %c0_95, %c0_96] : memref<2x32x32xf32, #tpu.memory_space<vmem>>, vector<1x32x32xf32>
    %176 = vector.shape_cast %175 : vector<1x32x32xf32> to vector<32x32xf32>
    %c1_97 = arith.constant 1 : index
    %c0_98 = arith.constant 0 : index
    %c0_99 = arith.constant 0 : index
    %177 = vector.load %arg6[%c1_97, %c0_98, %c0_99] : memref<2x1x32xf32, #tpu.memory_space<vmem>>, vector<1x1x32xf32>
    %178 = vector.shape_cast %177 : vector<1x1x32xf32> to vector<1x32xf32>
    %cst_100 = arith.constant dense<0.000000e+00> : vector<8x32xf32>
    %179 = tpu.matmul %174, %176, %cst_100 {dimension_numbers = #tpu.dot_dimension_numbers<[1], [0], [0], [1], [0, 0, 1, 1], [], []>} : vector<8x32xf32>, vector<32x32xf32>, vector<8x32xf32> -> vector<8x32xf32>
    %180 = vector.broadcast %178 : vector<1x32xf32> to vector<8x32xf32>
    %181 = arith.addf %179, %180 : vector<8x32xf32>
    %c1_101 = arith.constant 1 : index
    %c0_102 = arith.constant 0 : index
    %c0_103 = arith.constant 0 : index
    %182 = vector.load %arg7[%c1_101, %c0_102, %c0_103] : memref<2x32x32xf32, #tpu.memory_space<vmem>>, vector<1x32x32xf32>
    %183 = vector.shape_cast %182 : vector<1x32x32xf32> to vector<32x32xf32>
    %c1_104 = arith.constant 1 : index
    %c0_105 = arith.constant 0 : index
    %c0_106 = arith.constant 0 : index
    %184 = vector.load %arg8[%c1_104, %c0_105, %c0_106] : memref<2x1x32xf32, #tpu.memory_space<vmem>>, vector<1x1x32xf32>
    %185 = vector.shape_cast %184 : vector<1x1x32xf32> to vector<1x32xf32>
    %cst_107 = arith.constant dense<0.000000e+00> : vector<8x32xf32>
    %186 = tpu.matmul %174, %183, %cst_107 {dimension_numbers = #tpu.dot_dimension_numbers<[1], [0], [0], [1], [0, 0, 1, 1], [], []>} : vector<8x32xf32>, vector<32x32xf32>, vector<8x32xf32> -> vector<8x32xf32>
    %187 = vector.broadcast %185 : vector<1x32xf32> to vector<8x32xf32>
    %188 = arith.addf %186, %187 : vector<8x32xf32>
    %c1_108 = arith.constant 1 : index
    %c0_109 = arith.constant 0 : index
    %c0_110 = arith.constant 0 : index
    %189 = vector.load %arg9[%c1_108, %c0_109, %c0_110] : memref<2x32x32xf32, #tpu.memory_space<vmem>>, vector<1x32x32xf32>
    %190 = vector.shape_cast %189 : vector<1x32x32xf32> to vector<32x32xf32>
    %c1_111 = arith.constant 1 : index
    %c0_112 = arith.constant 0 : index
    %c0_113 = arith.constant 0 : index
    %191 = vector.load %arg10[%c1_111, %c0_112, %c0_113] : memref<2x1x32xf32, #tpu.memory_space<vmem>>, vector<1x1x32xf32>
    %192 = vector.shape_cast %191 : vector<1x1x32xf32> to vector<1x32xf32>
    %cst_114 = arith.constant dense<0.000000e+00> : vector<8x32xf32>
    %193 = tpu.matmul %174, %190, %cst_114 {dimension_numbers = #tpu.dot_dimension_numbers<[1], [0], [0], [1], [0, 0, 1, 1], [], []>} : vector<8x32xf32>, vector<32x32xf32>, vector<8x32xf32> -> vector<8x32xf32>
    %194 = vector.broadcast %192 : vector<1x32xf32> to vector<8x32xf32>
    %195 = arith.addf %193, %194 : vector<8x32xf32>
    %c1_115 = arith.constant 1 : index
    %c0_116 = arith.constant 0 : index
    %c0_117 = arith.constant 0 : index
    %196 = vector.load %arg11[%c1_115, %c0_116, %c0_117] : memref<2x32x32xf32, #tpu.memory_space<vmem>>, vector<1x32x32xf32>
    %197 = vector.shape_cast %196 : vector<1x32x32xf32> to vector<32x32xf32>
    %c1_118 = arith.constant 1 : index
    %c0_119 = arith.constant 0 : index
    %c0_120 = arith.constant 0 : index
    %198 = vector.load %arg12[%c1_118, %c0_119, %c0_120] : memref<2x1x32xf32, #tpu.memory_space<vmem>>, vector<1x1x32xf32>
    %199 = vector.shape_cast %198 : vector<1x1x32xf32> to vector<1x32xf32>
    %200 = vector.extract_strided_slice %181 {offsets = [0, 0], sizes = [8, 8], strides = [1, 1]} : vector<8x32xf32> to vector<8x8xf32>
    %201 = vector.extract_strided_slice %188 {offsets = [0, 0], sizes = [8, 8], strides = [1, 1]} : vector<8x32xf32> to vector<8x8xf32>
    %202 = vector.extract_strided_slice %195 {offsets = [0, 0], sizes = [8, 8], strides = [1, 1]} : vector<8x32xf32> to vector<8x8xf32>
    %cst_121 = arith.constant dense<0.000000e+00> : vector<8x8xf32>
    %203 = tpu.matmul %200, %201, %cst_121 {dimension_numbers = #tpu.dot_dimension_numbers<[1], [1], [0], [0], [0, 0, 1, 0], [], []>} : vector<8x8xf32>, vector<8x8xf32>, vector<8x8xf32> -> vector<8x8xf32>
    %cst_122 = arith.constant 0.353553385 : f32
    %204 = vector.broadcast %cst_122 : f32 to vector<8x8xf32>
    %205 = arith.mulf %203, %204 : vector<8x8xf32>
    %cst_123 = arith.constant dense<0xFF800000> : vector<8xf32>
    %206 = vector.multi_reduction <maximumf>, %205, %cst_123 [1] : vector<8x8xf32> to vector<8xf32>
    %207 = vector.shape_cast %206 : vector<8xf32> to vector<8x1xf32>
    %208 = vector.broadcast %207 : vector<8x1xf32> to vector<8x8xf32>
    %209 = arith.subf %205, %208 : vector<8x8xf32>
    %210 = math.exp %209 : vector<8x8xf32>
    %cst_124 = arith.constant dense<0.000000e+00> : vector<8xf32>
    %211 = vector.multi_reduction <add>, %210, %cst_124 [1] : vector<8x8xf32> to vector<8xf32>
    %212 = vector.shape_cast %211 : vector<8xf32> to vector<8x1xf32>
    %213 = vector.broadcast %212 : vector<8x1xf32> to vector<8x8xf32>
    %214 = arith.divf %210, %213 : vector<8x8xf32>
    %cst_125 = arith.constant dense<0.000000e+00> : vector<8x8xf32>
    %215 = tpu.matmul %214, %202, %cst_125 {dimension_numbers = #tpu.dot_dimension_numbers<[1], [0], [0], [1], [0, 0, 1, 1], [], []>} : vector<8x8xf32>, vector<8x8xf32>, vector<8x8xf32> -> vector<8x8xf32>
    %216 = vector.extract_strided_slice %181 {offsets = [0, 8], sizes = [8, 8], strides = [1, 1]} : vector<8x32xf32> to vector<8x8xf32>
    %217 = vector.extract_strided_slice %188 {offsets = [0, 8], sizes = [8, 8], strides = [1, 1]} : vector<8x32xf32> to vector<8x8xf32>
    %218 = vector.extract_strided_slice %195 {offsets = [0, 8], sizes = [8, 8], strides = [1, 1]} : vector<8x32xf32> to vector<8x8xf32>
    %cst_126 = arith.constant dense<0.000000e+00> : vector<8x8xf32>
    %219 = tpu.matmul %216, %217, %cst_126 {dimension_numbers = #tpu.dot_dimension_numbers<[1], [1], [0], [0], [0, 0, 1, 0], [], []>} : vector<8x8xf32>, vector<8x8xf32>, vector<8x8xf32> -> vector<8x8xf32>
    %cst_127 = arith.constant 0.353553385 : f32
    %220 = vector.broadcast %cst_127 : f32 to vector<8x8xf32>
    %221 = arith.mulf %219, %220 : vector<8x8xf32>
    %cst_128 = arith.constant dense<0xFF800000> : vector<8xf32>
    %222 = vector.multi_reduction <maximumf>, %221, %cst_128 [1] : vector<8x8xf32> to vector<8xf32>
    %223 = vector.shape_cast %222 : vector<8xf32> to vector<8x1xf32>
    %224 = vector.broadcast %223 : vector<8x1xf32> to vector<8x8xf32>
    %225 = arith.subf %221, %224 : vector<8x8xf32>
    %226 = math.exp %225 : vector<8x8xf32>
    %cst_129 = arith.constant dense<0.000000e+00> : vector<8xf32>
    %227 = vector.multi_reduction <add>, %226, %cst_129 [1] : vector<8x8xf32> to vector<8xf32>
    %228 = vector.shape_cast %227 : vector<8xf32> to vector<8x1xf32>
    %229 = vector.broadcast %228 : vector<8x1xf32> to vector<8x8xf32>
    %230 = arith.divf %226, %229 : vector<8x8xf32>
    %cst_130 = arith.constant dense<0.000000e+00> : vector<8x8xf32>
    %231 = tpu.matmul %230, %218, %cst_130 {dimension_numbers = #tpu.dot_dimension_numbers<[1], [0], [0], [1], [0, 0, 1, 1], [], []>} : vector<8x8xf32>, vector<8x8xf32>, vector<8x8xf32> -> vector<8x8xf32>
    %232 = vector.extract_strided_slice %181 {offsets = [0, 16], sizes = [8, 8], strides = [1, 1]} : vector<8x32xf32> to vector<8x8xf32>
    %233 = vector.extract_strided_slice %188 {offsets = [0, 16], sizes = [8, 8], strides = [1, 1]} : vector<8x32xf32> to vector<8x8xf32>
    %234 = vector.extract_strided_slice %195 {offsets = [0, 16], sizes = [8, 8], strides = [1, 1]} : vector<8x32xf32> to vector<8x8xf32>
    %cst_131 = arith.constant dense<0.000000e+00> : vector<8x8xf32>
    %235 = tpu.matmul %232, %233, %cst_131 {dimension_numbers = #tpu.dot_dimension_numbers<[1], [1], [0], [0], [0, 0, 1, 0], [], []>} : vector<8x8xf32>, vector<8x8xf32>, vector<8x8xf32> -> vector<8x8xf32>
    %cst_132 = arith.constant 0.353553385 : f32
    %236 = vector.broadcast %cst_132 : f32 to vector<8x8xf32>
    %237 = arith.mulf %235, %236 : vector<8x8xf32>
    %cst_133 = arith.constant dense<0xFF800000> : vector<8xf32>
    %238 = vector.multi_reduction <maximumf>, %237, %cst_133 [1] : vector<8x8xf32> to vector<8xf32>
    %239 = vector.shape_cast %238 : vector<8xf32> to vector<8x1xf32>
    %240 = vector.broadcast %239 : vector<8x1xf32> to vector<8x8xf32>
    %241 = arith.subf %237, %240 : vector<8x8xf32>
    %242 = math.exp %241 : vector<8x8xf32>
    %cst_134 = arith.constant dense<0.000000e+00> : vector<8xf32>
    %243 = vector.multi_reduction <add>, %242, %cst_134 [1] : vector<8x8xf32> to vector<8xf32>
    %244 = vector.shape_cast %243 : vector<8xf32> to vector<8x1xf32>
    %245 = vector.broadcast %244 : vector<8x1xf32> to vector<8x8xf32>
    %246 = arith.divf %242, %245 : vector<8x8xf32>
    %cst_135 = arith.constant dense<0.000000e+00> : vector<8x8xf32>
    %247 = tpu.matmul %246, %234, %cst_135 {dimension_numbers = #tpu.dot_dimension_numbers<[1], [0], [0], [1], [0, 0, 1, 1], [], []>} : vector<8x8xf32>, vector<8x8xf32>, vector<8x8xf32> -> vector<8x8xf32>
    %248 = vector.extract_strided_slice %181 {offsets = [0, 24], sizes = [8, 8], strides = [1, 1]} : vector<8x32xf32> to vector<8x8xf32>
    %249 = vector.extract_strided_slice %188 {offsets = [0, 24], sizes = [8, 8], strides = [1, 1]} : vector<8x32xf32> to vector<8x8xf32>
    %250 = vector.extract_strided_slice %195 {offsets = [0, 24], sizes = [8, 8], strides = [1, 1]} : vector<8x32xf32> to vector<8x8xf32>
    %cst_136 = arith.constant dense<0.000000e+00> : vector<8x8xf32>
    %251 = tpu.matmul %248, %249, %cst_136 {dimension_numbers = #tpu.dot_dimension_numbers<[1], [1], [0], [0], [0, 0, 1, 0], [], []>} : vector<8x8xf32>, vector<8x8xf32>, vector<8x8xf32> -> vector<8x8xf32>
    %cst_137 = arith.constant 0.353553385 : f32
    %252 = vector.broadcast %cst_137 : f32 to vector<8x8xf32>
    %253 = arith.mulf %251, %252 : vector<8x8xf32>
    %cst_138 = arith.constant dense<0xFF800000> : vector<8xf32>
    %254 = vector.multi_reduction <maximumf>, %253, %cst_138 [1] : vector<8x8xf32> to vector<8xf32>
    %255 = vector.shape_cast %254 : vector<8xf32> to vector<8x1xf32>
    %256 = vector.broadcast %255 : vector<8x1xf32> to vector<8x8xf32>
    %257 = arith.subf %253, %256 : vector<8x8xf32>
    %258 = math.exp %257 : vector<8x8xf32>
    %cst_139 = arith.constant dense<0.000000e+00> : vector<8xf32>
    %259 = vector.multi_reduction <add>, %258, %cst_139 [1] : vector<8x8xf32> to vector<8xf32>
    %260 = vector.shape_cast %259 : vector<8xf32> to vector<8x1xf32>
    %261 = vector.broadcast %260 : vector<8x1xf32> to vector<8x8xf32>
    %262 = arith.divf %258, %261 : vector<8x8xf32>
    %cst_140 = arith.constant dense<0.000000e+00> : vector<8x8xf32>
    %263 = tpu.matmul %262, %250, %cst_140 {dimension_numbers = #tpu.dot_dimension_numbers<[1], [0], [0], [1], [0, 0, 1, 1], [], []>} : vector<8x8xf32>, vector<8x8xf32>, vector<8x8xf32> -> vector<8x8xf32>
    %264 = tpu.concatenate %215, %231, %247, %263 in 1 : vector<8x8xf32>, vector<8x8xf32>, vector<8x8xf32>, vector<8x8xf32> -> vector<8x32xf32>
    %cst_141 = arith.constant dense<0.000000e+00> : vector<8x32xf32>
    %265 = tpu.matmul %264, %197, %cst_141 {dimension_numbers = #tpu.dot_dimension_numbers<[1], [0], [0], [1], [0, 0, 1, 1], [], []>} : vector<8x32xf32>, vector<32x32xf32>, vector<8x32xf32> -> vector<8x32xf32>
    %266 = vector.broadcast %199 : vector<1x32xf32> to vector<8x32xf32>
    %267 = arith.addf %265, %266 : vector<8x32xf32>
    %268 = arith.addf %174, %267 : vector<8x32xf32>
    %c1_142 = arith.constant 1 : index
    %c0_143 = arith.constant 0 : index
    %c0_144 = arith.constant 0 : index
    %269 = vector.load %arg13[%c1_142, %c0_143, %c0_144] : memref<2x1x32xf32, #tpu.memory_space<vmem>>, vector<1x1x32xf32>
    %270 = vector.shape_cast %269 : vector<1x1x32xf32> to vector<1x32xf32>
    %c1_145 = arith.constant 1 : index
    %c0_146 = arith.constant 0 : index
    %c0_147 = arith.constant 0 : index
    %271 = vector.load %arg14[%c1_145, %c0_146, %c0_147] : memref<2x1x32xf32, #tpu.memory_space<vmem>>, vector<1x1x32xf32>
    %272 = vector.shape_cast %271 : vector<1x1x32xf32> to vector<1x32xf32>
    %cst_148 = arith.constant dense<0.000000e+00> : vector<8xf32>
    %273 = vector.multi_reduction <add>, %268, %cst_148 [1] : vector<8x32xf32> to vector<8xf32>
    %274 = vector.shape_cast %273 : vector<8xf32> to vector<8x1xf32>
    %cst_149 = arith.constant 3.200000e+01 : f32
    %275 = vector.broadcast %cst_149 : f32 to vector<8x1xf32>
    %276 = arith.divf %274, %275 : vector<8x1xf32>
    %277 = vector.broadcast %276 : vector<8x1xf32> to vector<8x32xf32>
    %278 = arith.subf %268, %277 : vector<8x32xf32>
    %279 = arith.mulf %278, %278 : vector<8x32xf32>
    %cst_150 = arith.constant dense<0.000000e+00> : vector<8xf32>
    %280 = vector.multi_reduction <add>, %279, %cst_150 [1] : vector<8x32xf32> to vector<8xf32>
    %281 = vector.shape_cast %280 : vector<8xf32> to vector<8x1xf32>
    %cst_151 = arith.constant 3.200000e+01 : f32
    %282 = vector.broadcast %cst_151 : f32 to vector<8x1xf32>
    %283 = arith.divf %281, %282 : vector<8x1xf32>
    %284 = vector.broadcast %276 : vector<8x1xf32> to vector<8x32xf32>
    %285 = arith.subf %268, %284 : vector<8x32xf32>
    %cst_152 = arith.constant 9.99999974E-6 : f32
    %286 = vector.broadcast %cst_152 : f32 to vector<8x1xf32>
    %287 = arith.addf %283, %286 : vector<8x1xf32>
    %288 = math.rsqrt %287 : vector<8x1xf32>
    %289 = vector.broadcast %288 : vector<8x1xf32> to vector<8x32xf32>
    %290 = arith.mulf %285, %289 : vector<8x32xf32>
    %291 = vector.broadcast %270 : vector<1x32xf32> to vector<8x32xf32>
    %292 = arith.mulf %290, %291 : vector<8x32xf32>
    %293 = vector.broadcast %272 : vector<1x32xf32> to vector<8x32xf32>
    %294 = arith.addf %292, %293 : vector<8x32xf32>
    %c1_153 = arith.constant 1 : index
    %c0_154 = arith.constant 0 : index
    %c0_155 = arith.constant 0 : index
    %295 = vector.load %arg15[%c1_153, %c0_154, %c0_155] : memref<2x32x64xf32, #tpu.memory_space<vmem>>, vector<1x32x64xf32>
    %296 = vector.shape_cast %295 : vector<1x32x64xf32> to vector<32x64xf32>
    %c1_156 = arith.constant 1 : index
    %c0_157 = arith.constant 0 : index
    %c0_158 = arith.constant 0 : index
    %297 = vector.load %arg16[%c1_156, %c0_157, %c0_158] : memref<2x1x64xf32, #tpu.memory_space<vmem>>, vector<1x1x64xf32>
    %298 = vector.shape_cast %297 : vector<1x1x64xf32> to vector<1x64xf32>
    %cst_159 = arith.constant dense<0.000000e+00> : vector<8x64xf32>
    %299 = tpu.matmul %294, %296, %cst_159 {dimension_numbers = #tpu.dot_dimension_numbers<[1], [0], [0], [1], [0, 0, 1, 1], [], []>} : vector<8x32xf32>, vector<32x64xf32>, vector<8x64xf32> -> vector<8x64xf32>
    %300 = vector.broadcast %298 : vector<1x64xf32> to vector<8x64xf32>
    %301 = arith.addf %299, %300 : vector<8x64xf32>
    %cst_160 = arith.constant 0.000000e+00 : f32
    %302 = vector.broadcast %cst_160 : f32 to vector<8x64xf32>
    %303 = arith.maximumf %301, %302 : vector<8x64xf32>
    %c1_161 = arith.constant 1 : index
    %c0_162 = arith.constant 0 : index
    %c0_163 = arith.constant 0 : index
    %304 = vector.load %arg17[%c1_161, %c0_162, %c0_163] : memref<2x64x32xf32, #tpu.memory_space<vmem>>, vector<1x64x32xf32>
    %305 = vector.shape_cast %304 : vector<1x64x32xf32> to vector<64x32xf32>
    %c1_164 = arith.constant 1 : index
    %c0_165 = arith.constant 0 : index
    %c0_166 = arith.constant 0 : index
    %306 = vector.load %arg18[%c1_164, %c0_165, %c0_166] : memref<2x1x32xf32, #tpu.memory_space<vmem>>, vector<1x1x32xf32>
    %307 = vector.shape_cast %306 : vector<1x1x32xf32> to vector<1x32xf32>
    %cst_167 = arith.constant dense<0.000000e+00> : vector<8x32xf32>
    %308 = tpu.matmul %303, %305, %cst_167 {dimension_numbers = #tpu.dot_dimension_numbers<[1], [0], [0], [1], [0, 0, 1, 1], [], []>} : vector<8x64xf32>, vector<64x32xf32>, vector<8x32xf32> -> vector<8x32xf32>
    %309 = vector.broadcast %307 : vector<1x32xf32> to vector<8x32xf32>
    %310 = arith.addf %308, %309 : vector<8x32xf32>
    %311 = arith.addf %294, %310 : vector<8x32xf32>
    %c1_168 = arith.constant 1 : index
    %c0_169 = arith.constant 0 : index
    %c0_170 = arith.constant 0 : index
    %312 = vector.load %arg19[%c1_168, %c0_169, %c0_170] : memref<2x1x32xf32, #tpu.memory_space<vmem>>, vector<1x1x32xf32>
    %313 = vector.shape_cast %312 : vector<1x1x32xf32> to vector<1x32xf32>
    %c1_171 = arith.constant 1 : index
    %c0_172 = arith.constant 0 : index
    %c0_173 = arith.constant 0 : index
    %314 = vector.load %arg20[%c1_171, %c0_172, %c0_173] : memref<2x1x32xf32, #tpu.memory_space<vmem>>, vector<1x1x32xf32>
    %315 = vector.shape_cast %314 : vector<1x1x32xf32> to vector<1x32xf32>
    %cst_174 = arith.constant dense<0.000000e+00> : vector<8xf32>
    %316 = vector.multi_reduction <add>, %311, %cst_174 [1] : vector<8x32xf32> to vector<8xf32>
    %317 = vector.shape_cast %316 : vector<8xf32> to vector<8x1xf32>
    %cst_175 = arith.constant 3.200000e+01 : f32
    %318 = vector.broadcast %cst_175 : f32 to vector<8x1xf32>
    %319 = arith.divf %317, %318 : vector<8x1xf32>
    %320 = vector.broadcast %319 : vector<8x1xf32> to vector<8x32xf32>
    %321 = arith.subf %311, %320 : vector<8x32xf32>
    %322 = arith.mulf %321, %321 : vector<8x32xf32>
    %cst_176 = arith.constant dense<0.000000e+00> : vector<8xf32>
    %323 = vector.multi_reduction <add>, %322, %cst_176 [1] : vector<8x32xf32> to vector<8xf32>
    %324 = vector.shape_cast %323 : vector<8xf32> to vector<8x1xf32>
    %cst_177 = arith.constant 3.200000e+01 : f32
    %325 = vector.broadcast %cst_177 : f32 to vector<8x1xf32>
    %326 = arith.divf %324, %325 : vector<8x1xf32>
    %327 = vector.broadcast %319 : vector<8x1xf32> to vector<8x32xf32>
    %328 = arith.subf %311, %327 : vector<8x32xf32>
    %cst_178 = arith.constant 9.99999974E-6 : f32
    %329 = vector.broadcast %cst_178 : f32 to vector<8x1xf32>
    %330 = arith.addf %326, %329 : vector<8x1xf32>
    %331 = math.rsqrt %330 : vector<8x1xf32>
    %332 = vector.broadcast %331 : vector<8x1xf32> to vector<8x32xf32>
    %333 = arith.mulf %328, %332 : vector<8x32xf32>
    %334 = vector.broadcast %313 : vector<1x32xf32> to vector<8x32xf32>
    %335 = arith.mulf %333, %334 : vector<8x32xf32>
    %336 = vector.broadcast %315 : vector<1x32xf32> to vector<8x32xf32>
    %337 = arith.addf %335, %336 : vector<8x32xf32>
    %c0_179 = arith.constant 0 : index
    %c0_180 = arith.constant 0 : index
    %338 = vector.load %arg21[%c0_179, %c0_180] : memref<1x32xf32, #tpu.memory_space<vmem>>, vector<1x32xf32>
    %c0_181 = arith.constant 0 : index
    %c0_182 = arith.constant 0 : index
    %339 = vector.load %arg22[%c0_181, %c0_182] : memref<1x32xf32, #tpu.memory_space<vmem>>, vector<1x32xf32>
    %cst_183 = arith.constant dense<0.000000e+00> : vector<8xf32>
    %340 = vector.multi_reduction <add>, %337, %cst_183 [1] : vector<8x32xf32> to vector<8xf32>
    %341 = vector.shape_cast %340 : vector<8xf32> to vector<8x1xf32>
    %cst_184 = arith.constant 3.200000e+01 : f32
    %342 = vector.broadcast %cst_184 : f32 to vector<8x1xf32>
    %343 = arith.divf %341, %342 : vector<8x1xf32>
    %344 = vector.broadcast %343 : vector<8x1xf32> to vector<8x32xf32>
    %345 = arith.subf %337, %344 : vector<8x32xf32>
    %346 = arith.mulf %345, %345 : vector<8x32xf32>
    %cst_185 = arith.constant dense<0.000000e+00> : vector<8xf32>
    %347 = vector.multi_reduction <add>, %346, %cst_185 [1] : vector<8x32xf32> to vector<8xf32>
    %348 = vector.shape_cast %347 : vector<8xf32> to vector<8x1xf32>
    %cst_186 = arith.constant 3.200000e+01 : f32
    %349 = vector.broadcast %cst_186 : f32 to vector<8x1xf32>
    %350 = arith.divf %348, %349 : vector<8x1xf32>
    %351 = vector.broadcast %343 : vector<8x1xf32> to vector<8x32xf32>
    %352 = arith.subf %337, %351 : vector<8x32xf32>
    %cst_187 = arith.constant 9.99999974E-6 : f32
    %353 = vector.broadcast %cst_187 : f32 to vector<8x1xf32>
    %354 = arith.addf %350, %353 : vector<8x1xf32>
    %355 = math.rsqrt %354 : vector<8x1xf32>
    %356 = vector.broadcast %355 : vector<8x1xf32> to vector<8x32xf32>
    %357 = arith.mulf %352, %356 : vector<8x32xf32>
    %358 = vector.broadcast %338 : vector<1x32xf32> to vector<8x32xf32>
    %359 = arith.mulf %357, %358 : vector<8x32xf32>
    %360 = vector.broadcast %339 : vector<1x32xf32> to vector<8x32xf32>
    %361 = arith.addf %359, %360 : vector<8x32xf32>
    %c0_188 = arith.constant 0 : index
    %c0_189 = arith.constant 0 : index
    %c0_190 = arith.constant 0 : index
    %362 = vector.load %arg23[%c0_188, %c0_189, %c0_190] : memref<2x32x32xf32, #tpu.memory_space<vmem>>, vector<1x32x32xf32>
    %363 = vector.shape_cast %362 : vector<1x32x32xf32> to vector<32x32xf32>
    %c0_191 = arith.constant 0 : index
    %c0_192 = arith.constant 0 : index
    %c0_193 = arith.constant 0 : index
    %364 = vector.load %arg24[%c0_191, %c0_192, %c0_193] : memref<2x1x32xf32, #tpu.memory_space<vmem>>, vector<1x1x32xf32>
    %365 = vector.shape_cast %364 : vector<1x1x32xf32> to vector<1x32xf32>
    %cst_194 = arith.constant dense<0.000000e+00> : vector<16x32xf32>
    %366 = tpu.matmul %11, %363, %cst_194 {dimension_numbers = #tpu.dot_dimension_numbers<[1], [0], [0], [1], [0, 0, 1, 1], [], []>} : vector<16x32xf32>, vector<32x32xf32>, vector<16x32xf32> -> vector<16x32xf32>
    %367 = vector.broadcast %365 : vector<1x32xf32> to vector<16x32xf32>
    %368 = arith.addf %366, %367 : vector<16x32xf32>
    %c0_195 = arith.constant 0 : index
    %c0_196 = arith.constant 0 : index
    %c0_197 = arith.constant 0 : index
    %369 = vector.load %arg25[%c0_195, %c0_196, %c0_197] : memref<2x32x32xf32, #tpu.memory_space<vmem>>, vector<1x32x32xf32>
    %370 = vector.shape_cast %369 : vector<1x32x32xf32> to vector<32x32xf32>
    %c0_198 = arith.constant 0 : index
    %c0_199 = arith.constant 0 : index
    %c0_200 = arith.constant 0 : index
    %371 = vector.load %arg26[%c0_198, %c0_199, %c0_200] : memref<2x1x32xf32, #tpu.memory_space<vmem>>, vector<1x1x32xf32>
    %372 = vector.shape_cast %371 : vector<1x1x32xf32> to vector<1x32xf32>
    %cst_201 = arith.constant dense<0.000000e+00> : vector<16x32xf32>
    %373 = tpu.matmul %11, %370, %cst_201 {dimension_numbers = #tpu.dot_dimension_numbers<[1], [0], [0], [1], [0, 0, 1, 1], [], []>} : vector<16x32xf32>, vector<32x32xf32>, vector<16x32xf32> -> vector<16x32xf32>
    %374 = vector.broadcast %372 : vector<1x32xf32> to vector<16x32xf32>
    %375 = arith.addf %373, %374 : vector<16x32xf32>
    %c0_202 = arith.constant 0 : index
    %c0_203 = arith.constant 0 : index
    %c0_204 = arith.constant 0 : index
    %376 = vector.load %arg27[%c0_202, %c0_203, %c0_204] : memref<2x32x32xf32, #tpu.memory_space<vmem>>, vector<1x32x32xf32>
    %377 = vector.shape_cast %376 : vector<1x32x32xf32> to vector<32x32xf32>
    %c0_205 = arith.constant 0 : index
    %c0_206 = arith.constant 0 : index
    %c0_207 = arith.constant 0 : index
    %378 = vector.load %arg28[%c0_205, %c0_206, %c0_207] : memref<2x1x32xf32, #tpu.memory_space<vmem>>, vector<1x1x32xf32>
    %379 = vector.shape_cast %378 : vector<1x1x32xf32> to vector<1x32xf32>
    %cst_208 = arith.constant dense<0.000000e+00> : vector<16x32xf32>
    %380 = tpu.matmul %11, %377, %cst_208 {dimension_numbers = #tpu.dot_dimension_numbers<[1], [0], [0], [1], [0, 0, 1, 1], [], []>} : vector<16x32xf32>, vector<32x32xf32>, vector<16x32xf32> -> vector<16x32xf32>
    %381 = vector.broadcast %379 : vector<1x32xf32> to vector<16x32xf32>
    %382 = arith.addf %380, %381 : vector<16x32xf32>
    %c0_209 = arith.constant 0 : index
    %c0_210 = arith.constant 0 : index
    %c0_211 = arith.constant 0 : index
    %383 = vector.load %arg29[%c0_209, %c0_210, %c0_211] : memref<2x32x32xf32, #tpu.memory_space<vmem>>, vector<1x32x32xf32>
    %384 = vector.shape_cast %383 : vector<1x32x32xf32> to vector<32x32xf32>
    %c0_212 = arith.constant 0 : index
    %c0_213 = arith.constant 0 : index
    %c0_214 = arith.constant 0 : index
    %385 = vector.load %arg30[%c0_212, %c0_213, %c0_214] : memref<2x1x32xf32, #tpu.memory_space<vmem>>, vector<1x1x32xf32>
    %386 = vector.shape_cast %385 : vector<1x1x32xf32> to vector<1x32xf32>
    %387 = vector.extract_strided_slice %368 {offsets = [0, 0], sizes = [16, 8], strides = [1, 1]} : vector<16x32xf32> to vector<16x8xf32>
    %388 = vector.extract_strided_slice %375 {offsets = [0, 0], sizes = [16, 8], strides = [1, 1]} : vector<16x32xf32> to vector<16x8xf32>
    %389 = vector.extract_strided_slice %382 {offsets = [0, 0], sizes = [16, 8], strides = [1, 1]} : vector<16x32xf32> to vector<16x8xf32>
    %cst_215 = arith.constant dense<0.000000e+00> : vector<16x16xf32>
    %390 = tpu.matmul %387, %388, %cst_215 {dimension_numbers = #tpu.dot_dimension_numbers<[1], [1], [0], [0], [0, 0, 1, 0], [], []>} : vector<16x8xf32>, vector<16x8xf32>, vector<16x16xf32> -> vector<16x16xf32>
    %cst_216 = arith.constant 0.353553385 : f32
    %391 = vector.broadcast %cst_216 : f32 to vector<16x16xf32>
    %392 = arith.mulf %390, %391 : vector<16x16xf32>
    %cst_217 = arith.constant dense<0xFF800000> : vector<16xf32>
    %393 = vector.multi_reduction <maximumf>, %392, %cst_217 [1] : vector<16x16xf32> to vector<16xf32>
    %394 = vector.shape_cast %393 : vector<16xf32> to vector<16x1xf32>
    %395 = vector.broadcast %394 : vector<16x1xf32> to vector<16x16xf32>
    %396 = arith.subf %392, %395 : vector<16x16xf32>
    %397 = math.exp %396 : vector<16x16xf32>
    %cst_218 = arith.constant dense<0.000000e+00> : vector<16xf32>
    %398 = vector.multi_reduction <add>, %397, %cst_218 [1] : vector<16x16xf32> to vector<16xf32>
    %399 = vector.shape_cast %398 : vector<16xf32> to vector<16x1xf32>
    %400 = vector.broadcast %399 : vector<16x1xf32> to vector<16x16xf32>
    %401 = arith.divf %397, %400 : vector<16x16xf32>
    %cst_219 = arith.constant dense<0.000000e+00> : vector<16x8xf32>
    %402 = tpu.matmul %401, %389, %cst_219 {dimension_numbers = #tpu.dot_dimension_numbers<[1], [0], [0], [1], [0, 0, 1, 1], [], []>} : vector<16x16xf32>, vector<16x8xf32>, vector<16x8xf32> -> vector<16x8xf32>
    %403 = vector.extract_strided_slice %368 {offsets = [0, 8], sizes = [16, 8], strides = [1, 1]} : vector<16x32xf32> to vector<16x8xf32>
    %404 = vector.extract_strided_slice %375 {offsets = [0, 8], sizes = [16, 8], strides = [1, 1]} : vector<16x32xf32> to vector<16x8xf32>
    %405 = vector.extract_strided_slice %382 {offsets = [0, 8], sizes = [16, 8], strides = [1, 1]} : vector<16x32xf32> to vector<16x8xf32>
    %cst_220 = arith.constant dense<0.000000e+00> : vector<16x16xf32>
    %406 = tpu.matmul %403, %404, %cst_220 {dimension_numbers = #tpu.dot_dimension_numbers<[1], [1], [0], [0], [0, 0, 1, 0], [], []>} : vector<16x8xf32>, vector<16x8xf32>, vector<16x16xf32> -> vector<16x16xf32>
    %cst_221 = arith.constant 0.353553385 : f32
    %407 = vector.broadcast %cst_221 : f32 to vector<16x16xf32>
    %408 = arith.mulf %406, %407 : vector<16x16xf32>
    %cst_222 = arith.constant dense<0xFF800000> : vector<16xf32>
    %409 = vector.multi_reduction <maximumf>, %408, %cst_222 [1] : vector<16x16xf32> to vector<16xf32>
    %410 = vector.shape_cast %409 : vector<16xf32> to vector<16x1xf32>
    %411 = vector.broadcast %410 : vector<16x1xf32> to vector<16x16xf32>
    %412 = arith.subf %408, %411 : vector<16x16xf32>
    %413 = math.exp %412 : vector<16x16xf32>
    %cst_223 = arith.constant dense<0.000000e+00> : vector<16xf32>
    %414 = vector.multi_reduction <add>, %413, %cst_223 [1] : vector<16x16xf32> to vector<16xf32>
    %415 = vector.shape_cast %414 : vector<16xf32> to vector<16x1xf32>
    %416 = vector.broadcast %415 : vector<16x1xf32> to vector<16x16xf32>
    %417 = arith.divf %413, %416 : vector<16x16xf32>
    %cst_224 = arith.constant dense<0.000000e+00> : vector<16x8xf32>
    %418 = tpu.matmul %417, %405, %cst_224 {dimension_numbers = #tpu.dot_dimension_numbers<[1], [0], [0], [1], [0, 0, 1, 1], [], []>} : vector<16x16xf32>, vector<16x8xf32>, vector<16x8xf32> -> vector<16x8xf32>
    %419 = vector.extract_strided_slice %368 {offsets = [0, 16], sizes = [16, 8], strides = [1, 1]} : vector<16x32xf32> to vector<16x8xf32>
    %420 = vector.extract_strided_slice %375 {offsets = [0, 16], sizes = [16, 8], strides = [1, 1]} : vector<16x32xf32> to vector<16x8xf32>
    %421 = vector.extract_strided_slice %382 {offsets = [0, 16], sizes = [16, 8], strides = [1, 1]} : vector<16x32xf32> to vector<16x8xf32>
    %cst_225 = arith.constant dense<0.000000e+00> : vector<16x16xf32>
    %422 = tpu.matmul %419, %420, %cst_225 {dimension_numbers = #tpu.dot_dimension_numbers<[1], [1], [0], [0], [0, 0, 1, 0], [], []>} : vector<16x8xf32>, vector<16x8xf32>, vector<16x16xf32> -> vector<16x16xf32>
    %cst_226 = arith.constant 0.353553385 : f32
    %423 = vector.broadcast %cst_226 : f32 to vector<16x16xf32>
    %424 = arith.mulf %422, %423 : vector<16x16xf32>
    %cst_227 = arith.constant dense<0xFF800000> : vector<16xf32>
    %425 = vector.multi_reduction <maximumf>, %424, %cst_227 [1] : vector<16x16xf32> to vector<16xf32>
    %426 = vector.shape_cast %425 : vector<16xf32> to vector<16x1xf32>
    %427 = vector.broadcast %426 : vector<16x1xf32> to vector<16x16xf32>
    %428 = arith.subf %424, %427 : vector<16x16xf32>
    %429 = math.exp %428 : vector<16x16xf32>
    %cst_228 = arith.constant dense<0.000000e+00> : vector<16xf32>
    %430 = vector.multi_reduction <add>, %429, %cst_228 [1] : vector<16x16xf32> to vector<16xf32>
    %431 = vector.shape_cast %430 : vector<16xf32> to vector<16x1xf32>
    %432 = vector.broadcast %431 : vector<16x1xf32> to vector<16x16xf32>
    %433 = arith.divf %429, %432 : vector<16x16xf32>
    %cst_229 = arith.constant dense<0.000000e+00> : vector<16x8xf32>
    %434 = tpu.matmul %433, %421, %cst_229 {dimension_numbers = #tpu.dot_dimension_numbers<[1], [0], [0], [1], [0, 0, 1, 1], [], []>} : vector<16x16xf32>, vector<16x8xf32>, vector<16x8xf32> -> vector<16x8xf32>
    %435 = vector.extract_strided_slice %368 {offsets = [0, 24], sizes = [16, 8], strides = [1, 1]} : vector<16x32xf32> to vector<16x8xf32>
    %436 = vector.extract_strided_slice %375 {offsets = [0, 24], sizes = [16, 8], strides = [1, 1]} : vector<16x32xf32> to vector<16x8xf32>
    %437 = vector.extract_strided_slice %382 {offsets = [0, 24], sizes = [16, 8], strides = [1, 1]} : vector<16x32xf32> to vector<16x8xf32>
    %cst_230 = arith.constant dense<0.000000e+00> : vector<16x16xf32>
    %438 = tpu.matmul %435, %436, %cst_230 {dimension_numbers = #tpu.dot_dimension_numbers<[1], [1], [0], [0], [0, 0, 1, 0], [], []>} : vector<16x8xf32>, vector<16x8xf32>, vector<16x16xf32> -> vector<16x16xf32>
    %cst_231 = arith.constant 0.353553385 : f32
    %439 = vector.broadcast %cst_231 : f32 to vector<16x16xf32>
    %440 = arith.mulf %438, %439 : vector<16x16xf32>
    %cst_232 = arith.constant dense<0xFF800000> : vector<16xf32>
    %441 = vector.multi_reduction <maximumf>, %440, %cst_232 [1] : vector<16x16xf32> to vector<16xf32>
    %442 = vector.shape_cast %441 : vector<16xf32> to vector<16x1xf32>
    %443 = vector.broadcast %442 : vector<16x1xf32> to vector<16x16xf32>
    %444 = arith.subf %440, %443 : vector<16x16xf32>
    %445 = math.exp %444 : vector<16x16xf32>
    %cst_233 = arith.constant dense<0.000000e+00> : vector<16xf32>
    %446 = vector.multi_reduction <add>, %445, %cst_233 [1] : vector<16x16xf32> to vector<16xf32>
    %447 = vector.shape_cast %446 : vector<16xf32> to vector<16x1xf32>
    %448 = vector.broadcast %447 : vector<16x1xf32> to vector<16x16xf32>
    %449 = arith.divf %445, %448 : vector<16x16xf32>
    %cst_234 = arith.constant dense<0.000000e+00> : vector<16x8xf32>
    %450 = tpu.matmul %449, %437, %cst_234 {dimension_numbers = #tpu.dot_dimension_numbers<[1], [0], [0], [1], [0, 0, 1, 1], [], []>} : vector<16x16xf32>, vector<16x8xf32>, vector<16x8xf32> -> vector<16x8xf32>
    %451 = tpu.concatenate %402, %418, %434, %450 in 1 : vector<16x8xf32>, vector<16x8xf32>, vector<16x8xf32>, vector<16x8xf32> -> vector<16x32xf32>
    %cst_235 = arith.constant dense<0.000000e+00> : vector<16x32xf32>
    %452 = tpu.matmul %451, %384, %cst_235 {dimension_numbers = #tpu.dot_dimension_numbers<[1], [0], [0], [1], [0, 0, 1, 1], [], []>} : vector<16x32xf32>, vector<32x32xf32>, vector<16x32xf32> -> vector<16x32xf32>
    %453 = vector.broadcast %386 : vector<1x32xf32> to vector<16x32xf32>
    %454 = arith.addf %452, %453 : vector<16x32xf32>
    %455 = arith.addf %11, %454 : vector<16x32xf32>
    %c0_236 = arith.constant 0 : index
    %c0_237 = arith.constant 0 : index
    %c0_238 = arith.constant 0 : index
    %456 = vector.load %arg31[%c0_236, %c0_237, %c0_238] : memref<2x1x32xf32, #tpu.memory_space<vmem>>, vector<1x1x32xf32>
    %457 = vector.shape_cast %456 : vector<1x1x32xf32> to vector<1x32xf32>
    %c0_239 = arith.constant 0 : index
    %c0_240 = arith.constant 0 : index
    %c0_241 = arith.constant 0 : index
    %458 = vector.load %arg32[%c0_239, %c0_240, %c0_241] : memref<2x1x32xf32, #tpu.memory_space<vmem>>, vector<1x1x32xf32>
    %459 = vector.shape_cast %458 : vector<1x1x32xf32> to vector<1x32xf32>
    %cst_242 = arith.constant dense<0.000000e+00> : vector<16xf32>
    %460 = vector.multi_reduction <add>, %455, %cst_242 [1] : vector<16x32xf32> to vector<16xf32>
    %461 = vector.shape_cast %460 : vector<16xf32> to vector<16x1xf32>
    %cst_243 = arith.constant 3.200000e+01 : f32
    %462 = vector.broadcast %cst_243 : f32 to vector<16x1xf32>
    %463 = arith.divf %461, %462 : vector<16x1xf32>
    %464 = vector.broadcast %463 : vector<16x1xf32> to vector<16x32xf32>
    %465 = arith.subf %455, %464 : vector<16x32xf32>
    %466 = arith.mulf %465, %465 : vector<16x32xf32>
    %cst_244 = arith.constant dense<0.000000e+00> : vector<16xf32>
    %467 = vector.multi_reduction <add>, %466, %cst_244 [1] : vector<16x32xf32> to vector<16xf32>
    %468 = vector.shape_cast %467 : vector<16xf32> to vector<16x1xf32>
    %cst_245 = arith.constant 3.200000e+01 : f32
    %469 = vector.broadcast %cst_245 : f32 to vector<16x1xf32>
    %470 = arith.divf %468, %469 : vector<16x1xf32>
    %471 = vector.broadcast %463 : vector<16x1xf32> to vector<16x32xf32>
    %472 = arith.subf %455, %471 : vector<16x32xf32>
    %cst_246 = arith.constant 9.99999974E-6 : f32
    %473 = vector.broadcast %cst_246 : f32 to vector<16x1xf32>
    %474 = arith.addf %470, %473 : vector<16x1xf32>
    %475 = math.rsqrt %474 : vector<16x1xf32>
    %476 = vector.broadcast %475 : vector<16x1xf32> to vector<16x32xf32>
    %477 = arith.mulf %472, %476 : vector<16x32xf32>
    %478 = vector.broadcast %457 : vector<1x32xf32> to vector<16x32xf32>
    %479 = arith.mulf %477, %478 : vector<16x32xf32>
    %480 = vector.broadcast %459 : vector<1x32xf32> to vector<16x32xf32>
    %481 = arith.addf %479, %480 : vector<16x32xf32>
    %c0_247 = arith.constant 0 : index
    %c0_248 = arith.constant 0 : index
    %c0_249 = arith.constant 0 : index
    %482 = vector.load %arg33[%c0_247, %c0_248, %c0_249] : memref<2x32x32xf32, #tpu.memory_space<vmem>>, vector<1x32x32xf32>
    %483 = vector.shape_cast %482 : vector<1x32x32xf32> to vector<32x32xf32>
    %c0_250 = arith.constant 0 : index
    %c0_251 = arith.constant 0 : index
    %c0_252 = arith.constant 0 : index
    %484 = vector.load %arg34[%c0_250, %c0_251, %c0_252] : memref<2x1x32xf32, #tpu.memory_space<vmem>>, vector<1x1x32xf32>
    %485 = vector.shape_cast %484 : vector<1x1x32xf32> to vector<1x32xf32>
    %cst_253 = arith.constant dense<0.000000e+00> : vector<16x32xf32>
    %486 = tpu.matmul %481, %483, %cst_253 {dimension_numbers = #tpu.dot_dimension_numbers<[1], [0], [0], [1], [0, 0, 1, 1], [], []>} : vector<16x32xf32>, vector<32x32xf32>, vector<16x32xf32> -> vector<16x32xf32>
    %487 = vector.broadcast %485 : vector<1x32xf32> to vector<16x32xf32>
    %488 = arith.addf %486, %487 : vector<16x32xf32>
    %c0_254 = arith.constant 0 : index
    %c0_255 = arith.constant 0 : index
    %c0_256 = arith.constant 0 : index
    %489 = vector.load %arg35[%c0_254, %c0_255, %c0_256] : memref<2x32x32xf32, #tpu.memory_space<vmem>>, vector<1x32x32xf32>
    %490 = vector.shape_cast %489 : vector<1x32x32xf32> to vector<32x32xf32>
    %c0_257 = arith.constant 0 : index
    %c0_258 = arith.constant 0 : index
    %c0_259 = arith.constant 0 : index
    %491 = vector.load %arg36[%c0_257, %c0_258, %c0_259] : memref<2x1x32xf32, #tpu.memory_space<vmem>>, vector<1x1x32xf32>
    %492 = vector.shape_cast %491 : vector<1x1x32xf32> to vector<1x32xf32>
    %cst_260 = arith.constant dense<0.000000e+00> : vector<8x32xf32>
    %493 = tpu.matmul %361, %490, %cst_260 {dimension_numbers = #tpu.dot_dimension_numbers<[1], [0], [0], [1], [0, 0, 1, 1], [], []>} : vector<8x32xf32>, vector<32x32xf32>, vector<8x32xf32> -> vector<8x32xf32>
    %494 = vector.broadcast %492 : vector<1x32xf32> to vector<8x32xf32>
    %495 = arith.addf %493, %494 : vector<8x32xf32>
    %c0_261 = arith.constant 0 : index
    %c0_262 = arith.constant 0 : index
    %c0_263 = arith.constant 0 : index
    %496 = vector.load %arg37[%c0_261, %c0_262, %c0_263] : memref<2x32x32xf32, #tpu.memory_space<vmem>>, vector<1x32x32xf32>
    %497 = vector.shape_cast %496 : vector<1x32x32xf32> to vector<32x32xf32>
    %c0_264 = arith.constant 0 : index
    %c0_265 = arith.constant 0 : index
    %c0_266 = arith.constant 0 : index
    %498 = vector.load %arg38[%c0_264, %c0_265, %c0_266] : memref<2x1x32xf32, #tpu.memory_space<vmem>>, vector<1x1x32xf32>
    %499 = vector.shape_cast %498 : vector<1x1x32xf32> to vector<1x32xf32>
    %cst_267 = arith.constant dense<0.000000e+00> : vector<8x32xf32>
    %500 = tpu.matmul %361, %497, %cst_267 {dimension_numbers = #tpu.dot_dimension_numbers<[1], [0], [0], [1], [0, 0, 1, 1], [], []>} : vector<8x32xf32>, vector<32x32xf32>, vector<8x32xf32> -> vector<8x32xf32>
    %501 = vector.broadcast %499 : vector<1x32xf32> to vector<8x32xf32>
    %502 = arith.addf %500, %501 : vector<8x32xf32>
    %c0_268 = arith.constant 0 : index
    %c0_269 = arith.constant 0 : index
    %c0_270 = arith.constant 0 : index
    %503 = vector.load %arg39[%c0_268, %c0_269, %c0_270] : memref<2x32x32xf32, #tpu.memory_space<vmem>>, vector<1x32x32xf32>
    %504 = vector.shape_cast %503 : vector<1x32x32xf32> to vector<32x32xf32>
    %c0_271 = arith.constant 0 : index
    %c0_272 = arith.constant 0 : index
    %c0_273 = arith.constant 0 : index
    %505 = vector.load %arg40[%c0_271, %c0_272, %c0_273] : memref<2x1x32xf32, #tpu.memory_space<vmem>>, vector<1x1x32xf32>
    %506 = vector.shape_cast %505 : vector<1x1x32xf32> to vector<1x32xf32>
    %507 = vector.extract_strided_slice %488 {offsets = [0, 0], sizes = [16, 8], strides = [1, 1]} : vector<16x32xf32> to vector<16x8xf32>
    %508 = vector.extract_strided_slice %495 {offsets = [0, 0], sizes = [8, 8], strides = [1, 1]} : vector<8x32xf32> to vector<8x8xf32>
    %509 = vector.extract_strided_slice %502 {offsets = [0, 0], sizes = [8, 8], strides = [1, 1]} : vector<8x32xf32> to vector<8x8xf32>
    %cst_274 = arith.constant dense<0.000000e+00> : vector<16x8xf32>
    %510 = tpu.matmul %507, %508, %cst_274 {dimension_numbers = #tpu.dot_dimension_numbers<[1], [1], [0], [0], [0, 0, 1, 0], [], []>} : vector<16x8xf32>, vector<8x8xf32>, vector<16x8xf32> -> vector<16x8xf32>
    %cst_275 = arith.constant 0.353553385 : f32
    %511 = vector.broadcast %cst_275 : f32 to vector<16x8xf32>
    %512 = arith.mulf %510, %511 : vector<16x8xf32>
    %cst_276 = arith.constant dense<0xFF800000> : vector<16xf32>
    %513 = vector.multi_reduction <maximumf>, %512, %cst_276 [1] : vector<16x8xf32> to vector<16xf32>
    %514 = vector.shape_cast %513 : vector<16xf32> to vector<16x1xf32>
    %515 = vector.broadcast %514 : vector<16x1xf32> to vector<16x8xf32>
    %516 = arith.subf %512, %515 : vector<16x8xf32>
    %517 = math.exp %516 : vector<16x8xf32>
    %cst_277 = arith.constant dense<0.000000e+00> : vector<16xf32>
    %518 = vector.multi_reduction <add>, %517, %cst_277 [1] : vector<16x8xf32> to vector<16xf32>
    %519 = vector.shape_cast %518 : vector<16xf32> to vector<16x1xf32>
    %520 = vector.broadcast %519 : vector<16x1xf32> to vector<16x8xf32>
    %521 = arith.divf %517, %520 : vector<16x8xf32>
    %cst_278 = arith.constant dense<0.000000e+00> : vector<16x8xf32>
    %522 = tpu.matmul %521, %509, %cst_278 {dimension_numbers = #tpu.dot_dimension_numbers<[1], [0], [0], [1], [0, 0, 1, 1], [], []>} : vector<16x8xf32>, vector<8x8xf32>, vector<16x8xf32> -> vector<16x8xf32>
    %523 = vector.extract_strided_slice %488 {offsets = [0, 8], sizes = [16, 8], strides = [1, 1]} : vector<16x32xf32> to vector<16x8xf32>
    %524 = vector.extract_strided_slice %495 {offsets = [0, 8], sizes = [8, 8], strides = [1, 1]} : vector<8x32xf32> to vector<8x8xf32>
    %525 = vector.extract_strided_slice %502 {offsets = [0, 8], sizes = [8, 8], strides = [1, 1]} : vector<8x32xf32> to vector<8x8xf32>
    %cst_279 = arith.constant dense<0.000000e+00> : vector<16x8xf32>
    %526 = tpu.matmul %523, %524, %cst_279 {dimension_numbers = #tpu.dot_dimension_numbers<[1], [1], [0], [0], [0, 0, 1, 0], [], []>} : vector<16x8xf32>, vector<8x8xf32>, vector<16x8xf32> -> vector<16x8xf32>
    %cst_280 = arith.constant 0.353553385 : f32
    %527 = vector.broadcast %cst_280 : f32 to vector<16x8xf32>
    %528 = arith.mulf %526, %527 : vector<16x8xf32>
    %cst_281 = arith.constant dense<0xFF800000> : vector<16xf32>
    %529 = vector.multi_reduction <maximumf>, %528, %cst_281 [1] : vector<16x8xf32> to vector<16xf32>
    %530 = vector.shape_cast %529 : vector<16xf32> to vector<16x1xf32>
    %531 = vector.broadcast %530 : vector<16x1xf32> to vector<16x8xf32>
    %532 = arith.subf %528, %531 : vector<16x8xf32>
    %533 = math.exp %532 : vector<16x8xf32>
    %cst_282 = arith.constant dense<0.000000e+00> : vector<16xf32>
    %534 = vector.multi_reduction <add>, %533, %cst_282 [1] : vector<16x8xf32> to vector<16xf32>
    %535 = vector.shape_cast %534 : vector<16xf32> to vector<16x1xf32>
    %536 = vector.broadcast %535 : vector<16x1xf32> to vector<16x8xf32>
    %537 = arith.divf %533, %536 : vector<16x8xf32>
    %cst_283 = arith.constant dense<0.000000e+00> : vector<16x8xf32>
    %538 = tpu.matmul %537, %525, %cst_283 {dimension_numbers = #tpu.dot_dimension_numbers<[1], [0], [0], [1], [0, 0, 1, 1], [], []>} : vector<16x8xf32>, vector<8x8xf32>, vector<16x8xf32> -> vector<16x8xf32>
    %539 = vector.extract_strided_slice %488 {offsets = [0, 16], sizes = [16, 8], strides = [1, 1]} : vector<16x32xf32> to vector<16x8xf32>
    %540 = vector.extract_strided_slice %495 {offsets = [0, 16], sizes = [8, 8], strides = [1, 1]} : vector<8x32xf32> to vector<8x8xf32>
    %541 = vector.extract_strided_slice %502 {offsets = [0, 16], sizes = [8, 8], strides = [1, 1]} : vector<8x32xf32> to vector<8x8xf32>
    %cst_284 = arith.constant dense<0.000000e+00> : vector<16x8xf32>
    %542 = tpu.matmul %539, %540, %cst_284 {dimension_numbers = #tpu.dot_dimension_numbers<[1], [1], [0], [0], [0, 0, 1, 0], [], []>} : vector<16x8xf32>, vector<8x8xf32>, vector<16x8xf32> -> vector<16x8xf32>
    %cst_285 = arith.constant 0.353553385 : f32
    %543 = vector.broadcast %cst_285 : f32 to vector<16x8xf32>
    %544 = arith.mulf %542, %543 : vector<16x8xf32>
    %cst_286 = arith.constant dense<0xFF800000> : vector<16xf32>
    %545 = vector.multi_reduction <maximumf>, %544, %cst_286 [1] : vector<16x8xf32> to vector<16xf32>
    %546 = vector.shape_cast %545 : vector<16xf32> to vector<16x1xf32>
    %547 = vector.broadcast %546 : vector<16x1xf32> to vector<16x8xf32>
    %548 = arith.subf %544, %547 : vector<16x8xf32>
    %549 = math.exp %548 : vector<16x8xf32>
    %cst_287 = arith.constant dense<0.000000e+00> : vector<16xf32>
    %550 = vector.multi_reduction <add>, %549, %cst_287 [1] : vector<16x8xf32> to vector<16xf32>
    %551 = vector.shape_cast %550 : vector<16xf32> to vector<16x1xf32>
    %552 = vector.broadcast %551 : vector<16x1xf32> to vector<16x8xf32>
    %553 = arith.divf %549, %552 : vector<16x8xf32>
    %cst_288 = arith.constant dense<0.000000e+00> : vector<16x8xf32>
    %554 = tpu.matmul %553, %541, %cst_288 {dimension_numbers = #tpu.dot_dimension_numbers<[1], [0], [0], [1], [0, 0, 1, 1], [], []>} : vector<16x8xf32>, vector<8x8xf32>, vector<16x8xf32> -> vector<16x8xf32>
    %555 = vector.extract_strided_slice %488 {offsets = [0, 24], sizes = [16, 8], strides = [1, 1]} : vector<16x32xf32> to vector<16x8xf32>
    %556 = vector.extract_strided_slice %495 {offsets = [0, 24], sizes = [8, 8], strides = [1, 1]} : vector<8x32xf32> to vector<8x8xf32>
    %557 = vector.extract_strided_slice %502 {offsets = [0, 24], sizes = [8, 8], strides = [1, 1]} : vector<8x32xf32> to vector<8x8xf32>
    %cst_289 = arith.constant dense<0.000000e+00> : vector<16x8xf32>
    %558 = tpu.matmul %555, %556, %cst_289 {dimension_numbers = #tpu.dot_dimension_numbers<[1], [1], [0], [0], [0, 0, 1, 0], [], []>} : vector<16x8xf32>, vector<8x8xf32>, vector<16x8xf32> -> vector<16x8xf32>
    %cst_290 = arith.constant 0.353553385 : f32
    %559 = vector.broadcast %cst_290 : f32 to vector<16x8xf32>
    %560 = arith.mulf %558, %559 : vector<16x8xf32>
    %cst_291 = arith.constant dense<0xFF800000> : vector<16xf32>
    %561 = vector.multi_reduction <maximumf>, %560, %cst_291 [1] : vector<16x8xf32> to vector<16xf32>
    %562 = vector.shape_cast %561 : vector<16xf32> to vector<16x1xf32>
    %563 = vector.broadcast %562 : vector<16x1xf32> to vector<16x8xf32>
    %564 = arith.subf %560, %563 : vector<16x8xf32>
    %565 = math.exp %564 : vector<16x8xf32>
    %cst_292 = arith.constant dense<0.000000e+00> : vector<16xf32>
    %566 = vector.multi_reduction <add>, %565, %cst_292 [1] : vector<16x8xf32> to vector<16xf32>
    %567 = vector.shape_cast %566 : vector<16xf32> to vector<16x1xf32>
    %568 = vector.broadcast %567 : vector<16x1xf32> to vector<16x8xf32>
    %569 = arith.divf %565, %568 : vector<16x8xf32>
    %cst_293 = arith.constant dense<0.000000e+00> : vector<16x8xf32>
    %570 = tpu.matmul %569, %557, %cst_293 {dimension_numbers = #tpu.dot_dimension_numbers<[1], [0], [0], [1], [0, 0, 1, 1], [], []>} : vector<16x8xf32>, vector<8x8xf32>, vector<16x8xf32> -> vector<16x8xf32>
    %571 = tpu.concatenate %522, %538, %554, %570 in 1 : vector<16x8xf32>, vector<16x8xf32>, vector<16x8xf32>, vector<16x8xf32> -> vector<16x32xf32>
    %cst_294 = arith.constant dense<0.000000e+00> : vector<16x32xf32>
    %572 = tpu.matmul %571, %504, %cst_294 {dimension_numbers = #tpu.dot_dimension_numbers<[1], [0], [0], [1], [0, 0, 1, 1], [], []>} : vector<16x32xf32>, vector<32x32xf32>, vector<16x32xf32> -> vector<16x32xf32>
    %573 = vector.broadcast %506 : vector<1x32xf32> to vector<16x32xf32>
    %574 = arith.addf %572, %573 : vector<16x32xf32>
    %575 = arith.addf %481, %574 : vector<16x32xf32>
    %c0_295 = arith.constant 0 : index
    %c0_296 = arith.constant 0 : index
    %c0_297 = arith.constant 0 : index
    %576 = vector.load %arg41[%c0_295, %c0_296, %c0_297] : memref<2x1x32xf32, #tpu.memory_space<vmem>>, vector<1x1x32xf32>
    %577 = vector.shape_cast %576 : vector<1x1x32xf32> to vector<1x32xf32>
    %c0_298 = arith.constant 0 : index
    %c0_299 = arith.constant 0 : index
    %c0_300 = arith.constant 0 : index
    %578 = vector.load %arg42[%c0_298, %c0_299, %c0_300] : memref<2x1x32xf32, #tpu.memory_space<vmem>>, vector<1x1x32xf32>
    %579 = vector.shape_cast %578 : vector<1x1x32xf32> to vector<1x32xf32>
    %cst_301 = arith.constant dense<0.000000e+00> : vector<16xf32>
    %580 = vector.multi_reduction <add>, %575, %cst_301 [1] : vector<16x32xf32> to vector<16xf32>
    %581 = vector.shape_cast %580 : vector<16xf32> to vector<16x1xf32>
    %cst_302 = arith.constant 3.200000e+01 : f32
    %582 = vector.broadcast %cst_302 : f32 to vector<16x1xf32>
    %583 = arith.divf %581, %582 : vector<16x1xf32>
    %584 = vector.broadcast %583 : vector<16x1xf32> to vector<16x32xf32>
    %585 = arith.subf %575, %584 : vector<16x32xf32>
    %586 = arith.mulf %585, %585 : vector<16x32xf32>
    %cst_303 = arith.constant dense<0.000000e+00> : vector<16xf32>
    %587 = vector.multi_reduction <add>, %586, %cst_303 [1] : vector<16x32xf32> to vector<16xf32>
    %588 = vector.shape_cast %587 : vector<16xf32> to vector<16x1xf32>
    %cst_304 = arith.constant 3.200000e+01 : f32
    %589 = vector.broadcast %cst_304 : f32 to vector<16x1xf32>
    %590 = arith.divf %588, %589 : vector<16x1xf32>
    %591 = vector.broadcast %583 : vector<16x1xf32> to vector<16x32xf32>
    %592 = arith.subf %575, %591 : vector<16x32xf32>
    %cst_305 = arith.constant 9.99999974E-6 : f32
    %593 = vector.broadcast %cst_305 : f32 to vector<16x1xf32>
    %594 = arith.addf %590, %593 : vector<16x1xf32>
    %595 = math.rsqrt %594 : vector<16x1xf32>
    %596 = vector.broadcast %595 : vector<16x1xf32> to vector<16x32xf32>
    %597 = arith.mulf %592, %596 : vector<16x32xf32>
    %598 = vector.broadcast %577 : vector<1x32xf32> to vector<16x32xf32>
    %599 = arith.mulf %597, %598 : vector<16x32xf32>
    %600 = vector.broadcast %579 : vector<1x32xf32> to vector<16x32xf32>
    %601 = arith.addf %599, %600 : vector<16x32xf32>
    %c0_306 = arith.constant 0 : index
    %c0_307 = arith.constant 0 : index
    %c0_308 = arith.constant 0 : index
    %602 = vector.load %arg43[%c0_306, %c0_307, %c0_308] : memref<2x32x64xf32, #tpu.memory_space<vmem>>, vector<1x32x64xf32>
    %603 = vector.shape_cast %602 : vector<1x32x64xf32> to vector<32x64xf32>
    %c0_309 = arith.constant 0 : index
    %c0_310 = arith.constant 0 : index
    %c0_311 = arith.constant 0 : index
    %604 = vector.load %arg44[%c0_309, %c0_310, %c0_311] : memref<2x1x64xf32, #tpu.memory_space<vmem>>, vector<1x1x64xf32>
    %605 = vector.shape_cast %604 : vector<1x1x64xf32> to vector<1x64xf32>
    %cst_312 = arith.constant dense<0.000000e+00> : vector<16x64xf32>
    %606 = tpu.matmul %601, %603, %cst_312 {dimension_numbers = #tpu.dot_dimension_numbers<[1], [0], [0], [1], [0, 0, 1, 1], [], []>} : vector<16x32xf32>, vector<32x64xf32>, vector<16x64xf32> -> vector<16x64xf32>
    %607 = vector.broadcast %605 : vector<1x64xf32> to vector<16x64xf32>
    %608 = arith.addf %606, %607 : vector<16x64xf32>
    %cst_313 = arith.constant 0.000000e+00 : f32
    %609 = vector.broadcast %cst_313 : f32 to vector<16x64xf32>
    %610 = arith.maximumf %608, %609 : vector<16x64xf32>
    %c0_314 = arith.constant 0 : index
    %c0_315 = arith.constant 0 : index
    %c0_316 = arith.constant 0 : index
    %611 = vector.load %arg45[%c0_314, %c0_315, %c0_316] : memref<2x64x32xf32, #tpu.memory_space<vmem>>, vector<1x64x32xf32>
    %612 = vector.shape_cast %611 : vector<1x64x32xf32> to vector<64x32xf32>
    %c0_317 = arith.constant 0 : index
    %c0_318 = arith.constant 0 : index
    %c0_319 = arith.constant 0 : index
    %613 = vector.load %arg46[%c0_317, %c0_318, %c0_319] : memref<2x1x32xf32, #tpu.memory_space<vmem>>, vector<1x1x32xf32>
    %614 = vector.shape_cast %613 : vector<1x1x32xf32> to vector<1x32xf32>
    %cst_320 = arith.constant dense<0.000000e+00> : vector<16x32xf32>
    %615 = tpu.matmul %610, %612, %cst_320 {dimension_numbers = #tpu.dot_dimension_numbers<[1], [0], [0], [1], [0, 0, 1, 1], [], []>} : vector<16x64xf32>, vector<64x32xf32>, vector<16x32xf32> -> vector<16x32xf32>
    %616 = vector.broadcast %614 : vector<1x32xf32> to vector<16x32xf32>
    %617 = arith.addf %615, %616 : vector<16x32xf32>
    %618 = arith.addf %601, %617 : vector<16x32xf32>
    %c0_321 = arith.constant 0 : index
    %c0_322 = arith.constant 0 : index
    %c0_323 = arith.constant 0 : index
    %619 = vector.load %arg47[%c0_321, %c0_322, %c0_323] : memref<2x1x32xf32, #tpu.memory_space<vmem>>, vector<1x1x32xf32>
    %620 = vector.shape_cast %619 : vector<1x1x32xf32> to vector<1x32xf32>
    %c0_324 = arith.constant 0 : index
    %c0_325 = arith.constant 0 : index
    %c0_326 = arith.constant 0 : index
    %621 = vector.load %arg48[%c0_324, %c0_325, %c0_326] : memref<2x1x32xf32, #tpu.memory_space<vmem>>, vector<1x1x32xf32>
    %622 = vector.shape_cast %621 : vector<1x1x32xf32> to vector<1x32xf32>
    %cst_327 = arith.constant dense<0.000000e+00> : vector<16xf32>
    %623 = vector.multi_reduction <add>, %618, %cst_327 [1] : vector<16x32xf32> to vector<16xf32>
    %624 = vector.shape_cast %623 : vector<16xf32> to vector<16x1xf32>
    %cst_328 = arith.constant 3.200000e+01 : f32
    %625 = vector.broadcast %cst_328 : f32 to vector<16x1xf32>
    %626 = arith.divf %624, %625 : vector<16x1xf32>
    %627 = vector.broadcast %626 : vector<16x1xf32> to vector<16x32xf32>
    %628 = arith.subf %618, %627 : vector<16x32xf32>
    %629 = arith.mulf %628, %628 : vector<16x32xf32>
    %cst_329 = arith.constant dense<0.000000e+00> : vector<16xf32>
    %630 = vector.multi_reduction <add>, %629, %cst_329 [1] : vector<16x32xf32> to vector<16xf32>
    %631 = vector.shape_cast %630 : vector<16xf32> to vector<16x1xf32>
    %cst_330 = arith.constant 3.200000e+01 : f32
    %632 = vector.broadcast %cst_330 : f32 to vector<16x1xf32>
    %633 = arith.divf %631, %632 : vector<16x1xf32>
    %634 = vector.broadcast %626 : vector<16x1xf32> to vector<16x32xf32>
    %635 = arith.subf %618, %634 : vector<16x32xf32>
    %cst_331 = arith.constant 9.99999974E-6 : f32
    %636 = vector.broadcast %cst_331 : f32 to vector<16x1xf32>
    %637 = arith.addf %633, %636 : vector<16x1xf32>
    %638 = math.rsqrt %637 : vector<16x1xf32>
    %639 = vector.broadcast %638 : vector<16x1xf32> to vector<16x32xf32>
    %640 = arith.mulf %635, %639 : vector<16x32xf32>
    %641 = vector.broadcast %620 : vector<1x32xf32> to vector<16x32xf32>
    %642 = arith.mulf %640, %641 : vector<16x32xf32>
    %643 = vector.broadcast %622 : vector<1x32xf32> to vector<16x32xf32>
    %644 = arith.addf %642, %643 : vector<16x32xf32>
    %c1_332 = arith.constant 1 : index
    %c0_333 = arith.constant 0 : index
    %c0_334 = arith.constant 0 : index
    %645 = vector.load %arg23[%c1_332, %c0_333, %c0_334] : memref<2x32x32xf32, #tpu.memory_space<vmem>>, vector<1x32x32xf32>
    %646 = vector.shape_cast %645 : vector<1x32x32xf32> to vector<32x32xf32>
    %c1_335 = arith.constant 1 : index
    %c0_336 = arith.constant 0 : index
    %c0_337 = arith.constant 0 : index
    %647 = vector.load %arg24[%c1_335, %c0_336, %c0_337] : memref<2x1x32xf32, #tpu.memory_space<vmem>>, vector<1x1x32xf32>
    %648 = vector.shape_cast %647 : vector<1x1x32xf32> to vector<1x32xf32>
    %cst_338 = arith.constant dense<0.000000e+00> : vector<16x32xf32>
    %649 = tpu.matmul %644, %646, %cst_338 {dimension_numbers = #tpu.dot_dimension_numbers<[1], [0], [0], [1], [0, 0, 1, 1], [], []>} : vector<16x32xf32>, vector<32x32xf32>, vector<16x32xf32> -> vector<16x32xf32>
    %650 = vector.broadcast %648 : vector<1x32xf32> to vector<16x32xf32>
    %651 = arith.addf %649, %650 : vector<16x32xf32>
    %c1_339 = arith.constant 1 : index
    %c0_340 = arith.constant 0 : index
    %c0_341 = arith.constant 0 : index
    %652 = vector.load %arg25[%c1_339, %c0_340, %c0_341] : memref<2x32x32xf32, #tpu.memory_space<vmem>>, vector<1x32x32xf32>
    %653 = vector.shape_cast %652 : vector<1x32x32xf32> to vector<32x32xf32>
    %c1_342 = arith.constant 1 : index
    %c0_343 = arith.constant 0 : index
    %c0_344 = arith.constant 0 : index
    %654 = vector.load %arg26[%c1_342, %c0_343, %c0_344] : memref<2x1x32xf32, #tpu.memory_space<vmem>>, vector<1x1x32xf32>
    %655 = vector.shape_cast %654 : vector<1x1x32xf32> to vector<1x32xf32>
    %cst_345 = arith.constant dense<0.000000e+00> : vector<16x32xf32>
    %656 = tpu.matmul %644, %653, %cst_345 {dimension_numbers = #tpu.dot_dimension_numbers<[1], [0], [0], [1], [0, 0, 1, 1], [], []>} : vector<16x32xf32>, vector<32x32xf32>, vector<16x32xf32> -> vector<16x32xf32>
    %657 = vector.broadcast %655 : vector<1x32xf32> to vector<16x32xf32>
    %658 = arith.addf %656, %657 : vector<16x32xf32>
    %c1_346 = arith.constant 1 : index
    %c0_347 = arith.constant 0 : index
    %c0_348 = arith.constant 0 : index
    %659 = vector.load %arg27[%c1_346, %c0_347, %c0_348] : memref<2x32x32xf32, #tpu.memory_space<vmem>>, vector<1x32x32xf32>
    %660 = vector.shape_cast %659 : vector<1x32x32xf32> to vector<32x32xf32>
    %c1_349 = arith.constant 1 : index
    %c0_350 = arith.constant 0 : index
    %c0_351 = arith.constant 0 : index
    %661 = vector.load %arg28[%c1_349, %c0_350, %c0_351] : memref<2x1x32xf32, #tpu.memory_space<vmem>>, vector<1x1x32xf32>
    %662 = vector.shape_cast %661 : vector<1x1x32xf32> to vector<1x32xf32>
    %cst_352 = arith.constant dense<0.000000e+00> : vector<16x32xf32>
    %663 = tpu.matmul %644, %660, %cst_352 {dimension_numbers = #tpu.dot_dimension_numbers<[1], [0], [0], [1], [0, 0, 1, 1], [], []>} : vector<16x32xf32>, vector<32x32xf32>, vector<16x32xf32> -> vector<16x32xf32>
    %664 = vector.broadcast %662 : vector<1x32xf32> to vector<16x32xf32>
    %665 = arith.addf %663, %664 : vector<16x32xf32>
    %c1_353 = arith.constant 1 : index
    %c0_354 = arith.constant 0 : index
    %c0_355 = arith.constant 0 : index
    %666 = vector.load %arg29[%c1_353, %c0_354, %c0_355] : memref<2x32x32xf32, #tpu.memory_space<vmem>>, vector<1x32x32xf32>
    %667 = vector.shape_cast %666 : vector<1x32x32xf32> to vector<32x32xf32>
    %c1_356 = arith.constant 1 : index
    %c0_357 = arith.constant 0 : index
    %c0_358 = arith.constant 0 : index
    %668 = vector.load %arg30[%c1_356, %c0_357, %c0_358] : memref<2x1x32xf32, #tpu.memory_space<vmem>>, vector<1x1x32xf32>
    %669 = vector.shape_cast %668 : vector<1x1x32xf32> to vector<1x32xf32>
    %670 = vector.extract_strided_slice %651 {offsets = [0, 0], sizes = [16, 8], strides = [1, 1]} : vector<16x32xf32> to vector<16x8xf32>
    %671 = vector.extract_strided_slice %658 {offsets = [0, 0], sizes = [16, 8], strides = [1, 1]} : vector<16x32xf32> to vector<16x8xf32>
    %672 = vector.extract_strided_slice %665 {offsets = [0, 0], sizes = [16, 8], strides = [1, 1]} : vector<16x32xf32> to vector<16x8xf32>
    %cst_359 = arith.constant dense<0.000000e+00> : vector<16x16xf32>
    %673 = tpu.matmul %670, %671, %cst_359 {dimension_numbers = #tpu.dot_dimension_numbers<[1], [1], [0], [0], [0, 0, 1, 0], [], []>} : vector<16x8xf32>, vector<16x8xf32>, vector<16x16xf32> -> vector<16x16xf32>
    %cst_360 = arith.constant 0.353553385 : f32
    %674 = vector.broadcast %cst_360 : f32 to vector<16x16xf32>
    %675 = arith.mulf %673, %674 : vector<16x16xf32>
    %cst_361 = arith.constant dense<0xFF800000> : vector<16xf32>
    %676 = vector.multi_reduction <maximumf>, %675, %cst_361 [1] : vector<16x16xf32> to vector<16xf32>
    %677 = vector.shape_cast %676 : vector<16xf32> to vector<16x1xf32>
    %678 = vector.broadcast %677 : vector<16x1xf32> to vector<16x16xf32>
    %679 = arith.subf %675, %678 : vector<16x16xf32>
    %680 = math.exp %679 : vector<16x16xf32>
    %cst_362 = arith.constant dense<0.000000e+00> : vector<16xf32>
    %681 = vector.multi_reduction <add>, %680, %cst_362 [1] : vector<16x16xf32> to vector<16xf32>
    %682 = vector.shape_cast %681 : vector<16xf32> to vector<16x1xf32>
    %683 = vector.broadcast %682 : vector<16x1xf32> to vector<16x16xf32>
    %684 = arith.divf %680, %683 : vector<16x16xf32>
    %cst_363 = arith.constant dense<0.000000e+00> : vector<16x8xf32>
    %685 = tpu.matmul %684, %672, %cst_363 {dimension_numbers = #tpu.dot_dimension_numbers<[1], [0], [0], [1], [0, 0, 1, 1], [], []>} : vector<16x16xf32>, vector<16x8xf32>, vector<16x8xf32> -> vector<16x8xf32>
    %686 = vector.extract_strided_slice %651 {offsets = [0, 8], sizes = [16, 8], strides = [1, 1]} : vector<16x32xf32> to vector<16x8xf32>
    %687 = vector.extract_strided_slice %658 {offsets = [0, 8], sizes = [16, 8], strides = [1, 1]} : vector<16x32xf32> to vector<16x8xf32>
    %688 = vector.extract_strided_slice %665 {offsets = [0, 8], sizes = [16, 8], strides = [1, 1]} : vector<16x32xf32> to vector<16x8xf32>
    %cst_364 = arith.constant dense<0.000000e+00> : vector<16x16xf32>
    %689 = tpu.matmul %686, %687, %cst_364 {dimension_numbers = #tpu.dot_dimension_numbers<[1], [1], [0], [0], [0, 0, 1, 0], [], []>} : vector<16x8xf32>, vector<16x8xf32>, vector<16x16xf32> -> vector<16x16xf32>
    %cst_365 = arith.constant 0.353553385 : f32
    %690 = vector.broadcast %cst_365 : f32 to vector<16x16xf32>
    %691 = arith.mulf %689, %690 : vector<16x16xf32>
    %cst_366 = arith.constant dense<0xFF800000> : vector<16xf32>
    %692 = vector.multi_reduction <maximumf>, %691, %cst_366 [1] : vector<16x16xf32> to vector<16xf32>
    %693 = vector.shape_cast %692 : vector<16xf32> to vector<16x1xf32>
    %694 = vector.broadcast %693 : vector<16x1xf32> to vector<16x16xf32>
    %695 = arith.subf %691, %694 : vector<16x16xf32>
    %696 = math.exp %695 : vector<16x16xf32>
    %cst_367 = arith.constant dense<0.000000e+00> : vector<16xf32>
    %697 = vector.multi_reduction <add>, %696, %cst_367 [1] : vector<16x16xf32> to vector<16xf32>
    %698 = vector.shape_cast %697 : vector<16xf32> to vector<16x1xf32>
    %699 = vector.broadcast %698 : vector<16x1xf32> to vector<16x16xf32>
    %700 = arith.divf %696, %699 : vector<16x16xf32>
    %cst_368 = arith.constant dense<0.000000e+00> : vector<16x8xf32>
    %701 = tpu.matmul %700, %688, %cst_368 {dimension_numbers = #tpu.dot_dimension_numbers<[1], [0], [0], [1], [0, 0, 1, 1], [], []>} : vector<16x16xf32>, vector<16x8xf32>, vector<16x8xf32> -> vector<16x8xf32>
    %702 = vector.extract_strided_slice %651 {offsets = [0, 16], sizes = [16, 8], strides = [1, 1]} : vector<16x32xf32> to vector<16x8xf32>
    %703 = vector.extract_strided_slice %658 {offsets = [0, 16], sizes = [16, 8], strides = [1, 1]} : vector<16x32xf32> to vector<16x8xf32>
    %704 = vector.extract_strided_slice %665 {offsets = [0, 16], sizes = [16, 8], strides = [1, 1]} : vector<16x32xf32> to vector<16x8xf32>
    %cst_369 = arith.constant dense<0.000000e+00> : vector<16x16xf32>
    %705 = tpu.matmul %702, %703, %cst_369 {dimension_numbers = #tpu.dot_dimension_numbers<[1], [1], [0], [0], [0, 0, 1, 0], [], []>} : vector<16x8xf32>, vector<16x8xf32>, vector<16x16xf32> -> vector<16x16xf32>
    %cst_370 = arith.constant 0.353553385 : f32
    %706 = vector.broadcast %cst_370 : f32 to vector<16x16xf32>
    %707 = arith.mulf %705, %706 : vector<16x16xf32>
    %cst_371 = arith.constant dense<0xFF800000> : vector<16xf32>
    %708 = vector.multi_reduction <maximumf>, %707, %cst_371 [1] : vector<16x16xf32> to vector<16xf32>
    %709 = vector.shape_cast %708 : vector<16xf32> to vector<16x1xf32>
    %710 = vector.broadcast %709 : vector<16x1xf32> to vector<16x16xf32>
    %711 = arith.subf %707, %710 : vector<16x16xf32>
    %712 = math.exp %711 : vector<16x16xf32>
    %cst_372 = arith.constant dense<0.000000e+00> : vector<16xf32>
    %713 = vector.multi_reduction <add>, %712, %cst_372 [1] : vector<16x16xf32> to vector<16xf32>
    %714 = vector.shape_cast %713 : vector<16xf32> to vector<16x1xf32>
    %715 = vector.broadcast %714 : vector<16x1xf32> to vector<16x16xf32>
    %716 = arith.divf %712, %715 : vector<16x16xf32>
    %cst_373 = arith.constant dense<0.000000e+00> : vector<16x8xf32>
    %717 = tpu.matmul %716, %704, %cst_373 {dimension_numbers = #tpu.dot_dimension_numbers<[1], [0], [0], [1], [0, 0, 1, 1], [], []>} : vector<16x16xf32>, vector<16x8xf32>, vector<16x8xf32> -> vector<16x8xf32>
    %718 = vector.extract_strided_slice %651 {offsets = [0, 24], sizes = [16, 8], strides = [1, 1]} : vector<16x32xf32> to vector<16x8xf32>
    %719 = vector.extract_strided_slice %658 {offsets = [0, 24], sizes = [16, 8], strides = [1, 1]} : vector<16x32xf32> to vector<16x8xf32>
    %720 = vector.extract_strided_slice %665 {offsets = [0, 24], sizes = [16, 8], strides = [1, 1]} : vector<16x32xf32> to vector<16x8xf32>
    %cst_374 = arith.constant dense<0.000000e+00> : vector<16x16xf32>
    %721 = tpu.matmul %718, %719, %cst_374 {dimension_numbers = #tpu.dot_dimension_numbers<[1], [1], [0], [0], [0, 0, 1, 0], [], []>} : vector<16x8xf32>, vector<16x8xf32>, vector<16x16xf32> -> vector<16x16xf32>
    %cst_375 = arith.constant 0.353553385 : f32
    %722 = vector.broadcast %cst_375 : f32 to vector<16x16xf32>
    %723 = arith.mulf %721, %722 : vector<16x16xf32>
    %cst_376 = arith.constant dense<0xFF800000> : vector<16xf32>
    %724 = vector.multi_reduction <maximumf>, %723, %cst_376 [1] : vector<16x16xf32> to vector<16xf32>
    %725 = vector.shape_cast %724 : vector<16xf32> to vector<16x1xf32>
    %726 = vector.broadcast %725 : vector<16x1xf32> to vector<16x16xf32>
    %727 = arith.subf %723, %726 : vector<16x16xf32>
    %728 = math.exp %727 : vector<16x16xf32>
    %cst_377 = arith.constant dense<0.000000e+00> : vector<16xf32>
    %729 = vector.multi_reduction <add>, %728, %cst_377 [1] : vector<16x16xf32> to vector<16xf32>
    %730 = vector.shape_cast %729 : vector<16xf32> to vector<16x1xf32>
    %731 = vector.broadcast %730 : vector<16x1xf32> to vector<16x16xf32>
    %732 = arith.divf %728, %731 : vector<16x16xf32>
    %cst_378 = arith.constant dense<0.000000e+00> : vector<16x8xf32>
    %733 = tpu.matmul %732, %720, %cst_378 {dimension_numbers = #tpu.dot_dimension_numbers<[1], [0], [0], [1], [0, 0, 1, 1], [], []>} : vector<16x16xf32>, vector<16x8xf32>, vector<16x8xf32> -> vector<16x8xf32>
    %734 = tpu.concatenate %685, %701, %717, %733 in 1 : vector<16x8xf32>, vector<16x8xf32>, vector<16x8xf32>, vector<16x8xf32> -> vector<16x32xf32>
    %cst_379 = arith.constant dense<0.000000e+00> : vector<16x32xf32>
    %735 = tpu.matmul %734, %667, %cst_379 {dimension_numbers = #tpu.dot_dimension_numbers<[1], [0], [0], [1], [0, 0, 1, 1], [], []>} : vector<16x32xf32>, vector<32x32xf32>, vector<16x32xf32> -> vector<16x32xf32>
    %736 = vector.broadcast %669 : vector<1x32xf32> to vector<16x32xf32>
    %737 = arith.addf %735, %736 : vector<16x32xf32>
    %738 = arith.addf %644, %737 : vector<16x32xf32>
    %c1_380 = arith.constant 1 : index
    %c0_381 = arith.constant 0 : index
    %c0_382 = arith.constant 0 : index
    %739 = vector.load %arg31[%c1_380, %c0_381, %c0_382] : memref<2x1x32xf32, #tpu.memory_space<vmem>>, vector<1x1x32xf32>
    %740 = vector.shape_cast %739 : vector<1x1x32xf32> to vector<1x32xf32>
    %c1_383 = arith.constant 1 : index
    %c0_384 = arith.constant 0 : index
    %c0_385 = arith.constant 0 : index
    %741 = vector.load %arg32[%c1_383, %c0_384, %c0_385] : memref<2x1x32xf32, #tpu.memory_space<vmem>>, vector<1x1x32xf32>
    %742 = vector.shape_cast %741 : vector<1x1x32xf32> to vector<1x32xf32>
    %cst_386 = arith.constant dense<0.000000e+00> : vector<16xf32>
    %743 = vector.multi_reduction <add>, %738, %cst_386 [1] : vector<16x32xf32> to vector<16xf32>
    %744 = vector.shape_cast %743 : vector<16xf32> to vector<16x1xf32>
    %cst_387 = arith.constant 3.200000e+01 : f32
    %745 = vector.broadcast %cst_387 : f32 to vector<16x1xf32>
    %746 = arith.divf %744, %745 : vector<16x1xf32>
    %747 = vector.broadcast %746 : vector<16x1xf32> to vector<16x32xf32>
    %748 = arith.subf %738, %747 : vector<16x32xf32>
    %749 = arith.mulf %748, %748 : vector<16x32xf32>
    %cst_388 = arith.constant dense<0.000000e+00> : vector<16xf32>
    %750 = vector.multi_reduction <add>, %749, %cst_388 [1] : vector<16x32xf32> to vector<16xf32>
    %751 = vector.shape_cast %750 : vector<16xf32> to vector<16x1xf32>
    %cst_389 = arith.constant 3.200000e+01 : f32
    %752 = vector.broadcast %cst_389 : f32 to vector<16x1xf32>
    %753 = arith.divf %751, %752 : vector<16x1xf32>
    %754 = vector.broadcast %746 : vector<16x1xf32> to vector<16x32xf32>
    %755 = arith.subf %738, %754 : vector<16x32xf32>
    %cst_390 = arith.constant 9.99999974E-6 : f32
    %756 = vector.broadcast %cst_390 : f32 to vector<16x1xf32>
    %757 = arith.addf %753, %756 : vector<16x1xf32>
    %758 = math.rsqrt %757 : vector<16x1xf32>
    %759 = vector.broadcast %758 : vector<16x1xf32> to vector<16x32xf32>
    %760 = arith.mulf %755, %759 : vector<16x32xf32>
    %761 = vector.broadcast %740 : vector<1x32xf32> to vector<16x32xf32>
    %762 = arith.mulf %760, %761 : vector<16x32xf32>
    %763 = vector.broadcast %742 : vector<1x32xf32> to vector<16x32xf32>
    %764 = arith.addf %762, %763 : vector<16x32xf32>
    %c1_391 = arith.constant 1 : index
    %c0_392 = arith.constant 0 : index
    %c0_393 = arith.constant 0 : index
    %765 = vector.load %arg33[%c1_391, %c0_392, %c0_393] : memref<2x32x32xf32, #tpu.memory_space<vmem>>, vector<1x32x32xf32>
    %766 = vector.shape_cast %765 : vector<1x32x32xf32> to vector<32x32xf32>
    %c1_394 = arith.constant 1 : index
    %c0_395 = arith.constant 0 : index
    %c0_396 = arith.constant 0 : index
    %767 = vector.load %arg34[%c1_394, %c0_395, %c0_396] : memref<2x1x32xf32, #tpu.memory_space<vmem>>, vector<1x1x32xf32>
    %768 = vector.shape_cast %767 : vector<1x1x32xf32> to vector<1x32xf32>
    %cst_397 = arith.constant dense<0.000000e+00> : vector<16x32xf32>
    %769 = tpu.matmul %764, %766, %cst_397 {dimension_numbers = #tpu.dot_dimension_numbers<[1], [0], [0], [1], [0, 0, 1, 1], [], []>} : vector<16x32xf32>, vector<32x32xf32>, vector<16x32xf32> -> vector<16x32xf32>
    %770 = vector.broadcast %768 : vector<1x32xf32> to vector<16x32xf32>
    %771 = arith.addf %769, %770 : vector<16x32xf32>
    %c1_398 = arith.constant 1 : index
    %c0_399 = arith.constant 0 : index
    %c0_400 = arith.constant 0 : index
    %772 = vector.load %arg35[%c1_398, %c0_399, %c0_400] : memref<2x32x32xf32, #tpu.memory_space<vmem>>, vector<1x32x32xf32>
    %773 = vector.shape_cast %772 : vector<1x32x32xf32> to vector<32x32xf32>
    %c1_401 = arith.constant 1 : index
    %c0_402 = arith.constant 0 : index
    %c0_403 = arith.constant 0 : index
    %774 = vector.load %arg36[%c1_401, %c0_402, %c0_403] : memref<2x1x32xf32, #tpu.memory_space<vmem>>, vector<1x1x32xf32>
    %775 = vector.shape_cast %774 : vector<1x1x32xf32> to vector<1x32xf32>
    %cst_404 = arith.constant dense<0.000000e+00> : vector<8x32xf32>
    %776 = tpu.matmul %361, %773, %cst_404 {dimension_numbers = #tpu.dot_dimension_numbers<[1], [0], [0], [1], [0, 0, 1, 1], [], []>} : vector<8x32xf32>, vector<32x32xf32>, vector<8x32xf32> -> vector<8x32xf32>
    %777 = vector.broadcast %775 : vector<1x32xf32> to vector<8x32xf32>
    %778 = arith.addf %776, %777 : vector<8x32xf32>
    %c1_405 = arith.constant 1 : index
    %c0_406 = arith.constant 0 : index
    %c0_407 = arith.constant 0 : index
    %779 = vector.load %arg37[%c1_405, %c0_406, %c0_407] : memref<2x32x32xf32, #tpu.memory_space<vmem>>, vector<1x32x32xf32>
    %780 = vector.shape_cast %779 : vector<1x32x32xf32> to vector<32x32xf32>
    %c1_408 = arith.constant 1 : index
    %c0_409 = arith.constant 0 : index
    %c0_410 = arith.constant 0 : index
    %781 = vector.load %arg38[%c1_408, %c0_409, %c0_410] : memref<2x1x32xf32, #tpu.memory_space<vmem>>, vector<1x1x32xf32>
    %782 = vector.shape_cast %781 : vector<1x1x32xf32> to vector<1x32xf32>
    %cst_411 = arith.constant dense<0.000000e+00> : vector<8x32xf32>
    %783 = tpu.matmul %361, %780, %cst_411 {dimension_numbers = #tpu.dot_dimension_numbers<[1], [0], [0], [1], [0, 0, 1, 1], [], []>} : vector<8x32xf32>, vector<32x32xf32>, vector<8x32xf32> -> vector<8x32xf32>
    %784 = vector.broadcast %782 : vector<1x32xf32> to vector<8x32xf32>
    %785 = arith.addf %783, %784 : vector<8x32xf32>
    %c1_412 = arith.constant 1 : index
    %c0_413 = arith.constant 0 : index
    %c0_414 = arith.constant 0 : index
    %786 = vector.load %arg39[%c1_412, %c0_413, %c0_414] : memref<2x32x32xf32, #tpu.memory_space<vmem>>, vector<1x32x32xf32>
    %787 = vector.shape_cast %786 : vector<1x32x32xf32> to vector<32x32xf32>
    %c1_415 = arith.constant 1 : index
    %c0_416 = arith.constant 0 : index
    %c0_417 = arith.constant 0 : index
    %788 = vector.load %arg40[%c1_415, %c0_416, %c0_417] : memref<2x1x32xf32, #tpu.memory_space<vmem>>, vector<1x1x32xf32>
    %789 = vector.shape_cast %788 : vector<1x1x32xf32> to vector<1x32xf32>
    %790 = vector.extract_strided_slice %771 {offsets = [0, 0], sizes = [16, 8], strides = [1, 1]} : vector<16x32xf32> to vector<16x8xf32>
    %791 = vector.extract_strided_slice %778 {offsets = [0, 0], sizes = [8, 8], strides = [1, 1]} : vector<8x32xf32> to vector<8x8xf32>
    %792 = vector.extract_strided_slice %785 {offsets = [0, 0], sizes = [8, 8], strides = [1, 1]} : vector<8x32xf32> to vector<8x8xf32>
    %cst_418 = arith.constant dense<0.000000e+00> : vector<16x8xf32>
    %793 = tpu.matmul %790, %791, %cst_418 {dimension_numbers = #tpu.dot_dimension_numbers<[1], [1], [0], [0], [0, 0, 1, 0], [], []>} : vector<16x8xf32>, vector<8x8xf32>, vector<16x8xf32> -> vector<16x8xf32>
    %cst_419 = arith.constant 0.353553385 : f32
    %794 = vector.broadcast %cst_419 : f32 to vector<16x8xf32>
    %795 = arith.mulf %793, %794 : vector<16x8xf32>
    %cst_420 = arith.constant dense<0xFF800000> : vector<16xf32>
    %796 = vector.multi_reduction <maximumf>, %795, %cst_420 [1] : vector<16x8xf32> to vector<16xf32>
    %797 = vector.shape_cast %796 : vector<16xf32> to vector<16x1xf32>
    %798 = vector.broadcast %797 : vector<16x1xf32> to vector<16x8xf32>
    %799 = arith.subf %795, %798 : vector<16x8xf32>
    %800 = math.exp %799 : vector<16x8xf32>
    %cst_421 = arith.constant dense<0.000000e+00> : vector<16xf32>
    %801 = vector.multi_reduction <add>, %800, %cst_421 [1] : vector<16x8xf32> to vector<16xf32>
    %802 = vector.shape_cast %801 : vector<16xf32> to vector<16x1xf32>
    %803 = vector.broadcast %802 : vector<16x1xf32> to vector<16x8xf32>
    %804 = arith.divf %800, %803 : vector<16x8xf32>
    %cst_422 = arith.constant dense<0.000000e+00> : vector<16x8xf32>
    %805 = tpu.matmul %804, %792, %cst_422 {dimension_numbers = #tpu.dot_dimension_numbers<[1], [0], [0], [1], [0, 0, 1, 1], [], []>} : vector<16x8xf32>, vector<8x8xf32>, vector<16x8xf32> -> vector<16x8xf32>
    %806 = vector.extract_strided_slice %771 {offsets = [0, 8], sizes = [16, 8], strides = [1, 1]} : vector<16x32xf32> to vector<16x8xf32>
    %807 = vector.extract_strided_slice %778 {offsets = [0, 8], sizes = [8, 8], strides = [1, 1]} : vector<8x32xf32> to vector<8x8xf32>
    %808 = vector.extract_strided_slice %785 {offsets = [0, 8], sizes = [8, 8], strides = [1, 1]} : vector<8x32xf32> to vector<8x8xf32>
    %cst_423 = arith.constant dense<0.000000e+00> : vector<16x8xf32>
    %809 = tpu.matmul %806, %807, %cst_423 {dimension_numbers = #tpu.dot_dimension_numbers<[1], [1], [0], [0], [0, 0, 1, 0], [], []>} : vector<16x8xf32>, vector<8x8xf32>, vector<16x8xf32> -> vector<16x8xf32>
    %cst_424 = arith.constant 0.353553385 : f32
    %810 = vector.broadcast %cst_424 : f32 to vector<16x8xf32>
    %811 = arith.mulf %809, %810 : vector<16x8xf32>
    %cst_425 = arith.constant dense<0xFF800000> : vector<16xf32>
    %812 = vector.multi_reduction <maximumf>, %811, %cst_425 [1] : vector<16x8xf32> to vector<16xf32>
    %813 = vector.shape_cast %812 : vector<16xf32> to vector<16x1xf32>
    %814 = vector.broadcast %813 : vector<16x1xf32> to vector<16x8xf32>
    %815 = arith.subf %811, %814 : vector<16x8xf32>
    %816 = math.exp %815 : vector<16x8xf32>
    %cst_426 = arith.constant dense<0.000000e+00> : vector<16xf32>
    %817 = vector.multi_reduction <add>, %816, %cst_426 [1] : vector<16x8xf32> to vector<16xf32>
    %818 = vector.shape_cast %817 : vector<16xf32> to vector<16x1xf32>
    %819 = vector.broadcast %818 : vector<16x1xf32> to vector<16x8xf32>
    %820 = arith.divf %816, %819 : vector<16x8xf32>
    %cst_427 = arith.constant dense<0.000000e+00> : vector<16x8xf32>
    %821 = tpu.matmul %820, %808, %cst_427 {dimension_numbers = #tpu.dot_dimension_numbers<[1], [0], [0], [1], [0, 0, 1, 1], [], []>} : vector<16x8xf32>, vector<8x8xf32>, vector<16x8xf32> -> vector<16x8xf32>
    %822 = vector.extract_strided_slice %771 {offsets = [0, 16], sizes = [16, 8], strides = [1, 1]} : vector<16x32xf32> to vector<16x8xf32>
    %823 = vector.extract_strided_slice %778 {offsets = [0, 16], sizes = [8, 8], strides = [1, 1]} : vector<8x32xf32> to vector<8x8xf32>
    %824 = vector.extract_strided_slice %785 {offsets = [0, 16], sizes = [8, 8], strides = [1, 1]} : vector<8x32xf32> to vector<8x8xf32>
    %cst_428 = arith.constant dense<0.000000e+00> : vector<16x8xf32>
    %825 = tpu.matmul %822, %823, %cst_428 {dimension_numbers = #tpu.dot_dimension_numbers<[1], [1], [0], [0], [0, 0, 1, 0], [], []>} : vector<16x8xf32>, vector<8x8xf32>, vector<16x8xf32> -> vector<16x8xf32>
    %cst_429 = arith.constant 0.353553385 : f32
    %826 = vector.broadcast %cst_429 : f32 to vector<16x8xf32>
    %827 = arith.mulf %825, %826 : vector<16x8xf32>
    %cst_430 = arith.constant dense<0xFF800000> : vector<16xf32>
    %828 = vector.multi_reduction <maximumf>, %827, %cst_430 [1] : vector<16x8xf32> to vector<16xf32>
    %829 = vector.shape_cast %828 : vector<16xf32> to vector<16x1xf32>
    %830 = vector.broadcast %829 : vector<16x1xf32> to vector<16x8xf32>
    %831 = arith.subf %827, %830 : vector<16x8xf32>
    %832 = math.exp %831 : vector<16x8xf32>
    %cst_431 = arith.constant dense<0.000000e+00> : vector<16xf32>
    %833 = vector.multi_reduction <add>, %832, %cst_431 [1] : vector<16x8xf32> to vector<16xf32>
    %834 = vector.shape_cast %833 : vector<16xf32> to vector<16x1xf32>
    %835 = vector.broadcast %834 : vector<16x1xf32> to vector<16x8xf32>
    %836 = arith.divf %832, %835 : vector<16x8xf32>
    %cst_432 = arith.constant dense<0.000000e+00> : vector<16x8xf32>
    %837 = tpu.matmul %836, %824, %cst_432 {dimension_numbers = #tpu.dot_dimension_numbers<[1], [0], [0], [1], [0, 0, 1, 1], [], []>} : vector<16x8xf32>, vector<8x8xf32>, vector<16x8xf32> -> vector<16x8xf32>
    %838 = vector.extract_strided_slice %771 {offsets = [0, 24], sizes = [16, 8], strides = [1, 1]} : vector<16x32xf32> to vector<16x8xf32>
    %839 = vector.extract_strided_slice %778 {offsets = [0, 24], sizes = [8, 8], strides = [1, 1]} : vector<8x32xf32> to vector<8x8xf32>
    %840 = vector.extract_strided_slice %785 {offsets = [0, 24], sizes = [8, 8], strides = [1, 1]} : vector<8x32xf32> to vector<8x8xf32>
    %cst_433 = arith.constant dense<0.000000e+00> : vector<16x8xf32>
    %841 = tpu.matmul %838, %839, %cst_433 {dimension_numbers = #tpu.dot_dimension_numbers<[1], [1], [0], [0], [0, 0, 1, 0], [], []>} : vector<16x8xf32>, vector<8x8xf32>, vector<16x8xf32> -> vector<16x8xf32>
    %cst_434 = arith.constant 0.353553385 : f32
    %842 = vector.broadcast %cst_434 : f32 to vector<16x8xf32>
    %843 = arith.mulf %841, %842 : vector<16x8xf32>
    %cst_435 = arith.constant dense<0xFF800000> : vector<16xf32>
    %844 = vector.multi_reduction <maximumf>, %843, %cst_435 [1] : vector<16x8xf32> to vector<16xf32>
    %845 = vector.shape_cast %844 : vector<16xf32> to vector<16x1xf32>
    %846 = vector.broadcast %845 : vector<16x1xf32> to vector<16x8xf32>
    %847 = arith.subf %843, %846 : vector<16x8xf32>
    %848 = math.exp %847 : vector<16x8xf32>
    %cst_436 = arith.constant dense<0.000000e+00> : vector<16xf32>
    %849 = vector.multi_reduction <add>, %848, %cst_436 [1] : vector<16x8xf32> to vector<16xf32>
    %850 = vector.shape_cast %849 : vector<16xf32> to vector<16x1xf32>
    %851 = vector.broadcast %850 : vector<16x1xf32> to vector<16x8xf32>
    %852 = arith.divf %848, %851 : vector<16x8xf32>
    %cst_437 = arith.constant dense<0.000000e+00> : vector<16x8xf32>
    %853 = tpu.matmul %852, %840, %cst_437 {dimension_numbers = #tpu.dot_dimension_numbers<[1], [0], [0], [1], [0, 0, 1, 1], [], []>} : vector<16x8xf32>, vector<8x8xf32>, vector<16x8xf32> -> vector<16x8xf32>
    %854 = tpu.concatenate %805, %821, %837, %853 in 1 : vector<16x8xf32>, vector<16x8xf32>, vector<16x8xf32>, vector<16x8xf32> -> vector<16x32xf32>
    %cst_438 = arith.constant dense<0.000000e+00> : vector<16x32xf32>
    %855 = tpu.matmul %854, %787, %cst_438 {dimension_numbers = #tpu.dot_dimension_numbers<[1], [0], [0], [1], [0, 0, 1, 1], [], []>} : vector<16x32xf32>, vector<32x32xf32>, vector<16x32xf32> -> vector<16x32xf32>
    %856 = vector.broadcast %789 : vector<1x32xf32> to vector<16x32xf32>
    %857 = arith.addf %855, %856 : vector<16x32xf32>
    %858 = arith.addf %764, %857 : vector<16x32xf32>
    %c1_439 = arith.constant 1 : index
    %c0_440 = arith.constant 0 : index
    %c0_441 = arith.constant 0 : index
    %859 = vector.load %arg41[%c1_439, %c0_440, %c0_441] : memref<2x1x32xf32, #tpu.memory_space<vmem>>, vector<1x1x32xf32>
    %860 = vector.shape_cast %859 : vector<1x1x32xf32> to vector<1x32xf32>
    %c1_442 = arith.constant 1 : index
    %c0_443 = arith.constant 0 : index
    %c0_444 = arith.constant 0 : index
    %861 = vector.load %arg42[%c1_442, %c0_443, %c0_444] : memref<2x1x32xf32, #tpu.memory_space<vmem>>, vector<1x1x32xf32>
    %862 = vector.shape_cast %861 : vector<1x1x32xf32> to vector<1x32xf32>
    %cst_445 = arith.constant dense<0.000000e+00> : vector<16xf32>
    %863 = vector.multi_reduction <add>, %858, %cst_445 [1] : vector<16x32xf32> to vector<16xf32>
    %864 = vector.shape_cast %863 : vector<16xf32> to vector<16x1xf32>
    %cst_446 = arith.constant 3.200000e+01 : f32
    %865 = vector.broadcast %cst_446 : f32 to vector<16x1xf32>
    %866 = arith.divf %864, %865 : vector<16x1xf32>
    %867 = vector.broadcast %866 : vector<16x1xf32> to vector<16x32xf32>
    %868 = arith.subf %858, %867 : vector<16x32xf32>
    %869 = arith.mulf %868, %868 : vector<16x32xf32>
    %cst_447 = arith.constant dense<0.000000e+00> : vector<16xf32>
    %870 = vector.multi_reduction <add>, %869, %cst_447 [1] : vector<16x32xf32> to vector<16xf32>
    %871 = vector.shape_cast %870 : vector<16xf32> to vector<16x1xf32>
    %cst_448 = arith.constant 3.200000e+01 : f32
    %872 = vector.broadcast %cst_448 : f32 to vector<16x1xf32>
    %873 = arith.divf %871, %872 : vector<16x1xf32>
    %874 = vector.broadcast %866 : vector<16x1xf32> to vector<16x32xf32>
    %875 = arith.subf %858, %874 : vector<16x32xf32>
    %cst_449 = arith.constant 9.99999974E-6 : f32
    %876 = vector.broadcast %cst_449 : f32 to vector<16x1xf32>
    %877 = arith.addf %873, %876 : vector<16x1xf32>
    %878 = math.rsqrt %877 : vector<16x1xf32>
    %879 = vector.broadcast %878 : vector<16x1xf32> to vector<16x32xf32>
    %880 = arith.mulf %875, %879 : vector<16x32xf32>
    %881 = vector.broadcast %860 : vector<1x32xf32> to vector<16x32xf32>
    %882 = arith.mulf %880, %881 : vector<16x32xf32>
    %883 = vector.broadcast %862 : vector<1x32xf32> to vector<16x32xf32>
    %884 = arith.addf %882, %883 : vector<16x32xf32>
    %c1_450 = arith.constant 1 : index
    %c0_451 = arith.constant 0 : index
    %c0_452 = arith.constant 0 : index
    %885 = vector.load %arg43[%c1_450, %c0_451, %c0_452] : memref<2x32x64xf32, #tpu.memory_space<vmem>>, vector<1x32x64xf32>
    %886 = vector.shape_cast %885 : vector<1x32x64xf32> to vector<32x64xf32>
    %c1_453 = arith.constant 1 : index
    %c0_454 = arith.constant 0 : index
    %c0_455 = arith.constant 0 : index
    %887 = vector.load %arg44[%c1_453, %c0_454, %c0_455] : memref<2x1x64xf32, #tpu.memory_space<vmem>>, vector<1x1x64xf32>
    %888 = vector.shape_cast %887 : vector<1x1x64xf32> to vector<1x64xf32>
    %cst_456 = arith.constant dense<0.000000e+00> : vector<16x64xf32>
    %889 = tpu.matmul %884, %886, %cst_456 {dimension_numbers = #tpu.dot_dimension_numbers<[1], [0], [0], [1], [0, 0, 1, 1], [], []>} : vector<16x32xf32>, vector<32x64xf32>, vector<16x64xf32> -> vector<16x64xf32>
    %890 = vector.broadcast %888 : vector<1x64xf32> to vector<16x64xf32>
    %891 = arith.addf %889, %890 : vector<16x64xf32>
    %cst_457 = arith.constant 0.000000e+00 : f32
    %892 = vector.broadcast %cst_457 : f32 to vector<16x64xf32>
    %893 = arith.maximumf %891, %892 : vector<16x64xf32>
    %c1_458 = arith.constant 1 : index
    %c0_459 = arith.constant 0 : index
    %c0_460 = arith.constant 0 : index
    %894 = vector.load %arg45[%c1_458, %c0_459, %c0_460] : memref<2x64x32xf32, #tpu.memory_space<vmem>>, vector<1x64x32xf32>
    %895 = vector.shape_cast %894 : vector<1x64x32xf32> to vector<64x32xf32>
    %c1_461 = arith.constant 1 : index
    %c0_462 = arith.constant 0 : index
    %c0_463 = arith.constant 0 : index
    %896 = vector.load %arg46[%c1_461, %c0_462, %c0_463] : memref<2x1x32xf32, #tpu.memory_space<vmem>>, vector<1x1x32xf32>
    %897 = vector.shape_cast %896 : vector<1x1x32xf32> to vector<1x32xf32>
    %cst_464 = arith.constant dense<0.000000e+00> : vector<16x32xf32>
    %898 = tpu.matmul %893, %895, %cst_464 {dimension_numbers = #tpu.dot_dimension_numbers<[1], [0], [0], [1], [0, 0, 1, 1], [], []>} : vector<16x64xf32>, vector<64x32xf32>, vector<16x32xf32> -> vector<16x32xf32>
    %899 = vector.broadcast %897 : vector<1x32xf32> to vector<16x32xf32>
    %900 = arith.addf %898, %899 : vector<16x32xf32>
    %901 = arith.addf %884, %900 : vector<16x32xf32>
    %c1_465 = arith.constant 1 : index
    %c0_466 = arith.constant 0 : index
    %c0_467 = arith.constant 0 : index
    %902 = vector.load %arg47[%c1_465, %c0_466, %c0_467] : memref<2x1x32xf32, #tpu.memory_space<vmem>>, vector<1x1x32xf32>
    %903 = vector.shape_cast %902 : vector<1x1x32xf32> to vector<1x32xf32>
    %c1_468 = arith.constant 1 : index
    %c0_469 = arith.constant 0 : index
    %c0_470 = arith.constant 0 : index
    %904 = vector.load %arg48[%c1_468, %c0_469, %c0_470] : memref<2x1x32xf32, #tpu.memory_space<vmem>>, vector<1x1x32xf32>
    %905 = vector.shape_cast %904 : vector<1x1x32xf32> to vector<1x32xf32>
    %cst_471 = arith.constant dense<0.000000e+00> : vector<16xf32>
    %906 = vector.multi_reduction <add>, %901, %cst_471 [1] : vector<16x32xf32> to vector<16xf32>
    %907 = vector.shape_cast %906 : vector<16xf32> to vector<16x1xf32>
    %cst_472 = arith.constant 3.200000e+01 : f32
    %908 = vector.broadcast %cst_472 : f32 to vector<16x1xf32>
    %909 = arith.divf %907, %908 : vector<16x1xf32>
    %910 = vector.broadcast %909 : vector<16x1xf32> to vector<16x32xf32>
    %911 = arith.subf %901, %910 : vector<16x32xf32>
    %912 = arith.mulf %911, %911 : vector<16x32xf32>
    %cst_473 = arith.constant dense<0.000000e+00> : vector<16xf32>
    %913 = vector.multi_reduction <add>, %912, %cst_473 [1] : vector<16x32xf32> to vector<16xf32>
    %914 = vector.shape_cast %913 : vector<16xf32> to vector<16x1xf32>
    %cst_474 = arith.constant 3.200000e+01 : f32
    %915 = vector.broadcast %cst_474 : f32 to vector<16x1xf32>
    %916 = arith.divf %914, %915 : vector<16x1xf32>
    %917 = vector.broadcast %909 : vector<16x1xf32> to vector<16x32xf32>
    %918 = arith.subf %901, %917 : vector<16x32xf32>
    %cst_475 = arith.constant 9.99999974E-6 : f32
    %919 = vector.broadcast %cst_475 : f32 to vector<16x1xf32>
    %920 = arith.addf %916, %919 : vector<16x1xf32>
    %921 = math.rsqrt %920 : vector<16x1xf32>
    %922 = vector.broadcast %921 : vector<16x1xf32> to vector<16x32xf32>
    %923 = arith.mulf %918, %922 : vector<16x32xf32>
    %924 = vector.broadcast %903 : vector<1x32xf32> to vector<16x32xf32>
    %925 = arith.mulf %923, %924 : vector<16x32xf32>
    %926 = vector.broadcast %905 : vector<1x32xf32> to vector<16x32xf32>
    %927 = arith.addf %925, %926 : vector<16x32xf32>
    %c0_476 = arith.constant 0 : index
    %c0_477 = arith.constant 0 : index
    %928 = vector.load %arg49[%c0_476, %c0_477] : memref<1x32xf32, #tpu.memory_space<vmem>>, vector<1x32xf32>
    %c0_478 = arith.constant 0 : index
    %c0_479 = arith.constant 0 : index
    %929 = vector.load %arg50[%c0_478, %c0_479] : memref<1x32xf32, #tpu.memory_space<vmem>>, vector<1x32xf32>
    %cst_480 = arith.constant dense<0.000000e+00> : vector<16xf32>
    %930 = vector.multi_reduction <add>, %927, %cst_480 [1] : vector<16x32xf32> to vector<16xf32>
    %931 = vector.shape_cast %930 : vector<16xf32> to vector<16x1xf32>
    %cst_481 = arith.constant 3.200000e+01 : f32
    %932 = vector.broadcast %cst_481 : f32 to vector<16x1xf32>
    %933 = arith.divf %931, %932 : vector<16x1xf32>
    %934 = vector.broadcast %933 : vector<16x1xf32> to vector<16x32xf32>
    %935 = arith.subf %927, %934 : vector<16x32xf32>
    %936 = arith.mulf %935, %935 : vector<16x32xf32>
    %cst_482 = arith.constant dense<0.000000e+00> : vector<16xf32>
    %937 = vector.multi_reduction <add>, %936, %cst_482 [1] : vector<16x32xf32> to vector<16xf32>
    %938 = vector.shape_cast %937 : vector<16xf32> to vector<16x1xf32>
    %cst_483 = arith.constant 3.200000e+01 : f32
    %939 = vector.broadcast %cst_483 : f32 to vector<16x1xf32>
    %940 = arith.divf %938, %939 : vector<16x1xf32>
    %941 = vector.broadcast %933 : vector<16x1xf32> to vector<16x32xf32>
    %942 = arith.subf %927, %941 : vector<16x32xf32>
    %cst_484 = arith.constant 9.99999974E-6 : f32
    %943 = vector.broadcast %cst_484 : f32 to vector<16x1xf32>
    %944 = arith.addf %940, %943 : vector<16x1xf32>
    %945 = math.rsqrt %944 : vector<16x1xf32>
    %946 = vector.broadcast %945 : vector<16x1xf32> to vector<16x32xf32>
    %947 = arith.mulf %942, %946 : vector<16x32xf32>
    %948 = vector.broadcast %928 : vector<1x32xf32> to vector<16x32xf32>
    %949 = arith.mulf %947, %948 : vector<16x32xf32>
    %950 = vector.broadcast %929 : vector<1x32xf32> to vector<16x32xf32>
    %951 = arith.addf %949, %950 : vector<16x32xf32>
    %c0_485 = arith.constant 0 : index
    %c0_486 = arith.constant 0 : index
    %952 = vector.load %arg51[%c0_485, %c0_486] : memref<32x128xf32, #tpu.memory_space<vmem>>, vector<32x128xf32>
    %c0_487 = arith.constant 0 : index
    %c0_488 = arith.constant 0 : index
    %953 = vector.load %arg52[%c0_487, %c0_488] : memref<1x128xf32, #tpu.memory_space<vmem>>, vector<1x128xf32>
    %cst_489 = arith.constant dense<0.000000e+00> : vector<16x128xf32>
    %954 = tpu.matmul %951, %952, %cst_489 {dimension_numbers = #tpu.dot_dimension_numbers<[1], [0], [0], [1], [0, 0, 1, 1], [], []>} : vector<16x32xf32>, vector<32x128xf32>, vector<16x128xf32> -> vector<16x128xf32>
    %955 = vector.broadcast %953 : vector<1x128xf32> to vector<16x128xf32>
    %956 = arith.addf %954, %955 : vector<16x128xf32>
    %c0_490 = arith.constant 0 : index
    %c0_491 = arith.constant 0 : index
    %c0_492 = arith.constant 0 : index
    %957 = vector.load %arg53[%c0_490, %c0_491, %c0_492] : memref<1x16x128xf32, #tpu.memory_space<vmem>>, vector<1x16x128xf32>
    %958 = vector.shape_cast %957 : vector<1x16x128xf32> to vector<16x128xf32>
    %959 = vector.shape_cast %956 : vector<16x128xf32> to vector<1x16x128xf32>
    tpu.vector_store %arg53[%c0_490, %c0_491, %c0_492], %959 {strides = array<i32>} : memref<1x16x128xf32, #tpu.memory_space<vmem>>, vector<1x16x128xf32>,
    return
  }
  func.func @transform_0(%arg0: i32) -> (i32, i32, i32) {
    %c0_i32 = arith.constant 0 : i32
    %c0_i32_0 = arith.constant 0 : i32
    %c0_i32_1 = arith.constant 0 : i32
    return %arg0, %c0_i32, %c0_i32_0 : i32, i32, i32
  }
  func.func @transform_1(%arg0: i32) -> (i32, i32, i32) {
    %c0_i32 = arith.constant 0 : i32
    %c0_i32_0 = arith.constant 0 : i32
    %c0_i32_1 = arith.constant 0 : i32
    return %arg0, %c0_i32, %c0_i32_0 : i32, i32, i32
  }
  func.func @transform_2(%arg0: i32) -> (i32, i32) {
    %c0_i32 = arith.constant 0 : i32
    %c0_i32_0 = arith.constant 0 : i32
    %c0_i32_1 = arith.constant 0 : i32
    return %c0_i32, %c0_i32_0 : i32, i32
  }
  func.func @transform_3(%arg0: i32) -> (i32, i32) {
    %c0_i32 = arith.constant 0 : i32
    %c0_i32_0 = arith.constant 0 : i32
    %c0_i32_1 = arith.constant 0 : i32
    return %c0_i32, %c0_i32_0 : i32, i32
  }
  func.func @transform_4(%arg0: i32) -> (i32, i32, i32) {
    %c0_i32 = arith.constant 0 : i32
    %c0_i32_0 = arith.constant 0 : i32
    %c0_i32_1 = arith.constant 0 : i32
    %c0_i32_2 = arith.constant 0 : i32
    return %c0_i32, %c0_i32_0, %c0_i32_1 : i32, i32, i32
  }
  func.func @transform_5(%arg0: i32) -> (i32, i32, i32) {
    %c0_i32 = arith.constant 0 : i32
    %c0_i32_0 = arith.constant 0 : i32
    %c0_i32_1 = arith.constant 0 : i32
    %c0_i32_2 = arith.constant 0 : i32
    return %c0_i32, %c0_i32_0, %c0_i32_1 : i32, i32, i32
  }
  func.func @transform_6(%arg0: i32) -> (i32, i32, i32) {
    %c0_i32 = arith.constant 0 : i32
    %c0_i32_0 = arith.constant 0 : i32
    %c0_i32_1 = arith.constant 0 : i32
    %c0_i32_2 = arith.constant 0 : i32
    return %c0_i32, %c0_i32_0, %c0_i32_1 : i32, i32, i32
  }
  func.func @transform_7(%arg0: i32) -> (i32, i32, i32) {
    %c0_i32 = arith.constant 0 : i32
    %c0_i32_0 = arith.constant 0 : i32
    %c0_i32_1 = arith.constant 0 : i32
    %c0_i32_2 = arith.constant 0 : i32
    return %c0_i32, %c0_i32_0, %c0_i32_1 : i32, i32, i32
  }
  func.func @transform_8(%arg0: i32) -> (i32, i32, i32) {
    %c0_i32 = arith.constant 0 : i32
    %c0_i32_0 = arith.constant 0 : i32
    %c0_i32_1 = arith.constant 0 : i32
    %c0_i32_2 = arith.constant 0 : i32
    return %c0_i32, %c0_i32_0, %c0_i32_1 : i32, i32, i32
  }
  func.func @transform_9(%arg0: i32) -> (i32, i32, i32) {
    %c0_i32 = arith.constant 0 : i32
    %c0_i32_0 = arith.constant 0 : i32
    %c0_i32_1 = arith.constant 0 : i32
    %c0_i32_2 = arith.constant 0 : i32
    return %c0_i32, %c0_i32_0, %c0_i32_1 : i32, i32, i32
  }
  func.func @transform_10(%arg0: i32) -> (i32, i32, i32) {
    %c0_i32 = arith.constant 0 : i32
    %c0_i32_0 = arith.constant 0 : i32
    %c0_i32_1 = arith.constant 0 : i32
    %c0_i32_2 = arith.constant 0 : i32
    return %c0_i32, %c0_i32_0, %c0_i32_1 : i32, i32, i32
  }
  func.func @transform_11(%arg0: i32) -> (i32, i32, i32) {
    %c0_i32 = arith.constant 0 : i32
    %c0_i32_0 = arith.constant 0 : i32
    %c0_i32_1 = arith.constant 0 : i32
    %c0_i32_2 = arith.constant 0 : i32
    return %c0_i32, %c0_i32_0, %c0_i32_1 : i32, i32, i32
  }
  func.func @transform_12(%arg0: i32) -> (i32, i32, i32) {
    %c0_i32 = arith.constant 0 : i32
    %c0_i32_0 = arith.constant 0 : i32
    %c0_i32_1 = arith.constant 0 : i32
    %c0_i32_2 = arith.constant 0 : i32
    return %c0_i32, %c0_i32_0, %c0_i32_1 : i32, i32, i32
  }
  func.func @transform_13(%arg0: i32) -> (i32, i32, i32) {
    %c0_i32 = arith.constant 0 : i32
    %c0_i32_0 = arith.constant 0 : i32
    %c0_i32_1 = arith.constant 0 : i32
    %c0_i32_2 = arith.constant 0 : i32
    return %c0_i32, %c0_i32_0, %c0_i32_1 : i32, i32, i32
  }
  func.func @transform_14(%arg0: i32) -> (i32, i32, i32) {
    %c0_i32 = arith.constant 0 : i32
    %c0_i32_0 = arith.constant 0 : i32
    %c0_i32_1 = arith.constant 0 : i32
    %c0_i32_2 = arith.constant 0 : i32
    return %c0_i32, %c0_i32_0, %c0_i32_1 : i32, i32, i32
  }
  func.func @transform_15(%arg0: i32) -> (i32, i32, i32) {
    %c0_i32 = arith.constant 0 : i32
    %c0_i32_0 = arith.constant 0 : i32
    %c0_i32_1 = arith.constant 0 : i32
    %c0_i32_2 = arith.constant 0 : i32
    return %c0_i32, %c0_i32_0, %c0_i32_1 : i32, i32, i32
  }
  func.func @transform_16(%arg0: i32) -> (i32, i32, i32) {
    %c0_i32 = arith.constant 0 : i32
    %c0_i32_0 = arith.constant 0 : i32
    %c0_i32_1 = arith.constant 0 : i32
    %c0_i32_2 = arith.constant 0 : i32
    return %c0_i32, %c0_i32_0, %c0_i32_1 : i32, i32, i32
  }
  func.func @transform_17(%arg0: i32) -> (i32, i32, i32) {
    %c0_i32 = arith.constant 0 : i32
    %c0_i32_0 = arith.constant 0 : i32
    %c0_i32_1 = arith.constant 0 : i32
    %c0_i32_2 = arith.constant 0 : i32
    return %c0_i32, %c0_i32_0, %c0_i32_1 : i32, i32, i32
  }
  func.func @transform_18(%arg0: i32) -> (i32, i32, i32) {
    %c0_i32 = arith.constant 0 : i32
    %c0_i32_0 = arith.constant 0 : i32
    %c0_i32_1 = arith.constant 0 : i32
    %c0_i32_2 = arith.constant 0 : i32
    return %c0_i32, %c0_i32_0, %c0_i32_1 : i32, i32, i32
  }
  func.func @transform_19(%arg0: i32) -> (i32, i32, i32) {
    %c0_i32 = arith.constant 0 : i32
    %c0_i32_0 = arith.constant 0 : i32
    %c0_i32_1 = arith.constant 0 : i32
    %c0_i32_2 = arith.constant 0 : i32
    return %c0_i32, %c0_i32_0, %c0_i32_1 : i32, i32, i32
  }
  func.func @transform_20(%arg0: i32) -> (i32, i32) {
    %c0_i32 = arith.constant 0 : i32
    %c0_i32_0 = arith.constant 0 : i32
    %c0_i32_1 = arith.constant 0 : i32
    return %c0_i32, %c0_i32_0 : i32, i32
  }
  func.func @transform_21(%arg0: i32) -> (i32, i32) {
    %c0_i32 = arith.constant 0 : i32
    %c0_i32_0 = arith.constant 0 : i32
    %c0_i32_1 = arith.constant 0 : i32
    return %c0_i32, %c0_i32_0 : i32, i32
  }
  func.func @transform_22(%arg0: i32) -> (i32, i32, i32) {
    %c0_i32 = arith.constant 0 : i32
    %c0_i32_0 = arith.constant 0 : i32
    %c0_i32_1 = arith.constant 0 : i32
    %c0_i32_2 = arith.constant 0 : i32
    return %c0_i32, %c0_i32_0, %c0_i32_1 : i32, i32, i32
  }
  func.func @transform_23(%arg0: i32) -> (i32, i32, i32) {
    %c0_i32 = arith.constant 0 : i32
    %c0_i32_0 = arith.constant 0 : i32
    %c0_i32_1 = arith.constant 0 : i32
    %c0_i32_2 = arith.constant 0 : i32
    return %c0_i32, %c0_i32_0, %c0_i32_1 : i32, i32, i32
  }
  func.func @transform_24(%arg0: i32) -> (i32, i32, i32) {
    %c0_i32 = arith.constant 0 : i32
    %c0_i32_0 = arith.constant 0 : i32
    %c0_i32_1 = arith.constant 0 : i32
    %c0_i32_2 = arith.constant 0 : i32
    return %c0_i32, %c0_i32_0, %c0_i32_1 : i32, i32, i32
  }
  func.func @transform_25(%arg0: i32) -> (i32, i32, i32) {
    %c0_i32 = arith.constant 0 : i32
    %c0_i32_0 = arith.constant 0 : i32
    %c0_i32_1 = arith.constant 0 : i32
    %c0_i32_2 = arith.constant 0 : i32
    return %c0_i32, %c0_i32_0, %c0_i32_1 : i32, i32, i32
  }
  func.func @transform_26(%arg0: i32) -> (i32, i32, i32) {
    %c0_i32 = arith.constant 0 : i32
    %c0_i32_0 = arith.constant 0 : i32
    %c0_i32_1 = arith.constant 0 : i32
    %c0_i32_2 = arith.constant 0 : i32
    return %c0_i32, %c0_i32_0, %c0_i32_1 : i32, i32, i32
  }
  func.func @transform_27(%arg0: i32) -> (i32, i32, i32) {
    %c0_i32 = arith.constant 0 : i32
    %c0_i32_0 = arith.constant 0 : i32
    %c0_i32_1 = arith.constant 0 : i32
    %c0_i32_2 = arith.constant 0 : i32
    return %c0_i32, %c0_i32_0, %c0_i32_1 : i32, i32, i32
  }
  func.func @transform_28(%arg0: i32) -> (i32, i32, i32) {
    %c0_i32 = arith.constant 0 : i32
    %c0_i32_0 = arith.constant 0 : i32
    %c0_i32_1 = arith.constant 0 : i32
    %c0_i32_2 = arith.constant 0 : i32
    return %c0_i32, %c0_i32_0, %c0_i32_1 : i32, i32, i32
  }
  func.func @transform_29(%arg0: i32) -> (i32, i32, i32) {
    %c0_i32 = arith.constant 0 : i32
    %c0_i32_0 = arith.constant 0 : i32
    %c0_i32_1 = arith.constant 0 : i32
    %c0_i32_2 = arith.constant 0 : i32
    return %c0_i32, %c0_i32_0, %c0_i32_1 : i32, i32, i32
  }
  func.func @transform_30(%arg0: i32) -> (i32, i32, i32) {
    %c0_i32 = arith.constant 0 : i32
    %c0_i32_0 = arith.constant 0 : i32
    %c0_i32_1 = arith.constant 0 : i32
    %c0_i32_2 = arith.constant 0 : i32
    return %c0_i32, %c0_i32_0, %c0_i32_1 : i32, i32, i32
  }
  func.func @transform_31(%arg0: i32) -> (i32, i32, i32) {
    %c0_i32 = arith.constant 0 : i32
    %c0_i32_0 = arith.constant 0 : i32
    %c0_i32_1 = arith.constant 0 : i32
    %c0_i32_2 = arith.constant 0 : i32
    return %c0_i32, %c0_i32_0, %c0_i32_1 : i32, i32, i32
  }
  func.func @transform_32(%arg0: i32) -> (i32, i32, i32) {
    %c0_i32 = arith.constant 0 : i32
    %c0_i32_0 = arith.constant 0 : i32
    %c0_i32_1 = arith.constant 0 : i32
    %c0_i32_2 = arith.constant 0 : i32
    return %c0_i32, %c0_i32_0, %c0_i32_1 : i32, i32, i32
  }
  func.func @transform_33(%arg0: i32) -> (i32, i32, i32) {
    %c0_i32 = arith.constant 0 : i32
    %c0_i32_0 = arith.constant 0 : i32
    %c0_i32_1 = arith.constant 0 : i32
    %c0_i32_2 = arith.constant 0 : i32
    return %c0_i32, %c0_i32_0, %c0_i32_1 : i32, i32, i32
  }
  func.func @transform_34(%arg0: i32) -> (i32, i32, i32) {
    %c0_i32 = arith.constant 0 : i32
    %c0_i32_0 = arith.constant 0 : i32
    %c0_i32_1 = arith.constant 0 : i32
    %c0_i32_2 = arith.constant 0 : i32
    return %c0_i32, %c0_i32_0, %c0_i32_1 : i32, i32, i32
  }
  func.func @transform_35(%arg0: i32) -> (i32, i32, i32) {
    %c0_i32 = arith.constant 0 : i32
    %c0_i32_0 = arith.constant 0 : i32
    %c0_i32_1 = arith.constant 0 : i32
    %c0_i32_2 = arith.constant 0 : i32
    return %c0_i32, %c0_i32_0, %c0_i32_1 : i32, i32, i32
  }
  func.func @transform_36(%arg0: i32) -> (i32, i32, i32) {
    %c0_i32 = arith.constant 0 : i32
    %c0_i32_0 = arith.constant 0 : i32
    %c0_i32_1 = arith.constant 0 : i32
    %c0_i32_2 = arith.constant 0 : i32
    return %c0_i32, %c0_i32_0, %c0_i32_1 : i32, i32, i32
  }
  func.func @transform_37(%arg0: i32) -> (i32, i32, i32) {
    %c0_i32 = arith.constant 0 : i32
    %c0_i32_0 = arith.constant 0 : i32
    %c0_i32_1 = arith.constant 0 : i32
    %c0_i32_2 = arith.constant 0 : i32
    return %c0_i32, %c0_i32_0, %c0_i32_1 : i32, i32, i32
  }
  func.func @transform_38(%arg0: i32) -> (i32, i32, i32) {
    %c0_i32 = arith.constant 0 : i32
    %c0_i32_0 = arith.constant 0 : i32
    %c0_i32_1 = arith.constant 0 : i32
    %c0_i32_2 = arith.constant 0 : i32
    return %c0_i32, %c0_i32_0, %c0_i32_1 : i32, i32, i32
  }
  func.func @transform_39(%arg0: i32) -> (i32, i32, i32) {
    %c0_i32 = arith.constant 0 : i32
    %c0_i32_0 = arith.constant 0 : i32
    %c0_i32_1 = arith.constant 0 : i32
    %c0_i32_2 = arith.constant 0 : i32
    return %c0_i32, %c0_i32_0, %c0_i32_1 : i32, i32, i32
  }
  func.func @transform_40(%arg0: i32) -> (i32, i32, i32) {
    %c0_i32 = arith.constant 0 : i32
    %c0_i32_0 = arith.constant 0 : i32
    %c0_i32_1 = arith.constant 0 : i32
    %c0_i32_2 = arith.constant 0 : i32
    return %c0_i32, %c0_i32_0, %c0_i32_1 : i32, i32, i32
  }
  func.func @transform_41(%arg0: i32) -> (i32, i32, i32) {
    %c0_i32 = arith.constant 0 : i32
    %c0_i32_0 = arith.constant 0 : i32
    %c0_i32_1 = arith.constant 0 : i32
    %c0_i32_2 = arith.constant 0 : i32
    return %c0_i32, %c0_i32_0, %c0_i32_1 : i32, i32, i32
  }
  func.func @transform_42(%arg0: i32) -> (i32, i32, i32) {
    %c0_i32 = arith.constant 0 : i32
    %c0_i32_0 = arith.constant 0 : i32
    %c0_i32_1 = arith.constant 0 : i32
    %c0_i32_2 = arith.constant 0 : i32
    return %c0_i32, %c0_i32_0, %c0_i32_1 : i32, i32, i32
  }
  func.func @transform_43(%arg0: i32) -> (i32, i32, i32) {
    %c0_i32 = arith.constant 0 : i32
    %c0_i32_0 = arith.constant 0 : i32
    %c0_i32_1 = arith.constant 0 : i32
    %c0_i32_2 = arith.constant 0 : i32
    return %c0_i32, %c0_i32_0, %c0_i32_1 : i32, i32, i32
  }
  func.func @transform_44(%arg0: i32) -> (i32, i32, i32) {
    %c0_i32 = arith.constant 0 : i32
    %c0_i32_0 = arith.constant 0 : i32
    %c0_i32_1 = arith.constant 0 : i32
    %c0_i32_2 = arith.constant 0 : i32
    return %c0_i32, %c0_i32_0, %c0_i32_1 : i32, i32, i32
  }
  func.func @transform_45(%arg0: i32) -> (i32, i32, i32) {
    %c0_i32 = arith.constant 0 : i32
    %c0_i32_0 = arith.constant 0 : i32
    %c0_i32_1 = arith.constant 0 : i32
    %c0_i32_2 = arith.constant 0 : i32
    return %c0_i32, %c0_i32_0, %c0_i32_1 : i32, i32, i32
  }
  func.func @transform_46(%arg0: i32) -> (i32, i32, i32) {
    %c0_i32 = arith.constant 0 : i32
    %c0_i32_0 = arith.constant 0 : i32
    %c0_i32_1 = arith.constant 0 : i32
    %c0_i32_2 = arith.constant 0 : i32
    return %c0_i32, %c0_i32_0, %c0_i32_1 : i32, i32, i32
  }
  func.func @transform_47(%arg0: i32) -> (i32, i32, i32) {
    %c0_i32 = arith.constant 0 : i32
    %c0_i32_0 = arith.constant 0 : i32
    %c0_i32_1 = arith.constant 0 : i32
    %c0_i32_2 = arith.constant 0 : i32
    return %c0_i32, %c0_i32_0, %c0_i32_1 : i32, i32, i32
  }
  func.func @transform_48(%arg0: i32) -> (i32, i32) {
    %c0_i32 = arith.constant 0 : i32
    %c0_i32_0 = arith.constant 0 : i32
    %c0_i32_1 = arith.constant 0 : i32
    return %c0_i32, %c0_i32_0 : i32, i32
  }
  func.func @transform_49(%arg0: i32) -> (i32, i32) {
    %c0_i32 = arith.constant 0 : i32
    %c0_i32_0 = arith.constant 0 : i32
    %c0_i32_1 = arith.constant 0 : i32
    return %c0_i32, %c0_i32_0 : i32, i32
  }
  func.func @transform_50(%arg0: i32) -> (i32, i32) {
    %c0_i32 = arith.constant 0 : i32
    %c0_i32_0 = arith.constant 0 : i32
    %c0_i32_1 = arith.constant 0 : i32
    return %c0_i32, %c0_i32_0 : i32, i32
  }
  func.func @transform_51(%arg0: i32) -> (i32, i32) {
    %c0_i32 = arith.constant 0 : i32
    %c0_i32_0 = arith.constant 0 : i32
    %c0_i32_1 = arith.constant 0 : i32
    return %c0_i32, %c0_i32_0 : i32, i32
  }
  func.func @transform_52(%arg0: i32) -> (i32, i32, i32) {
    %c0_i32 = arith.constant 0 : i32
    %c0_i32_0 = arith.constant 0 : i32
    %c0_i32_1 = arith.constant 0 : i32
    return %arg0, %c0_i32, %c0_i32_0 : i32, i32, i32
  }
}

</mosaic_0001>

<bundles_post_ra>
// kernel: simple_transformer_forward.1
= control target key start
LH: loop header
LB: loop body
LE: loop exit
PB: predicated region body
PF: predicated region fallthrough
CT: control target
= control target key end

     0   :  { %s8694_s6 = smov 1   ;;  %s8695_s10 = smov 2   ;;  %s10661_s0 = inlined_call_operand.smem [shape: u32[53], index: -1, kind: input, shape index: {}] }
   0x1   :  { %s8795_s5 = sld [smem:[%s10661_s0]]   ;;  %s8696_s14 = smov 3  }
   0x2   :  { %s8800_s9 = sld [smem:[%s10661_s0 + %s8694_s6]]   ;;  %s8697_s18 = smov 4  }
   0x3   :  { %s8805_s13 = sld [smem:[%s10661_s0 + %s8695_s10]]   ;;  %s8698_s22 = smov 5  }
   0x4   :  { %s8810_s17 = sld [smem:[%s10661_s0 + %s8696_s14]]   ;;  %s8699_s26 = smov 6  }
   0x5   :  { %s8815_s21 = sld [smem:[%s10661_s0 + %s8697_s18]]   ;;  %s8700_s30 = smov 7  }
   0x6   :  { %s8820_s25 = sld [smem:[%s10661_s0 + %s8698_s22]]   ;;  %s8701_s4 = smov 8  }
   0x7   :  { %10739 = sst [smem:[#allocation64_spill]] %s8795_s5  ;;  %s8702_s10 = smov 9  }
   0x8   :  { %10740 = sst [smem:[#allocation65_spill]] %s8800_s9  ;;  %s8703_s15 = smov 10  }
   0x9   :  { %10741 = sst [smem:[#allocation66_spill]] %s8805_s13  ;;  %s8704_s20 = smov 11  }
   0xa   :  { %10742 = sst [smem:[#allocation67_spill]] %s8810_s17  ;;  %s8706_s1 = smov 13  }
   0xb   :  { %10743 = sst [smem:[#allocation68_spill]] %s8815_s21  ;;  %s8707_s7 = smov 14  }
   0xc   :  { %10744 = sst [smem:[#allocation69_spill]] %s8820_s25  ;;  %s8709_s22 = smov 16  }
   0xd   :  { %s8825_s29 = sld [smem:[%s10661_s0 + %s8699_s26]]   ;;  %s8705_s26 = smov 12  }
   0xe   :  { %s8830_s3 = sld [smem:[%s10661_s0 + %s8700_s30]]   ;;  %s8710_s28 = smov 17  }
   0xf   :  { %s8835_s8 = sld [smem:[%s10661_s0 + %s8701_s4]]  }
  0x10   :  { %s8840_s14 = sld [smem:[%s10661_s0 + %s8702_s10]]  }
  0x11   :  { %s8845_s19 = sld [smem:[%s10661_s0 + %s8703_s15]]   ;;  %s8708_s15 = smov 15  }
  0x12   :  { %s8850_s24 = sld [smem:[%s10661_s0 + %s8704_s20]]  }
  0x13   :  { %10745 = sst [smem:[#allocation70_spill]] %s8825_s29 }
  0x14   :  { %10746 = sst [smem:[#allocation71_spill]] %s8830_s3 }
  0x15   :  { %10747 = sst [smem:[#allocation72_spill]] %s8835_s8 }
  0x16   :  { %10748 = sst [smem:[#allocation73_spill]] %s8840_s14 }
  0x17   :  { %10749 = sst [smem:[#allocation74_spill]] %s8845_s19 }
  0x18   :  { %10750 = sst [smem:[#allocation75_spill]] %s8850_s24 }
  0x19   :  { %s8855_s30 = sld [smem:[%s10661_s0 + %s8705_s26]]  }
  0x1a   :  { %s8860_s6 = sld [smem:[%s10661_s0 + %s8706_s1]]  }
  0x1b   :  { %s8865_s12 = sld [smem:[%s10661_s0 + %s8707_s7]]   ;;  %s8711_s7 = smov 18  }
  0x1c   :  { %s8870_s20 = sld [smem:[%s10661_s0 + %s8708_s15]]   ;;  %s8712_s15 = smov 19  }
  0x1d   :  { %s8875_s27 = sld [smem:[%s10661_s0 + %s8709_s22]]   ;;  %s8713_s22 = smov 20  }
  0x1e   :  { %s8880_s4 = sld [smem:[%s10661_s0 + %s8710_s28]]   ;;  %s8714_s28 = smov 21  }
  0x1f   :  { %10751 = sst [smem:[#allocation76_spill]] %s8855_s30 }
  0x20   :  { %10752 = sst [smem:[#allocation77_spill]] %s8860_s6 }
  0x21   :  { %10753 = sst [smem:[#allocation78_spill]] %s8865_s12 }
  0x22   :  { %10754 = sst [smem:[#allocation79_spill]] %s8870_s20 }
  0x23   :  { %10755 = sst [smem:[#allocation80_spill]] %s8875_s27 }
  0x24   :  { %10756 = sst [smem:[#allocation81_spill]] %s8880_s4 }
  0x25   :  { %s8885_s6 = sld [smem:[%s10661_s0 + %s8711_s7]]   ;;  %s8715_s7 = smov 22  }
  0x26   :  { %s8890_s30 = sld [smem:[%s10661_s0 + %s8712_s15]]   ;;  %s8716_s15 = smov 23  }
  0x27   :  { %s8895_s27 = sld [smem:[%s10661_s0 + %s8713_s22]]   ;;  %s8717_s22 = smov 24  }
  0x28   :  { %s8900_s12 = sld [smem:[%s10661_s0 + %s8714_s28]]   ;;  %s8718_s28 = smov 25  }
  0x29   :  { %s8905_s24 = sld [smem:[%s10661_s0 + %s8715_s7]]   ;;  %s8719_s7 = smov 26  }
  0x2a   :  { %s8910_s19 = sld [smem:[%s10661_s0 + %s8716_s15]]   ;;  %s8720_s15 = smov 27  }
  0x2b   :  { %10757 = sst [smem:[#allocation82_spill]] %s8885_s6 }
  0x2c   :  { %s8930_s9 = sld [smem:[%s10661_s0 + %s8720_s15]]   ;;  %s8724_s15 = smov 31  }
  0x2d   :  { %10758 = sst [smem:[#allocation83_spill]] %s8895_s27 }
  0x2e   :  { %10759 = sst [smem:[#allocation84_spill]] %s8900_s12 }
  0x2f   :  { %10760 = sst [smem:[#allocation85_spill]] %s8905_s24 }
  0x30   :  { %10761 = sst [smem:[#allocation86_spill]] %s8910_s19 }
  0x31   :  { %s8915_s27 = sld [smem:[%s10661_s0 + %s8717_s22]]   ;;  %s8721_s22 = smov 28  }
  0x32   :  { %s8920_s12 = sld [smem:[%s10661_s0 + %s8718_s28]]   ;;  %s8722_s28 = smov 29  }
  0x33   :  { %s8925_s24 = sld [smem:[%s10661_s0 + %s8719_s7]]   ;;  %s8723_s7 = smov 30  }
  0x34   :  { %10764 = sst [smem:[#allocation89_spill]] %s8930_s9 }
  0x35   :  { %s8935_s25 = sld [smem:[%s10661_s0 + %s8721_s22]]   ;;  %s8725_s22 = smov 32  }
  0x36   :  { %s8940_s3 = sld [smem:[%s10661_s0 + %s8722_s28]]   ;;  %s8726_s28 = smov 33  }
  0x37   :  { %s8945_s14 = sld [smem:[%s10661_s0 + %s8723_s7]]   ;;  %s8727_s7 = smov 34  }
  0x38   :  { %10762 = sst [smem:[#allocation87_spill]] %s8920_s12 }
  0x39   :  { %10763 = sst [smem:[#allocation88_spill]] %s8925_s24 }
  0x3a   :  { %s8950_s17 = sld [smem:[%s10661_s0 + %s8724_s15]]   ;;  %s8728_s15 = smov 35  }
  0x3b   :  { %s8955_s8 = sld [smem:[%s10661_s0 + %s8725_s22]]   ;;  %s8729_s22 = smov 36  }
  0x3c   :  { %10765 = sst [smem:[#allocation90_spill]] %s8940_s3 }
  0x3d   :  { %10766 = sst [smem:[#allocation91_spill]] %s8945_s14 }
  0x3e   :  { %s8960_s29 = sld [smem:[%s10661_s0 + %s8726_s28]]   ;;  %s8730_s28 = smov 37  }
  0x3f   :  { %s8965_s21 = sld [smem:[%s10661_s0 + %s8727_s7]]   ;;  %s8731_s7 = smov 38  }
  0x40   :  { %10767 = sst [smem:[#allocation92_spill]] %s8950_s17 }
  0x41   :  { %10768 = sst [smem:[#allocation93_spill]] %s8955_s8 }
  0x42   :  { %s8970_s5 = sld [smem:[%s10661_s0 + %s8728_s15]]   ;;  %s8732_s15 = smov 39  }
  0x43   :  { %s8975_s13 = sld [smem:[%s10661_s0 + %s8729_s22]]   ;;  %s8733_s22 = smov 40  }
  0x44   :  { %10769 = sst [smem:[#allocation94_spill]] %s8960_s29 }
  0x45   :  { %s8980_s29 = sld [smem:[%s10661_s0 + %s8730_s28]]   ;;  %s8734_s28 = smov 41  }
  0x46   :  { %s8985_s17 = sld [smem:[%s10661_s0 + %s8731_s7]]   ;;  %s8735_s7 = smov 42  }
  0x47   :  { %s8995_s3 = sld [smem:[%s10661_s0 + %s8733_s22]]   ;;  %s8737_s22 = smov 44  }
  0x48   :  { %10770 = sst [smem:[#allocation95_spill]] %s8970_s5 }
  0x49   :  { %10771 = sst [smem:[#allocation96_spill]] %s8975_s13 }
  0x4a   :  { %s8990_s5 = sld [smem:[%s10661_s0 + %s8732_s15]]   ;;  %s8736_s15 = smov 43  }
  0x4b   :  { %10772 = sst [smem:[#allocation97_spill]] %s8980_s29 }
  0x4c   :  { %s9000_s29 = sld [smem:[%s10661_s0 + %s8734_s28]]   ;;  %s8738_s28 = smov 45  }
  0x4d   :  { %10774 = sst [smem:[#allocation99_spill]] %s8995_s3 }
  0x4e   :  { %s9005_s9 = sld [smem:[%s10661_s0 + %s8735_s7]]   ;;  %s8739_s7 = smov 46  }
  0x4f   :  { %s9015_s12 = sld [smem:[%s10661_s0 + %s8737_s22]]   ;;  %s8741_s22 = smov 48  }
  0x50   :  { %10773 = sst [smem:[#allocation98_spill]] %s8990_s5 }
  0x51   :  { %s9010_s5 = sld [smem:[%s10661_s0 + %s8736_s15]]   ;;  %s8740_s15 = smov 47  }
  0x52   :  { %10775 = sst [smem:[#allocation100_spill]] %s9000_s29 }
  0x53   :  { %s9020_s29 = sld [smem:[%s10661_s0 + %s8738_s28]]   ;;  %s8742_s28 = smov 49  }
  0x54   :  { %10776 = sst [smem:[#allocation101_spill]] %s9005_s9 }
  0x55   :  { %10778 = sst [smem:[#allocation103_spill]] %s9015_s12 }
  0x56   :  { %s9025_s19 = sld [smem:[%s10661_s0 + %s8739_s7]]   ;;  %s8743_s7 = smov 50  }
  0x57   :  { %10777 = sst [smem:[#allocation102_spill]] %s9010_s5 }
  0x58   :  { %s9030_s5 = sld [smem:[%s10661_s0 + %s8740_s15]]   ;;  %s8744_s15 = smov 51  }
  0x59   :  { %s9035_s12 = sld [smem:[%s10661_s0 + %s8741_s22]]   ;;  %s8745_s22 = smov 52  }
  0x5a   :  { %s9040_s6 = sld [smem:[%s10661_s0 + %s8742_s28]]  }
  0x5b   :  { %s9050_s20 = sld [smem:[%s10661_s0 + %s8744_s15]]  }
  0x5c   :  { %10779 = sst [smem:[#allocation104_spill]] %s9025_s19 }
  0x5d   :  { %s9045_s19 = sld [smem:[%s10661_s0 + %s8743_s7]]  }
  0x5e   :  { %10780 = sst [smem:[#allocation105_spill]] %s9030_s5 }
  0x5f   :  { %10781 = sst [smem:[#allocation106_spill]] %s9035_s12 }
  0x60   :  { %10782 = sst [smem:[#allocation107_spill]] %s9040_s6 }
  0x61   :  { %s9055_s12 = sld [smem:[%s10661_s0 + %s8745_s22]]  }
  0x62   :  { %110 = vsyncpa [#allocation3], 0 }
  0x63   :  { %111 = vsyncpa [#allocation5], 0 }
  0x64   :  { %112 = vsyncpa [#allocation8], 0 }
  0x65   :  { %113 = vsyncpa [#allocation11], 0 }
  0x66   :  { %114 = vsyncpa [#allocation14], 0 }
  0x67   :  { %115 = vsyncpa [#allocation17], 0 }
  0x68   :  { %116 = vsyncpa [#allocation20], 0 }
  0x69   :  { %117 = vsyncpa [#allocation23], 0 }
  0x6a   :  { %118 = vsyncpa [#allocation26], 0 }
  0x6b   :  { %119 = vsyncpa [#allocation29], 0 }
  0x6c   :  { %120 = vsyncpa [#allocation32], 0 }
  0x6d   :  { %121 = vsyncpa [#allocation35], 0 }
  0x6e   :  { %122 = vsyncpa [#allocation38], 0 }
  0x6f   :  { %123 = vsyncpa [#allocation41], 0 }
  0x70   :  { %124 = vsyncpa [#allocation44], 0 }
  0x71   :  { %125 = vsyncpa [#allocation47], 0  ;;  %s9057_s28 = smov 0  }
  0x72 LB: > { %s10783_s6 = sld [smem:[#allocation107_spill]]  ;;  %s9063_s0 = sadd.s32 4294967295, %s8692_s28   ;;  %s8692_s28 = sphi %s9057_s28, %s131_s28  }
  0x73   : > { %s10784_s13 = sld [smem:[#allocation96_spill]]  ;;  %p6930_p0 = scmp.ge.s32.totalorder %s8692_s28, 1 }
  0x74   : > { %s10785_s9 = sld [smem:[#allocation101_spill]]  ;;  %p1264_p1 = scmp.lt.s32.totalorder %s8692_s28, 3 }
  0x75   : > { %s10786_s8 = sld [smem:[#allocation93_spill]] }
  0x76   : > { %s10787_s5 = sld [smem:[#allocation105_spill]]  ;;  %p9067_p2 = pnand %p6930_p0, %p1264_p1 }
  0x77   : > { %s10788_s3 = sld [smem:[#allocation99_spill]]  ;;  %p7333_p3 = scmp.eq.s32.totalorder (!%p9067_p2), %s9063_s0, 0 }
  0x78   : > { %s10789_s24 = sld [smem:[#allocation88_spill]]  ;;  %1268 = sbr.rel (%p9067_p2) target bundleno = 521 (0x209), region = 12 }
  0x79   : > { %s10790_s14 = sld [smem:[#allocation91_spill]]  ;;  %s8746_s7 = smov (!%p9067_p2), [#allocation4]  }
  0x7a   : > { %s10791_s4 = sld [smem:[#allocation81_spill]]  ;;  %s1333_s10 = sshll.u32 (!%p9067_p2), %s8746_s7, 4  ;;  %s1334_s10 = int_to_ptr.vmem [resolvable:$true] %s1333_s10 }
  0x7b   : > { %s1359_s11 = sshll.u32 (!%p9067_p2), %s8890_s30, 4  ;;  %s9076_s11 = int_to_ptr.hbm [resolvable:$true] %s1359_s11 }
  0x80   : > { %s1331_s2 = sshll.u32 %s10791_s4, 4  ;;  %s7788_s18 = scalar_lea.hbm %s10791_s4, 2  ;;  %s1332_s2 = int_to_ptr.hbm [resolvable:$true] %s1331_s2 }
  0x81   : > { %s7782_s15 = sshra.s32 %s1332_s2, 4  ;;  %s7783_s15 = int_to_ptr.hbm [resolvable:$true] %s7782_s15 }
  0x82   : > { %s7784_s16 = scalar_lea.hbm %s7783_s15, 2  ;;  %p7789_p7 = scmp.lt.s32.totalorder %s7783_s15, %s10791_s4 }
  0x83   : > { %p7785_p4 = scmp.ne.s32.totalorder %s7783_s15, %s7784_s16  ;;  %p7790_p8 = scmp.lt.s32.totalorder %s7788_s18, %s7784_s16 }
  0x85   : > { %p7786_p5 = pnand %p7785_p4, %p7333_p3  ;;  %p7791_p9 = por %p7790_p8, %p7789_p7 }
  0x87   : > { %p7787_p6 = pneg %p7786_p5 }
  0x89   : > { %p7792_p10 = pnand %p7791_p9, %p7787_p6 }
  0x8b   : > { %7795 = shalt.err (!%p7792_p10)
}
  0x8c   : > { %s10693_s22 = smov 16   ;;  %s10695_s23 = smov 1  }
  0x8d   : > { %7216 = dma.hbm_to_vmem [thread:$0]  (%p7333_p3), %s1332_s2, 32, %s1334_s10, [#allocation5], %s10693_s22, %s10693_s22, %s10695_s23  }
  0x8e   : > { %s1396_s26 = sshll.u32 %s8915_s27, 4  ;;  %s8749_s7 = smov [#allocation7]   ;;  %s9088_s26 = int_to_ptr.hbm [resolvable:$true] %s1396_s26 }
  0x8f   : > { %s1361_s15 = sshll.u32 %s8749_s7, 4  ;;  %s7810_s16 = sshra.s32 %s9076_s11, 4  ;;  %s1362_s15 = int_to_ptr.vmem [resolvable:$true] %s1361_s15  ;;  %s7811_s16 = int_to_ptr.hbm [resolvable:$true] %s7810_s16 }
  0x90   : > { %s7812_s18 = scalar_lea.hbm %s7811_s16, 2  ;;  %s7816_s4 = scalar_lea.hbm %s8890_s30, 2 }
  0x91   : > { %p7813_p11 = scmp.ne.s32.totalorder %s7811_s16, %s7812_s18  ;;  %p7817_p0 = scmp.lt.s32.totalorder %s7811_s16, %s8890_s30 }
  0x92   : > { %p7818_p1 = scmp.lt.s32.totalorder %s7816_s4, %s7812_s18 }
  0x93   : > { %p7814_p12 = pnand %p7813_p11, %p7333_p3 }
  0x94   : > { %p7819_p4 = por %p7818_p1, %p7817_p0 }
  0x95   : > { %p7815_p13 = pneg %p7814_p12 }
  0x97   : > { %p7820_p5 = pnand %p7819_p4, %p7815_p13 }
  0x99   : > { %7823 = shalt.err (!%p7820_p5)
}
  0x9a   : > { %7220 = dma.hbm_to_vmem [thread:$0]  (%p7333_p3), %s9076_s11, 32, %s1362_s15, [#allocation8], %s10693_s22, %s10693_s22, %s10695_s23  }
  0x9b   : > { %s8750_s2 = smov [#allocation10]   ;;  %s7838_s7 = sshra.s32 %s9088_s26, 4  ;;  %s7839_s7 = int_to_ptr.hbm [resolvable:$true] %s7838_s7 }
  0x9c   : > { %s1398_s10 = sshll.u32 %s8750_s2, 4  ;;  %s7840_s4 = scalar_lea.hbm %s7839_s7, 64  ;;  %s1399_s10 = int_to_ptr.vmem [resolvable:$true] %s1398_s10 }
  0x9d   : > { %p7841_p6 = scmp.ne.s32.totalorder %s7839_s7, %s7840_s4  ;;  %s7844_s16 = scalar_lea.hbm %s8915_s27, 64 }
  0x9e   : > { %p7845_p9 = scmp.lt.s32.totalorder %s7839_s7, %s8915_s27  ;;  %p7846_p10 = scmp.lt.s32.totalorder %s7844_s16, %s7840_s4 }
  0x9f   : > { %p7842_p7 = pnand %p7841_p6, %p7333_p3 }
  0xa0   : > { %p7847_p11 = por %p7846_p10, %p7845_p9 }
  0xa1   : > { %p7843_p8 = pneg %p7842_p7 }
  0xa3   : > { %p7848_p12 = pnand %p7847_p11, %p7843_p8 }
  0xa5   : > { %7851 = shalt.err (!%p7848_p12)
}
  0xa6   : > { %s10697_s18 = smov 128   ;;  %s10699_s11 = smov 8  }
  0xa7   : > { %7224 = dma.hbm_to_vmem [thread:$0]  (%p7333_p3), %s9088_s26, 1024, %s1399_s10, [#allocation11], %s10697_s18, %s10697_s18, %s10699_s11  }
  0xa8   : > { %s1424_s15 = sshll.u32 %s10789_s24, 4  ;;  %s8753_s2 = smov [#allocation13]   ;;  %s1425_s15 = int_to_ptr.hbm [resolvable:$true] %s1424_s15 }
  0xa9   : > { %s1426_s7 = sshll.u32 %s8753_s2, 4  ;;  %s1452_s4 = sshll.u32 %s8935_s25, 4  ;;  %s1427_s7 = int_to_ptr.vmem [resolvable:$true] %s1426_s7  ;;  %s1453_s4 = int_to_ptr.hbm [resolvable:$true] %s1452_s4 }
  0xaa   : > { %s7866_s16 = sshra.s32 %s1425_s15, 4  ;;  %s7872_s23 = scalar_lea.hbm %s10789_s24, 64  ;;  %s7867_s16 = int_to_ptr.hbm [resolvable:$true] %s7866_s16 }
  0xab   : > { %s7868_s22 = scalar_lea.hbm %s7867_s16, 64  ;;  %p7873_p4 = scmp.lt.s32.totalorder %s7867_s16, %s10789_s24 }
  0xac   : > { %p7869_p13 = scmp.ne.s32.totalorder %s7867_s16, %s7868_s22  ;;  %p7874_p5 = scmp.lt.s32.totalorder %s7872_s23, %s7868_s22 }
  0xae   : > { %p7870_p0 = pnand %p7869_p13, %p7333_p3  ;;  %p7875_p6 = por %p7874_p5, %p7873_p4 }
  0xb0   : > { %p7871_p1 = pneg %p7870_p0 }
  0xb2   : > { %p7876_p7 = pnand %p7875_p6, %p7871_p1 }
  0xb4   : > { %7879 = shalt.err (!%p7876_p7)
}
  0xb5   : > { %7228 = dma.hbm_to_vmem [thread:$0]  (%p7333_p3), %s1425_s15, 1024, %s1427_s7, [#allocation14], %s10697_s18, %s10697_s18, %s10699_s11  }
  0xb6   : > { %s8754_s26 = smov [#allocation16]   ;;  %s1480_s2 = sshll.u32 %s10790_s14, 4  ;;  %s9124_s2 = int_to_ptr.hbm [resolvable:$true] %s1480_s2 }
  0xb7   : > { %s1454_s10 = sshll.u32 %s8754_s26, 4  ;;  %s7894_s22 = sshra.s32 %s1453_s4, 4  ;;  %s1455_s10 = int_to_ptr.vmem [resolvable:$true] %s1454_s10  ;;  %s7895_s22 = int_to_ptr.hbm [resolvable:$true] %s7894_s22 }
  0xb8   : > { %s7896_s23 = scalar_lea.hbm %s7895_s22, 64  ;;  %s7900_s16 = scalar_lea.hbm %s8935_s25, 64 }
  0xb9   : > { %p7897_p8 = scmp.ne.s32.totalorder %s7895_s22, %s7896_s23  ;;  %p7901_p11 = scmp.lt.s32.totalorder %s7895_s22, %s8935_s25 }
  0xba   : > { %p7902_p12 = scmp.lt.s32.totalorder %s7900_s16, %s7896_s23 }
  0xbb   : > { %p7898_p9 = pnand %p7897_p8, %p7333_p3 }
  0xbc   : > { %p7903_p13 = por %p7902_p12, %p7901_p11 }
  0xbd   : > { %p7899_p10 = pneg %p7898_p9 }
  0xbf   : > { %p7904_p0 = pnand %p7903_p13, %p7899_p10 }
  0xc1   : > { %7907 = shalt.err (!%p7904_p0)
}
  0xc2   : > { %7232 = dma.hbm_to_vmem [thread:$0]  (%p7333_p3), %s1453_s4, 1024, %s1455_s10, [#allocation17], %s10697_s18, %s10697_s18, %s10699_s11  }
  0xc3   : > { %s1508_s15 = sshll.u32 %s10786_s8, 4  ;;  %s8755_s7 = smov [#allocation19]   ;;  %s9136_s15 = int_to_ptr.hbm [resolvable:$true] %s1508_s15 }
  0xc4   : > { %s1482_s26 = sshll.u32 %s8755_s7, 4  ;;  %s7922_s22 = sshra.s32 %s9124_s2, 4  ;;  %s1483_s26 = int_to_ptr.vmem [resolvable:$true] %s1482_s26  ;;  %s7923_s22 = int_to_ptr.hbm [resolvable:$true] %s7922_s22 }
  0xc5   : > { %s7924_s23 = scalar_lea.hbm %s7923_s22, 2  ;;  %s7928_s16 = scalar_lea.hbm %s10790_s14, 2 }
  0xc6   : > { %p7925_p1 = scmp.ne.s32.totalorder %s7923_s22, %s7924_s23  ;;  %p7929_p6 = scmp.lt.s32.totalorder %s7923_s22, %s10790_s14 }
  0xc7   : > { %p7930_p7 = scmp.lt.s32.totalorder %s7928_s16, %s7924_s23 }
  0xc8   : > { %p7926_p4 = pnand %p7925_p1, %p7333_p3 }
  0xc9   : > { %p7931_p8 = por %p7930_p7, %p7929_p6 }
  0xca   : > { %p7927_p5 = pneg %p7926_p4 }
  0xcc   : > { %p7932_p9 = pnand %p7931_p8, %p7927_p5 }
  0xce   : > { %7935 = shalt.err (!%p7932_p9)
}
  0xcf   : > { %s10793_s4 = smov 1   ;;  %s10794_s10 = smov 16  }
  0xd0   : > { %7236 = dma.hbm_to_vmem [thread:$0]  (%p7333_p3), %s9124_s2, 32, %s1483_s26, [#allocation20], %s10794_s10, %s10794_s10, %s10793_s4  }
  0xd1   : > { %s8756_s7 = smov [#allocation22]   ;;  %s1536_s11 = sshll.u32 %s8965_s21, 4  ;;  %s9150_s11 = int_to_ptr.hbm [resolvable:$true] %s1536_s11 }
  0xd2   : > { %s1510_s18 = sshll.u32 %s8756_s7, 4  ;;  %s7950_s22 = sshra.s32 %s9136_s15, 4  ;;  %s1511_s18 = int_to_ptr.vmem [resolvable:$true] %s1510_s18  ;;  %s7951_s22 = int_to_ptr.hbm [resolvable:$true] %s7950_s22 }
  0xd3   : > { %s7952_s23 = scalar_lea.hbm %s7951_s22, 64  ;;  %s7956_s16 = scalar_lea.hbm %s10786_s8, 64 }
  0xd4   : > { %p7953_p10 = scmp.ne.s32.totalorder %s7951_s22, %s7952_s23  ;;  %p7957_p13 = scmp.lt.s32.totalorder %s7951_s22, %s10786_s8 }
  0xd5   : > { %p7958_p0 = scmp.lt.s32.totalorder %s7956_s16, %s7952_s23 }
  0xd6   : > { %p7954_p11 = pnand %p7953_p10, %p7333_p3 }
  0xd7   : > { %p7959_p1 = por %p7958_p0, %p7957_p13 }
  0xd8   : > { %p7955_p12 = pneg %p7954_p11 }
  0xda   : > { %p7960_p4 = pnand %p7959_p1, %p7955_p12 }
  0xdc   : > { %7963 = shalt.err (!%p7960_p4)
}
  0xdd   : > { %s10795_s2 = smov 8   ;;  %s10796_s26 = smov 128  }
  0xde   : > { %7240 = dma.hbm_to_vmem [thread:$0]  (%p7333_p3), %s9136_s15, 1024, %s1511_s18, [#allocation23], %s10796_s26, %s10796_s26, %s10795_s2  }
  0xdf   : > { %s1564_s7 = sshll.u32 %s10784_s13, 4  ;;  %s8757_s14 = smov [#allocation25]   ;;  %s9164_s7 = int_to_ptr.hbm [resolvable:$true] %s1564_s7 }
  0xe0   : > { %s1538_s24 = sshll.u32 %s8757_s14, 4  ;;  %s7978_s22 = sshra.s32 %s9150_s11, 4  ;;  %s1539_s24 = int_to_ptr.vmem [resolvable:$true] %s1538_s24  ;;  %s7979_s22 = int_to_ptr.hbm [resolvable:$true] %s7978_s22 }
  0xe1   : > { %s7980_s23 = scalar_lea.hbm %s7979_s22, 64  ;;  %s7984_s16 = scalar_lea.hbm %s8965_s21, 64 }
  0xe2   : > { %p7981_p5 = scmp.ne.s32.totalorder %s7979_s22, %s7980_s23  ;;  %p7985_p8 = scmp.lt.s32.totalorder %s7979_s22, %s8965_s21 }
  0xe3   : > { %p7986_p9 = scmp.lt.s32.totalorder %s7984_s16, %s7980_s23 }
  0xe4   : > { %p7982_p6 = pnand %p7981_p5, %p7333_p3 }
  0xe5   : > { %p7987_p10 = por %p7986_p9, %p7985_p8 }
  0xe6   : > { %p7983_p7 = pneg %p7982_p6 }
  0xe8   : > { %p7988_p11 = pnand %p7987_p10, %p7983_p7 }
  0xea   : > { %7991 = shalt.err (!%p7988_p11)
}
  0xeb   : > { %7244 = dma.hbm_to_vmem [thread:$0]  (%p7333_p3), %s9150_s11, 1024, %s1539_s24, [#allocation26], %s10796_s26, %s10796_s26, %s10795_s2  }
  0xec   : > { %s8758_s14 = smov [#allocation28]   ;;  %s1592_s15 = sshll.u32 %s8985_s17, 4  ;;  %s9178_s15 = int_to_ptr.hbm [resolvable:$true] %s1592_s15 }
  0xed   : > { %s1566_s18 = sshll.u32 %s8758_s14, 4  ;;  %s8006_s22 = sshra.s32 %s9164_s7, 4  ;;  %s1567_s18 = int_to_ptr.vmem [resolvable:$true] %s1566_s18  ;;  %s8007_s22 = int_to_ptr.hbm [resolvable:$true] %s8006_s22 }
  0xee   : > { %s8008_s23 = scalar_lea.hbm %s8007_s22, 64  ;;  %s8012_s16 = scalar_lea.hbm %s10784_s13, 64 }
  0xef   : > { %p8009_p12 = scmp.ne.s32.totalorder %s8007_s22, %s8008_s23  ;;  %p8013_p1 = scmp.lt.s32.totalorder %s8007_s22, %s10784_s13 }
  0xf0   : > { %p8014_p4 = scmp.lt.s32.totalorder %s8012_s16, %s8008_s23 }
  0xf1   : > { %p8010_p13 = pnand %p8009_p12, %p7333_p3 }
  0xf2   : > { %p8015_p5 = por %p8014_p4, %p8013_p1 }
  0xf3   : > { %p8011_p0 = pneg %p8010_p13 }
  0xf5   : > { %p8016_p6 = pnand %p8015_p5, %p8011_p0 }
  0xf7   : > { %8019 = shalt.err (!%p8016_p6)
}
  0xf8   : > { %7248 = dma.hbm_to_vmem [thread:$0]  (%p7333_p3), %s9164_s7, 1024, %s1567_s18, [#allocation29], %s10796_s26, %s10796_s26, %s10795_s2  }
  0xf9   : > { %s1620_s24 = sshll.u32 %s10788_s3, 4  ;;  %s8759_s11 = smov [#allocation31]   ;;  %s9192_s24 = int_to_ptr.hbm [resolvable:$true] %s1620_s24 }
  0xfa   : > { %s1594_s14 = sshll.u32 %s8759_s11, 4  ;;  %s8034_s22 = sshra.s32 %s9178_s15, 4  ;;  %s1595_s14 = int_to_ptr.vmem [resolvable:$true] %s1594_s14  ;;  %s8035_s22 = int_to_ptr.hbm [resolvable:$true] %s8034_s22 }
  0xfb   : > { %s8036_s23 = scalar_lea.hbm %s8035_s22, 64  ;;  %s8040_s16 = scalar_lea.hbm %s8985_s17, 64 }
  0xfc   : > { %p8037_p7 = scmp.ne.s32.totalorder %s8035_s22, %s8036_s23  ;;  %p8041_p10 = scmp.lt.s32.totalorder %s8035_s22, %s8985_s17 }
  0xfd   : > { %p8042_p11 = scmp.lt.s32.totalorder %s8040_s16, %s8036_s23 }
  0xfe   : > { %p8038_p8 = pnand %p8037_p7, %p7333_p3 }
  0xff   : > { %p8043_p12 = por %p8042_p11, %p8041_p10 }
 0x100   : > { %p8039_p9 = pneg %p8038_p8 }
 0x102   : > { %p8044_p13 = pnand %p8043_p12, %p8039_p9 }
 0x104   : > { %8047 = shalt.err (!%p8044_p13)
}
 0x105   : > { %7252 = dma.hbm_to_vmem [thread:$0]  (%p7333_p3), %s9178_s15, 1024, %s1595_s14, [#allocation32], %s10796_s26, %s10796_s26, %s10795_s2  }
 0x106   : > { %s8760_s7 = smov [#allocation34]   ;;  %s1648_s11 = sshll.u32 %s10785_s9, 4  ;;  %s9206_s11 = int_to_ptr.hbm [resolvable:$true] %s1648_s11 }
 0x107   : > { %s1622_s18 = sshll.u32 %s8760_s7, 4  ;;  %s8062_s22 = sshra.s32 %s9192_s24, 4  ;;  %s1623_s18 = int_to_ptr.vmem [resolvable:$true] %s1622_s18  ;;  %s8063_s22 = int_to_ptr.hbm [resolvable:$true] %s8062_s22 }
 0x108   : > { %s8064_s23 = scalar_lea.hbm %s8063_s22, 2  ;;  %s8068_s16 = scalar_lea.hbm %s10788_s3, 2 }
 0x109   : > { %p8065_p0 = scmp.ne.s32.totalorder %s8063_s22, %s8064_s23  ;;  %p8069_p5 = scmp.lt.s32.totalorder %s8063_s22, %s10788_s3 }
 0x10a   : > { %p8070_p6 = scmp.lt.s32.totalorder %s8068_s16, %s8064_s23 }
 0x10b   : > { %p8066_p1 = pnand %p8065_p0, %p7333_p3 }
 0x10c   : > { %p8071_p7 = por %p8070_p6, %p8069_p5 }
 0x10d   : > { %p8067_p4 = pneg %p8066_p1 }
 0x10f   : > { %p8072_p8 = pnand %p8071_p7, %p8067_p4 }
 0x111   : > { %8075 = shalt.err (!%p8072_p8)
}
 0x112   : > { %7256 = dma.hbm_to_vmem [thread:$0]  (%p7333_p3), %s9192_s24, 32, %s1623_s18, [#allocation35], %s10794_s10, %s10794_s10, %s10793_s4  }
 0x113   : > { %s1679_s15 = sshll.u32 %s9020_s29, 4  ;;  %s8761_s14 = smov [#allocation37]   ;;  %s9220_s15 = int_to_ptr.hbm [resolvable:$true] %s1679_s15 }
 0x114   : > { %s1650_s7 = sshll.u32 %s8761_s14, 4  ;;  %s8090_s22 = sshra.s32 %s9206_s11, 4  ;;  %s1651_s7 = int_to_ptr.vmem [resolvable:$true] %s1650_s7  ;;  %s8091_s22 = int_to_ptr.hbm [resolvable:$true] %s8090_s22 }
 0x115   : > { %s8092_s23 = scalar_lea.hbm %s8091_s22, 64  ;;  %s8096_s16 = scalar_lea.hbm %s10785_s9, 64 }
 0x116   : > { %p8093_p9 = scmp.ne.s32.totalorder %s8091_s22, %s8092_s23  ;;  %p8097_p12 = scmp.lt.s32.totalorder %s8091_s22, %s10785_s9 }
 0x117   : > { %p8098_p13 = scmp.lt.s32.totalorder %s8096_s16, %s8092_s23 }
 0x118   : > { %p8094_p10 = pnand %p8093_p9, %p7333_p3 }
 0x119   : > { %p8099_p0 = por %p8098_p13, %p8097_p12 }
 0x11a   : > { %p8095_p11 = pneg %p8094_p10 }
 0x11c   : > { %p8100_p1 = pnand %p8099_p0, %p8095_p11 }
 0x11e   : > { %8103 = shalt.err (!%p8100_p1)
}
 0x11f   : > { %7260 = dma.hbm_to_vmem [thread:$0]  (%p7333_p3), %s9206_s11, 1024, %s1651_s7, [#allocation38], %s10796_s26, %s10796_s26, %s10795_s2  }
 0x120   : > { %s8762_s24 = smov [#allocation40]   ;;  %s1707_s14 = sshll.u32 %s10787_s5, 4  ;;  %s9234_s14 = int_to_ptr.hbm [resolvable:$true] %s1707_s14 }
 0x121   : > { %s1681_s18 = sshll.u32 %s8762_s24, 4  ;;  %s8118_s22 = sshra.s32 %s9220_s15, 4  ;;  %s1682_s18 = int_to_ptr.vmem [resolvable:$true] %s1681_s18  ;;  %s8119_s22 = int_to_ptr.hbm [resolvable:$true] %s8118_s22 }
 0x122   : > { %s8120_s23 = scalar_lea.hbm %s8119_s22, 2  ;;  %s8124_s16 = scalar_lea.hbm %s9020_s29, 2 }
 0x123   : > { %p8121_p4 = scmp.ne.s32.totalorder %s8119_s22, %s8120_s23  ;;  %p8125_p7 = scmp.lt.s32.totalorder %s8119_s22, %s9020_s29 }
 0x124   : > { %p8126_p8 = scmp.lt.s32.totalorder %s8124_s16, %s8120_s23 }
 0x125   : > { %p8122_p5 = pnand %p8121_p4, %p7333_p3 }
 0x126   : > { %p8127_p9 = por %p8126_p8, %p8125_p7 }
 0x127   : > { %p8123_p6 = pneg %p8122_p5 }
 0x129   : > { %p8128_p10 = pnand %p8127_p9, %p8123_p6 }
 0x12b   : > { %8131 = shalt.err (!%p8128_p10)
}
 0x12c   : > { %s10797_s2 = sld [smem:[#allocation79_spill]]  ;;  %s8763_s26 = smov [#allocation43]  }
 0x12d   : > { %7264 = dma.hbm_to_vmem [thread:$0]  (%p7333_p3), %s9220_s15, 32, %s1682_s18, [#allocation41], %s10794_s10, %s10794_s10, %s10793_s4  }
 0x12e   : > { %s1709_s11 = sshll.u32 %s8763_s26, 4  ;;  %s8146_s24 = sshra.s32 %s9234_s14, 4  ;;  %s1710_s11 = int_to_ptr.vmem [resolvable:$true] %s1709_s11  ;;  %s8147_s24 = int_to_ptr.hbm [resolvable:$true] %s8146_s24 }
 0x12f   : > { %s8148_s22 = scalar_lea.hbm %s8147_s24, 2  ;;  %s8152_s23 = scalar_lea.hbm %s10787_s5, 2 }
 0x130   : > { %p8149_p11 = scmp.ne.s32.totalorder %s8147_s24, %s8148_s22  ;;  %p8153_p0 = scmp.lt.s32.totalorder %s8147_s24, %s10787_s5 }
 0x131   : > { %p8154_p1 = scmp.lt.s32.totalorder %s8152_s23, %s8148_s22 }
 0x132   : > { %s1314_s7 = sshll.u32 %s10797_s2, 4  ;;  %p8150_p12 = pnand %p8149_p11, %p7333_p3  ;;  %s9248_s7 = int_to_ptr.hbm [resolvable:$true] %s1314_s7 }
 0x133   : > { %p8155_p4 = por %p8154_p1, %p8153_p0 }
 0x134   : > { %p8151_p13 = pneg %p8150_p12 }
 0x136   : > { %p8156_p5 = pnand %p8155_p4, %p8151_p13 }
 0x138   : > { %8159 = shalt.err (!%p8156_p5)
}
 0x139   : > { %s10798_s15 = sld [smem:[#allocation82_spill]]  ;;  %s8764_s16 = smov [#allocation2]  }
 0x13a   : > { %7268 = dma.hbm_to_vmem [thread:$0]  (%p7333_p3), %s9234_s14, 32, %s1710_s11, [#allocation44], %s10794_s10, %s10794_s10, %s10793_s4  }
 0x13b   : > { %s1316_s26 = sshll.u32 %s8764_s16, 4  ;;  %s8174_s24 = sshra.s32 %s9248_s7, 4  ;;  %s1317_s26 = int_to_ptr.vmem [resolvable:$true] %s1316_s26  ;;  %s8175_s24 = int_to_ptr.hbm [resolvable:$true] %s8174_s24 }
 0x13c   : > { %s8176_s22 = scalar_lea.hbm %s8175_s24, 2  ;;  %s8180_s23 = scalar_lea.hbm %s10797_s2, 2 }
 0x13d   : > { %p8177_p6 = scmp.ne.s32.totalorder %s8175_s24, %s8176_s22  ;;  %p8181_p9 = scmp.lt.s32.totalorder %s8175_s24, %s10797_s2 }
 0x13e   : > { %p8182_p10 = scmp.lt.s32.totalorder %s8180_s23, %s8176_s22 }
 0x13f   : > { %s1345_s18 = sshll.u32 %s10798_s15, 4  ;;  %p8178_p7 = pnand %p8177_p6, %p7333_p3  ;;  %s9262_s18 = int_to_ptr.hbm [resolvable:$true] %s1345_s18 }
 0x140   : > { %p8183_p11 = por %p8182_p10, %p8181_p9 }
 0x141   : > { %p8179_p8 = pneg %p8178_p7 }
 0x143   : > { %p8184_p12 = pnand %p8183_p11, %p8179_p8 }
 0x145   : > { %8187 = shalt.err (!%p8184_p12)
}
 0x146   : > { %s10799_s14 = sld [smem:[#allocation86_spill]]  ;;  %s8765_s11 = smov [#allocation6]  }
 0x147   : > { %7214 = dma.hbm_to_vmem [thread:$0]  (%p7333_p3), %s9248_s7, 32, %s1317_s26, [#allocation3], %s10794_s10, %s10794_s10, %s10793_s4  }
 0x148   : > { %s1347_s16 = sshll.u32 %s8765_s11, 4  ;;  %s8202_s24 = sshra.s32 %s9262_s18, 4  ;;  %s1348_s16 = int_to_ptr.vmem [resolvable:$true] %s1347_s16  ;;  %s8203_s24 = int_to_ptr.hbm [resolvable:$true] %s8202_s24 }
 0x149   : > { %s8204_s22 = scalar_lea.hbm %s8203_s24, 2  ;;  %s8208_s23 = scalar_lea.hbm %s10798_s15, 2 }
 0x14a   : > { %p8205_p13 = scmp.ne.s32.totalorder %s8203_s24, %s8204_s22  ;;  %p8209_p4 = scmp.lt.s32.totalorder %s8203_s24, %s10798_s15 }
 0x14b   : > { %p8210_p5 = scmp.lt.s32.totalorder %s8208_s23, %s8204_s22 }
 0x14c   : > { %s1382_s3 = sshll.u32 %s10799_s14, 4  ;;  %p8206_p0 = pnand %p8205_p13, %p7333_p3  ;;  %s9276_s3 = int_to_ptr.hbm [resolvable:$true] %s1382_s3 }
 0x14d   : > { %p8211_p6 = por %p8210_p5, %p8209_p4 }
 0x14e   : > { %p8207_p1 = pneg %p8206_p0 }
 0x150   : > { %p8212_p7 = pnand %p8211_p6, %p8207_p1 }
 0x152   : > { %8215 = shalt.err (!%p8212_p7)
}
 0x153   : > { %s10800_s7 = sld [smem:[#allocation87_spill]]  ;;  %s8766_s11 = smov [#allocation9]  }
 0x154   : > { %7218 = dma.hbm_to_vmem [thread:$0]  (%p7333_p3), %s9262_s18, 32, %s1348_s16, [#allocation5], %s10794_s10, %s10794_s10, %s10793_s4  }
 0x155   : > { %s1384_s2 = sshll.u32 %s8766_s11, 4  ;;  %s8230_s24 = sshra.s32 %s9276_s3, 4  ;;  %s1385_s2 = int_to_ptr.vmem [resolvable:$true] %s1384_s2  ;;  %s8231_s24 = int_to_ptr.hbm [resolvable:$true] %s8230_s24 }
 0x156   : > { %s8232_s22 = scalar_lea.hbm %s8231_s24, 2  ;;  %s8236_s23 = scalar_lea.hbm %s10799_s14, 2 }
 0x157   : > { %p8233_p8 = scmp.ne.s32.totalorder %s8231_s24, %s8232_s22  ;;  %p8237_p11 = scmp.lt.s32.totalorder %s8231_s24, %s10799_s14 }
 0x158   : > { %p8238_p12 = scmp.lt.s32.totalorder %s8236_s23, %s8232_s22 }
 0x159   : > { %s1410_s26 = sshll.u32 %s10800_s7, 4  ;;  %p8234_p9 = pnand %p8233_p8, %p7333_p3  ;;  %s9290_s26 = int_to_ptr.hbm [resolvable:$true] %s1410_s26 }
 0x15a   : > { %p8239_p13 = por %p8238_p12, %p8237_p11 }
 0x15b   : > { %p8235_p10 = pneg %p8234_p9 }
 0x15d   : > { %p8240_p0 = pnand %p8239_p13, %p8235_p10 }
 0x15f   : > { %8243 = shalt.err (!%p8240_p0)
}
 0x160   : > { %s10801_s18 = sld [smem:[#allocation89_spill]]  ;;  %s8767_s16 = smov [#allocation12]  }
 0x161   : > { %7222 = dma.hbm_to_vmem [thread:$0]  (%p7333_p3), %s9276_s3, 32, %s1385_s2, [#allocation8], %s10794_s10, %s10794_s10, %s10793_s4  }
 0x162   : > { %s1412_s11 = sshll.u32 %s8767_s16, 4  ;;  %s8258_s24 = sshra.s32 %s9290_s26, 4  ;;  %s1413_s11 = int_to_ptr.vmem [resolvable:$true] %s1412_s11  ;;  %s8259_s24 = int_to_ptr.hbm [resolvable:$true] %s8258_s24 }
 0x163   : > { %s8260_s22 = scalar_lea.hbm %s8259_s24, 2  ;;  %s8264_s23 = scalar_lea.hbm %s10800_s7, 2 }
 0x164   : > { %p8261_p1 = scmp.ne.s32.totalorder %s8259_s24, %s8260_s22  ;;  %p8265_p6 = scmp.lt.s32.totalorder %s8259_s24, %s10800_s7 }
 0x165   : > { %p8266_p7 = scmp.lt.s32.totalorder %s8264_s23, %s8260_s22 }
 0x166   : > { %s1438_s5 = sshll.u32 %s10801_s18, 4  ;;  %p8262_p4 = pnand %p8261_p1, %p7333_p3  ;;  %s9304_s5 = int_to_ptr.hbm [resolvable:$true] %s1438_s5 }
 0x167   : > { %p8267_p8 = por %p8266_p7, %p8265_p6 }
 0x168   : > { %p8263_p5 = pneg %p8262_p4 }
 0x16a   : > { %p8268_p9 = pnand %p8267_p8, %p8263_p5 }
 0x16c   : > { %8271 = shalt.err (!%p8268_p9)
}
 0x16d   : > { %s10802_s3 = sld [smem:[#allocation90_spill]]  ;;  %s8768_s16 = smov [#allocation15]  }
 0x16e   : > { %7226 = dma.hbm_to_vmem [thread:$0]  (%p7333_p3), %s9290_s26, 32, %s1413_s11, [#allocation11], %s10794_s10, %s10794_s10, %s10793_s4  }
 0x16f   : > { %s1440_s8 = sshll.u32 %s8768_s16, 4  ;;  %s8286_s24 = sshra.s32 %s9304_s5, 4  ;;  %s1441_s8 = int_to_ptr.vmem [resolvable:$true] %s1440_s8  ;;  %s8287_s24 = int_to_ptr.hbm [resolvable:$true] %s8286_s24 }
 0x170   : > { %s8288_s22 = scalar_lea.hbm %s8287_s24, 2  ;;  %s8292_s23 = scalar_lea.hbm %s10801_s18, 2 }
 0x171   : > { %p8289_p10 = scmp.ne.s32.totalorder %s8287_s24, %s8288_s22  ;;  %p8293_p13 = scmp.lt.s32.totalorder %s8287_s24, %s10801_s18 }
 0x172   : > { %p8294_p0 = scmp.lt.s32.totalorder %s8292_s23, %s8288_s22 }
 0x173   : > { %s1466_s2 = sshll.u32 %s10802_s3, 4  ;;  %p8290_p11 = pnand %p8289_p10, %p7333_p3  ;;  %s9318_s2 = int_to_ptr.hbm [resolvable:$true] %s1466_s2 }
 0x174   : > { %p8295_p1 = por %p8294_p0, %p8293_p13 }
 0x175   : > { %p8291_p12 = pneg %p8290_p11 }
 0x177   : > { %p8296_p4 = pnand %p8295_p1, %p8291_p12 }
 0x179   : > { %8299 = shalt.err (!%p8296_p4)
}
 0x17a   : > { %s10803_s26 = sld [smem:[#allocation92_spill]]  ;;  %s8769_s11 = smov [#allocation18]  }
 0x17b   : > { %7230 = dma.hbm_to_vmem [thread:$0]  (%p7333_p3), %s9304_s5, 32, %s1441_s8, [#allocation14], %s10794_s10, %s10794_s10, %s10793_s4  }
 0x17c   : > { %s1468_s16 = sshll.u32 %s8769_s11, 4  ;;  %s8314_s24 = sshra.s32 %s9318_s2, 4  ;;  %s1469_s16 = int_to_ptr.vmem [resolvable:$true] %s1468_s16  ;;  %s8315_s24 = int_to_ptr.hbm [resolvable:$true] %s8314_s24 }
 0x17d   : > { %s8316_s22 = scalar_lea.hbm %s8315_s24, 2  ;;  %s8320_s23 = scalar_lea.hbm %s10802_s3, 2 }
 0x17e   : > { %p8317_p5 = scmp.ne.s32.totalorder %s8315_s24, %s8316_s22  ;;  %p8321_p8 = scmp.lt.s32.totalorder %s8315_s24, %s10802_s3 }
 0x17f   : > { %p8322_p9 = scmp.lt.s32.totalorder %s8320_s23, %s8316_s22 }
 0x180   : > { %s1494_s7 = sshll.u32 %s10803_s26, 4  ;;  %p8318_p6 = pnand %p8317_p5, %p7333_p3  ;;  %s9332_s7 = int_to_ptr.hbm [resolvable:$true] %s1494_s7 }
 0x181   : > { %p8323_p10 = por %p8322_p9, %p8321_p8 }
 0x182   : > { %p8319_p7 = pneg %p8318_p6 }
 0x184   : > { %p8324_p11 = pnand %p8323_p10, %p8319_p7 }
 0x186   : > { %8327 = shalt.err (!%p8324_p11)
}
 0x187   : > { %s10804_s5 = sld [smem:[#allocation94_spill]]  ;;  %s8770_s11 = smov [#allocation21]  }
 0x188   : > { %7234 = dma.hbm_to_vmem [thread:$0]  (%p7333_p3), %s9318_s2, 32, %s1469_s16, [#allocation17], %s10794_s10, %s10794_s10, %s10793_s4  }
 0x189   : > { %s1496_s9 = sshll.u32 %s8770_s11, 4  ;;  %s8342_s24 = sshra.s32 %s9332_s7, 4  ;;  %s1497_s9 = int_to_ptr.vmem [resolvable:$true] %s1496_s9  ;;  %s8343_s24 = int_to_ptr.hbm [resolvable:$true] %s8342_s24 }
 0x18a   : > { %s8344_s22 = scalar_lea.hbm %s8343_s24, 2  ;;  %s8348_s23 = scalar_lea.hbm %s10803_s26, 2 }
 0x18b   : > { %p8345_p12 = scmp.ne.s32.totalorder %s8343_s24, %s8344_s22  ;;  %p8349_p1 = scmp.lt.s32.totalorder %s8343_s24, %s10803_s26 }
 0x18c   : > { %p8350_p4 = scmp.lt.s32.totalorder %s8348_s23, %s8344_s22 }
 0x18d   : > { %s1522_s8 = sshll.u32 %s10804_s5, 4  ;;  %p8346_p13 = pnand %p8345_p12, %p7333_p3  ;;  %s9346_s8 = int_to_ptr.hbm [resolvable:$true] %s1522_s8 }
 0x18e   : > { %p8351_p5 = por %p8350_p4, %p8349_p1 }
 0x18f   : > { %p8347_p0 = pneg %p8346_p13 }
 0x191   : > { %p8352_p6 = pnand %p8351_p5, %p8347_p0 }
 0x193   : > { %8355 = shalt.err (!%p8352_p6)
}
 0x194   : > { %s10805_s2 = sld [smem:[#allocation95_spill]]  ;;  %s8771_s16 = smov [#allocation24]  }
 0x195   : > { %7238 = dma.hbm_to_vmem [thread:$0]  (%p7333_p3), %s9332_s7, 32, %s1497_s9, [#allocation20], %s10794_s10, %s10794_s10, %s10793_s4  }
 0x196   : > { %s1524_s11 = sshll.u32 %s8771_s16, 4  ;;  %s8370_s24 = sshra.s32 %s9346_s8, 4  ;;  %s1525_s11 = int_to_ptr.vmem [resolvable:$true] %s1524_s11  ;;  %s8371_s24 = int_to_ptr.hbm [resolvable:$true] %s8370_s24 }
 0x197   : > { %s8372_s22 = scalar_lea.hbm %s8371_s24, 2  ;;  %s8376_s23 = scalar_lea.hbm %s10804_s5, 2 }
 0x198   : > { %p8373_p7 = scmp.ne.s32.totalorder %s8371_s24, %s8372_s22  ;;  %p8377_p10 = scmp.lt.s32.totalorder %s8371_s24, %s10804_s5 }
 0x199   : > { %p8378_p11 = scmp.lt.s32.totalorder %s8376_s23, %s8372_s22 }
 0x19a   : > { %s1550_s3 = sshll.u32 %s10805_s2, 4  ;;  %p8374_p8 = pnand %p8373_p7, %p7333_p3  ;;  %s9360_s3 = int_to_ptr.hbm [resolvable:$true] %s1550_s3 }
 0x19b   : > { %p8379_p12 = por %p8378_p11, %p8377_p10 }
 0x19c   : > { %p8375_p9 = pneg %p8374_p8 }
 0x19e   : > { %p8380_p13 = pnand %p8379_p12, %p8375_p9 }
 0x1a0   : > { %8383 = shalt.err (!%p8380_p13)
}
 0x1a1   : > { %s10806_s9 = sld [smem:[#allocation97_spill]]  ;;  %s8772_s16 = smov [#allocation27]  }
 0x1a2   : > { %7242 = dma.hbm_to_vmem [thread:$0]  (%p7333_p3), %s9346_s8, 32, %s1525_s11, [#allocation23], %s10794_s10, %s10794_s10, %s10793_s4  }
 0x1a3   : > { %s1552_s13 = sshll.u32 %s8772_s16, 4  ;;  %s8398_s24 = sshra.s32 %s9360_s3, 4  ;;  %s1553_s13 = int_to_ptr.vmem [resolvable:$true] %s1552_s13  ;;  %s8399_s24 = int_to_ptr.hbm [resolvable:$true] %s8398_s24 }
 0x1a4   : > { %s8400_s22 = scalar_lea.hbm %s8399_s24, 2  ;;  %s8404_s23 = scalar_lea.hbm %s10805_s2, 2 }
 0x1a5   : > { %p8401_p0 = scmp.ne.s32.totalorder %s8399_s24, %s8400_s22  ;;  %p8405_p5 = scmp.lt.s32.totalorder %s8399_s24, %s10805_s2 }
 0x1a6   : > { %p8406_p6 = scmp.lt.s32.totalorder %s8404_s23, %s8400_s22 }
 0x1a7   : > { %s1578_s7 = sshll.u32 %s10806_s9, 4  ;;  %p8402_p1 = pnand %p8401_p0, %p7333_p3  ;;  %s9374_s7 = int_to_ptr.hbm [resolvable:$true] %s1578_s7 }
 0x1a8   : > { %p8407_p7 = por %p8406_p6, %p8405_p5 }
 0x1a9   : > { %p8403_p4 = pneg %p8402_p1 }
 0x1ab   : > { %p8408_p8 = pnand %p8407_p7, %p8403_p4 }
 0x1ad   : > { %8411 = shalt.err (!%p8408_p8)
}
 0x1ae   : > { %s10807_s8 = sld [smem:[#allocation98_spill]]  ;;  %s8773_s11 = smov [#allocation30]  }
 0x1af   : > { %7246 = dma.hbm_to_vmem [thread:$0]  (%p7333_p3), %s9360_s3, 32, %s1553_s13, [#allocation26], %s10794_s10, %s10794_s10, %s10793_s4  }
 0x1b0   : > { %s1580_s16 = sshll.u32 %s8773_s11, 4  ;;  %s8426_s24 = sshra.s32 %s9374_s7, 4  ;;  %s1581_s16 = int_to_ptr.vmem [resolvable:$true] %s1580_s16  ;;  %s8427_s24 = int_to_ptr.hbm [resolvable:$true] %s8426_s24 }
 0x1b1   : > { %s8428_s22 = scalar_lea.hbm %s8427_s24, 2  ;;  %s8432_s23 = scalar_lea.hbm %s10806_s9, 2 }
 0x1b2   : > { %p8429_p9 = scmp.ne.s32.totalorder %s8427_s24, %s8428_s22  ;;  %p8433_p12 = scmp.lt.s32.totalorder %s8427_s24, %s10806_s9 }
 0x1b3   : > { %p8434_p13 = scmp.lt.s32.totalorder %s8432_s23, %s8428_s22 }
 0x1b4   : > { %s1606_s5 = sshll.u32 %s10807_s8, 4  ;;  %p8430_p10 = pnand %p8429_p9, %p7333_p3  ;;  %s9388_s5 = int_to_ptr.hbm [resolvable:$true] %s1606_s5 }
 0x1b5   : > { %p8435_p0 = por %p8434_p13, %p8433_p12 }
 0x1b6   : > { %p8431_p11 = pneg %p8430_p10 }
 0x1b8   : > { %p8436_p1 = pnand %p8435_p0, %p8431_p11 }
 0x1ba   : > { %8439 = shalt.err (!%p8436_p1)
}
 0x1bb   : > { %s10808_s13 = sld [smem:[#allocation100_spill]]  ;;  %s8774_s11 = smov [#allocation33]  }
 0x1bc   : > { %7250 = dma.hbm_to_vmem [thread:$0]  (%p7333_p3), %s9374_s7, 32, %s1581_s16, [#allocation29], %s10794_s10, %s10794_s10, %s10793_s4  }
 0x1bd   : > { %s1608_s2 = sshll.u32 %s8774_s11, 4  ;;  %s8454_s24 = sshra.s32 %s9388_s5, 4  ;;  %s1609_s2 = int_to_ptr.vmem [resolvable:$true] %s1608_s2  ;;  %s8455_s24 = int_to_ptr.hbm [resolvable:$true] %s8454_s24 }
 0x1be   : > { %s8456_s22 = scalar_lea.hbm %s8455_s24, 2  ;;  %s8460_s23 = scalar_lea.hbm %s10807_s8, 2 }
 0x1bf   : > { %p8457_p4 = scmp.ne.s32.totalorder %s8455_s24, %s8456_s22  ;;  %p8461_p7 = scmp.lt.s32.totalorder %s8455_s24, %s10807_s8 }
 0x1c0   : > { %p8462_p8 = scmp.lt.s32.totalorder %s8460_s23, %s8456_s22 }
 0x1c1   : > { %s1634_s3 = sshll.u32 %s10808_s13, 4  ;;  %p8458_p5 = pnand %p8457_p4, %p7333_p3  ;;  %s9402_s3 = int_to_ptr.hbm [resolvable:$true] %s1634_s3 }
 0x1c2   : > { %p8463_p9 = por %p8462_p8, %p8461_p7 }
 0x1c3   : > { %p8459_p6 = pneg %p8458_p5 }
 0x1c5   : > { %p8464_p10 = pnand %p8463_p9, %p8459_p6 }
 0x1c7   : > { %8467 = shalt.err (!%p8464_p10)
}
 0x1c8   : > { %s10809_s7 = sld [smem:[#allocation102_spill]]  ;;  %s8775_s16 = smov [#allocation36]  }
 0x1c9   : > { %7254 = dma.hbm_to_vmem [thread:$0]  (%p7333_p3), %s9388_s5, 32, %s1609_s2, [#allocation32], %s10794_s10, %s10794_s10, %s10793_s4  }
 0x1ca   : > { %s1636_s11 = sshll.u32 %s8775_s16, 4  ;;  %s8482_s24 = sshra.s32 %s9402_s3, 4  ;;  %s1637_s11 = int_to_ptr.vmem [resolvable:$true] %s1636_s11  ;;  %s8483_s24 = int_to_ptr.hbm [resolvable:$true] %s8482_s24 }
 0x1cb   : > { %s8484_s22 = scalar_lea.hbm %s8483_s24, 2  ;;  %s8488_s23 = scalar_lea.hbm %s10808_s13, 2 }
 0x1cc   : > { %p8485_p11 = scmp.ne.s32.totalorder %s8483_s24, %s8484_s22  ;;  %p8489_p0 = scmp.lt.s32.totalorder %s8483_s24, %s10808_s13 }
 0x1cd   : > { %p8490_p1 = scmp.lt.s32.totalorder %s8488_s23, %s8484_s22 }
 0x1ce   : > { %s1662_s9 = sshll.u32 %s10809_s7, 4  ;;  %p8486_p12 = pnand %p8485_p11, %p7333_p3  ;;  %s9416_s9 = int_to_ptr.hbm [resolvable:$true] %s1662_s9 }
 0x1cf   : > { %p8491_p4 = por %p8490_p1, %p8489_p0 }
 0x1d0   : > { %p8487_p13 = pneg %p8486_p12 }
 0x1d2   : > { %p8492_p5 = pnand %p8491_p4, %p8487_p13 }
 0x1d4   : > { %8495 = shalt.err (!%p8492_p5)
}
 0x1d5   : > { %s10810_s5 = sld [smem:[#allocation104_spill]]  ;;  %s8776_s16 = smov [#allocation39]  }
 0x1d6   : > { %7258 = dma.hbm_to_vmem [thread:$0]  (%p7333_p3), %s9402_s3, 32, %s1637_s11, [#allocation35], %s10794_s10, %s10794_s10, %s10793_s4  }
 0x1d7   : > { %s1664_s8 = sshll.u32 %s8776_s16, 4  ;;  %s8510_s24 = sshra.s32 %s9416_s9, 4  ;;  %s1665_s8 = int_to_ptr.vmem [resolvable:$true] %s1664_s8  ;;  %s8511_s24 = int_to_ptr.hbm [resolvable:$true] %s8510_s24 }
 0x1d8   : > { %s8512_s22 = scalar_lea.hbm %s8511_s24, 2  ;;  %s8516_s23 = scalar_lea.hbm %s10809_s7, 2 }
 0x1d9   : > { %p8513_p6 = scmp.ne.s32.totalorder %s8511_s24, %s8512_s22  ;;  %p8517_p9 = scmp.lt.s32.totalorder %s8511_s24, %s10809_s7 }
 0x1da   : > { %p8518_p10 = scmp.lt.s32.totalorder %s8516_s23, %s8512_s22 }
 0x1db   : > { %s1693_s2 = sshll.u32 %s10810_s5, 4  ;;  %p8514_p7 = pnand %p8513_p6, %p7333_p3  ;;  %s9430_s2 = int_to_ptr.hbm [resolvable:$true] %s1693_s2 }
 0x1dc   : > { %p8519_p11 = por %p8518_p10, %p8517_p9 }
 0x1dd   : > { %p8515_p8 = pneg %p8514_p7 }
 0x1df   : > { %p8520_p12 = pnand %p8519_p11, %p8515_p8 }
 0x1e1   : > { %8523 = shalt.err (!%p8520_p12)
}
 0x1e2   : > { %s10811_s3 = sld [smem:[#allocation106_spill]]  ;;  %s8777_s11 = smov [#allocation42]  }
 0x1e3   : > { %7262 = dma.hbm_to_vmem [thread:$0]  (%p7333_p3), %s9416_s9, 32, %s1665_s8, [#allocation38], %s10794_s10, %s10794_s10, %s10793_s4  }
 0x1e4   : > { %s1695_s16 = sshll.u32 %s8777_s11, 4  ;;  %s8538_s24 = sshra.s32 %s9430_s2, 4  ;;  %s1696_s16 = int_to_ptr.vmem [resolvable:$true] %s1695_s16  ;;  %s8539_s24 = int_to_ptr.hbm [resolvable:$true] %s8538_s24 }
 0x1e5   : > { %s8540_s22 = scalar_lea.hbm %s8539_s24, 2  ;;  %s8544_s23 = scalar_lea.hbm %s10810_s5, 2 }
 0x1e6   : > { %p8541_p13 = scmp.ne.s32.totalorder %s8539_s24, %s8540_s22  ;;  %p8545_p4 = scmp.lt.s32.totalorder %s8539_s24, %s10810_s5 }
 0x1e7   : > { %p8546_p5 = scmp.lt.s32.totalorder %s8544_s23, %s8540_s22 }
 0x1e8   : > { %s1722_s13 = sshll.u32 %s10811_s3, 4  ;;  %p8542_p0 = pnand %p8541_p13, %p7333_p3  ;;  %s9444_s13 = int_to_ptr.hbm [resolvable:$true] %s1722_s13 }
 0x1e9   : > { %p8547_p6 = por %p8546_p5, %p8545_p4 }
 0x1ea   : > { %p8543_p1 = pneg %p8542_p0 }
 0x1ec   : > { %p8548_p7 = pnand %p8547_p6, %p8543_p1 }
 0x1ee   : > { %8551 = shalt.err (!%p8548_p7)
}
 0x1ef   : > { %7266 = dma.hbm_to_vmem [thread:$0]  (%p7333_p3), %s9430_s2, 32, %s1696_s16, [#allocation41], %s10794_s10, %s10794_s10, %s10793_s4  }
 0x1f0   : > { %s1734_s9 = sshll.u32 %s10783_s6, 4  ;;  %s8778_s8 = smov [#allocation45]   ;;  %s9458_s9 = int_to_ptr.hbm [resolvable:$true] %s1734_s9 }
 0x1f1   : > { %s1724_s11 = sshll.u32 %s8778_s8, 4  ;;  %s8566_s24 = sshra.s32 %s9444_s13, 4  ;;  %s1725_s11 = int_to_ptr.vmem [resolvable:$true] %s1724_s11  ;;  %s8567_s24 = int_to_ptr.hbm [resolvable:$true] %s8566_s24 }
 0x1f2   : > { %s8568_s22 = scalar_lea.hbm %s8567_s24, 1  ;;  %s8572_s23 = scalar_lea.hbm %s10811_s3, 1 }
 0x1f3   : > { %p8569_p8 = scmp.ne.s32.totalorder %s8567_s24, %s8568_s22  ;;  %p8573_p11 = scmp.lt.s32.totalorder %s8567_s24, %s10811_s3 }
 0x1f4   : > { %p8574_p12 = scmp.lt.s32.totalorder %s8572_s23, %s8568_s22 }
 0x1f5   : > { %p8570_p9 = pnand %p8569_p8, %p7333_p3 }
 0x1f6   : > { %p8575_p13 = por %p8574_p12, %p8573_p11 }
 0x1f7   : > { %p8571_p10 = pneg %p8570_p9 }
 0x1f9   : > { %p8576_p0 = pnand %p8575_p13, %p8571_p10 }
 0x1fb   : > { %8579 = shalt.err (!%p8576_p0)
}
 0x1fc   : > { %7270 = dma.hbm_to_vmem [thread:$0]  (%p7333_p3), %s9444_s13, 16, %s1725_s11, [#allocation44]  }
 0x1fd   : > { %s8779_s4 = smov [#allocation46]   ;;  %s8594_s2 = sshra.s32 %s9458_s9, 4  ;;  %s8595_s2 = int_to_ptr.hbm [resolvable:$true] %s8594_s2 }
 0x1fe   : > { %s1736_s10 = sshll.u32 %s8779_s4, 4  ;;  %s8596_s16 = scalar_lea.hbm %s8595_s2, 1  ;;  %s1737_s10 = int_to_ptr.vmem [resolvable:$true] %s1736_s10 }
 0x1ff   : > { %p8597_p1 = scmp.ne.s32.totalorder %s8595_s2, %s8596_s16  ;;  %s8600_s8 = scalar_lea.hbm %s10783_s6, 1 }
 0x200   : > { %p8601_p6 = scmp.lt.s32.totalorder %s8595_s2, %s10783_s6  ;;  %p8602_p7 = scmp.lt.s32.totalorder %s8600_s8, %s8596_s16 }
 0x201   : > { %p8598_p4 = pnand %p8597_p1, %p7333_p3 }
 0x202   : > { %p8603_p8 = por %p8602_p7, %p8601_p6 }
 0x203   : > { %p8599_p5 = pneg %p8598_p4 }
 0x205   : > { %p8604_p9 = pnand %p8603_p8, %p8599_p5 }
 0x207   : > { %8607 = shalt.err (!%p8604_p9)
}
 0x208   : > { %7272 = dma.hbm_to_vmem [thread:$0]  (%p7333_p3), %s9458_s9, 16, %s1737_s10, [#allocation47]  }
 0x209 PF: > { %1770 = sbr.rel (%p9067_p2) target bundleno = 10595 (0x2963), region = 228  ;;  %p7363_p10 = scmp.eq.s32.totalorder (!%p9067_p2), %s9063_s0, 0 }
 0x20e   : > { %8627 = dma.done.wait (%p7363_p10), [#allocation3], 32  }
 0x20f   : > { %8629 = vsyncadd (%p7363_p10), [#allocation3], 4294967264 }
 0x210   : > { %8631 = dma.done.wait (%p7363_p10), [#allocation5], 64  }
 0x211   : > { %8633 = vsyncadd (%p7363_p10), [#allocation5], 4294967232 }
 0x212   : > { %8635 = dma.done.wait (%p7363_p10), [#allocation8], 64  }
 0x213   : > { %8637 = vsyncadd (%p7363_p10), [#allocation8], 4294967232 }
 0x214   : > { %8639 = dma.done.wait (%p7363_p10), [#allocation11], 1056  }
 0x215   : > { %8641 = vsyncadd (%p7363_p10), [#allocation11], 4294966240 }
 0x216   : > { %8643 = dma.done.wait (%p7363_p10), [#allocation14], 1056  }
 0x217   : > { %8645 = vsyncadd (%p7363_p10), [#allocation14], 4294966240 }
 0x218   : > { %8647 = dma.done.wait (%p7363_p10), [#allocation17], 1056  }
 0x219   : > { %8649 = vsyncadd (%p7363_p10), [#allocation17], 4294966240 }
 0x21a   : > { %8651 = dma.done.wait (%p7363_p10), [#allocation20], 64  }
 0x21b   : > { %8653 = vsyncadd (%p7363_p10), [#allocation20], 4294967232 }
 0x21c   : > { %8655 = dma.done.wait (%p7363_p10), [#allocation23], 1056  }
 0x21d   : > { %8657 = vsyncadd (%p7363_p10), [#allocation23], 4294966240 }
 0x21e   : > { %8659 = dma.done.wait (%p7363_p10), [#allocation26], 1056  }
 0x21f   : > { %8661 = vsyncadd (%p7363_p10), [#allocation26], 4294966240 }
 0x220   : > { %8663 = dma.done.wait (%p7363_p10), [#allocation29], 1056  }
 0x221   : > { %8665 = vsyncadd (%p7363_p10), [#allocation29], 4294966240 }
 0x222   : > { %8667 = dma.done.wait (%p7363_p10), [#allocation32], 1056  }
 0x223   : > { %8669 = vsyncadd (%p7363_p10), [#allocation32], 4294966240 }
 0x224   : > { %8671 = dma.done.wait (%p7363_p10), [#allocation35], 64  }
 0x225   : > { %8673 = vsyncadd (%p7363_p10), [#allocation35], 4294967232 }
 0x226   : > { %8675 = dma.done.wait (%p7363_p10), [#allocation38], 1056  }
 0x227   : > { %8677 = vsyncadd (%p7363_p10), [#allocation38], 4294966240 }
 0x228   : > { %8679 = dma.done.wait (%p7363_p10), [#allocation41], 64  }
 0x229   : > { %8681 = vsyncadd (%p7363_p10), [#allocation41], 4294967232 }
 0x22a   : > { %8683 = dma.done.wait (%p7363_p10), [#allocation44], 48  }
 0x22b   : > { %8685 = vsyncadd (%p7363_p10), [#allocation44], 4294967248 }
 0x22c   : > { %8687 = dma.done.wait (%p7363_p10), [#allocation47], 16  }
 0x22d   : > { %8689 = vsyncadd (%p7363_p10), [#allocation47], 4294967280  ;;  %s10812_s1 = sld [smem:[#allocation66_spill]]  ;;  %p2042_p2 = scmp.lt.s32.totalorder %s9063_s0, 1  ;;  %vm2065_vm0 = vcmask 261120   ;;  %vm2212_vm1 = vcmask 64512  }
 0x22e   : > { %s10813_s13 = sld [smem:[#allocation64_spill]]  ;;  %s10718_s8 = smov 104  }
 0x22f   : > { %s10814_s9 = sld [smem:[#allocation68_spill]]  ;;  %s10854_s0 = smov (!%p2042_p2, %s9063_s0), 1 }
 0x230   : > { %s10815_s11 = sld [smem:[#allocation70_spill]]  ;;  %s6993_s24 = sshll.u32 %s10854_s0, 3 }
 0x231   : > { %s10816_s22 = sld [smem:[#allocation72_spill]]  ;;  %s10828_s3 = smov 120  }
 0x232   : > { %s10817_s4 = sld [smem:[#allocation67_spill]]  ;;  %s10829_s5 = smov 112  }
 0x233   : > { %v2059_v0 = vld [vmem:[%s10812_s1 + $0x18] sm:$0xff]  ;;  %v2058_v1 = vld [vmem:[%s10812_s1 + $0x10] sm:$0xff]  ;;  %v2057_v2 = vld [vmem:[%s10812_s1 + $0x8] sm:$0xff]  ;;  %s10818_s10 = sld [smem:[#allocation73_spill]]  ;;  %s10830_s6 = smov 104  }
 0x234   : > { %s2045_s23 = scalar_lea.vmem %s10813_s13, %s6993_s24  ;;  %2081 = vmatpush.msra.mxu0 %v2059_v0  ;;  %2109 = vmatpush.msra.mxu1 %v2059_v0  ;;  %v2056_v4 = vld [vmem:[%s10812_s1] sm:$0xff]  ;;  %s10819_s2 = sld [smem:[#allocation71_spill]] }
 0x235   : > { %v2123_v3 = vld [vmem:[%s10814_s9 + $0x18] sm:$0xff]  ;;  %v2122_v6 = vld [vmem:[%s10814_s9 + $0x10] sm:$0xff]  ;;  %v2061_v7 = vld [vmem:[%s2045_s23] sm:$0xff]  ;;  %s10820_s16 = sld [smem:[#allocation69_spill]]  ;;  %s10728_s13 = smov 120  }
 0x236   : > { %2143 = vmatpush.msra.mxu2 %v2123_v3  ;;  %v2154_v5 = vld [vmem:[%s10815_s11 + $0x18] sm:$0xff]  ;;  %2082 = vmatpush.msra.mxu0 %v2058_v1  ;;  %v2153_v8 = vld [vmem:[%s10815_s11 + $0x10] sm:$0xff]  ;;  %v2121_v11 = vld [vmem:[%s10814_s9 + $0x8] sm:$0xff]  ;;  %s10720_s24 = smov 112   ;;  %s10821_s23 = sld [smem:[#allocation65_spill]] }
 0x237   : > { %2171 = vmatpush.msra.mxu3 %v2154_v5  ;;  %v2182_v9 = vld [vmem:[%s10816_s22 + $0x18] sm:$0xff]  ;;  %2110 = vmatpush.msra.mxu1 %v2058_v1  ;;  %v2181_v10 = vld [vmem:[%s10816_s22 + $0x10] sm:$0xff]  ;;  %v2152_v12 = vld [vmem:[%s10815_s11 + $0x8] sm:$0xff]  ;;  %s10832_s7 = smov 8  }
 0x238   : > { %2144 = vmatpush.msra.mxu2 %v2122_v6  ;;  %2083 = vmatpush.msra.mxu0 %v2057_v2  ;;  %v2180_v13 = vld [vmem:[%s10816_s22 + $0x8] sm:$0xff]  ;;  %v2120_v14 = vld [vmem:[%s10814_s9] sm:$0xff] }
 0x239   : > { %2172 = vmatpush.msra.mxu3 %v2153_v8  ;;  %2111 = vmatpush.msra.mxu1 %v2057_v2  ;;  %v2151_v15 = vld [vmem:[%s10815_s11] sm:$0xff] }
 0x23a   : > { %2084 = vmatpush.msra.mxu0 %v2056_v4  ;;  %2145 = vmatpush.msra.mxu2 %v2121_v11  ;;  %v2179_v16 = vld [vmem:[%s10816_s22] sm:$0xff] }
 0x23b   : > { %6998 = vmatmul.msk.f32.vlgmr.msra.gmra.mxu0 %vm2065_vm0, %v2061_v7  ;;  %2112 = vmatpush.msra.mxu1 %v2056_v4  ;;  %v9567_v17 = vld [vmem:[%s10817_s4] ss:$0 sm:$0xff]  ;;  %s10717_s4 = sshll.u32 %s10854_s0, 4 }
 0x23c   : > { %2199 = vmatpush.msrb.mxu0 %v2182_v9  ;;  %2173 = vmatpush.msra.mxu3 %v2152_v12  ;;  %v7525_v20 = vld [vmem:[%s10818_s10] ss:$0 sm:$0xff]  ;;  %s2050_s1 = scalar_lea.vmem %s10821_s23, %s10717_s4  ;;  %s10726_s23 = smov 8  }
 0x23d   : > { %2146 = vmatpush.msra.mxu2 %v2120_v14  ;;  %v7527_v23 = vld [vmem:[%s10819_s2] ss:$0 sm:$0xff]  ;;  %s10724_s4 = smov 16  }
 0x23e   : > { %2200 = vmatpush.msrb.mxu0 %v2181_v10  ;;  %2174 = vmatpush.msra.mxu3 %v2151_v15  ;;  %v7526_v25 = vld [vmem:[%s10820_s16] ss:$0 sm:$0xff] }
 0x23f   : > { %v2089_v15 = vld [vmem:[%s2050_s1] sm:$0xff] }
 0x240   : > { %2201 = vmatpush.msrb.mxu0 %v2180_v13  ;;  %6999 = vmatmul.msk.f32.vlgmr.msra.gmra.mxu1 %vm2065_vm0, %v2089_v15  ;;  %v8786_v15 = vmov 32.0  }
 0x242   : > { %2202 = vmatpush.msrb.mxu0 %v2179_v16  ;;  %v2090_v16 = vld [vmem:[%s2050_s1 + $0x8] sm:$0xff]  ;;  %s10822_s1 = sld [smem:[#allocation74_spill]] }
 0x248   : > { %7000 = vmatmul.msk.f32.gmra.mxu1 %vm2065_vm0, %v2090_v16 }
 0x2b8   : > { %v2086_v18 = vpop.f32.mrf.mxu0 }
 0x2b9   : > { %v9570_v19 = vadd.f32 %v9567_v17, %v2086_v18 }
 0x2bb   : > { %7001 = vmatmul.msk.f32.vlgmr.msra.gmra.mxu2 %vm2065_vm0, %v9570_v19  ;;  %7002 = vmatmul.msk.f32.vlgmr.msra.gmra.mxu3 %vm2065_vm0, %v9570_v19 }
 0x2bc   : > { %7003 = vmatmul.msk.f32.vlgmr.msrb.gmra.mxu0 %vm2065_vm0, %v9570_v19 }
 0x339   : > { %v2204_v21 = vpop.f32.mrf.mxu0 }
 0x33a   : > { %v9579_v22 = vadd.f32 %v7525_v20, %v2204_v21 }
 0x33c   : > { %2282 = vmatpush.msrb.mxu3 %v9579_v22 }
 0x33e   : > { %v2176_v24 = vpop.f32.mrf.mxu3  ;;  %v2148_v27 = vpop.f32.mrf.mxu2 }
 0x33f   : > { %v2177_v26 = vadd.f32 %v7527_v23, %v2176_v24  ;;  %v2149_v28 = vadd.f32 %v7526_v25, %v2148_v27 }
 0x341   : > { %2448 = vrot.lane.b32.xlu2 %v2177_v26, %s10718_s8  ;;  %2289 = vrot.lane.b32.xlu1 %v2177_v26, %s10728_s13 }
 0x342   : > { %2369 = vrot.lane.b32.xlu0 %v2177_v26, %s10720_s24  ;;  %7004 = vmatpush.xpose.msk.msrb.mxu2 %vm2212_vm1, %v2177_v26 }
 0x345   : > { %7005 = vmatmul.msk.f32.vlgmr.msrb.gmra.mxu2 %vm2212_vm1, %v2149_v28 }
 0x349   : > { %2446 = vrot.lane.b32.xlu2 %v2149_v28, %s10718_s8  ;;  %2287 = vrot.lane.b32.xlu1 %v2149_v28, %s10728_s13 }
 0x34a   : > { %2367 = vrot.lane.b32.xlu0 %v2149_v28, %s10720_s24 }
 0x39b   : > { %v2449_v30 = vpop.permute.xlu2 %2448 }
 0x3a3   : > { %v2447_v34 = vpop.permute.xlu2 %2446 }
 0x3b3   : > { %v2290_v29 = vpop.permute.xlu1 %2289 }
 0x3b4   : > { %v2370_v31 = vpop.permute.xlu0 %2369  ;;  %7007 = vmatpush.xpose.msk.msra.mxu0 %vm2212_vm1, %v2290_v29 }
 0x3b5   : > { %7010 = vmatpush.xpose.msk.msra.mxu2 %vm2212_vm1, %v2370_v31 }
 0x3b8   : > { %7013 = vmatpush.xpose.msk.msrb.mxu0 %vm2212_vm1, %v2449_v30 }
 0x3bb   : > { %v2288_v32 = vpop.permute.xlu1 %2287 }
 0x3bc   : > { %v2368_v33 = vpop.permute.xlu0 %2367  ;;  %7008 = vmatmul.msk.f32.vlgmr.msra.gmra.mxu0 %vm2212_vm1, %v2288_v32 }
 0x3bd   : > { %7011 = vmatmul.msk.f32.vlgmr.msra.gmra.mxu2 %vm2212_vm1, %v2368_v33 }
 0x3c4   : > { %7014 = vmatmul.msk.f32.vlgmr.msrb.gmra.mxu0 %vm2212_vm1, %v2447_v34 }
 0x3c8   : > { %v2236_v35 = vpop.f32.mrf.mxu2 }
 0x3c9   : > { %v2239_v36 = vmul.f32 0.35355338, %v2236_v35 }
 0x3cb   : > { %v2240_v37 = vsel %vm2212_vm1, %v2239_v36, -inf }
 0x3cc   : > { %2241 = vmax.xlane.f32.xlu0 %v2240_v37 }
 0x439   : > { %v2312_v38 = vpop.f32.mrf.mxu0 }
 0x43a   : > { %v2315_v39 = vmul.f32 0.35355338, %v2312_v38 }
 0x43c   : > { %v2316_v40 = vsel %vm2212_vm1, %v2315_v39, -inf }
 0x43d   : > { %2317 = vmax.xlane.f32.xlu1 %v2316_v40 }
 0x43f   : > { %v2242_v41 = vpop.xlane.xlu0 %2241 }
 0x440   : > { %v2243_v42 = vsub.f32 %v2239_v36, %v2242_v41  ;;  %v2392_v43 = vpop.f32.mrf.mxu2 }
 0x441   : > { %v2395_v44 = vmul.f32 0.35355338, %v2392_v43  ;;  %v2471_v47 = vpop.f32.mrf.mxu0 }
 0x442   : > { %v2244_v45 = vmul.f32 1.442695, %v2243_v42  ;;  %v2474_v48 = vmul.f32 0.35355338, %v2471_v47 }
 0x443   : > { %v2396_v46 = vsel %vm2212_vm1, %v2395_v44, -inf }
 0x444   : > { %7582 = vpow2.f32 %v2244_v45  ;;  %2397 = vmax.xlane.f32.xlu2 %v2396_v46  ;;  %v2475_v50 = vsel %vm2212_vm1, %v2474_v48, -inf }
 0x44a   : > { %v7583_v49 = vpop.eup %7582 }
 0x44b   : > { %v2246_v51 = vsel %vm2212_vm1, %v7583_v49, 0.0 }
 0x44c   : > { %2476 = vmax.xlane.f32.xlu2 %v2475_v50  ;;  %2247 = vadd.xlane.f32.xlu0 %v2246_v51 }
 0x4b0   : > { %v2318_v52 = vpop.xlane.xlu1 %2317 }
 0x4b1   : > { %v2319_v53 = vsub.f32 %v2315_v39, %v2318_v52 }
 0x4b3   : > { %v2320_v54 = vmul.f32 1.442695, %v2319_v53 }
 0x4b5   : > { %7584 = vpow2.f32 %v2320_v54 }
 0x4b7   : > { %v2398_v55 = vpop.xlane.xlu2 %2397 }
 0x4b8   : > { %v2399_v56 = vsub.f32 %v2395_v44, %v2398_v55 }
 0x4ba   : > { %v2400_v57 = vmul.f32 1.442695, %v2399_v56 }
 0x4bb   : > { %v9603_v58 = vpop.eup %7584 }
 0x4bc   : > { %7586 = vpow2.f32 %v2400_v57  ;;  %v2322_v59 = vsel %vm2212_vm1, %v9603_v58, 0.0 }
 0x4bd   : > { %2323 = vadd.xlane.f32.xlu1 %v2322_v59 }
 0x4bf   : > { %v2477_v60 = vpop.xlane.xlu2 %2476  ;;  %v2248_v61 = vpop.xlane.xlu0 %2247 }
 0x4c0   : > { %v2478_v62 = vsub.f32 %v2474_v48, %v2477_v60  ;;  %7588 = vrcp.f32 %v2248_v61  ;;  %v2260_v6 = vand.u32 2147483648, %v2248_v61  ;;  %v2258_v9 = vand.u32 2147483647, %v2248_v61 }
 0x4c1   : > { %vm2254_vm3 = vweird.f32 %v2248_v61 }
 0x4c2   : > { %v9607_v63 = vpop.eup %7586  ;;  %v2479_v0 = vmul.f32 1.442695, %v2478_v62  ;;  %v2261_v11 = vor.u32 1.1754944e-38, %v2260_v6  ;;  %vm2259_vm5 = vcmp.eq.f32.partialorder %v2258_v9, 8.507059e+37 }
 0x4c3   : > { %v2402_v1 = vsel %vm2212_vm1, %v9607_v63, 0.0 }
 0x4c4   : > { %7590 = vpow2.f32 %v2479_v0  ;;  %2403 = vadd.xlane.f32.xlu2 %v2402_v1  ;;  %v2210_v0 = vld [vmem:[%s10822_s1 + $0x18] sm:$0xff]  ;;  %v2209_v1 = vld [vmem:[%s10822_s1 + $0x10] sm:$0xff] }
 0x4c5   : > { %2560 = vmatpush.msrb.mxu2 %v2210_v0 }
 0x4c6   : > { %v7589_v2 = vpop.eup %7588 }
 0x4c7   : > { %v2250_v3 = vmul.f32 %v7589_v2, %v2248_v61  ;;  %vm2255_vm2 = vweird.f32 %v7589_v2  ;;  %2561 = vmatpush.msrb.mxu2 %v2209_v1 }
 0x4c8   : > { %vm2256_vm4 = vmor %vm2254_vm3, %vm2255_vm2 }
 0x4c9   : > { %v2251_v4 = vsub.f32 1.0, %v2250_v3  ;;  %v2207_v3 = vld [vmem:[%s10822_s1] sm:$0xff] }
 0x4ca   : > { %v9611_v5 = vpop.eup %7590 }
 0x4cb   : > { %v2252_v7 = vmul.f32 %v7589_v2, %v2251_v4  ;;  %v2481_v8 = vsel %vm2212_vm1, %v9611_v5, 0.0 }
 0x4cc   : > { %2482 = vadd.xlane.f32.xlu0 %v2481_v8 }
 0x4cd   : > { %v2253_v10 = vadd.f32 %v7589_v2, %v2252_v7 }
 0x4cf   : > { %v2257_v12 = vsel %vm2256_vm4, %v7589_v2, %v2253_v10  ;;  %v2208_v2 = vld [vmem:[%s10822_s1 + $0x8] sm:$0xff]  ;;  %vm2538_vm4 = vcmask 130048  }
 0x4d0   : > { %v2262_v13 = vsel %vm2259_vm5, %v2261_v11, %v2257_v12  ;;  %2562 = vmatpush.msrb.mxu2 %v2208_v2  ;;  %vm2540_vm5 = vcmask 195584  }
 0x4d1   : > { %v2263_v14 = vmul.f32 %v7583_v49, %v2262_v13 }
 0x4d2   : > { %2563 = vmatpush.msrb.mxu2 %v2207_v3 }
 0x4d3   : > { %7006 = vmatmul.msk.f32.vlgmr.msrb.gmra.mxu3 %vm2212_vm1, %v2263_v14 }
 0x4d6   : > { %2341 = vrot.lane.b32.xlu1 %v9579_v22, %s10728_s13  ;;  %s10827_s13 = sld [smem:[#allocation77_spill]] }
 0x4dc   : > { %2420 = vrot.lane.b32.xlu2 %v9579_v22, %s10720_s24  ;;  %s10823_s24 = sld [smem:[#allocation75_spill]] }
 0x4e0   : > { %2499 = vrot.lane.b32.xlu0 %v9579_v22, %s10718_s8  ;;  %s10722_s8 = smov 24  }
 0x4e2   : > { %v7528_v10 = vld [vmem:[%s10823_s24] ss:$0 sm:$0xff] }
 0x530   : > { %v2324_v18 = vpop.xlane.xlu1 %2323 }
 0x531   : > { %7592 = vrcp.f32 %v2324_v18  ;;  %v2336_v27 = vand.u32 2147483648, %v2324_v18  ;;  %vm2330_vm7 = vweird.f32 %v2324_v18  ;;  %v2334_v31 = vand.u32 2147483647, %v2324_v18 }
 0x533   : > { %v2337_v35 = vor.u32 1.1754944e-38, %v2336_v27  ;;  %vm2335_vm10 = vcmp.eq.f32.partialorder %v2334_v31, 8.507059e+37 }
 0x537   : > { %v7593_v20 = vpop.eup %7592  ;;  %v2404_v21 = vpop.xlane.xlu2 %2403 }
 0x538   : > { %v2326_v23 = vmul.f32 %v7593_v20, %v2324_v18  ;;  %7594 = vrcp.f32 %v2404_v21  ;;  %vm2331_vm6 = vweird.f32 %v7593_v20  ;;  %v2416_v33 = vand.u32 2147483648, %v2404_v21 }
 0x539   : > { %vm2332_vm8 = vmor %vm2330_vm7, %vm2331_vm6  ;;  %v2414_v37 = vand.u32 2147483647, %v2404_v21  ;;  %vm2410_vm11 = vweird.f32 %v2404_v21 }
 0x53a   : > { %v2327_v24 = vsub.f32 1.0, %v2326_v23  ;;  %v2417_v41 = vor.u32 1.1754944e-38, %v2416_v33 }
 0x53b   : > { %vm2415_vm13 = vcmp.eq.f32.partialorder %v2414_v37, 8.507059e+37 }
 0x53c   : > { %v2328_v25 = vmul.f32 %v7593_v20, %v2327_v24 }
 0x53e   : > { %v7595_v26 = vpop.eup %7594  ;;  %v2329_v22 = vadd.f32 %v7593_v20, %v2328_v25 }
 0x53f   : > { %v2406_v28 = vmul.f32 %v7595_v26, %v2404_v21  ;;  %v2421_v29 = vpop.permute.xlu2 %2420  ;;  %v2483_v30 = vpop.xlane.xlu0 %2482  ;;  %vm2411_vm9 = vweird.f32 %v7595_v26 }
 0x540   : > { %7596 = vrcp.f32 %v2483_v30  ;;  %2441 = vmatpush.msra.mxu3 %v2421_v29  ;;  %v2333_v34 = vsel %vm2332_vm8, %v7593_v20, %v2329_v22  ;;  %vm2412_vm12 = vmor %vm2410_vm11, %vm2411_vm9  ;;  %v2495_v49 = vand.u32 2147483648, %v2483_v30  ;;  %v2493_v51 = vand.u32 2147483647, %v2483_v30 }
 0x541   : > { %v2407_v32 = vsub.f32 1.0, %v2406_v28  ;;  %v2338_v39 = vsel %vm2335_vm10, %v2337_v35, %v2333_v34  ;;  %vm2489_vm15 = vweird.f32 %v2483_v30  ;;  %7598 = vrcp.f32 %v8786_v15  ;;  %v7032_v15 = vld [vmem:[%s10816_s22 + $0x28] sm:$0xff] }
 0x542   : > { %v2339_v45 = vmul.f32 %v9603_v58, %v2338_v39  ;;  %v2496_v53 = vor.u32 1.1754944e-38, %v2495_v49  ;;  %vm2494_vm3 = vcmp.eq.f32.partialorder %v2493_v51, 8.507059e+37  ;;  %v9634_v58 = vpop.f32.mrf.mxu1  ;;  %v7530_v49 = vld [vmem:[%s10827_s13] ss:$0 sm:$0xff]  ;;  %vm2652_vm10 = vcmask 523264  }
 0x543   : > { %v2408_v36 = vmul.f32 %v7595_v26, %v2407_v32 }
 0x545   : > { %v2409_v38 = vadd.f32 %v7595_v26, %v2408_v36 }
 0x546   : > { %v7597_v40 = vpop.eup %7596 }
 0x547   : > { %v2413_v42 = vsel %vm2412_vm12, %v7595_v26, %v2409_v38  ;;  %v2485_v43 = vmul.f32 %v7597_v40, %v2483_v30  ;;  %vm2490_vm14 = vweird.f32 %v7597_v40  ;;  %v7599_v16 = vpop.eup %7598 }
 0x548   : > { %v2342_v44 = vpop.permute.xlu1 %2341  ;;  %v2418_v46 = vsel %vm2415_vm13, %v2417_v41, %v2413_v42  ;;  %vm2491_vm2 = vmor %vm2489_vm15, %vm2490_vm14  ;;  %v2575_v18 = vmul.f32 32.0, %v7599_v16  ;;  %vm2579_vm6 = vweird.f32 %v7599_v16 }
 0x549   : > { %v2486_v47 = vsub.f32 1.0, %v2485_v43  ;;  %2362 = vmatpush.msrb.mxu1 %v2342_v44  ;;  %v2419_v48 = vmul.f32 %v9607_v63, %v2418_v46 }
 0x54a   : > { %7009 = vmatmul.msk.f32.vlgmr.msrb.gmra.mxu1 %vm2212_vm1, %v2339_v45  ;;  %v9636_v59 = vpop.f32.mrf.mxu1  ;;  %v2576_v20 = vsub.f32 1.0, %v2575_v18  ;;  %v7025_v18 = vld [vmem:[%s10815_s11 + $0x20] sm:$0xff] }
 0x54b   : > { %v2487_v50 = vmul.f32 %v7597_v40, %v2486_v47  ;;  %7012 = vmatmul.msk.f32.vlgmr.msra.gmra.mxu3 %vm2212_vm1, %v2419_v48 }
 0x54c   : > { %v2577_v21 = vmul.f32 %v7599_v16, %v2576_v20  ;;  %v7031_v20 = vld [vmem:[%s10816_s22 + $0x20] sm:$0xff] }
 0x54d   : > { %v2488_v52 = vadd.f32 %v7597_v40, %v2487_v50 }
 0x54e   : > { %v2578_v23 = vadd.f32 %v7599_v16, %v2577_v21 }
 0x54f   : > { %v2492_v54 = vsel %vm2491_vm2, %v7597_v40, %v2488_v52 }
 0x550   : > { %v2497_v55 = vsel %vm2494_vm3, %v2496_v53, %v2492_v54  ;;  %v9652_v24 = vsel %vm2579_vm6, %v7599_v16, %v2578_v23  ;;  %v7019_v16 = vld [vmem:[%s10814_s9 + $0x20] sm:$0xff] }
 0x551   : > { %v2498_v56 = vmul.f32 %v9611_v5, %v2497_v55  ;;  %v7531_v55 = vld [vmem:[#allocation2] ss:$0 sm:$0xff] }
 0x552   : > { %v2500_v57 = vpop.permute.xlu0 %2499 }
 0x553   : > { %2520 = vmatpush.msra.mxu1 %v2500_v57 }
 0x554   : > { %7015 = vmatmul.msk.f32.vlgmr.msra.gmra.mxu1 %vm2212_vm1, %v2498_v56 }
 0x556   : > { %v2284_v60 = vpop.f32.mrf.mxu3 }
 0x5c7   : > { %v2364_v61 = vpop.f32.mrf.mxu1 }
 0x5c8   : > { %2526 = vrot.lane.b32.xlu1 %v2364_v61, %s10726_s23  ;;  %s10826_s23 = sld [smem:[#allocation76_spill]]  ;;  %v7532_v61 = vld [vmem:[#allocation4] ss:$0 sm:$0xff] }
 0x5ce   : > { %v2443_v62 = vpop.f32.mrf.mxu3  ;;  %v7529_v46 = vld [vmem:[%s10826_s23] ss:$0 sm:$0xff] }
 0x5cf   : > { %2530 = vrot.lane.b32.xlu0 %v2443_v62, %s10724_s4  ;;  %s10825_s4 = sld [smem:[#allocation80_spill]] }
 0x5d1   : > { %v2522_v63 = vpop.f32.mrf.mxu1 }
 0x5d2   : > { %2534 = vrot.lane.b32.xlu2 %v2522_v63, %s10722_s8  ;;  %s10824_s8 = sld [smem:[#allocation78_spill]] }
 0x5d5   : > { %v2647_v32 = vld [vmem:[%s10825_s4 + $0x38] sm:$0xff]  ;;  %v2646_v33 = vld [vmem:[%s10825_s4 + $0x30] sm:$0xff]  ;;  %v2645_v34 = vld [vmem:[%s10825_s4 + $0x28] sm:$0xff] }
 0x5d6   : > { %2664 = vmatpush.msra.mxu0 %v2647_v32  ;;  %v2644_v37 = vld [vmem:[%s10825_s4 + $0x20] sm:$0xff]  ;;  %v2643_v39 = vld [vmem:[%s10825_s4 + $0x18] sm:$0xff]  ;;  %v2642_v52 = vld [vmem:[%s10825_s4 + $0x10] sm:$0xff] }
 0x5d7   : > { %v2641_v53 = vld [vmem:[%s10825_s4 + $0x8] sm:$0xff]  ;;  %v2640_v54 = vld [vmem:[%s10825_s4] sm:$0xff] }
 0x5d8   : > { %v2611_v28 = vld [vmem:[%s10824_s8 + $0x18] sm:$0xff]  ;;  %v2610_v29 = vld [vmem:[%s10824_s8 + $0x10] sm:$0xff]  ;;  %v2609_v30 = vld [vmem:[%s10824_s8 + $0x8] sm:$0xff]  ;;  %2665 = vmatpush.msra.mxu0 %v2646_v33 }
 0x5d9   : > { %2631 = vmatpush.msrb.mxu3 %v2611_v28  ;;  %v2608_v31 = vld [vmem:[%s10824_s8] sm:$0xff] }
 0x5da   : > { %2666 = vmatpush.msra.mxu0 %v2645_v34  ;;  %v7534_v33 = vld [vmem:[#allocation7] ss:$0 sm:$0xff] }
 0x5db   : > { %2632 = vmatpush.msrb.mxu3 %v2610_v29 }
 0x5dc   : > { %2667 = vmatpush.msra.mxu0 %v2644_v37 }
 0x5dd   : > { %2633 = vmatpush.msrb.mxu3 %v2609_v30  ;;  %v7533_v30 = vld [vmem:[#allocation6] ss:$0 sm:$0xff] }
 0x5de   : > { %2668 = vmatpush.msra.mxu0 %v2643_v39  ;;  %v7536_v39 = vld [vmem:[%s10819_s2 + $0x1] ss:$0 sm:$0xff]  ;;  %s10831_s2 = sld [smem:[#allocation85_spill]] }
 0x5df   : > { %2634 = vmatpush.msrb.mxu3 %v2608_v31 }
 0x5e0   : > { %2669 = vmatpush.msra.mxu0 %v2642_v52 }
 0x5e2   : > { %2670 = vmatpush.msra.mxu0 %v2641_v53 }
 0x5e4   : > { %2671 = vmatpush.msra.mxu0 %v2640_v54 }
 0x62c   : > { %v2535_v7 = vpop.permute.xlu2 %2534 }
 0x63a   : > { %v2527_v4 = vpop.permute.xlu1 %2526 }
 0x63b   : > { %v2537_v5 = vsel %vm2212_vm1, %v2284_v60, %v2527_v4 }
 0x641   : > { %v2531_v6 = vpop.permute.xlu0 %2530 }
 0x642   : > { %v2539_v8 = vsel %vm2538_vm4, %v2537_v5, %v2531_v6 }
 0x643   : > { %v2541_v9 = vsel %vm2540_vm5, %v2539_v8, %v2535_v7  ;;  %v7022_v7 = vld [vmem:[%s10814_s9 + $0x38] sm:$0xff] }
 0x644   : > { %7016 = vmatmul.msk.f32.vlgmr.msrb.gmra.mxu2 %vm2065_vm0, %v2541_v9  ;;  %v7028_v8 = vld [vmem:[%s10815_s11 + $0x38] sm:$0xff]  ;;  %2734 = vmatpush.msrb.mxu1 %v7022_v7 }
 0x645   : > { %v7034_v9 = vld [vmem:[%s10816_s22 + $0x38] sm:$0xff]  ;;  %2764 = vmatpush.msra.mxu2 %v7028_v8 }
 0x646   : > { %2794 = vmatpush.msra.mxu3 %v7034_v9 }
 0x6c7   : > { %v2565_v11 = vpop.f32.mrf.mxu2 }
 0x6c8   : > { %v2566_v12 = vadd.f32 %v7528_v10, %v2565_v11  ;;  %v7021_v10 = vld [vmem:[%s10814_s9 + $0x30] sm:$0xff] }
 0x6c9   : > { %v7027_v11 = vld [vmem:[%s10815_s11 + $0x30] sm:$0xff]  ;;  %2735 = vmatpush.msrb.mxu1 %v7021_v10 }
 0x6ca   : > { %v2568_v13 = vadd.f32 %v2566_v12, %v9570_v19  ;;  %v7033_v12 = vld [vmem:[%s10816_s22 + $0x30] sm:$0xff]  ;;  %2765 = vmatpush.msra.mxu2 %v7027_v11 }
 0x6cb   : > { %2795 = vmatpush.msra.mxu3 %v7033_v12 }
 0x6cc   : > { %v2571_v14 = vsel %vm2065_vm0, %v2568_v13, 0.0 }
 0x6cd   : > { %2572 = vadd.xlane.f32.xlu1 %v2571_v14  ;;  %v7026_v14 = vld [vmem:[%s10815_s11 + $0x28] sm:$0xff]  ;;  %2796 = vmatpush.msra.mxu3 %v7032_v15 }
 0x6ce   : > { %2766 = vmatpush.msra.mxu2 %v7026_v14 }
 0x6cf   : > { %2797 = vmatpush.msra.mxu3 %v7031_v20 }
 0x6d0   : > { %2767 = vmatpush.msra.mxu2 %v7025_v18 }
 0x740   : > { %v2573_v19 = vpop.xlane.xlu1 %2572 }
 0x741   : > { %v2581_v25 = vmul.f32 %v9652_v24, %v2573_v19 }
 0x743   : > { %v2582_v26 = vsub.f32 %v2568_v13, %v2581_v25  ;;  %v7020_v13 = vld [vmem:[%s10814_s9 + $0x28] sm:$0xff]  ;;  %s10833_s9 = smov 16  }
 0x744   : > { %2736 = vmatpush.msrb.mxu1 %v7020_v13 }
 0x745   : > { %v2583_v22 = vmul.f32 %v2582_v26, %v2582_v26 }
 0x746   : > { %2737 = vmatpush.msrb.mxu1 %v7019_v16 }
 0x747   : > { %v2584_v27 = vsel %vm2065_vm0, %v2583_v22, 0.0 }
 0x748   : > { %2585 = vadd.xlane.f32.xlu0 %v2584_v27 }
 0x7bb   : > { %v2586_v35 = vpop.xlane.xlu0 %2585 }
 0x7bc   : > { %v2587_v36 = vmul.f32 %v2586_v35, %v9652_v24 }
 0x7be   : > { %v2588_v38 = vadd.f32 1e-05, %v2587_v36  ;;  %v7535_v36 = vld [vmem:[%s10820_s16 + $0x1] ss:$0 sm:$0xff] }
 0x7c0   : > { %7600 = vrsqrt.f32 %v2588_v38  ;;  %vm2595_vm8 = vweird.f32 %v2588_v38 }
 0x7c6   : > { %v7601_v40 = vpop.eup %7600 }
 0x7c7   : > { %v2590_v41 = vmul.f32 %v7601_v40, %v2588_v38  ;;  %vm2596_vm7 = vweird.f32 %v7601_v40 }
 0x7c8   : > { %vm2597_vm9 = vmor %vm2595_vm8, %vm2596_vm7 }
 0x7c9   : > { %v2591_v42 = vmul.f32 %v7601_v40, %v2590_v41 }
 0x7cb   : > { %v2592_v43 = vmul.f32 0.5, %v2591_v42 }
 0x7cd   : > { %v2593_v44 = vsub.f32 1.5, %v2592_v43 }
 0x7cf   : > { %v2594_v45 = vmul.f32 %v7601_v40, %v2593_v44 }
 0x7d1   : > { %v2598_v47 = vsel %vm2597_vm9, %v7601_v40, %v2594_v45  ;;  %v7537_v40 = vld [vmem:[%s10818_s10 + $0x1] ss:$0 sm:$0xff]  ;;  %s10834_s10 = smov 24  }
 0x7d2   : > { %v2599_v48 = vmul.f32 %v2598_v47, %v2582_v26 }
 0x7d4   : > { %v2603_v50 = vmul.f32 %v7529_v46, %v2599_v48 }
 0x7d6   : > { %v2607_v51 = vadd.f32 %v7530_v49, %v2603_v50 }
 0x7d8   : > { %7017 = vmatmul.msk.f32.vlgmr.msrb.gmra.mxu3 %vm2065_vm0, %v2607_v51 }
 0x85b   : > { %v2636_v56 = vpop.f32.mrf.mxu3 }
 0x85c   : > { %v2637_v57 = vadd.f32 %v7531_v55, %v2636_v56 }
 0x85e   : > { %v2639_v60 = vmax.f32 %v2637_v57, 0.0 }
 0x860   : > { %7018 = vmatmul.msk.f32.vlgmr.msra.gmra.mxu0 %vm2652_vm10, %v2639_v60 }
 0x8dd   : > { %v2673_v62 = vpop.f32.mrf.mxu0 }
 0x8de   : > { %v2674_v63 = vadd.f32 %v7532_v61, %v2673_v62 }
 0x8e0   : > { %v2676_v0 = vadd.f32 %v2674_v63, %v2607_v51 }
 0x8e2   : > { %v2679_v1 = vsel %vm2065_vm0, %v2676_v0, 0.0 }
 0x8e3   : > { %2680 = vadd.xlane.f32.xlu2 %v2679_v1 }
 0x956   : > { %v2681_v2 = vpop.xlane.xlu2 %2680 }
 0x957   : > { %v2682_v3 = vmul.f32 %v2681_v2, %v9652_v24 }
 0x959   : > { %v2683_v4 = vsub.f32 %v2676_v0, %v2682_v3 }
 0x95b   : > { %v2684_v5 = vmul.f32 %v2683_v4, %v2683_v4 }
 0x95d   : > { %v2685_v6 = vsel %vm2065_vm0, %v2684_v5, 0.0 }
 0x95e   : > { %2686 = vadd.xlane.f32.xlu1 %v2685_v6 }
 0x9d1   : > { %v2687_v21 = vpop.xlane.xlu1 %2686 }
 0x9d2   : > { %v2688_v23 = vmul.f32 %v2687_v21, %v9652_v24 }
 0x9d4   : > { %v2689_v19 = vadd.f32 1e-05, %v2688_v23 }
 0x9d6   : > { %7602 = vrsqrt.f32 %v2689_v19  ;;  %vm2696_vm12 = vweird.f32 %v2689_v19 }
 0x9dc   : > { %v7603_v25 = vpop.eup %7602 }
 0x9dd   : > { %v2691_v26 = vmul.f32 %v7603_v25, %v2689_v19  ;;  %vm2697_vm11 = vweird.f32 %v7603_v25 }
 0x9de   : > { %vm2698_vm13 = vmor %vm2696_vm12, %vm2697_vm11 }
 0x9df   : > { %v2692_v22 = vmul.f32 %v7603_v25, %v2691_v26 }
 0x9e1   : > { %v2693_v27 = vmul.f32 0.5, %v2692_v22 }
 0x9e3   : > { %v2694_v28 = vsub.f32 1.5, %v2693_v27 }
 0x9e5   : > { %v2695_v29 = vmul.f32 %v7603_v25, %v2694_v28 }
 0x9e7   : > { %v2699_v31 = vsel %vm2698_vm13, %v7603_v25, %v2695_v29 }
 0x9e8   : > { %v2700_v32 = vmul.f32 %v2699_v31, %v2683_v4 }
 0x9ea   : > { %v2704_v34 = vmul.f32 %v7533_v30, %v2700_v32 }
 0x9ec   : > { %v9689_v35 = vadd.f32 %v7534_v33, %v2704_v34 }
 0x9ee   : > { %7024 = vmatmul.msk.f32.vlgmr.msrb.gmra.mxu1 %vm2065_vm0, %v9689_v35  ;;  %7030 = vmatmul.msk.f32.vlgmr.msra.gmra.mxu2 %vm2065_vm0, %v9689_v35 }
 0x9ef   : > { %7036 = vmatmul.msk.f32.vlgmr.msra.gmra.mxu3 %vm2065_vm0, %v9689_v35 }
 0xa6b   : > { %v2739_v37 = vpop.f32.mrf.mxu1 }
 0xa6c   : > { %v2740_v38 = vadd.f32 %v7535_v36, %v2739_v37 }
 0xa6e   : > { %2883 = vrot.lane.b32.xlu2 %v2740_v38, %s10828_s3 }
 0xa71   : > { %v2769_v41 = vpop.f32.mrf.mxu2 }
 0xa72   : > { %v2770_v42 = vadd.f32 %v7536_v39, %v2769_v41  ;;  %v2799_v43 = vpop.f32.mrf.mxu3 }
 0xa73   : > { %v9701_v44 = vadd.f32 %v7537_v40, %v2799_v43 }
 0xa74   : > { %2965 = vrot.lane.b32.xlu1 %v2770_v42, %s10829_s5  ;;  %2885 = vrot.lane.b32.xlu0 %v2770_v42, %s10828_s3 }
 0xa75   : > { %2878 = vmatpush.msrb.mxu2 %v9701_v44  ;;  %7042 = vmatpush.xpose.msk.msra.mxu1 %vm2212_vm1, %v2770_v42 }
 0xa76   : > { %2963 = vrot.lane.b32.xlu2 %v2740_v38, %s10829_s5 }
 0xa78   : > { %7043 = vmatmul.msk.f32.vlgmr.msra.gmra.mxu1 %vm2212_vm1, %v2740_v38 }
 0xa7c   : > { %3044 = vrot.lane.b32.xlu0 %v2770_v42, %s10830_s6 }
 0xa84   : > { %3042 = vrot.lane.b32.xlu0 %v2740_v38, %s10830_s6 }
 0xac8   : > { %v2884_v45 = vpop.permute.xlu2 %2883 }
 0xad0   : > { %v2964_v48 = vpop.permute.xlu2 %2963 }
 0xae6   : > { %v2966_v46 = vpop.permute.xlu1 %2965  ;;  %v2886_v47 = vpop.permute.xlu0 %2885 }
 0xae7   : > { %7045 = vmatpush.xpose.msk.msrb.mxu3 %vm2212_vm1, %v2886_v47  ;;  %7048 = vmatpush.xpose.msk.msrb.mxu1 %vm2212_vm1, %v2966_v46 }
 0xaea   : > { %7046 = vmatmul.msk.f32.vlgmr.msrb.gmra.mxu3 %vm2212_vm1, %v2884_v45  ;;  %7049 = vmatmul.msk.f32.vlgmr.msrb.gmra.mxu1 %vm2212_vm1, %v2964_v48 }
 0xaee   : > { %v3045_v49 = vpop.permute.xlu0 %3044 }
 0xaef   : > { %7051 = vmatpush.xpose.msk.msra.mxu3 %vm2212_vm1, %v3045_v49 }
 0xaf5   : > { %v2832_v50 = vpop.f32.mrf.mxu1 }
 0xaf6   : > { %v2835_v51 = vmul.f32 0.35355338, %v2832_v50  ;;  %v3043_v52 = vpop.permute.xlu0 %3042 }
 0xaf7   : > { %7052 = vmatmul.msk.f32.vlgmr.msra.gmra.mxu3 %vm2212_vm1, %v3043_v52 }
 0xaf8   : > { %v2836_v53 = vsel %vm2212_vm1, %v2835_v51, -inf }
 0xaf9   : > { %2837 = vmax.xlane.f32.xlu1 %v2836_v53 }
 0xb67   : > { %v2988_v54 = vpop.f32.mrf.mxu1 }
 0xb68   : > { %v2991_v55 = vmul.f32 0.35355338, %v2988_v54 }
 0xb6a   : > { %v2992_v56 = vsel %vm2212_vm1, %v2991_v55, -inf }
 0xb6b   : > { %2993 = vmax.xlane.f32.xlu0 %v2992_v56 }
 0xb6c   : > { %v2838_v57 = vpop.xlane.xlu1 %2837 }
 0xb6d   : > { %v2839_v60 = vsub.f32 %v2835_v51, %v2838_v57  ;;  %v2908_v61 = vpop.f32.mrf.mxu3 }
 0xb6e   : > { %v2911_v62 = vmul.f32 0.35355338, %v2908_v61 }
 0xb6f   : > { %v2840_v63 = vmul.f32 1.442695, %v2839_v60 }
 0xb70   : > { %v2912_v0 = vsel %vm2212_vm1, %v2911_v62, -inf }
 0xb71   : > { %7604 = vpow2.f32 %v2840_v63  ;;  %2913 = vmax.xlane.f32.xlu2 %v2912_v0 }
 0xb77   : > { %v7605_v1 = vpop.eup %7604 }
 0xb78   : > { %v2842_v2 = vsel %vm2212_vm1, %v7605_v1, 0.0 }
 0xb79   : > { %2843 = vadd.xlane.f32.xlu2 %v2842_v2  ;;  %v3338_v2 = vld [vmem:[%s10831_s2 + $0x18] sm:$0xff] }
 0xb7a   : > { %v3067_v3 = vpop.f32.mrf.mxu3 }
 0xb7b   : > { %v3070_v4 = vmul.f32 0.35355338, %v3067_v3 }
 0xb7d   : > { %v3071_v5 = vsel %vm2212_vm1, %v3070_v4, -inf }
 0xb7e   : > { %3072 = vmax.xlane.f32.xlu1 %v3071_v5  ;;  %v3337_v5 = vld [vmem:[%s10831_s2 + $0x10] sm:$0xff] }
 0xbde   : > { %v2994_v6 = vpop.xlane.xlu0 %2993 }
 0xbdf   : > { %v2995_v7 = vsub.f32 %v2991_v55, %v2994_v6 }
 0xbe1   : > { %v2996_v8 = vmul.f32 1.442695, %v2995_v7 }
 0xbe3   : > { %7606 = vpow2.f32 %v2996_v8  ;;  %v3336_v8 = vld [vmem:[%s10831_s2 + $0x8] sm:$0xff] }
 0xbe4   : > { %v2914_v9 = vpop.xlane.xlu2 %2913 }
 0xbe5   : > { %v2915_v10 = vsub.f32 %v2911_v62, %v2914_v9 }
 0xbe7   : > { %v2916_v11 = vmul.f32 1.442695, %v2915_v10 }
 0xbe9   : > { %v9722_v12 = vpop.eup %7606  ;;  %7608 = vpow2.f32 %v2916_v11  ;;  %v3335_v11 = vld [vmem:[%s10831_s2] sm:$0xff] }
 0xbea   : > { %v2998_v13 = vsel %vm2212_vm1, %v9722_v12, 0.0 }
 0xbeb   : > { %2999 = vadd.xlane.f32.xlu1 %v2998_v13 }
 0xbec   : > { %v2844_v14 = vpop.xlane.xlu2 %2843 }
 0xbed   : > { %7610 = vrcp.f32 %v2844_v14  ;;  %v2856_v26 = vand.u32 2147483648, %v2844_v14  ;;  %v2854_v27 = vand.u32 2147483647, %v2844_v14  ;;  %vm2850_vm15 = vweird.f32 %v2844_v14 }
 0xbef   : > { %v9726_v15 = vpop.eup %7608  ;;  %v2857_v29 = vor.u32 1.1754944e-38, %v2856_v26  ;;  %vm2855_vm3 = vcmp.eq.f32.partialorder %v2854_v27, 8.507059e+37  ;;  %v7039_v26 = vld [vmem:[%s10822_s1 + $0x30] sm:$0xff]  ;;  %v3374_v27 = vld [vmem:[#allocation10 + $0x10] sm:$0xff] }
 0xbf0   : > { %v2918_v16 = vsel %vm2212_vm1, %v9726_v15, 0.0 }
 0xbf1   : > { %2919 = vadd.xlane.f32.xlu0 %v2918_v16  ;;  %v3073_v18 = vpop.xlane.xlu1 %3072 }
 0xbf2   : > { %v3074_v20 = vsub.f32 %v3070_v4, %v3073_v18  ;;  %v9753_v18 = vadd.f32 %v9567_v17, %v9634_v58 }
 0xbf3   : > { %v7611_v21 = vpop.eup %7610 }
 0xbf4   : > { %v2846_v23 = vmul.f32 %v7611_v21, %v2844_v14  ;;  %v3075_v19 = vmul.f32 1.442695, %v3074_v20  ;;  %vm2851_vm14 = vweird.f32 %v7611_v21  ;;  %v9759_v20 = vadd.f32 %v9567_v17, %v9636_v59  ;;  %v7037_v17 = vld [vmem:[%s10822_s1 + $0x20] sm:$0xff] }
 0xbf5   : > { %vm2852_vm2 = vmor %vm2850_vm15, %vm2851_vm14  ;;  %v3375_v59 = vld [vmem:[#allocation10 + $0x18] sm:$0xff] }
 0xbf6   : > { %v2847_v25 = vsub.f32 1.0, %v2846_v23  ;;  %7612 = vpow2.f32 %v3075_v19 }
 0xbf8   : > { %v2848_v22 = vmul.f32 %v7611_v21, %v2847_v25  ;;  %v7040_v25 = vld [vmem:[%s10822_s1 + $0x38] sm:$0xff] }
 0xbf9   : > { %3154 = vmatpush.msra.mxu1 %v7040_v25 }
 0xbfa   : > { %v2849_v28 = vadd.f32 %v7611_v21, %v2848_v22  ;;  %v7038_v22 = vld [vmem:[%s10822_s1 + $0x28] sm:$0xff]  ;;  %s10835_s1 = sld [smem:[#allocation83_spill]] }
 0xbfb   : > { %3155 = vmatpush.msra.mxu1 %v7039_v26 }
 0xbfc   : > { %v9730_v30 = vpop.eup %7612  ;;  %v2853_v31 = vsel %vm2852_vm2, %v7611_v21, %v2849_v28  ;;  %v3373_v28 = vld [vmem:[#allocation10 + $0x8] sm:$0xff] }
 0xbfd   : > { %v3077_v32 = vsel %vm2212_vm1, %v9730_v30, 0.0  ;;  %v2858_v33 = vsel %vm2855_vm3, %v2857_v29, %v2853_v31  ;;  %3156 = vmatpush.msra.mxu1 %v7038_v22  ;;  %v3372_v29 = vld [vmem:[#allocation10] sm:$0xff] }
 0xbfe   : > { %3078 = vadd.xlane.f32.xlu2 %v3077_v32  ;;  %v2859_v34 = vmul.f32 %v7605_v1, %v2858_v33 }
 0xbff   : > { %3157 = vmatpush.msra.mxu1 %v7037_v17 }
 0xc00   : > { %7044 = vmatmul.msk.f32.vlgmr.msrb.gmra.mxu2 %vm2212_vm1, %v2859_v34 }
 0xc01   : > { %3392 = vmatpush.msrb.mxu1 %v3375_v59 }
 0xc03   : > { %3393 = vmatpush.msrb.mxu1 %v3374_v27 }
 0xc04   : > { %3016 = vrot.lane.b32.xlu1 %v9701_v44, %s10829_s5 }
 0xc05   : > { %2937 = vrot.lane.b32.xlu0 %v9701_v44, %s10828_s3  ;;  %3394 = vmatpush.msrb.mxu1 %v3373_v28  ;;  %v7541_v28 = vld [vmem:[%s10826_s23 + $0x1] ss:$0 sm:$0xff] }
 0xc07   : > { %3395 = vmatpush.msrb.mxu1 %v3372_v29 }
 0xc16   : > { %3095 = vrot.lane.b32.xlu2 %v9701_v44, %s10830_s6 }
 0xc5e   : > { %v3000_v36 = vpop.xlane.xlu1 %2999 }
 0xc5f   : > { %7614 = vrcp.f32 %v3000_v36  ;;  %v3012_v46 = vand.u32 2147483648, %v3000_v36  ;;  %vm3006_vm7 = vweird.f32 %v3000_v36  ;;  %v3010_v47 = vand.u32 2147483647, %v3000_v36 }
 0xc61   : > { %v3013_v52 = vor.u32 1.1754944e-38, %v3012_v46  ;;  %vm3011_vm11 = vcmp.eq.f32.partialorder %v3010_v47, 8.507059e+37  ;;  %v7539_v46 = vld [vmem:[%s10823_s24 + $0x1] ss:$0 sm:$0xff] }
 0xc64   : > { %v2920_v37 = vpop.xlane.xlu0 %2919 }
 0xc65   : > { %v7615_v38 = vpop.eup %7614  ;;  %7616 = vrcp.f32 %v2920_v37  ;;  %v2932_v49 = vand.u32 2147483648, %v2920_v37  ;;  %v2930_v51 = vand.u32 2147483647, %v2920_v37  ;;  %vm2926_vm12 = vweird.f32 %v2920_v37 }
 0xc66   : > { %v3002_v39 = vmul.f32 %v7615_v38, %v3000_v36  ;;  %vm3007_vm6 = vweird.f32 %v7615_v38 }
 0xc67   : > { %vm3008_vm8 = vmor %vm3006_vm7, %vm3007_vm6  ;;  %v2933_v55 = vor.u32 1.1754944e-38, %v2932_v49  ;;  %vm2931_vm14 = vcmp.eq.f32.partialorder %v2930_v51, 8.507059e+37  ;;  %v7540_v51 = vld [vmem:[#allocation12] ss:$0 sm:$0xff] }
 0xc68   : > { %v3003_v40 = vsub.f32 1.0, %v3002_v39  ;;  %v7067_v39 = vld [vmem:[%s10825_s4 + $0x68] sm:$0xff] }
 0xc6a   : > { %v3004_v41 = vmul.f32 %v7615_v38, %v3003_v40  ;;  %v7066_v40 = vld [vmem:[%s10825_s4 + $0x60] sm:$0xff] }
 0xc6b   : > { %v7617_v42 = vpop.eup %7616 }
 0xc6c   : > { %v3005_v43 = vadd.f32 %v7615_v38, %v3004_v41  ;;  %v2922_v45 = vmul.f32 %v7617_v42, %v2920_v37  ;;  %vm2927_vm9 = vweird.f32 %v7617_v42  ;;  %v7069_v37 = vld [vmem:[%s10825_s4 + $0x78] sm:$0xff] }
 0xc6d   : > { %vm2928_vm13 = vmor %vm2926_vm12, %vm2927_vm9  ;;  %3256 = vmatpush.msrb.mxu3 %v7069_v37  ;;  %v7065_v41 = vld [vmem:[%s10825_s4 + $0x58] sm:$0xff] }
 0xc6e   : > { %v2923_v48 = vsub.f32 1.0, %v2922_v45  ;;  %v3009_v50 = vsel %vm3008_vm8, %v7615_v38, %v3005_v43  ;;  %v7068_v38 = vld [vmem:[%s10825_s4 + $0x70] sm:$0xff]  ;;  %v7063_v43 = vld [vmem:[%s10825_s4 + $0x48] sm:$0xff]  ;;  %v7062_v45 = vld [vmem:[%s10825_s4 + $0x40] sm:$0xff] }
 0xc6f   : > { %v3014_v56 = vsel %vm3011_vm11, %v3013_v52, %v3009_v50  ;;  %3257 = vmatpush.msrb.mxu3 %v7068_v38 }
 0xc70   : > { %v2924_v44 = vmul.f32 %v7617_v42, %v2923_v48  ;;  %v3015_v62 = vmul.f32 %v9722_v12, %v3014_v56  ;;  %v7538_v56 = vld [vmem:[#allocation9] ss:$0 sm:$0xff] }
 0xc71   : > { %v3079_v53 = vpop.xlane.xlu2 %3078  ;;  %3258 = vmatpush.msrb.mxu3 %v7067_v39 }
 0xc72   : > { %v2925_v54 = vadd.f32 %v7617_v42, %v2924_v44  ;;  %7618 = vrcp.f32 %v3079_v53  ;;  %v3091_v7 = vand.u32 2147483648, %v3079_v53  ;;  %v3089_v10 = vand.u32 2147483647, %v3079_v53 }
 0xc73   : > { %vm3085_vm2 = vweird.f32 %v3079_v53  ;;  %3259 = vmatpush.msrb.mxu3 %v7066_v40 }
 0xc74   : > { %v2929_v57 = vsel %vm2928_vm13, %v7617_v42, %v2925_v54  ;;  %v3092_v13 = vor.u32 1.1754944e-38, %v3091_v7  ;;  %vm3090_vm6 = vcmp.eq.f32.partialorder %v3089_v10, 8.507059e+37  ;;  %v7064_v42 = vld [vmem:[%s10825_s4 + $0x50] sm:$0xff]  ;;  %v7060_v7 = vld [vmem:[%s10824_s8 + $0x38] sm:$0xff]  ;;  %v7057_v10 = vld [vmem:[%s10824_s8 + $0x20] sm:$0xff]  ;;  %s10836_s4 = sld [smem:[#allocation84_spill]] }
 0xc75   : > { %v2934_v60 = vsel %vm2931_vm14, %v2933_v55, %v2929_v57  ;;  %3260 = vmatpush.msrb.mxu3 %v7065_v41 }
 0xc76   : > { %v3017_v61 = vpop.permute.xlu1 %3016  ;;  %v2935_v63 = vmul.f32 %v9726_v15, %v2934_v60 }
 0xc77   : > { %v2938_v0 = vpop.permute.xlu0 %2937  ;;  %3037 = vmatpush.msra.mxu2 %v3017_v61  ;;  %3261 = vmatpush.msrb.mxu3 %v7064_v42 }
 0xc78   : > { %v7619_v1 = vpop.eup %7618  ;;  %2958 = vmatpush.msrb.mxu0 %v2938_v0  ;;  %7050 = vmatmul.msk.f32.vlgmr.msra.gmra.mxu2 %vm2212_vm1, %v3015_v62 }
 0xc79   : > { %v3081_v3 = vmul.f32 %v7619_v1, %v3079_v53  ;;  %7047 = vmatmul.msk.f32.vlgmr.msrb.gmra.mxu0 %vm2212_vm1, %v2935_v63  ;;  %v3096_v4 = vpop.permute.xlu2 %3095  ;;  %vm3086_vm15 = vweird.f32 %v7619_v1  ;;  %3262 = vmatpush.msrb.mxu3 %v7063_v43 }
 0xc7a   : > { %3116 = vmatpush.msra.mxu0 %v3096_v4  ;;  %vm3087_vm3 = vmor %vm3085_vm2, %vm3086_vm15  ;;  %3222 = vmatpush.msrb.mxu2 %v7060_v7 }
 0xc7b   : > { %v3082_v6 = vsub.f32 1.0, %v3081_v3  ;;  %3263 = vmatpush.msrb.mxu3 %v7062_v45 }
 0xc7c   : > { %3361 = vmatpush.msrb.mxu0 %v3338_v2 }
 0xc7d   : > { %v3083_v9 = vmul.f32 %v7619_v1, %v3082_v6 }
 0xc7e   : > { %3362 = vmatpush.msrb.mxu0 %v3337_v5 }
 0xc7f   : > { %v3084_v12 = vadd.f32 %v7619_v1, %v3083_v9  ;;  %v7058_v9 = vld [vmem:[%s10824_s8 + $0x28] sm:$0xff] }
 0xc80   : > { %3363 = vmatpush.msrb.mxu0 %v3336_v8  ;;  %v7059_v8 = vld [vmem:[%s10824_s8 + $0x30] sm:$0xff] }
 0xc81   : > { %v3088_v14 = vsel %vm3087_vm3, %v7619_v1, %v3084_v12  ;;  %3223 = vmatpush.msrb.mxu2 %v7059_v8  ;;  %v3406_v12 = vld [vmem:[#allocation13 + $0x18] sm:$0xff] }
 0xc82   : > { %3364 = vmatpush.msrb.mxu0 %v3335_v11  ;;  %v3093_v15 = vsel %vm3090_vm6, %v3092_v13, %v3088_v14  ;;  %v3405_v14 = vld [vmem:[#allocation13 + $0x10] sm:$0xff] }
 0xc83   : > { %v3094_v16 = vmul.f32 %v9730_v30, %v3093_v15  ;;  %v2880_v21 = vpop.f32.mrf.mxu2  ;;  %3224 = vmatpush.msrb.mxu2 %v7058_v9  ;;  %v3404_v15 = vld [vmem:[#allocation13 + $0x8] sm:$0xff] }
 0xc85   : > { %7053 = vmatmul.msk.f32.vlgmr.msra.gmra.mxu0 %vm2212_vm1, %v3094_v16  ;;  %3225 = vmatpush.msrb.mxu2 %v7057_v10 }
 0xc87   : > { %3423 = vmatpush.msra.mxu2 %v3406_v12 }
 0xc89   : > { %3424 = vmatpush.msra.mxu2 %v3405_v14 }
 0xc8b   : > { %3425 = vmatpush.msra.mxu2 %v3404_v15 }
 0xc8d   : > { %7071 = vmatmul.msk.f32.vlgmr.msrb.gmra.mxu0 %vm2065_vm0, %v9753_v18 }
 0xc95   : > { %7072 = vmatmul.msk.f32.gmra.mxu0 %vm2065_vm0, %v9759_v20 }
 0xcf6   : > { %v2960_v23 = vpop.f32.mrf.mxu0 }
 0xcf7   : > { %3122 = vrot.lane.b32.xlu0 %v2960_v23, %s10832_s7  ;;  %v3403_v23 = vld [vmem:[#allocation13] sm:$0xff] }
 0xcf8   : > { %3426 = vmatpush.msra.mxu2 %v3403_v23 }
 0xcfb   : > { %v3039_v19 = vpop.f32.mrf.mxu2 }
 0xcfc   : > { %3126 = vrot.lane.b32.xlu1 %v3039_v19, %s10833_s9 }
 0xd02   : > { %v3118_v58 = vpop.f32.mrf.mxu0 }
 0xd03   : > { %3130 = vrot.lane.b32.xlu0 %v3118_v58, %s10834_s10 }
 0xd0a   : > { %v3366_v55 = vpop.f32.mrf.mxu0 }
 0xd12   : > { %v3369_v57 = vpop.f32.mrf.mxu0 }
 0xd13   : > { %v9798_v60 = vadd.f32 %v7538_v56, %v3369_v57  ;;  %v7544_v57 = vld [vmem:[#allocation15] ss:$0 sm:$0xff] }
 0xd69   : > { %v3123_v30 = vpop.permute.xlu0 %3122 }
 0xd6a   : > { %v3133_v32 = vsel %vm2212_vm1, %v2880_v21, %v3123_v30 }
 0xd6e   : > { %v3127_v31 = vpop.permute.xlu1 %3126 }
 0xd6f   : > { %v3134_v33 = vsel %vm2538_vm4, %v3133_v32, %v3127_v31  ;;  %v7542_v31 = vld [vmem:[%s10827_s13 + $0x1] ss:$0 sm:$0xff] }
 0xd75   : > { %v3131_v34 = vpop.permute.xlu0 %3130 }
 0xd76   : > { %v3135_v36 = vsel %vm2540_vm5, %v3134_v33, %v3131_v34 }
 0xd77   : > { %7054 = vmatmul.msk.f32.vlgmr.msra.gmra.mxu1 %vm2065_vm0, %v3135_v36 }
 0xd7f   : > { %7073 = vmatmul.msk.f32.vlgmr.msrb.gmra.mxu1 %vm2065_vm0, %v9753_v18 }
 0xd87   : > { %7074 = vmatmul.msk.f32.gmra.mxu1 %vm2065_vm0, %v9759_v20 }
 0xdf4   : > { %v3159_v47 = vpop.f32.mrf.mxu1 }
 0xdf5   : > { %v3160_v48 = vadd.f32 %v7539_v46, %v3159_v47 }
 0xdf7   : > { %v3162_v49 = vadd.f32 %v3160_v48, %v9689_v35  ;;  %v9794_v35 = vadd.f32 %v7538_v56, %v3366_v55  ;;  %v7543_v48 = vld [vmem:[#allocation2 + $0x1] ss:$0 sm:$0xff] }
 0xdf9   : > { %v3167_v50 = vsel %vm2065_vm0, %v3162_v49, 0.0 }
 0xdfa   : > { %3168 = vadd.xlane.f32.xlu2 %v3167_v50 }
 0xdfc   : > { %v3397_v44 = vpop.f32.mrf.mxu1 }
 0xdfd   : > { %v3398_v54 = vadd.f32 %v7540_v51, %v3397_v44 }
 0xe04   : > { %v3400_v52 = vpop.f32.mrf.mxu1 }
 0xe05   : > { %v3401_v53 = vadd.f32 %v7540_v51, %v3400_v52 }
 0xe07   : > { %3559 = vrot.lane.b32.xlu0 %v3401_v53, %s10828_s3  ;;  %7077 = vmatpush.xpose.msk.msra.mxu3 %vm2212_vm1, %v3401_v53 }
 0xe0b   : > { %7078 = vmatpush.xpose.msk.msra.mxu3 %vm2212_vm1, %v3398_v54 }
 0xe0f   : > { %3557 = vrot.lane.b32.xlu0 %v3398_v54, %s10828_s3 }
 0xe12   : > { %3809 = vrot.lane.b32.xlu2 %v3401_v53, %s10830_s6 }
 0xe17   : > { %3553 = vrot.lane.b32.xlu0 %v9794_v35, %s10828_s3 }
 0xe1a   : > { %3681 = vrot.lane.b32.xlu2 %v9798_v60, %s10829_s5 }
 0xe1f   : > { %3555 = vrot.lane.b32.xlu0 %v9798_v60, %s10828_s3 }
 0xe27   : > { %3685 = vrot.lane.b32.xlu0 %v3401_v53, %s10829_s5 }
 0xe2f   : > { %3683 = vrot.lane.b32.xlu0 %v3398_v54, %s10829_s5 }
 0xe37   : > { %3679 = vrot.lane.b32.xlu0 %v9794_v35, %s10829_s5 }
 0xe3f   : > { %3803 = vrot.lane.b32.xlu0 %v9794_v35, %s10830_s6 }
 0xe47   : > { %3805 = vrot.lane.b32.xlu0 %v9798_v60, %s10830_s6 }
 0xe6d   : > { %v3169_v61 = vpop.xlane.xlu2 %3168 }
 0xe6e   : > { %v3170_v62 = vmul.f32 %v3169_v61, %v9652_v24 }
 0xe70   : > { %v3171_v63 = vsub.f32 %v3162_v49, %v3170_v62 }
 0xe72   : > { %v3172_v0 = vmul.f32 %v3171_v63, %v3171_v63 }
 0xe74   : > { %v3173_v1 = vsel %vm2065_vm0, %v3172_v0, 0.0 }
 0xe75   : > { %3174 = vadd.xlane.f32.xlu1 %v3173_v1  ;;  %v3810_v4 = vpop.permute.xlu2 %3809 }
 0xe79   : > { %v3560_v2 = vpop.permute.xlu0 %3559 }
 0xe7a   : > { %7083 = vmatpush.xpose.msk.msra.mxu1 %vm2212_vm1, %v3560_v2 }
 0xe7d   : > { %v3682_v1 = vpop.permute.xlu2 %3681 }
 0xe81   : > { %v3558_v3 = vpop.permute.xlu0 %3557 }
 0xe82   : > { %7084 = vmatpush.xpose.msk.msra.mxu1 %vm2212_vm1, %v3558_v3 }
 0xe86   : > { %7095 = vmatpush.xpose.msk.msrb.mxu1 %vm2212_vm1, %v3810_v4 }
 0xe89   : > { %v3554_v5 = vpop.permute.xlu0 %3553 }
 0xe8a   : > { %7085 = vmatmul.msk.f32.vlgmr.msra.gmra.mxu1 %vm2212_vm1, %v3554_v5 }
 0xe8e   : > { %3807 = vrot.lane.b32.xlu1 %v3398_v54, %s10830_s6 }
 0xe91   : > { %v3556_v6 = vpop.permute.xlu0 %3555 }
 0xe92   : > { %7086 = vmatmul.msk.f32.gmra.mxu1 %vm2212_vm1, %v3556_v6 }
 0xe99   : > { %v3686_v11 = vpop.permute.xlu0 %3685 }
 0xea1   : > { %v3684_v19 = vpop.permute.xlu0 %3683 }
 0xea9   : > { %v3680_v22 = vpop.permute.xlu0 %3679 }
 0xeb1   : > { %v3804_v33 = vpop.permute.xlu0 %3803 }
 0xeb9   : > { %v3806_v40 = vpop.permute.xlu0 %3805 }
 0xee8   : > { %v3175_v13 = vpop.xlane.xlu1 %3174 }
 0xee9   : > { %v3176_v16 = vmul.f32 %v3175_v13, %v9652_v24 }
 0xeeb   : > { %v3177_v21 = vadd.f32 1e-05, %v3176_v16 }
 0xeed   : > { %7620 = vrsqrt.f32 %v3177_v21  ;;  %vm3184_vm8 = vweird.f32 %v3177_v21 }
 0xef3   : > { %v7621_v58 = vpop.eup %7620 }
 0xef4   : > { %v3179_v25 = vmul.f32 %v7621_v58, %v3177_v21  ;;  %vm3185_vm7 = vweird.f32 %v7621_v58 }
 0xef5   : > { %vm3186_vm9 = vmor %vm3184_vm8, %vm3185_vm7 }
 0xef6   : > { %v3180_v26 = vmul.f32 %v7621_v58, %v3179_v25 }
 0xef8   : > { %v3181_v17 = vmul.f32 0.5, %v3180_v26 }
 0xefa   : > { %v3182_v59 = vsub.f32 1.5, %v3181_v17 }
 0xefc   : > { %v3183_v27 = vmul.f32 %v7621_v58, %v3182_v59 }
 0xefe   : > { %v3187_v29 = vsel %vm3186_vm9, %v7621_v58, %v3183_v27 }
 0xeff   : > { %v3188_v30 = vmul.f32 %v3187_v29, %v3171_v63 }
 0xf00   : > { %v3808_v32 = vpop.permute.xlu1 %3807 }
 0xf01   : > { %v3192_v34 = vmul.f32 %v7541_v28, %v3188_v30  ;;  %7096 = vmatpush.xpose.msk.msrb.mxu1 %vm2212_vm1, %v3808_v32 }
 0xf03   : > { %v9828_v36 = vadd.f32 %v7542_v31, %v3192_v34 }
 0xf04   : > { %7097 = vmatmul.msk.f32.vlgmr.msrb.gmra.mxu1 %vm2212_vm1, %v3804_v33 }
 0xf05   : > { %7061 = vmatmul.msk.f32.vlgmr.msrb.gmra.mxu2 %vm2065_vm0, %v9828_v36 }
 0xf07   : > { %v3586_v37 = vpop.f32.mrf.mxu1 }
 0xf08   : > { %v3592_v38 = vmul.f32 0.35355338, %v3586_v37 }
 0xf0a   : > { %v3594_v39 = vsel %vm2538_vm4, %v3592_v38, -inf }
 0xf0b   : > { %3595 = vmax.xlane.f32.xlu1 %v3594_v39 }
 0xf0c   : > { %7098 = vmatmul.msk.f32.gmra.mxu1 %vm2212_vm1, %v3806_v40 }
 0xf0d   : > { %7075 = vmatmul.msk.f32.vlgmr.msra.gmra.mxu2 %vm2065_vm0, %v9753_v18 }
 0xf0f   : > { %v3589_v41 = vpop.f32.mrf.mxu1 }
 0xf10   : > { %v3593_v42 = vmul.f32 0.35355338, %v3589_v41 }
 0xf12   : > { %v3597_v43 = vsel %vm2538_vm4, %v3593_v42, -inf }
 0xf13   : > { %3598 = vmax.xlane.f32.xlu0 %v3597_v43 }
 0xf15   : > { %7076 = vmatmul.msk.f32.gmra.mxu2 %vm2065_vm0, %v9759_v20 }
 0xf7e   : > { %v3596_v3 = vpop.xlane.xlu1 %3595 }
 0xf7f   : > { %v3600_v8 = vsub.f32 %v3592_v38, %v3596_v3 }
 0xf81   : > { %v3836_v45 = vpop.f32.mrf.mxu1  ;;  %v3602_v12 = vmul.f32 1.442695, %v3600_v8 }
 0xf82   : > { %v3842_v46 = vmul.f32 0.35355338, %v3836_v45 }
 0xf84   : > { %v3844_v47 = vsel %vm2538_vm4, %v3842_v46, -inf }
 0xf85   : > { %3845 = vmax.xlane.f32.xlu1 %v3844_v47 }
 0xf86   : > { %v3599_v49 = vpop.xlane.xlu0 %3598 }
 0xf87   : > { %v3601_v50 = vsub.f32 %v3593_v42, %v3599_v49 }
 0xf88   : > { %v3227_v44 = vpop.f32.mrf.mxu2 }
 0xf89   : > { %v3604_v51 = vmul.f32 1.442695, %v3601_v50  ;;  %v3228_v52 = vadd.f32 %v7543_v48, %v3227_v44 }
 0xf8b   : > { %7622 = vpow2.f32 %v3604_v51  ;;  %v3230_v53 = vmax.f32 %v3228_v52, 0.0 }
 0xf8c   : > { %7624 = vpow2.f32 %v3602_v12 }
 0xf8d   : > { %7070 = vmatmul.msk.f32.vlgmr.msrb.gmra.mxu3 %vm2652_vm10, %v3230_v53 }
 0xf8e   : > { %7089 = vmatpush.xpose.msk.msrb.mxu3 %vm2212_vm1, %v3686_v11  ;;  %v3839_v11 = vpop.f32.mrf.mxu1 }
 0xf8f   : > { %v3843_v14 = vmul.f32 0.35355338, %v3839_v11 }
 0xf90   : > { %v3428_v54 = vpop.f32.mrf.mxu2 }
 0xf91   : > { %v9843_v55 = vpop.eup %7622  ;;  %v3429_v62 = vadd.f32 %v7544_v57, %v3428_v54  ;;  %v3847_v23 = vsel %vm2538_vm4, %v3843_v14, -inf }
 0xf92   : > { %7090 = vmatpush.xpose.msk.msrb.mxu3 %vm2212_vm1, %v3684_v19  ;;  %v3609_v56 = vsel %vm2538_vm4, %v9843_v55, 0.0  ;;  %v9862_v19 = vpop.eup %7624 }
 0xf93   : > { %3610 = vadd.xlane.f32.xlu1 %v3609_v56 }
 0xf95   : > { %7079 = vmatmul.msk.f32.vlgmr.msra.gmra.mxu3 %vm2212_vm1, %v9794_v35 }
 0xf98   : > { %v3431_v61 = vpop.f32.mrf.mxu2 }
 0xf99   : > { %v3432_v63 = vadd.f32 %v7544_v57, %v3431_v61 }
 0xf9b   : > { %3544 = vmatpush.msra.mxu0 %v3432_v63  ;;  %v9850_v0 = vpack.i.bf16 %v3429_v62, %v3432_v63 }
 0xf9d   : > { %7080 = vmatmul.msk.f32.gmra.mxu3 %vm2212_vm1, %v9798_v60  ;;  %3545 = vmatpush.msra.mxu0 %v3429_v62 }
 0xfa5   : > { %7091 = vmatmul.msk.f32.vlgmr.msrb.gmra.mxu3 %vm2212_vm1, %v3680_v22  ;;  %v3606_v22 = vsel %vm2538_vm4, %v9862_v19, 0.0 }
 0xfad   : > { %7092 = vmatmul.msk.f32.gmra.mxu3 %vm2212_vm1, %v3682_v1 }
 0xff8   : > { %v3846_v6 = vpop.xlane.xlu1 %3845 }
 0xff9   : > { %v3850_v10 = vsub.f32 %v3842_v46, %v3846_v6 }
 0xffb   : > { %v3852_v13 = vmul.f32 1.442695, %v3850_v10 }
 0xffd   : > { %7626 = vpow2.f32 %v3852_v13 }
0x1003   : > { %v9864_v58 = vpop.eup %7626 }
0x1004   : > { %v3856_v17 = vsel %vm2538_vm4, %v9864_v58, 0.0 }
0x1006   : > { %v9873_v33 = vpop.xlane.xlu1 %3610 }
0x1007   : > { %vm3632_vm2 = vweird.f32 %v9873_v33 }
0x1010   : > { %v9856_v2 = vpop.f32.mrf.mxu3 }
0x1018   : > { %v3468_v4 = vpop.f32.mrf.mxu3 }
0x1019   : > { %v3474_v35 = vmul.f32 0.35355338, %v3468_v4 }
0x101b   : > { %v3476_v5 = vsel %vm2538_vm4, %v3474_v35, -inf }
0x101c   : > { %3477 = vmax.xlane.f32.xlu2 %v3476_v5 }
0x1020   : > { %v3471_v7 = vpop.f32.mrf.mxu3 }
0x1021   : > { %v3475_v9 = vmul.f32 0.35355338, %v3471_v7 }
0x1023   : > { %v3479_v60 = vsel %vm2538_vm4, %v3475_v9, -inf }
0x1024   : > { %3480 = vmax.xlane.f32.xlu2 %v3479_v60 }
0x1028   : > { %v3712_v15 = vpop.f32.mrf.mxu3 }
0x1029   : > { %v3718_v16 = vmul.f32 0.35355338, %v3712_v15 }
0x102b   : > { %v3720_v21 = vsel %vm2538_vm4, %v3718_v16, -inf }
0x102c   : > { %3721 = vmax.xlane.f32.xlu0 %v3720_v21  ;;  %3848 = vmax.xlane.f32.xlu2 %v3847_v23 }
0x1030   : > { %v3715_v25 = vpop.f32.mrf.mxu3 }
0x1031   : > { %v3719_v26 = vmul.f32 0.35355338, %v3715_v25 }
0x1033   : > { %v3723_v59 = vsel %vm2538_vm4, %v3719_v26, -inf }
0x1034   : > { %3607 = vadd.xlane.f32.xlu0 %v3606_v22  ;;  %3857 = vadd.xlane.f32.xlu2 %v3856_v17 }
0x1035   : > { %3724 = vmax.xlane.f32.xlu1 %v3723_v59 }
0x104e   : > { %7495 = vrot.lane.b32.xlu1 %v9850_v0, %s10828_s3 }
0x108f   : > { %v3478_v27 = vpop.xlane.xlu2 %3477 }
0x1090   : > { %v3482_v41 = vsub.f32 %v3474_v35, %v3478_v27 }
0x1092   : > { %v3484_v43 = vmul.f32 1.442695, %v3482_v41 }
0x1097   : > { %v3481_v28 = vpop.xlane.xlu2 %3480 }
0x1098   : > { %v3483_v29 = vsub.f32 %v3475_v9, %v3481_v28 }
0x109a   : > { %v3486_v30 = vmul.f32 1.442695, %v3483_v29 }
0x109c   : > { %7628 = vpow2.f32 %v3486_v30 }
0x109f   : > { %v3722_v31 = vpop.xlane.xlu0 %3721  ;;  %v3849_v32 = vpop.xlane.xlu2 %3848 }
0x10a0   : > { %v3726_v34 = vsub.f32 %v3718_v16, %v3722_v31  ;;  %v3851_v37 = vsub.f32 %v3843_v14, %v3849_v32  ;;  %v3638_v14 = vand.u32 2147483648, %v9873_v33  ;;  %v3636_v16 = vand.u32 2147483647, %v9873_v33 }
0x10a2   : > { %v9875_v38 = vpop.eup %7628  ;;  %v3728_v39 = vmul.f32 1.442695, %v3726_v34  ;;  %v3854_v40 = vmul.f32 1.442695, %v3851_v37  ;;  %v3639_v23 = vor.u32 1.1754944e-38, %v3638_v14  ;;  %vm3637_vm6 = vcmp.eq.f32.partialorder %v3636_v16, 8.507059e+37 }
0x10a3   : > { %v3491_v42 = vsel %vm2538_vm4, %v9875_v38, 0.0 }
0x10a4   : > { %7630 = vpow2.f32 %v3728_v39  ;;  %3492 = vadd.xlane.f32.xlu0 %v3491_v42 }
0x10a5   : > { %7632 = vpow2.f32 %v3854_v40 }
0x10a7   : > { %v3608_v45 = vpop.xlane.xlu0 %3607 }
0x10a8   : > { %7634 = vrcp.f32 %v3608_v45  ;;  %v3725_v46 = vpop.xlane.xlu1 %3724  ;;  %v3623_v5 = vand.u32 2147483648, %v3608_v45  ;;  %vm3617_vm12 = vweird.f32 %v3608_v45  ;;  %v3621_v6 = vand.u32 2147483647, %v3608_v45 }
0x10a9   : > { %v3727_v47 = vsub.f32 %v3719_v26, %v3725_v46  ;;  %7636 = vpow2.f32 %v3484_v43 }
0x10aa   : > { %v9879_v48 = vpop.eup %7630  ;;  %7638 = vrcp.f32 %v9873_v33  ;;  %v3624_v9 = vor.u32 1.1754944e-38, %v3623_v5  ;;  %vm3622_vm14 = vcmp.eq.f32.partialorder %v3621_v6, 8.507059e+37 }
0x10ab   : > { %v9881_v49 = vpop.eup %7632  ;;  %v3730_v50 = vmul.f32 1.442695, %v3727_v47  ;;  %v3732_v44 = vsel %vm2538_vm4, %v9879_v48, 0.0 }
0x10ac   : > { %3733 = vadd.xlane.f32.xlu0 %v3732_v44  ;;  %v3859_v51 = vsel %vm2538_vm4, %v9881_v49, 0.0 }
0x10ad   : > { %7640 = vpow2.f32 %v3730_v50  ;;  %3860 = vadd.xlane.f32.xlu2 %v3859_v51 }
0x10ae   : > { %v7635_v52 = vpop.eup %7634 }
0x10af   : > { %v3613_v53 = vmul.f32 %v7635_v52, %v3608_v45  ;;  %v9888_v54 = vpop.eup %7636  ;;  %vm3618_vm11 = vweird.f32 %v7635_v52 }
0x10b0   : > { %v7639_v56 = vpop.eup %7638  ;;  %v3488_v63 = vsel %vm2538_vm4, %v9888_v54, 0.0  ;;  %vm3619_vm13 = vmor %vm3617_vm12, %vm3618_vm11 }
0x10b1   : > { %v3614_v57 = vsub.f32 1.0, %v3613_v53  ;;  %v3628_v1 = vmul.f32 %v7639_v56, %v9873_v33  ;;  %vm3633_vm15 = vweird.f32 %v7639_v56 }
0x10b2   : > { %vm3634_vm3 = vmor %vm3632_vm2, %vm3633_vm15 }
0x10b3   : > { %v9890_v61 = vpop.eup %7640  ;;  %v3615_v3 = vmul.f32 %v7635_v52, %v3614_v57  ;;  %v3629_v4 = vsub.f32 1.0, %v3628_v1 }
0x10b4   : > { %v3735_v62 = vsel %vm2538_vm4, %v9890_v61, 0.0 }
0x10b5   : > { %3736 = vadd.xlane.f32.xlu0 %v3735_v62  ;;  %3489 = vadd.xlane.f32.xlu2 %v3488_v63  ;;  %v3616_v35 = vadd.f32 %v7635_v52, %v3615_v3  ;;  %v3630_v8 = vmul.f32 %v7639_v56, %v3629_v4 }
0x10b7   : > { %v3620_v7 = vsel %vm3619_vm13, %v7635_v52, %v3616_v35  ;;  %v3631_v12 = vadd.f32 %v7639_v56, %v3630_v8 }
0x10b8   : > { %v3625_v11 = vsel %vm3622_vm14, %v3624_v9, %v3620_v7 }
0x10b9   : > { %v3626_v15 = vmul.f32 %v9862_v19, %v3625_v11  ;;  %v3635_v21 = vsel %vm3634_vm3, %v7639_v56, %v3631_v12  ;;  %v3858_v19 = vpop.xlane.xlu2 %3857 }
0x10ba   : > { %v3640_v25 = vsel %vm3637_vm6, %v3639_v23, %v3635_v21  ;;  %7642 = vrcp.f32 %v3858_v19  ;;  %v3873_v34 = vand.u32 2147483648, %v3858_v19  ;;  %vm3867_vm8 = vweird.f32 %v3858_v19 }
0x10bb   : > { %v3641_v26 = vmul.f32 %v9843_v55, %v3640_v25  ;;  %v3871_v37 = vand.u32 2147483647, %v3858_v19 }
0x10bc   : > { %v3874_v42 = vor.u32 1.1754944e-38, %v3873_v34 }
0x10bd   : > { %vm3872_vm11 = vcmp.eq.f32.partialorder %v3871_v37, 8.507059e+37 }
0x10c0   : > { %v7496_v10 = vpop.permute.xlu1 %7495  ;;  %v7643_v22 = vpop.eup %7642 }
0x10c1   : > { %v7497_v60 = vunpack.i.l.bf16 %v7496_v10  ;;  %v7498_v13 = vunpack.i.h.bf16 %v7496_v10  ;;  %v3863_v17 = vmul.f32 %v7643_v22, %v3858_v19  ;;  %vm3868_vm7 = vweird.f32 %v7643_v22 }
0x10c2   : > { %vm3869_vm9 = vmor %vm3867_vm8, %vm3868_vm7 }
0x10c3   : > { %3670 = vmatpush.msrb.mxu2 %v7497_v60  ;;  %v3864_v27 = vsub.f32 1.0, %v3863_v17 }
0x10c5   : > { %3671 = vmatpush.msrb.mxu2 %v7498_v13  ;;  %v3865_v29 = vmul.f32 %v7643_v22, %v3864_v27 }
0x10c6   : > { %7087 = vmatmul.msk.f32.vlgmr.msrb.gmra.mxu2 %vm2538_vm4, %v3626_v15 }
0x10c7   : > { %v3866_v55 = vadd.f32 %v7643_v22, %v3865_v29 }
0x10c9   : > { %7505 = vrot.lane.b32.xlu0 %v9850_v0, %s10829_s5  ;;  %v3870_v40 = vsel %vm3869_vm9, %v7643_v22, %v3866_v55 }
0x10ca   : > { %v3875_v45 = vsel %vm3872_vm11, %v3874_v42, %v3870_v40 }
0x10cb   : > { %v3876_v56 = vmul.f32 %v9864_v58, %v3875_v45 }
0x10cd   : > { %7500 = vrot.lane.b32.xlu2 %v9850_v0, %s10830_s6 }
0x10ce   : > { %7088 = vmatmul.msk.f32.gmra.mxu2 %vm2538_vm4, %v3641_v26 }
0x1117   : > { %v9908_v59 = vpop.xlane.xlu0 %3492 }
0x1118   : > { %v3520_v16 = vand.u32 2147483648, %v9908_v59  ;;  %vm3514_vm9 = vweird.f32 %v9908_v59  ;;  %v3518_v25 = vand.u32 2147483647, %v9908_v59 }
0x111f   : > { %v9911_v31 = vpop.xlane.xlu0 %3733 }
0x1120   : > { %v3861_v28 = vpop.xlane.xlu2 %3860  ;;  %v3747_v55 = vand.u32 2147483647, %v9911_v31 }
0x1121   : > { %7644 = vrcp.f32 %v3861_v28  ;;  %vm3882_vm13 = vweird.f32 %v3861_v28  ;;  %v3888_v1 = vand.u32 2147483648, %v3861_v28  ;;  %v3886_v4 = vand.u32 2147483647, %v3861_v28 }
0x1122   : > { %7646 = vrcp.f32 %v9908_v59 }
0x1123   : > { %v3889_v9 = vor.u32 1.1754944e-38, %v3888_v1  ;;  %vm3887_vm6 = vcmp.eq.f32.partialorder %v3886_v4, 8.507059e+37  ;;  %v3436_v1 = vld [vmem:[#allocation16 + $0x10] sm:$0xff]  ;;  %v3434_v4 = vld [vmem:[#allocation16] sm:$0xff] }
0x1127   : > { %v7645_v30 = vpop.eup %7644 }
0x1128   : > { %v3878_v0 = vmul.f32 %v7645_v30, %v3861_v28  ;;  %v3490_v32 = vpop.xlane.xlu2 %3489  ;;  %v9913_v33 = vpop.eup %7646  ;;  %vm3883_vm12 = vweird.f32 %v7645_v30 }
0x1129   : > { %7648 = vrcp.f32 %v3490_v32  ;;  %v3510_v41 = vmul.f32 %v9913_v33, %v9908_v59  ;;  %v9918_v44 = vpop.xlane.xlu0 %3736  ;;  %v3505_v3 = vand.u32 2147483648, %v3490_v32  ;;  %v3503_v7 = vand.u32 2147483647, %v3490_v32  ;;  %vm3884_vm15 = vmor %vm3882_vm13, %vm3883_vm12 }
0x112a   : > { %v3879_v39 = vsub.f32 1.0, %v3878_v0  ;;  %7650 = vrcp.f32 %v9911_v31  ;;  %vm3499_vm2 = vweird.f32 %v3490_v32  ;;  %vm3515_vm7 = vweird.f32 %v9913_v33 }
0x112b   : > { %v3511_v47 = vsub.f32 1.0, %v3510_v41  ;;  %7652 = vrcp.f32 %v9918_v44  ;;  %v3506_v10 = vor.u32 1.1754944e-38, %v3505_v3  ;;  %vm3504_vm8 = vcmp.eq.f32.partialorder %v3503_v7, 8.507059e+37  ;;  %vm3516_vm11 = vmor %vm3514_vm9, %vm3515_vm7  ;;  %v3435_v3 = vld [vmem:[#allocation16 + $0x8] sm:$0xff] }
0x112c   : > { %v3880_v43 = vmul.f32 %v7645_v30, %v3879_v39  ;;  %vm3519_vm12 = vcmp.eq.f32.partialorder %v3518_v25, 8.507059e+37  ;;  %v3764_v41 = vand.u32 2147483648, %v9918_v44 }
0x112d   : > { %v3512_v35 = vmul.f32 %v9913_v33, %v3511_v47 }
0x112e   : > { %v3881_v57 = vadd.f32 %v7645_v30, %v3880_v43  ;;  %v3765_v43 = vor.u32 1.1754944e-38, %v3764_v41 }
0x112f   : > { %v7649_v46 = vpop.eup %7648  ;;  %v3513_v60 = vadd.f32 %v9913_v33, %v3512_v35 }
0x1130   : > { %v7501_v50 = vpop.permute.xlu2 %7500  ;;  %v3495_v51 = vmul.f32 %v7649_v46, %v3490_v32  ;;  %v9920_v53 = vpop.eup %7650  ;;  %vm3500_vm14 = vweird.f32 %v7649_v46  ;;  %v3885_v58 = vsel %vm3884_vm15, %v7645_v30, %v3881_v57  ;;  %v3749_v30 = vand.u32 2147483648, %v9911_v31 }
0x1131   : > { %v7502_v52 = vunpack.i.l.bf16 %v7501_v50  ;;  %v7503_v63 = vunpack.i.h.bf16 %v7501_v50  ;;  %v3739_v5 = vmul.f32 %v9920_v53, %v9911_v31  ;;  %vm3501_vm3 = vmor %vm3499_vm2, %vm3500_vm14  ;;  %v3890_v13 = vsel %vm3887_vm6, %v3889_v9, %v3885_v58  ;;  %v7653_v14 = vpop.eup %7652 }
0x1132   : > { %v3496_v62 = vsub.f32 1.0, %v3495_v51  ;;  %v3891_v19 = vmul.f32 %v9881_v49, %v3890_v13  ;;  %v3754_v17 = vmul.f32 %v7653_v14, %v9918_v44  ;;  %v3517_v27 = vsel %vm3516_vm11, %v9913_v33, %v3513_v60 }
0x1133   : > { %3918 = vmatpush.msra.mxu2 %v7502_v52  ;;  %v3740_v11 = vsub.f32 1.0, %v3739_v5  ;;  %vm3744_vm13 = vweird.f32 %v9920_v53  ;;  %vm3743_vm14 = vweird.f32 %v9911_v31  ;;  %v3750_v34 = vor.u32 1.1754944e-38, %v3749_v30 }
0x1134   : > { %v3497_v6 = vmul.f32 %v7649_v46, %v3496_v62  ;;  %v3755_v49 = vsub.f32 1.0, %v3754_v17  ;;  %vm3745_vm15 = vmor %vm3743_vm14, %vm3744_vm13  ;;  %vm3748_vm2 = vcmp.eq.f32.partialorder %v3747_v55, 8.507059e+37  ;;  %vm3758_vm6 = vweird.f32 %v9918_v44 }
0x1135   : > { %3919 = vmatpush.msra.mxu2 %v7503_v63  ;;  %v3741_v22 = vmul.f32 %v9920_v53, %v3740_v11  ;;  %v3437_v63 = vld [vmem:[#allocation16 + $0x18] sm:$0xff] }
0x1136   : > { %7099 = vmatmul.msk.f32.vlgmr.msra.gmra.mxu2 %vm2538_vm4, %v3876_v56  ;;  %v3498_v8 = vadd.f32 %v7649_v46, %v3497_v6  ;;  %v3756_v33 = vmul.f32 %v7653_v14, %v3755_v49  ;;  %3978 = vmatpush.msra.mxu3 %v3437_v63  ;;  %v4048_v63 = vld [vmem:[#allocation22 + $0x8] sm:$0xff] }
0x1137   : > { %v3742_v29 = vadd.f32 %v9920_v53, %v3741_v22 }
0x1138   : > { %v3502_v12 = vsel %vm3501_vm3, %v7649_v46, %v3498_v8  ;;  %v3757_v40 = vadd.f32 %v7653_v14, %v3756_v33  ;;  %vm3759_vm3 = vweird.f32 %v7653_v14  ;;  %3979 = vmatpush.msra.mxu3 %v3436_v1  ;;  %v7547_v33 = vld [vmem:[#allocation6 + $0x1] ss:$0 sm:$0xff]  ;;  %v4047_v1 = vld [vmem:[#allocation22] sm:$0xff] }
0x1139   : > { %v3507_v15 = vsel %vm3504_vm8, %v3506_v10, %v3502_v12  ;;  %v3746_v32 = vsel %vm3745_vm15, %v9920_v53, %v3742_v29  ;;  %vm3760_vm7 = vmor %vm3758_vm6, %vm3759_vm3 }
0x113a   : > { %v3508_v23 = vmul.f32 %v9888_v54, %v3507_v15  ;;  %v3521_v54 = vor.u32 1.1754944e-38, %v3520_v16  ;;  %v3751_v37 = vsel %vm3748_vm2, %v3750_v34, %v3746_v32  ;;  %v3761_v42 = vsel %vm3760_vm7, %v7653_v14, %v3757_v40  ;;  %3980 = vmatpush.msra.mxu3 %v3435_v3 }
0x113b   : > { %v7506_v21 = vpop.permute.xlu0 %7505  ;;  %v3752_v31 = vmul.f32 %v9879_v48, %v3751_v37  ;;  %v7548_v37 = vld [vmem:[#allocation7 + $0x1] ss:$0 sm:$0xff] }
0x113c   : > { %v7507_v26 = vunpack.i.l.bf16 %v7506_v21  ;;  %7081 = vmatmul.msk.f32.vlgmr.msra.gmra.mxu0 %vm2538_vm4, %v3508_v23  ;;  %v7508_v28 = vunpack.i.h.bf16 %v7506_v21  ;;  %v3522_v59 = vsel %vm3519_vm12, %v3521_v54, %v3517_v27  ;;  %3981 = vmatpush.msra.mxu3 %v3434_v4  ;;  %v7546_v21 = vld [vmem:[#allocation18] ss:$0 sm:$0xff] }
0x113d   : > { %v3523_v0 = vmul.f32 %v9875_v38, %v3522_v59  ;;  %v3762_v38 = vand.u32 2147483647, %v9918_v44 }
0x113e   : > { %3794 = vmatpush.msrb.mxu0 %v7507_v26  ;;  %7100 = vmatmul.msk.f32.gmra.mxu2 %vm2538_vm4, %v3891_v19 }
0x113f   : > { %vm3763_vm8 = vcmp.eq.f32.partialorder %v3762_v38, 8.507059e+37 }
0x1140   : > { %3795 = vmatpush.msrb.mxu0 %v7508_v28  ;;  %v3766_v45 = vsel %vm3763_vm8, %v3765_v43, %v3761_v42 }
0x1141   : > { %v3767_v46 = vmul.f32 %v9890_v61, %v3766_v45  ;;  %v7545_v61 = vld [vmem:[#allocation4 + $0x1] ss:$0 sm:$0xff] }
0x1142   : > { %v3266_v56 = vadd.f32 %v7545_v61, %v9856_v2 }
0x1144   : > { %7082 = vmatmul.msk.f32.gmra.mxu0 %vm2538_vm4, %v3523_v0  ;;  %v3268_v57 = vadd.f32 %v3266_v56, %v9828_v36 }
0x1146   : > { %v3273_v62 = vsel %vm2065_vm0, %v3268_v57, 0.0 }
0x1149   : > { %v3673_v39 = vpop.f32.mrf.mxu2 }
0x114a   : > { %3929 = vrot.lane.b32.xlu1 %v3673_v39, %s10832_s7 }
0x114c   : > { %7093 = vmatmul.msk.f32.vlgmr.msrb.gmra.mxu0 %vm2538_vm4, %v3752_v31 }
0x1151   : > { %v3676_v47 = vpop.f32.mrf.mxu2 }
0x1154   : > { %7094 = vmatmul.msk.f32.gmra.mxu0 %vm2538_vm4, %v3767_v46 }
0x11b9   : > { %v3921_v50 = vpop.f32.mrf.mxu2  ;;  %v3547_v51 = vpop.f32.mrf.mxu0 }
0x11ba   : > { %3945 = vrot.lane.b32.xlu2 %v3921_v50, %s10834_s10 }
0x11bc   : > { %v3930_v35 = vpop.permute.xlu1 %3929 }
0x11bd   : > { %v3951_v5 = vsel %vm2212_vm1, %v3547_v51, %v3930_v35 }
0x11c1   : > { %v3924_v48 = vpop.f32.mrf.mxu2  ;;  %v3550_v52 = vpop.f32.mrf.mxu0 }
0x11c2   : > { %3947 = vrot.lane.b32.xlu2 %v3924_v48, %s10834_s10 }
0x11c9   : > { %v3797_v44 = vpop.f32.mrf.mxu0 }
0x11ca   : > { %3937 = vrot.lane.b32.xlu1 %v3797_v44, %s10833_s9 }
0x11d1   : > { %v3800_v53 = vpop.f32.mrf.mxu0 }
0x11d2   : > { %3931 = vrot.lane.b32.xlu1 %v3676_v47, %s10832_s7  ;;  %3939 = vrot.lane.b32.xlu0 %v3800_v53, %s10833_s9 }
0x11fc   : > { %3274 = vadd.xlane.f32.xlu1 %v3273_v62  ;;  %v4049_v62 = vld [vmem:[#allocation22 + $0x10] sm:$0xff] }
0x1214   : > { %v3946_v6 = vpop.permute.xlu2 %3945 }
0x121c   : > { %v3948_v10 = vpop.permute.xlu2 %3947 }
0x123c   : > { %v3938_v7 = vpop.permute.xlu1 %3937 }
0x123d   : > { %v3953_v2 = vsel %vm2538_vm4, %v3951_v5, %v3938_v7 }
0x123e   : > { %v3955_v36 = vsel %vm2540_vm5, %v3953_v2, %v3946_v6 }
0x123f   : > { %7101 = vmatmul.msk.f32.vlgmr.msra.gmra.mxu3 %vm2065_vm0, %v3955_v36 }
0x1244   : > { %v3932_v58 = vpop.permute.xlu1 %3931  ;;  %v3940_v8 = vpop.permute.xlu0 %3939 }
0x1245   : > { %v3952_v9 = vsel %vm2212_vm1, %v3550_v52, %v3932_v58 }
0x1246   : > { %v3954_v60 = vsel %vm2538_vm4, %v3952_v9, %v3940_v8 }
0x1247   : > { %v3956_v11 = vsel %vm2540_vm5, %v3954_v60, %v3948_v10 }
0x1248   : > { %7102 = vmatmul.msk.f32.gmra.mxu3 %vm2065_vm0, %v3956_v11  ;;  %v7549_v11 = vld [vmem:[#allocation19] ss:$0 sm:$0xff] }
0x126f   : > { %v3275_v12 = vpop.xlane.xlu1 %3274 }
0x1270   : > { %v3276_v13 = vmul.f32 %v3275_v12, %v9652_v24 }
0x1272   : > { %v3277_v14 = vsub.f32 %v3268_v57, %v3276_v13  ;;  %v4050_v57 = vld [vmem:[#allocation22 + $0x18] sm:$0xff] }
0x1273   : > { %4073 = vmatpush.msra.mxu0 %v4050_v57  ;;  %v7555_v57 = vld [vmem:[#allocation30] ss:$0 sm:$0xff] }
0x1274   : > { %v3278_v15 = vmul.f32 %v3277_v14, %v3277_v14 }
0x1275   : > { %4074 = vmatpush.msra.mxu0 %v4049_v62 }
0x1276   : > { %v3279_v16 = vsel %vm2065_vm0, %v3278_v15, 0.0 }
0x1277   : > { %3280 = vadd.xlane.f32.xlu0 %v3279_v16  ;;  %4075 = vmatpush.msra.mxu0 %v4048_v63  ;;  %v7550_v16 = vld [vmem:[#allocation21] ss:$0 sm:$0xff] }
0x1279   : > { %4076 = vmatpush.msra.mxu0 %v4047_v1 }
0x12c2   : > { %v3983_v23 = vpop.f32.mrf.mxu3 }
0x12c3   : > { %v3984_v25 = vadd.f32 %v7546_v21, %v3983_v23 }
0x12c5   : > { %v3989_v26 = vadd.f32 %v3984_v25, %v9753_v18 }
0x12c7   : > { %v3993_v19 = vsel %vm2065_vm0, %v3989_v26, 0.0 }
0x12c8   : > { %3994 = vadd.xlane.f32.xlu1 %v3993_v19 }
0x12cb   : > { %v3986_v22 = vpop.f32.mrf.mxu3 }
0x12cc   : > { %v3987_v17 = vadd.f32 %v7546_v21, %v3986_v22 }
0x12ce   : > { %v3990_v27 = vadd.f32 %v3987_v17, %v9759_v20 }
0x12d0   : > { %v3996_v28 = vsel %vm2065_vm0, %v3990_v27, 0.0 }
0x12d1   : > { %3997 = vadd.xlane.f32.xlu0 %v3996_v28 }
0x12ea   : > { %v3281_v54 = vpop.xlane.xlu0 %3280 }
0x12eb   : > { %v3282_v59 = vmul.f32 %v3281_v54, %v9652_v24  ;;  %v4087_v54 = vld [vmem:[#allocation25 + $0x18] sm:$0xff] }
0x12ec   : > { %4107 = vmatpush.msra.mxu1 %v4087_v54 }
0x12ed   : > { %v3283_v29 = vadd.f32 1e-05, %v3282_v59  ;;  %v4118_v59 = vld [vmem:[#allocation28 + $0x18] sm:$0xff] }
0x12ee   : > { %4135 = vmatpush.msrb.mxu2 %v4118_v59 }
0x12ef   : > { %7654 = vrsqrt.f32 %v3283_v29  ;;  %vm3290_vm11 = vweird.f32 %v3283_v29 }
0x12f5   : > { %v7655_v49 = vpop.eup %7654 }
0x12f6   : > { %v3285_v30 = vmul.f32 %v7655_v49, %v3283_v29  ;;  %vm3291_vm9 = vweird.f32 %v7655_v49  ;;  %v4086_v29 = vld [vmem:[#allocation25 + $0x10] sm:$0xff] }
0x12f7   : > { %vm3292_vm12 = vmor %vm3290_vm11, %vm3291_vm9  ;;  %4108 = vmatpush.msra.mxu1 %v4086_v29 }
0x12f8   : > { %v3286_v55 = vmul.f32 %v7655_v49, %v3285_v30  ;;  %v4085_v30 = vld [vmem:[#allocation25 + $0x8] sm:$0xff] }
0x12f9   : > { %4109 = vmatpush.msra.mxu1 %v4085_v30 }
0x12fa   : > { %v3287_v0 = vmul.f32 0.5, %v3286_v55  ;;  %v4116_v55 = vld [vmem:[#allocation28 + $0x8] sm:$0xff] }
0x12fc   : > { %v3288_v18 = vsub.f32 1.5, %v3287_v0  ;;  %v4084_v0 = vld [vmem:[#allocation25] sm:$0xff] }
0x12fd   : > { %4110 = vmatpush.msra.mxu1 %v4084_v0 }
0x12fe   : > { %v3289_v32 = vmul.f32 %v7655_v49, %v3288_v18  ;;  %v4115_v18 = vld [vmem:[#allocation28] sm:$0xff] }
0x1300   : > { %v3293_v34 = vsel %vm3292_vm12, %v7655_v49, %v3289_v32  ;;  %v4117_v49 = vld [vmem:[#allocation28 + $0x10] sm:$0xff] }
0x1301   : > { %v3294_v20 = vmul.f32 %v3293_v34, %v3277_v14  ;;  %4136 = vmatpush.msrb.mxu2 %v4117_v49 }
0x1303   : > { %v3298_v39 = vmul.f32 %v7547_v33, %v3294_v20  ;;  %4137 = vmatpush.msrb.mxu2 %v4116_v55 }
0x1305   : > { %v3302_v40 = vadd.f32 %v7548_v37, %v3298_v39  ;;  %4138 = vmatpush.msrb.mxu2 %v4115_v18 }
0x1307   : > { %v3305_v41 = vsel %vm2065_vm0, %v3302_v40, 0.0 }
0x1308   : > { %3306 = vadd.xlane.f32.xlu2 %v3305_v41 }
0x133b   : > { %v3995_v31 = vpop.xlane.xlu1 %3994 }
0x133c   : > { %v3999_v38 = vmul.f32 %v3995_v31, %v9652_v24 }
0x133e   : > { %v4001_v42 = vsub.f32 %v3989_v26, %v3999_v38  ;;  %v7551_v38 = vld [vmem:[%s10835_s1] ss:$0 sm:$0xff] }
0x1340   : > { %v4003_v43 = vmul.f32 %v4001_v42, %v4001_v42 }
0x1342   : > { %v4005_v45 = vsel %vm2065_vm0, %v4003_v43, 0.0 }
0x1343   : > { %4006 = vadd.xlane.f32.xlu1 %v4005_v45  ;;  %v7552_v45 = vld [vmem:[%s10836_s4] ss:$0 sm:$0xff]  ;;  %s10839_s4 = sld [smem:[#allocation103_spill]] }
0x1344   : > { %v3998_v46 = vpop.xlane.xlu0 %3997 }
0x1345   : > { %v4000_v47 = vmul.f32 %v3998_v46, %v9652_v24 }
0x1347   : > { %v4002_v50 = vsub.f32 %v3990_v27, %v4000_v47 }
0x1349   : > { %v4004_v51 = vmul.f32 %v4002_v50, %v4002_v50 }
0x134b   : > { %v4008_v48 = vsel %vm2065_vm0, %v4004_v51, 0.0 }
0x134c   : > { %4009 = vadd.xlane.f32.xlu0 %v4008_v48 }
0x137b   : > { %v3307_v52 = vpop.xlane.xlu2 %3306 }
0x137c   : > { %v3308_v44 = vmul.f32 %v3307_v52, %v9652_v24 }
0x137e   : > { %v9986_v53 = vsub.f32 %v3302_v40, %v3308_v44 }
0x1380   : > { %v3310_v61 = vmul.f32 %v9986_v53, %v9986_v53 }
0x1382   : > { %v3311_v56 = vsel %vm2065_vm0, %v3310_v61, 0.0 }
0x1383   : > { %3312 = vadd.xlane.f32.xlu2 %v3311_v56 }
0x13b6   : > { %v4007_v3 = vpop.xlane.xlu1 %4006 }
0x13b7   : > { %v4011_v4 = vmul.f32 %v4007_v3, %v9652_v24 }
0x13b9   : > { %v4013_v35 = vadd.f32 1e-05, %v4011_v4 }
0x13bb   : > { %7656 = vrsqrt.f32 %v4013_v35  ;;  %vm4021_vm14 = vweird.f32 %v4013_v35 }
0x13bf   : > { %v4010_v5 = vpop.xlane.xlu0 %4009 }
0x13c0   : > { %v4012_v6 = vmul.f32 %v4010_v5, %v9652_v24 }
0x13c1   : > { %v7657_v7 = vpop.eup %7656 }
0x13c2   : > { %v4016_v2 = vmul.f32 %v7657_v7, %v4013_v35  ;;  %v4014_v36 = vadd.f32 1e-05, %v4012_v6  ;;  %vm4022_vm13 = vweird.f32 %v7657_v7 }
0x13c3   : > { %vm4023_vm15 = vmor %vm4021_vm14, %vm4022_vm13 }
0x13c4   : > { %v4017_v58 = vmul.f32 %v7657_v7, %v4016_v2  ;;  %7658 = vrsqrt.f32 %v4014_v36  ;;  %vm4031_vm3 = vweird.f32 %v4014_v36 }
0x13c6   : > { %v4018_v8 = vmul.f32 0.5, %v4017_v58 }
0x13c8   : > { %v4019_v9 = vsub.f32 1.5, %v4018_v8 }
0x13ca   : > { %v7659_v10 = vpop.eup %7658  ;;  %v4020_v60 = vmul.f32 %v7657_v7, %v4019_v9 }
0x13cb   : > { %v4026_v12 = vmul.f32 %v7659_v10, %v4014_v36  ;;  %vm4032_vm2 = vweird.f32 %v7659_v10 }
0x13cc   : > { %v4024_v13 = vsel %vm4023_vm15, %v7657_v7, %v4020_v60  ;;  %vm4033_vm6 = vmor %vm4031_vm3, %vm4032_vm2 }
0x13cd   : > { %v4035_v14 = vmul.f32 %v4024_v13, %v4001_v42  ;;  %v4027_v15 = vmul.f32 %v7659_v10, %v4026_v12 }
0x13cf   : > { %v4040_v21 = vmul.f32 %v7549_v11, %v4035_v14  ;;  %v4028_v23 = vmul.f32 0.5, %v4027_v15 }
0x13d1   : > { %v4029_v25 = vsub.f32 1.5, %v4028_v23  ;;  %v9993_v26 = vadd.f32 %v7550_v16, %v4040_v21 }
0x13d3   : > { %v4030_v19 = vmul.f32 %v7659_v10, %v4029_v25  ;;  %7103 = vmatmul.msk.f32.vlgmr.msra.gmra.mxu0 %vm2065_vm0, %v9993_v26 }
0x13d5   : > { %v4034_v22 = vsel %vm4033_vm6, %v7659_v10, %v4030_v19 }
0x13d6   : > { %v4036_v17 = vmul.f32 %v4034_v22, %v4002_v50  ;;  %v7553_v50 = vld [vmem:[#allocation24] ss:$0 sm:$0xff] }
0x13d8   : > { %v4041_v27 = vmul.f32 %v7549_v11, %v4036_v17 }
0x13da   : > { %v9997_v28 = vadd.f32 %v7550_v16, %v4041_v27 }
0x13dc   : > { %7104 = vmatmul.msk.f32.gmra.mxu0 %vm2065_vm0, %v9997_v28 }
0x13f6   : > { %v3313_v32 = vpop.xlane.xlu2 %3312 }
0x13f7   : > { %v3314_v33 = vmul.f32 %v3313_v32, %v9652_v24 }
0x13f9   : > { %v3315_v34 = vadd.f32 1e-05, %v3314_v33 }
0x13fb   : > { %7660 = vrsqrt.f32 %v3315_v34  ;;  %vm3322_vm8 = vweird.f32 %v3315_v34 }
0x1401   : > { %v7661_v20 = vpop.eup %7660 }
0x1402   : > { %v3317_v37 = vmul.f32 %v7661_v20, %v3315_v34  ;;  %vm3323_vm7 = vweird.f32 %v7661_v20 }
0x1403   : > { %vm3324_vm9 = vmor %vm3322_vm8, %vm3323_vm7 }
0x1404   : > { %v3318_v39 = vmul.f32 %v7661_v20, %v3317_v37 }
0x1406   : > { %v3319_v40 = vmul.f32 0.5, %v3318_v39 }
0x1408   : > { %v3320_v41 = vsub.f32 1.5, %v3319_v40 }
0x140a   : > { %v3321_v31 = vmul.f32 %v7661_v20, %v3320_v41 }
0x140c   : > { %v3325_v42 = vsel %vm3324_vm9, %v7661_v20, %v3321_v31 }
0x140d   : > { %v3326_v43 = vmul.f32 %v3325_v42, %v9986_v53  ;;  %v7554_v53 = vld [vmem:[#allocation27] ss:$0 sm:$0xff] }
0x140f   : > { %v3330_v46 = vmul.f32 %v7551_v38, %v3326_v43 }
0x1411   : > { %v10005_v47 = vadd.f32 %v7552_v45, %v3330_v46 }
0x1413   : > { %7105 = vmatmul.msk.f32.vlgmr.msra.gmra.mxu1 %vm2065_vm0, %v10005_v47  ;;  %7106 = vmatmul.msk.f32.vlgmr.msrb.gmra.mxu2 %vm2065_vm0, %v10005_v47 }
0x1450   : > { %v4078_v51 = vpop.f32.mrf.mxu0 }
0x1451   : > { %v4079_v48 = vadd.f32 %v7553_v50, %v4078_v51 }
0x1453   : > { %4259 = vrot.lane.b32.xlu1 %v4079_v48, %s10828_s3 }
0x1459   : > { %v4081_v52 = vpop.f32.mrf.mxu0 }
0x145a   : > { %v4082_v44 = vadd.f32 %v7553_v50, %v4081_v52 }
0x145b   : > { %4377 = vrot.lane.b32.xlu1 %v4079_v48, %s10829_s5 }
0x1463   : > { %4496 = vrot.lane.b32.xlu1 %v4082_v44, %s10830_s6 }
0x1490   : > { %v4112_v61 = vpop.f32.mrf.mxu1 }
0x1491   : > { %v4113_v56 = vadd.f32 %v7554_v53, %v4112_v61 }
0x1493   : > { %4381 = vrot.lane.b32.xlu0 %v4113_v56, %s10829_s5  ;;  %4263 = vrot.lane.b32.xlu2 %v4113_v56, %s10828_s3 }
0x1494   : > { %7107 = vmatpush.xpose.msk.msrb.mxu1 %vm2212_vm1, %v4113_v56 }
0x1496   : > { %v4140_v62 = vpop.f32.mrf.mxu2 }
0x1497   : > { %v10017_v63 = vadd.f32 %v7555_v57, %v4140_v62  ;;  %7108 = vmatmul.msk.f32.vlgmr.msrb.gmra.mxu1 %vm2212_vm1, %v4079_v48 }
0x1499   : > { %4251 = vmatpush.msra.mxu2 %v10017_v63 }
0x149b   : > { %4261 = vrot.lane.b32.xlu0 %v4082_v44, %s10828_s3  ;;  %4498 = vrot.lane.b32.xlu2 %v4113_v56, %s10830_s6 }
0x149f   : > { %7109 = vmatmul.msk.f32.gmra.mxu1 %vm2212_vm1, %v4082_v44 }
0x14a3   : > { %4494 = vrot.lane.b32.xlu0 %v4079_v48, %s10830_s6  ;;  %4379 = vrot.lane.b32.xlu2 %v4082_v44, %s10829_s5 }
0x14c5   : > { %v4260_v3 = vpop.permute.xlu1 %4259 }
0x14cd   : > { %v4378_v5 = vpop.permute.xlu1 %4377 }
0x14d5   : > { %v4497_v10 = vpop.permute.xlu1 %4496 }
0x14ed   : > { %v4264_v1 = vpop.permute.xlu2 %4263 }
0x14ee   : > { %7112 = vmatpush.xpose.msk.msrb.mxu3 %vm2212_vm1, %v4264_v1 }
0x14f1   : > { %7113 = vmatmul.msk.f32.vlgmr.msrb.gmra.mxu3 %vm2212_vm1, %v4260_v3 }
0x14f5   : > { %v4499_v4 = vpop.permute.xlu2 %4498 }
0x14f6   : > { %7122 = vmatpush.xpose.msk.msra.mxu3 %vm2212_vm1, %v4499_v4 }
0x14fd   : > { %v4380_v7 = vpop.permute.xlu2 %4379 }
0x1505   : > { %v4382_v35 = vpop.permute.xlu0 %4381 }
0x1506   : > { %7117 = vmatpush.xpose.msk.msra.mxu1 %vm2212_vm1, %v4382_v35 }
0x1509   : > { %7118 = vmatmul.msk.f32.vlgmr.msra.gmra.mxu1 %vm2212_vm1, %v4378_v5 }
0x150d   : > { %v4262_v6 = vpop.permute.xlu0 %4261 }
0x150e   : > { %7114 = vmatmul.msk.f32.gmra.mxu3 %vm2212_vm1, %v4262_v6 }
0x1511   : > { %7119 = vmatmul.msk.f32.gmra.mxu1 %vm2212_vm1, %v4380_v7 }
0x1514   : > { %v4174_v2 = vpop.f32.mrf.mxu1 }
0x1515   : > { %v4180_v36 = vmul.f32 0.35355338, %v4174_v2  ;;  %v4495_v58 = vpop.permute.xlu0 %4494 }
0x1516   : > { %7123 = vmatmul.msk.f32.vlgmr.msra.gmra.mxu3 %vm2212_vm1, %v4495_v58 }
0x1517   : > { %v4182_v8 = vsel %vm2212_vm1, %v4180_v36, -inf }
0x1518   : > { %4183 = vmax.xlane.f32.xlu0 %v4182_v8 }
0x151c   : > { %v4177_v9 = vpop.f32.mrf.mxu1 }
0x151d   : > { %v4181_v60 = vmul.f32 0.35355338, %v4177_v9 }
0x151e   : > { %7124 = vmatmul.msk.f32.gmra.mxu3 %vm2212_vm1, %v4497_v10 }
0x151f   : > { %v4185_v11 = vsel %vm2212_vm1, %v4181_v60, -inf }
0x1520   : > { %4186 = vmax.xlane.f32.xlu1 %v4185_v11 }
0x1574   : > { %v4288_v12 = vpop.f32.mrf.mxu3 }
0x1575   : > { %v4294_v13 = vmul.f32 0.35355338, %v4288_v12 }
0x1577   : > { %v4296_v14 = vsel %vm2212_vm1, %v4294_v13, -inf }
0x1578   : > { %4297 = vmax.xlane.f32.xlu2 %v4296_v14 }
0x1586   : > { %v4406_v15 = vpop.f32.mrf.mxu1 }
0x1587   : > { %v4412_v16 = vmul.f32 0.35355338, %v4406_v15 }
0x1589   : > { %v4414_v21 = vsel %vm2212_vm1, %v4412_v16, -inf }
0x158a   : > { %4415 = vmax.xlane.f32.xlu0 %v4414_v21 }
0x158b   : > { %v4184_v23 = vpop.xlane.xlu0 %4183 }
0x158c   : > { %v4188_v22 = vsub.f32 %v4180_v36, %v4184_v23 }
0x158e   : > { %v4409_v27 = vpop.f32.mrf.mxu1  ;;  %v4190_v54 = vmul.f32 1.442695, %v4188_v22 }
0x158f   : > { %v4413_v59 = vmul.f32 0.35355338, %v4409_v27 }
0x1590   : > { %7662 = vpow2.f32 %v4190_v54 }
0x1591   : > { %v4291_v25 = vpop.f32.mrf.mxu3  ;;  %v4417_v0 = vsel %vm2212_vm1, %v4413_v59, -inf }
0x1592   : > { %v4295_v19 = vmul.f32 0.35355338, %v4291_v25 }
0x1593   : > { %v4187_v29 = vpop.xlane.xlu1 %4186 }
0x1594   : > { %v4299_v17 = vsel %vm2212_vm1, %v4295_v19, -inf  ;;  %v4189_v55 = vsub.f32 %v4181_v60, %v4187_v29 }
0x1595   : > { %4300 = vmax.xlane.f32.xlu2 %v4299_v17 }
0x1596   : > { %v4192_v32 = vmul.f32 1.442695, %v4189_v55  ;;  %v10042_v33 = vpop.eup %7662 }
0x1597   : > { %v4194_v39 = vsel %vm2212_vm1, %v10042_v33, 0.0 }
0x1598   : > { %7664 = vpow2.f32 %v4192_v32 }
0x1599   : > { %v4523_v49 = vpop.f32.mrf.mxu3 }
0x159a   : > { %v4529_v30 = vmul.f32 0.35355338, %v4523_v49 }
0x159c   : > { %v4531_v18 = vsel %vm2212_vm1, %v4529_v30, -inf }
0x159d   : > { %4418 = vmax.xlane.f32.xlu2 %v4417_v0  ;;  %4532 = vmax.xlane.f32.xlu1 %v4531_v18 }
0x159e   : > { %v10047_v40 = vpop.eup %7664 }
0x159f   : > { %v4197_v41 = vsel %vm2212_vm1, %v10047_v40, 0.0 }
0x15a1   : > { %v4526_v34 = vpop.f32.mrf.mxu3 }
0x15a2   : > { %v4530_v20 = vmul.f32 0.35355338, %v4526_v34 }
0x15a4   : > { %v4534_v37 = vsel %vm2212_vm1, %v4530_v20, -inf }
0x15a5   : > { %4535 = vmax.xlane.f32.xlu0 %v4534_v37  ;;  %4195 = vadd.xlane.f32.xlu1 %v4194_v39 }
0x15ad   : > { %4198 = vadd.xlane.f32.xlu0 %v4197_v41 }
0x15eb   : > { %v4298_v31 = vpop.xlane.xlu2 %4297 }
0x15ec   : > { %v4302_v43 = vsub.f32 %v4294_v13, %v4298_v31 }
0x15ee   : > { %v4304_v46 = vmul.f32 1.442695, %v4302_v43 }
0x15fd   : > { %v4416_v38 = vpop.xlane.xlu0 %4415 }
0x15fe   : > { %v4420_v42 = vsub.f32 %v4412_v16, %v4416_v38 }
0x1600   : > { %v4422_v45 = vmul.f32 1.442695, %v4420_v42 }
0x1602   : > { %7666 = vpow2.f32 %v4422_v45 }
0x1603   : > { %7668 = vpow2.f32 %v4304_v46 }
0x1608   : > { %v10051_v50 = vpop.eup %7666  ;;  %v4301_v51 = vpop.xlane.xlu2 %4300 }
0x1609   : > { %v4426_v48 = vsel %vm2212_vm1, %v10051_v50, 0.0  ;;  %v10055_v52 = vpop.eup %7668  ;;  %v4303_v62 = vsub.f32 %v4295_v19, %v4301_v51 }
0x160a   : > { %4427 = vadd.xlane.f32.xlu2 %v4426_v48  ;;  %v4308_v57 = vsel %vm2212_vm1, %v10055_v52, 0.0 }
0x160b   : > { %v4306_v4 = vmul.f32 1.442695, %v4303_v62 }
0x1610   : > { %v4419_v44 = vpop.xlane.xlu2 %4418  ;;  %v4533_v53 = vpop.xlane.xlu1 %4532 }
0x1611   : > { %v4421_v61 = vsub.f32 %v4413_v59, %v4419_v44  ;;  %v4537_v56 = vsub.f32 %v4529_v30, %v4533_v53 }
0x1612   : > { %4309 = vadd.xlane.f32.xlu2 %v4308_v57 }
0x1613   : > { %v4424_v1 = vmul.f32 1.442695, %v4421_v61  ;;  %v4539_v3 = vmul.f32 1.442695, %v4537_v56 }
0x1615   : > { %7670 = vpow2.f32 %v4424_v1 }
0x1616   : > { %7672 = vpow2.f32 %v4539_v3 }
0x1618   : > { %v4536_v35 = vpop.xlane.xlu0 %4535  ;;  %v4196_v5 = vpop.xlane.xlu1 %4195 }
0x1619   : > { %v4538_v6 = vsub.f32 %v4530_v20, %v4536_v35  ;;  %7674 = vrcp.f32 %v4196_v5  ;;  %v4211_v14 = vand.u32 2147483648, %v4196_v5  ;;  %v4209_v21 = vand.u32 2147483647, %v4196_v5 }
0x161a   : > { %7676 = vpow2.f32 %v4306_v4  ;;  %vm4205_vm12 = vweird.f32 %v4196_v5 }
0x161b   : > { %v10059_v7 = vpop.eup %7670  ;;  %v4541_v2 = vmul.f32 1.442695, %v4538_v6  ;;  %v4212_v22 = vor.u32 1.1754944e-38, %v4211_v14  ;;  %vm4210_vm14 = vcmp.eq.f32.partialorder %v4209_v21, 8.507059e+37 }
0x161c   : > { %v10061_v36 = vpop.eup %7672  ;;  %v4429_v58 = vsel %vm2212_vm1, %v10059_v7, 0.0 }
0x161d   : > { %7678 = vpow2.f32 %v4541_v2  ;;  %4430 = vadd.xlane.f32.xlu1 %v4429_v58  ;;  %v4543_v8 = vsel %vm2212_vm1, %v10061_v36, 0.0 }
0x161e   : > { %4544 = vadd.xlane.f32.xlu0 %v4543_v8 }
0x161f   : > { %v7675_v9 = vpop.eup %7674 }
0x1620   : > { %v10067_v10 = vpop.eup %7676  ;;  %v4201_v60 = vmul.f32 %v7675_v9, %v4196_v5  ;;  %v4199_v11 = vpop.xlane.xlu0 %4198  ;;  %vm4206_vm11 = vweird.f32 %v7675_v9 }
0x1621   : > { %7680 = vrcp.f32 %v4199_v11  ;;  %v4311_v15 = vsel %vm2212_vm1, %v10067_v10, 0.0  ;;  %vm4207_vm13 = vmor %vm4205_vm12, %vm4206_vm11  ;;  %v4226_v49 = vand.u32 2147483648, %v4199_v11  ;;  %v4224_v55 = vand.u32 2147483647, %v4199_v11 }
0x1622   : > { %v4202_v12 = vsub.f32 1.0, %v4201_v60  ;;  %vm4220_vm2 = vweird.f32 %v4199_v11 }
0x1623   : > { %v10069_v13 = vpop.eup %7678  ;;  %v4227_v18 = vor.u32 1.1754944e-38, %v4226_v49  ;;  %vm4225_vm6 = vcmp.eq.f32.partialorder %v4224_v55, 8.507059e+37 }
0x1624   : > { %v4203_v16 = vmul.f32 %v7675_v9, %v4202_v12  ;;  %v4546_v23 = vsel %vm2212_vm1, %v10069_v13, 0.0 }
0x1625   : > { %4312 = vadd.xlane.f32.xlu1 %v4311_v15 }
0x1626   : > { %v4204_v25 = vadd.f32 %v7675_v9, %v4203_v16  ;;  %4547 = vadd.xlane.f32.xlu0 %v4546_v23 }
0x1627   : > { %v7681_v19 = vpop.eup %7680 }
0x1628   : > { %v4208_v17 = vsel %vm4207_vm13, %v7675_v9, %v4204_v25  ;;  %v4216_v27 = vmul.f32 %v7681_v19, %v4199_v11  ;;  %vm4221_vm15 = vweird.f32 %v7681_v19 }
0x1629   : > { %v4213_v54 = vsel %vm4210_vm14, %v4212_v22, %v4208_v17  ;;  %vm4222_vm3 = vmor %vm4220_vm2, %vm4221_vm15 }
0x162a   : > { %v4217_v59 = vsub.f32 1.0, %v4216_v27  ;;  %4345 = vrot.lane.b32.xlu2 %v10017_v63, %s10828_s3  ;;  %v4214_v29 = vmul.f32 %v10042_v33, %v4213_v54 }
0x162c   : > { %v4218_v30 = vmul.f32 %v7681_v19, %v4217_v59  ;;  %7110 = vmatmul.msk.f32.vlgmr.msra.gmra.mxu2 %vm2212_vm1, %v4214_v29 }
0x162e   : > { %v4219_v0 = vadd.f32 %v7681_v19, %v4218_v30 }
0x1630   : > { %v4223_v32 = vsel %vm4222_vm3, %v7681_v19, %v4219_v0 }
0x1631   : > { %v4228_v34 = vsel %vm4225_vm6, %v4227_v18, %v4223_v32 }
0x1632   : > { %v4229_v20 = vmul.f32 %v10047_v40, %v4228_v34 }
0x1634   : > { %7111 = vmatmul.msk.f32.gmra.mxu2 %vm2212_vm1, %v4229_v20 }
0x163a   : > { %4579 = vrot.lane.b32.xlu0 %v10017_v63, %s10830_s6 }
0x163e   : > { %4462 = vrot.lane.b32.xlu1 %v10017_v63, %s10829_s5 }
0x167d   : > { %v10085_v33 = vpop.xlane.xlu2 %4427 }
0x167e   : > { %v4443_v21 = vand.u32 2147483648, %v10085_v33  ;;  %vm4437_vm15 = vweird.f32 %v10085_v33  ;;  %v4441_v19 = vand.u32 2147483647, %v10085_v33 }
0x1680   : > { %v4444_v49 = vor.u32 1.1754944e-38, %v4443_v21 }
0x1685   : > { %v4310_v37 = vpop.xlane.xlu2 %4309 }
0x1686   : > { %7682 = vrcp.f32 %v4310_v37  ;;  %v4325_v40 = vand.u32 2147483648, %v4310_v37  ;;  %v4323_v45 = vand.u32 2147483647, %v4310_v37  ;;  %vm4319_vm8 = vweird.f32 %v4310_v37 }
0x1687   : > { %7684 = vrcp.f32 %v10085_v33 }
0x1688   : > { %v4326_v51 = vor.u32 1.1754944e-38, %v4325_v40  ;;  %vm4324_vm11 = vcmp.eq.f32.partialorder %v4323_v45, 8.507059e+37 }
0x168c   : > { %v7683_v39 = vpop.eup %7682 }
0x168d   : > { %v4315_v41 = vmul.f32 %v7683_v39, %v4310_v37  ;;  %v4346_v31 = vpop.permute.xlu2 %4345  ;;  %vm4320_vm7 = vweird.f32 %v7683_v39  ;;  %v7685_v44 = vpop.eup %7684 }
0x168e   : > { %4369 = vmatpush.msrb.mxu0 %v4346_v31  ;;  %vm4321_vm9 = vmor %vm4319_vm8, %vm4320_vm7  ;;  %v4433_v62 = vmul.f32 %v7685_v44, %v10085_v33  ;;  %vm4438_vm13 = vweird.f32 %v7685_v44 }
0x168f   : > { %v4316_v38 = vsub.f32 1.0, %v4315_v41  ;;  %vm10112_vm6 = vmor %vm4437_vm15, %vm4438_vm13 }
0x1690   : > { %v10088_v42 = vpop.xlane.xlu1 %4430  ;;  %v4434_v4 = vsub.f32 1.0, %v4433_v62 }
0x1691   : > { %v4317_v43 = vmul.f32 %v7683_v39, %v4316_v38  ;;  %v10090_v46 = vpop.xlane.xlu0 %4544 }
0x1692   : > { %7686 = vrcp.f32 %v10090_v46  ;;  %v4435_v58 = vmul.f32 %v7685_v44, %v4434_v4  ;;  %v4560_v30 = vand.u32 2147483648, %v10090_v46  ;;  %vm4554_vm8 = vweird.f32 %v10090_v46 }
0x1693   : > { %v4318_v63 = vadd.f32 %v7683_v39, %v4317_v43  ;;  %7688 = vrcp.f32 %v10088_v42  ;;  %v4558_v0 = vand.u32 2147483647, %v10090_v46  ;;  %v4456_v43 = vand.u32 2147483647, %v10088_v42 }
0x1694   : > { %v4436_v16 = vadd.f32 %v7685_v44, %v4435_v58 }
0x1695   : > { %v4322_v48 = vsel %vm4321_vm9, %v7683_v39, %v4318_v63  ;;  %vm4442_vm9 = vcmp.eq.f32.partialorder %v4441_v19, 8.507059e+37  ;;  %v4561_v39 = vor.u32 1.1754944e-38, %v4560_v30  ;;  %v7556_v19 = vld [vmem:[#allocation33] ss:$0 sm:$0xff] }
0x1696   : > { %v4327_v53 = vsel %vm4324_vm11, %v4326_v51, %v4322_v48  ;;  %v4440_v29 = vsel %vm10112_vm6, %v7685_v44, %v4436_v16 }
0x1697   : > { %v4328_v61 = vmul.f32 %v10055_v52, %v4327_v53  ;;  %v4445_v34 = vsel %vm4442_vm9, %v4444_v49, %v4440_v29 }
0x1698   : > { %v4313_v56 = vpop.xlane.xlu1 %4312  ;;  %v7687_v57 = vpop.eup %7686  ;;  %v4446_v38 = vmul.f32 %v10051_v50, %v4445_v34 }
0x1699   : > { %v10096_v1 = vpop.xlane.xlu0 %4547  ;;  %7690 = vrcp.f32 %v4313_v56  ;;  %7115 = vmatmul.msk.f32.vlgmr.msrb.gmra.mxu0 %vm2212_vm1, %v4328_v61  ;;  %v4550_v3 = vmul.f32 %v7687_v57, %v10090_v46  ;;  %v10101_v35 = vpop.eup %7688  ;;  %v4340_v60 = vand.u32 2147483648, %v4313_v56  ;;  %v4338_v11 = vand.u32 2147483647, %v4313_v56 }
0x169a   : > { %7692 = vrcp.f32 %v10096_v1  ;;  %v4448_v8 = vmul.f32 %v10101_v35, %v10088_v42  ;;  %vm4334_vm14 = vweird.f32 %v4313_v56  ;;  %vm4555_vm2 = vweird.f32 %v7687_v57 }
0x169b   : > { %v4551_v52 = vsub.f32 1.0, %v4550_v3  ;;  %v4341_v22 = vor.u32 1.1754944e-38, %v4340_v60  ;;  %vm4339_vm7 = vcmp.eq.f32.partialorder %v4338_v11, 8.507059e+37  ;;  %vm4556_vm11 = vmor %vm4554_vm8, %vm4555_vm2  ;;  %vm4453_vm13 = vweird.f32 %v10101_v35 }
0x169c   : > { %v4449_v23 = vsub.f32 1.0, %v4448_v8  ;;  %v4575_v46 = vand.u32 2147483648, %v10096_v1  ;;  %v4573_v51 = vand.u32 2147483647, %v10096_v1 }
0x169d   : > { %v4552_v12 = vmul.f32 %v7687_v57, %v4551_v52  ;;  %v4145_v52 = vld [vmem:[#allocation31 + $0x10] sm:$0xff] }
0x169e   : > { %v4450_v18 = vmul.f32 %v10101_v35, %v4449_v23  ;;  %v4576_v44 = vor.u32 1.1754944e-38, %v4575_v46  ;;  %vm4574_vm8 = vcmp.eq.f32.partialorder %v4573_v51, 8.507059e+37  ;;  %v4776_v46 = vld [vmem:[%s10839_s4 + $0x30] sm:$0xff] }
0x169f   : > { %v7691_v5 = vpop.eup %7690  ;;  %v4553_v27 = vadd.f32 %v7687_v57, %v4552_v12 }
0x16a0   : > { %v4330_v6 = vmul.f32 %v7691_v5, %v4313_v56  ;;  %v10103_v2 = vpop.eup %7692  ;;  %vm4335_vm12 = vweird.f32 %v7691_v5  ;;  %v4451_v41 = vadd.f32 %v10101_v35, %v4450_v18 }
0x16a1   : > { %v4565_v14 = vmul.f32 %v10103_v2, %v10096_v1  ;;  %vm4336_vm3 = vmor %vm4334_vm14, %vm4335_vm12  ;;  %v4557_v20 = vsel %vm4556_vm11, %v7687_v57, %v4553_v27  ;;  %vm4559_vm12 = vcmp.eq.f32.partialorder %v4558_v0, 8.507059e+37  ;;  %vm4452_vm14 = vweird.f32 %v10088_v42 }
0x16a2   : > { %v4331_v9 = vsub.f32 1.0, %v4330_v6  ;;  %v4562_v31 = vsel %vm4559_vm12, %v4561_v39, %v4557_v20  ;;  %vm4570_vm15 = vweird.f32 %v10103_v2  ;;  %vm4454_vm2 = vmor %vm4452_vm14, %vm4453_vm13  ;;  %v4144_v6 = vld [vmem:[#allocation31 + $0x8] sm:$0xff]  ;;  %v4734_v39 = vld [vmem:[#allocation37 + $0x18] sm:$0xff] }
0x16a3   : > { %v4566_v54 = vsub.f32 1.0, %v4565_v14  ;;  %v4563_v63 = vmul.f32 %v10061_v36, %v4562_v31  ;;  %v4455_v50 = vsel %vm4454_vm2, %v10101_v35, %v4451_v41  ;;  %v4733_v41 = vld [vmem:[#allocation37 + $0x10] sm:$0xff]  ;;  %v4732_v31 = vld [vmem:[#allocation37 + $0x8] sm:$0xff] }
0x16a4   : > { %v4332_v15 = vmul.f32 %v7691_v5, %v4331_v9 }
0x16a5   : > { %v4567_v33 = vmul.f32 %v10103_v2, %v4566_v54 }
0x16a6   : > { %v4333_v25 = vadd.f32 %v7691_v5, %v4332_v15 }
0x16a7   : > { %v4568_v45 = vadd.f32 %v10103_v2, %v4567_v33 }
0x16a8   : > { %v4337_v59 = vsel %vm4336_vm3, %v7691_v5, %v4333_v25  ;;  %vm4569_vm3 = vweird.f32 %v10096_v1  ;;  %v4146_v5 = vld [vmem:[#allocation31 + $0x18] sm:$0xff] }
0x16a9   : > { %v4342_v55 = vsel %vm4339_vm7, %v4341_v22, %v4337_v59  ;;  %vm4571_vm6 = vmor %vm4569_vm3, %vm4570_vm15  ;;  %vm4457_vm7 = vcmp.eq.f32.partialorder %v4456_v43, 8.507059e+37  ;;  %4662 = vmatpush.msrb.mxu1 %v4146_v5  ;;  %v7558_v5 = vld [vmem:[#allocation36] ss:$0 sm:$0xff] }
0x16aa   : > { %v4343_v32 = vmul.f32 %v10067_v10, %v4342_v55  ;;  %v4458_v10 = vand.u32 2147483648, %v10088_v42  ;;  %v4572_v42 = vsel %vm4571_vm6, %v10103_v2, %v4568_v45  ;;  %v4143_v2 = vld [vmem:[#allocation31] sm:$0xff] }
0x16ab   : > { %v4577_v61 = vsel %vm4574_vm8, %v4576_v44, %v4572_v42  ;;  %4663 = vmatpush.msrb.mxu1 %v4145_v52  ;;  %v4777_v45 = vld [vmem:[%s10839_s4 + $0x38] sm:$0xff] }
0x16ac   : > { %v4580_v37 = vpop.permute.xlu0 %4579  ;;  %7116 = vmatmul.msk.f32.gmra.mxu0 %vm2212_vm1, %v4343_v32  ;;  %v4459_v48 = vor.u32 1.1754944e-38, %v4458_v10  ;;  %v4578_v36 = vmul.f32 %v10069_v13, %v4577_v61  ;;  %v4731_v10 = vld [vmem:[#allocation37] sm:$0xff]  ;;  %4796 = vmatpush.msrb.mxu3 %v4777_v45  ;;  %v7135_v45 = vld [vmem:[%s10831_s2 + $0x30] sm:$0xff] }
0x16ad   : > { %4603 = vmatpush.msra.mxu0 %v4580_v37  ;;  %4664 = vmatpush.msrb.mxu1 %v4144_v6 }
0x16ae   : > { %v4460_v53 = vsel %vm4457_vm7, %v4459_v48, %v4455_v50  ;;  %4797 = vmatpush.msrb.mxu3 %v4776_v46  ;;  %v4774_v48 = vld [vmem:[%s10839_s4 + $0x20] sm:$0xff] }
0x16af   : > { %v4461_v56 = vmul.f32 %v10059_v7, %v4460_v53  ;;  %v4253_v62 = vpop.f32.mrf.mxu2  ;;  %4665 = vmatpush.msrb.mxu1 %v4143_v2  ;;  %v4773_v53 = vld [vmem:[%s10839_s4 + $0x18] sm:$0xff] }
0x16b0   : > { %v4463_v40 = vpop.permute.xlu1 %4462  ;;  %v4911_v46 = vld [vmem:[#allocation10 + $0x30] sm:$0xff] }
0x16b1   : > { %4486 = vmatpush.msrb.mxu2 %v4463_v40 }
0x16b2   : > { %7120 = vmatmul.msk.f32.vlgmr.msrb.gmra.mxu2 %vm2212_vm1, %v4446_v38 }
0x16b3   : > { %4757 = vmatpush.msra.mxu2 %v4734_v39 }
0x16b4   : > { %7125 = vmatmul.msk.f32.vlgmr.msra.gmra.mxu0 %vm2212_vm1, %v4563_v63  ;;  %v4775_v63 = vld [vmem:[%s10839_s4 + $0x28] sm:$0xff] }
0x16b5   : > { %4758 = vmatpush.msra.mxu2 %v4733_v41  ;;  %4798 = vmatpush.msrb.mxu3 %v4775_v63  ;;  %v4944_v63 = vld [vmem:[#allocation13 + $0x30] sm:$0xff] }
0x16b7   : > { %v4256_v3 = vpop.f32.mrf.mxu2  ;;  %4759 = vmatpush.msra.mxu2 %v4732_v31  ;;  %4799 = vmatpush.msrb.mxu3 %v4774_v48  ;;  %v4943_v48 = vld [vmem:[#allocation13 + $0x28] sm:$0xff] }
0x16b9   : > { %4760 = vmatpush.msra.mxu2 %v4731_v10  ;;  %4800 = vmatpush.msrb.mxu3 %v4773_v53  ;;  %v4942_v53 = vld [vmem:[#allocation13 + $0x20] sm:$0xff] }
0x16ba   : > { %7121 = vmatmul.msk.f32.gmra.mxu2 %vm2212_vm1, %v4461_v56 }
0x16bc   : > { %7126 = vmatmul.msk.f32.gmra.mxu0 %vm2212_vm1, %v4578_v36 }
0x1716   : > { %v4371_v57 = vpop.f32.mrf.mxu0 }
0x1717   : > { %4613 = vrot.lane.b32.xlu2 %v4371_v57, %s10832_s7 }
0x1729   : > { %v4374_v1 = vpop.f32.mrf.mxu0 }
0x172a   : > { %4615 = vrot.lane.b32.xlu2 %v4374_v1, %s10832_s7 }
0x1731   : > { %v4605_v4 = vpop.f32.mrf.mxu0 }
0x1732   : > { %4629 = vrot.lane.b32.xlu1 %v4605_v4, %s10834_s10  ;;  %v7557_v4 = vld [vmem:[#allocation34] ss:$0 sm:$0xff] }
0x1735   : > { %v4488_v35 = vpop.f32.mrf.mxu2 }
0x1736   : > { %4621 = vrot.lane.b32.xlu0 %v4488_v35, %s10833_s9 }
0x1739   : > { %v4608_v7 = vpop.f32.mrf.mxu0 }
0x173a   : > { %4631 = vrot.lane.b32.xlu1 %v4608_v7, %s10834_s10 }
0x173d   : > { %v4491_v13 = vpop.f32.mrf.mxu2 }
0x173e   : > { %4623 = vrot.lane.b32.xlu0 %v4491_v13, %s10833_s9 }
0x1771   : > { %v4614_v58 = vpop.permute.xlu2 %4613 }
0x1772   : > { %v4635_v9 = vsel %vm2212_vm1, %v4253_v62, %v4614_v58 }
0x1784   : > { %v4616_v14 = vpop.permute.xlu2 %4615 }
0x1785   : > { %v4636_v15 = vsel %vm2212_vm1, %v4256_v3, %v4616_v14  ;;  %v4772_v14 = vld [vmem:[%s10839_s4 + $0x10] sm:$0xff] }
0x1786   : > { %4801 = vmatpush.msrb.mxu3 %v4772_v14 }
0x17a4   : > { %v4630_v8 = vpop.permute.xlu1 %4629 }
0x17a8   : > { %v4622_v60 = vpop.permute.xlu0 %4621 }
0x17a9   : > { %v4637_v11 = vsel %vm2538_vm4, %v4635_v9, %v4622_v60 }
0x17aa   : > { %v4639_v12 = vsel %vm2540_vm5, %v4637_v11, %v4630_v8 }
0x17ab   : > { %7127 = vmatmul.msk.f32.vlgmr.msrb.gmra.mxu1 %vm2065_vm0, %v4639_v12 }
0x17ac   : > { %v4632_v21 = vpop.permute.xlu1 %4631 }
0x17b0   : > { %v4624_v16 = vpop.permute.xlu0 %4623 }
0x17b1   : > { %v4638_v23 = vsel %vm2538_vm4, %v4636_v15, %v4624_v16  ;;  %v4771_v15 = vld [vmem:[%s10839_s4 + $0x8] sm:$0xff]  ;;  %v4770_v16 = vld [vmem:[%s10839_s4] sm:$0xff] }
0x17b2   : > { %v4640_v25 = vsel %vm2540_vm5, %v4638_v23, %v4632_v21  ;;  %4802 = vmatpush.msrb.mxu3 %v4771_v15  ;;  %v7559_v21 = vld [vmem:[#allocation39] ss:$0 sm:$0xff] }
0x17b3   : > { %7128 = vmatmul.msk.f32.gmra.mxu1 %vm2065_vm0, %v4640_v25 }
0x17b4   : > { %4803 = vmatpush.msrb.mxu3 %v4770_v16 }
0x1828   : > { %v4667_v22 = vpop.f32.mrf.mxu1 }
0x1829   : > { %v4668_v17 = vadd.f32 %v7556_v19, %v4667_v22 }
0x182b   : > { %v4673_v27 = vadd.f32 %v4668_v17, %v9993_v26 }
0x182d   : > { %v4677_v54 = vsel %vm2065_vm0, %v4673_v27, 0.0 }
0x182e   : > { %4678 = vadd.xlane.f32.xlu2 %v4677_v54  ;;  %v7560_v54 = vld [vmem:[#allocation40] ss:$0 sm:$0xff] }
0x1830   : > { %v4670_v59 = vpop.f32.mrf.mxu1 }
0x1831   : > { %v4671_v29 = vadd.f32 %v7556_v19, %v4670_v59 }
0x1833   : > { %v4674_v49 = vadd.f32 %v4671_v29, %v9997_v28 }
0x1835   : > { %v4680_v30 = vsel %vm2065_vm0, %v4674_v49, 0.0 }
0x1836   : > { %4681 = vadd.xlane.f32.xlu0 %v4680_v30 }
0x18a1   : > { %v4679_v55 = vpop.xlane.xlu2 %4678 }
0x18a2   : > { %v4683_v0 = vmul.f32 %v4679_v55, %v9652_v24 }
0x18a4   : > { %v4685_v18 = vsub.f32 %v4673_v27, %v4683_v0 }
0x18a6   : > { %v4687_v32 = vmul.f32 %v4685_v18, %v4685_v18 }
0x18a8   : > { %v4689_v34 = vsel %vm2065_vm0, %v4687_v32, 0.0 }
0x18a9   : > { %4690 = vadd.xlane.f32.xlu1 %v4689_v34  ;;  %v4682_v20 = vpop.xlane.xlu0 %4681 }
0x18aa   : > { %v4684_v26 = vmul.f32 %v4682_v20, %v9652_v24 }
0x18ac   : > { %v4686_v33 = vsub.f32 %v4674_v49, %v4684_v26 }
0x18ae   : > { %v4688_v37 = vmul.f32 %v4686_v33, %v4686_v33 }
0x18b0   : > { %v4692_v28 = vsel %vm2065_vm0, %v4688_v37, 0.0 }
0x18b1   : > { %4693 = vadd.xlane.f32.xlu2 %v4692_v28 }
0x191c   : > { %v4691_v38 = vpop.xlane.xlu1 %4690 }
0x191d   : > { %v4695_v40 = vmul.f32 %v4691_v38, %v9652_v24  ;;  %v7136_v38 = vld [vmem:[%s10831_s2 + $0x38] sm:$0xff] }
0x191e   : > { %4897 = vmatpush.msrb.mxu0 %v7136_v38 }
0x191f   : > { %v4697_v43 = vadd.f32 1e-05, %v4695_v40  ;;  %v4912_v40 = vld [vmem:[#allocation10 + $0x38] sm:$0xff] }
0x1920   : > { %4930 = vmatpush.msra.mxu1 %v4912_v40  ;;  %4898 = vmatpush.msrb.mxu0 %v7135_v45 }
0x1921   : > { %7694 = vrsqrt.f32 %v4697_v43  ;;  %vm4705_vm11 = vweird.f32 %v4697_v43 }
0x1922   : > { %4931 = vmatpush.msra.mxu1 %v4911_v46  ;;  %v5632_v46 = vld [vmem:[#allocation25 + $0x28] sm:$0xff] }
0x1924   : > { %v4694_v50 = vpop.xlane.xlu2 %4693 }
0x1925   : > { %v4696_v51 = vmul.f32 %v4694_v50, %v9652_v24  ;;  %v7134_v50 = vld [vmem:[%s10831_s2 + $0x28] sm:$0xff] }
0x1926   : > { %4899 = vmatpush.msrb.mxu0 %v7134_v50 }
0x1927   : > { %v7695_v42 = vpop.eup %7694  ;;  %v4698_v44 = vadd.f32 1e-05, %v4696_v51  ;;  %v4910_v51 = vld [vmem:[#allocation10 + $0x28] sm:$0xff] }
0x1928   : > { %v4700_v61 = vmul.f32 %v7695_v42, %v4697_v43  ;;  %vm4706_vm9 = vweird.f32 %v7695_v42  ;;  %v4945_v43 = vld [vmem:[#allocation13 + $0x38] sm:$0xff]  ;;  %4932 = vmatpush.msra.mxu1 %v4910_v51 }
0x1929   : > { %7696 = vrsqrt.f32 %v4698_v44  ;;  %vm4707_vm12 = vmor %vm4705_vm11, %vm4706_vm9  ;;  %vm4715_vm14 = vweird.f32 %v4698_v44  ;;  %4963 = vmatpush.msrb.mxu2 %v4945_v43  ;;  %v5633_v43 = vld [vmem:[#allocation25 + $0x30] sm:$0xff] }
0x192a   : > { %v4701_v56 = vmul.f32 %v7695_v42, %v4700_v61 }
0x192b   : > { %4964 = vmatpush.msrb.mxu2 %v4944_v63  ;;  %v5631_v63 = vld [vmem:[#allocation25 + $0x20] sm:$0xff] }
0x192c   : > { %v4702_v36 = vmul.f32 0.5, %v4701_v56 }
0x192d   : > { %4965 = vmatpush.msrb.mxu2 %v4943_v48 }
0x192e   : > { %v4703_v57 = vsub.f32 1.5, %v4702_v36 }
0x192f   : > { %v7697_v62 = vpop.eup %7696  ;;  %4966 = vmatpush.msrb.mxu2 %v4942_v53 }
0x1930   : > { %v4704_v1 = vmul.f32 %v7695_v42, %v4703_v57  ;;  %v4710_v3 = vmul.f32 %v7697_v62, %v4698_v44  ;;  %vm4716_vm13 = vweird.f32 %v7697_v62  ;;  %v4909_v44 = vld [vmem:[#allocation10 + $0x20] sm:$0xff] }
0x1931   : > { %vm4717_vm15 = vmor %vm4715_vm14, %vm4716_vm13  ;;  %4933 = vmatpush.msra.mxu1 %v4909_v44 }
0x1932   : > { %v4708_v35 = vsel %vm4707_vm12, %v7695_v42, %v4704_v1  ;;  %v4711_v7 = vmul.f32 %v7697_v62, %v4710_v3  ;;  %v7133_v42 = vld [vmem:[%s10831_s2 + $0x20] sm:$0xff] }
0x1933   : > { %v4719_v13 = vmul.f32 %v4708_v35, %v4685_v18  ;;  %4900 = vmatpush.msrb.mxu0 %v7133_v42 }
0x1934   : > { %v4712_v52 = vmul.f32 0.5, %v4711_v7 }
0x1935   : > { %v4724_v6 = vmul.f32 %v7557_v4, %v4719_v13 }
0x1936   : > { %v4713_v2 = vsub.f32 1.5, %v4712_v52 }
0x1937   : > { %v4729_v58 = vadd.f32 %v7558_v5, %v4724_v6 }
0x1938   : > { %v4714_v8 = vmul.f32 %v7697_v62, %v4713_v2  ;;  %v7561_v2 = vld [vmem:[#allocation42] ss:$0 sm:$0xff] }
0x1939   : > { %7129 = vmatmul.msk.f32.vlgmr.msra.gmra.mxu2 %vm2065_vm0, %v4729_v58 }
0x193a   : > { %v4718_v9 = vsel %vm4717_vm15, %v7697_v62, %v4714_v8 }
0x193b   : > { %v4720_v60 = vmul.f32 %v4718_v9, %v4686_v33 }
0x193d   : > { %v4725_v11 = vmul.f32 %v7557_v4, %v4720_v60  ;;  %v7562_v60 = vld [vmem:[#allocation43] ss:$0 sm:$0xff] }
0x193f   : > { %v4730_v12 = vadd.f32 %v7558_v5, %v4725_v11 }
0x1941   : > { %7130 = vmatmul.msk.f32.gmra.mxu2 %vm2065_vm0, %v4730_v12 }
0x19bc   : > { %v4762_v23 = vpop.f32.mrf.mxu2 }
0x19bd   : > { %v4763_v25 = vadd.f32 %v7559_v21, %v4762_v23 }
0x19bf   : > { %v4768_v19 = vmax.f32 %v4763_v25, 0.0 }
0x19c1   : > { %7131 = vmatmul.msk.f32.vlgmr.msrb.gmra.mxu3 %vm2652_vm10, %v4768_v19 }
0x19c4   : > { %v4765_v22 = vpop.f32.mrf.mxu2 }
0x19c5   : > { %v4766_v17 = vadd.f32 %v7559_v21, %v4765_v22  ;;  %v7563_v22 = vld [vmem:[#allocation9 + $0x1] ss:$0 sm:$0xff] }
0x19c7   : > { %v4769_v27 = vmax.f32 %v4766_v17, 0.0  ;;  %v7564_v17 = vld [vmem:[#allocation12 + $0x1] ss:$0 sm:$0xff] }
0x19c9   : > { %7132 = vmatmul.msk.f32.gmra.mxu3 %vm2652_vm10, %v4769_v27 }
0x1a44   : > { %v4805_v59 = vpop.f32.mrf.mxu3 }
0x1a45   : > { %v4806_v29 = vadd.f32 %v7560_v54, %v4805_v59 }
0x1a47   : > { %v4811_v49 = vadd.f32 %v4806_v29, %v4729_v58 }
0x1a49   : > { %v4815_v30 = vsel %vm2065_vm0, %v4811_v49, 0.0 }
0x1a4a   : > { %4816 = vadd.xlane.f32.xlu0 %v4815_v30 }
0x1a4c   : > { %v4808_v55 = vpop.f32.mrf.mxu3 }
0x1a4d   : > { %v4809_v0 = vadd.f32 %v7560_v54, %v4808_v55 }
0x1a4f   : > { %v4812_v18 = vadd.f32 %v4809_v0, %v4730_v12  ;;  %v7565_v0 = vld [vmem:[#allocation15 + $0x1] ss:$0 sm:$0xff] }
0x1a51   : > { %v4818_v32 = vsel %vm2065_vm0, %v4812_v18, 0.0 }
0x1a52   : > { %4819 = vadd.xlane.f32.xlu1 %v4818_v32 }
0x1abd   : > { %v4817_v34 = vpop.xlane.xlu0 %4816 }
0x1abe   : > { %v4821_v20 = vmul.f32 %v4817_v34, %v9652_v24 }
0x1ac0   : > { %v4823_v26 = vsub.f32 %v4811_v49, %v4821_v20 }
0x1ac2   : > { %v4825_v33 = vmul.f32 %v4823_v26, %v4823_v26 }
0x1ac4   : > { %v4827_v37 = vsel %vm2065_vm0, %v4825_v33, 0.0 }
0x1ac5   : > { %v4820_v28 = vpop.xlane.xlu1 %4819  ;;  %4828 = vadd.xlane.f32.xlu2 %v4827_v37 }
0x1ac6   : > { %v4822_v39 = vmul.f32 %v4820_v28, %v9652_v24 }
0x1ac8   : > { %v10187_v41 = vsub.f32 %v4812_v18, %v4822_v39 }
0x1aca   : > { %v4826_v31 = vmul.f32 %v10187_v41, %v10187_v41 }
0x1acc   : > { %v4830_v10 = vsel %vm2065_vm0, %v4826_v31, 0.0 }
0x1acd   : > { %4831 = vadd.xlane.f32.xlu0 %v4830_v10  ;;  %v5634_v10 = vld [vmem:[#allocation25 + $0x38] sm:$0xff] }
0x1b38   : > { %v4829_v61 = vpop.xlane.xlu2 %4828 }
0x1b39   : > { %v4833_v56 = vmul.f32 %v4829_v61, %v9652_v24 }
0x1b3b   : > { %v4835_v36 = vadd.f32 1e-05, %v4833_v56 }
0x1b3d   : > { %7698 = vrsqrt.f32 %v4835_v36  ;;  %vm4843_vm3 = vweird.f32 %v4835_v36 }
0x1b40   : > { %v4832_v57 = vpop.xlane.xlu0 %4831 }
0x1b41   : > { %v4834_v62 = vmul.f32 %v4832_v57, %v9652_v24 }
0x1b43   : > { %v7699_v1 = vpop.eup %7698  ;;  %v4836_v3 = vadd.f32 1e-05, %v4834_v62  ;;  %v4978_v62 = vld [vmem:[#allocation16 + $0x38] sm:$0xff] }
0x1b44   : > { %v4838_v4 = vmul.f32 %v7699_v1, %v4835_v36  ;;  %vm4844_vm2 = vweird.f32 %v7699_v1 }
0x1b45   : > { %7700 = vrsqrt.f32 %v4836_v3  ;;  %vm4845_vm6 = vmor %vm4843_vm3, %vm4844_vm2  ;;  %vm4853_vm8 = vweird.f32 %v4836_v3 }
0x1b46   : > { %v4839_v35 = vmul.f32 %v7699_v1, %v4838_v4 }
0x1b48   : > { %v4840_v7 = vmul.f32 0.5, %v4839_v35 }
0x1b4a   : > { %v4841_v13 = vsub.f32 1.5, %v4840_v7 }
0x1b4b   : > { %v7701_v5 = vpop.eup %7700 }
0x1b4c   : > { %v4842_v52 = vmul.f32 %v7699_v1, %v4841_v13  ;;  %v4848_v6 = vmul.f32 %v7701_v5, %v4836_v3  ;;  %vm4854_vm7 = vweird.f32 %v7701_v5  ;;  %v4976_v3 = vld [vmem:[#allocation16 + $0x28] sm:$0xff]  ;;  %v4975_v13 = vld [vmem:[#allocation16 + $0x20] sm:$0xff] }
0x1b4d   : > { %vm4855_vm9 = vmor %vm4853_vm8, %vm4854_vm7 }
0x1b4e   : > { %v4846_v58 = vsel %vm4845_vm6, %v7699_v1, %v4842_v52  ;;  %v4849_v8 = vmul.f32 %v7701_v5, %v4848_v6  ;;  %v4977_v1 = vld [vmem:[#allocation16 + $0x30] sm:$0xff] }
0x1b4f   : > { %v4857_v9 = vmul.f32 %v4846_v58, %v4823_v26 }
0x1b50   : > { %v4850_v11 = vmul.f32 0.5, %v4849_v8 }
0x1b51   : > { %v4862_v12 = vmul.f32 %v7561_v2, %v4857_v9 }
0x1b52   : > { %v4851_v14 = vsub.f32 1.5, %v4850_v11 }
0x1b53   : > { %v10198_v15 = vadd.f32 %v7562_v60, %v4862_v12 }
0x1b54   : > { %v4852_v16 = vmul.f32 %v7701_v5, %v4851_v14 }
0x1b55   : > { %7137 = vmatmul.msk.f32.vlgmr.msrb.gmra.mxu0 %vm2065_vm0, %v10198_v15  ;;  %7139 = vmatmul.msk.f32.vlgmr.msra.gmra.mxu1 %vm2065_vm0, %v10198_v15 }
0x1b56   : > { %v4856_v21 = vsel %vm4855_vm9, %v7701_v5, %v4852_v16  ;;  %7141 = vmatmul.msk.f32.vlgmr.msrb.gmra.mxu2 %vm2065_vm0, %v10198_v15 }
0x1b57   : > { %v4858_v23 = vmul.f32 %v4856_v21, %v10187_v41 }
0x1b59   : > { %v4863_v25 = vmul.f32 %v7561_v2, %v4858_v23 }
0x1b5b   : > { %v10207_v19 = vadd.f32 %v7562_v60, %v4863_v25 }
0x1b5d   : > { %7138 = vmatmul.msk.f32.gmra.mxu0 %vm2065_vm0, %v10207_v19  ;;  %7140 = vmatmul.msk.f32.gmra.mxu1 %vm2065_vm0, %v10207_v19 }
0x1b5e   : > { %7142 = vmatmul.msk.f32.gmra.mxu2 %vm2065_vm0, %v10207_v19 }
0x1bd2   : > { %v4902_v27 = vpop.f32.mrf.mxu0  ;;  %v4935_v54 = vpop.f32.mrf.mxu1 }
0x1bd3   : > { %v4903_v59 = vadd.f32 %v7563_v22, %v4902_v27  ;;  %v4936_v29 = vadd.f32 %v7564_v17, %v4935_v54 }
0x1bd5   : > { %5099 = vrot.lane.b32.xlu2 %v4936_v29, %s10828_s3  ;;  %5095 = vrot.lane.b32.xlu0 %v4903_v59, %s10828_s3 }
0x1bd9   : > { %v4968_v49 = vpop.f32.mrf.mxu2 }
0x1bda   : > { %v4938_v30 = vpop.f32.mrf.mxu1  ;;  %v4969_v32 = vadd.f32 %v7565_v0, %v4968_v49  ;;  %v4905_v26 = vpop.f32.mrf.mxu0 }
0x1bdb   : > { %v4939_v55 = vadd.f32 %v7564_v17, %v4938_v30  ;;  %v4906_v33 = vadd.f32 %v7563_v22, %v4905_v26 }
0x1bdd   : > { %5351 = vrot.lane.b32.xlu0 %v4939_v55, %s10830_s6  ;;  %5227 = vrot.lane.b32.xlu2 %v4939_v55, %s10829_s5 }
0x1bde   : > { %5101 = vrot.lane.b32.xlu1 %v4939_v55, %s10828_s3  ;;  %7143 = vmatpush.xpose.msk.msra.mxu3 %vm2212_vm1, %v4939_v55  ;;  %v7566_v55 = vld [vmem:[#allocation27 + $0x1] ss:$0 sm:$0xff] }
0x1be1   : > { %v4971_v18 = vpop.f32.mrf.mxu2 }
0x1be2   : > { %v4972_v34 = vadd.f32 %v7565_v0, %v4971_v18  ;;  %7144 = vmatpush.xpose.msk.msra.mxu3 %vm2212_vm1, %v4936_v29 }
0x1be4   : > { %5086 = vmatpush.msra.mxu0 %v4972_v34  ;;  %v10222_v20 = vpack.i.bf16 %v4969_v32, %v4972_v34 }
0x1be5   : > { %7145 = vmatmul.msk.f32.vlgmr.msra.gmra.mxu3 %vm2212_vm1, %v4903_v59  ;;  %5221 = vrot.lane.b32.xlu0 %v4903_v59, %s10829_s5 }
0x1be6   : > { %5087 = vmatpush.msra.mxu0 %v4969_v32  ;;  %5349 = vrot.lane.b32.xlu2 %v4936_v29, %s10830_s6 }
0x1be7   : > { %5225 = vrot.lane.b32.xlu1 %v4936_v29, %s10829_s5 }
0x1bed   : > { %7146 = vmatmul.msk.f32.gmra.mxu3 %vm2212_vm1, %v4906_v33  ;;  %5347 = vrot.lane.b32.xlu0 %v4906_v33, %s10830_s6 }
0x1bee   : > { %5223 = vrot.lane.b32.xlu2 %v4906_v33, %s10829_s5 }
0x1bef   : > { %5097 = vrot.lane.b32.xlu1 %v4906_v33, %s10828_s3 }
0x1bf7   : > { %5345 = vrot.lane.b32.xlu1 %v4903_v59, %s10830_s6 }
0x1c2f   : > { %v5100_v37 = vpop.permute.xlu2 %5099 }
0x1c37   : > { %v5228_v28 = vpop.permute.xlu2 %5227 }
0x1c38   : > { %7155 = vmatpush.xpose.msk.msrb.mxu3 %vm2212_vm1, %v5228_v28 }
0x1c40   : > { %v5350_v38 = vpop.permute.xlu2 %5349 }
0x1c47   : > { %v5096_v39 = vpop.permute.xlu0 %5095 }
0x1c48   : > { %v5224_v51 = vpop.permute.xlu2 %5223 }
0x1c4f   : > { %v5352_v31 = vpop.permute.xlu0 %5351 }
0x1c50   : > { %v5102_v41 = vpop.permute.xlu1 %5101 }
0x1c51   : > { %7149 = vmatpush.xpose.msk.msrb.mxu1 %vm2212_vm1, %v5102_v41 }
0x1c55   : > { %7150 = vmatpush.xpose.msk.msrb.mxu1 %vm2212_vm1, %v5100_v37 }
0x1c57   : > { %v5222_v45 = vpop.permute.xlu0 %5221 }
0x1c58   : > { %7151 = vmatmul.msk.f32.vlgmr.msrb.gmra.mxu1 %vm2212_vm1, %v5096_v39 }
0x1c59   : > { %7161 = vmatpush.xpose.msk.msra.mxu1 %vm2212_vm1, %v5352_v31  ;;  %v5226_v40 = vpop.permute.xlu1 %5225 }
0x1c5a   : > { %7156 = vmatpush.xpose.msk.msrb.mxu3 %vm2212_vm1, %v5226_v40 }
0x1c5d   : > { %7162 = vmatpush.xpose.msk.msra.mxu1 %vm2212_vm1, %v5350_v38  ;;  %7157 = vmatmul.msk.f32.vlgmr.msrb.gmra.mxu3 %vm2212_vm1, %v5222_v45 }
0x1c5e   : > { %5520 = vmatpush.msra.mxu3 %v4978_v62 }
0x1c5f   : > { %v5348_v56 = vpop.permute.xlu0 %5347 }
0x1c60   : > { %5521 = vmatpush.msra.mxu3 %v4977_v1 }
0x1c61   : > { %5652 = vmatpush.msrb.mxu1 %v5634_v10  ;;  %v5098_v50 = vpop.permute.xlu1 %5097 }
0x1c62   : > { %7152 = vmatmul.msk.f32.gmra.mxu1 %vm2212_vm1, %v5098_v50  ;;  %5522 = vmatpush.msra.mxu3 %v4976_v3 }
0x1c63   : > { %5653 = vmatpush.msrb.mxu1 %v5633_v43 }
0x1c64   : > { %5523 = vmatpush.msra.mxu3 %v4975_v13 }
0x1c65   : > { %5654 = vmatpush.msrb.mxu1 %v5632_v46  ;;  %7158 = vmatmul.msk.f32.gmra.mxu3 %vm2212_vm1, %v5224_v51 }
0x1c67   : > { %5655 = vmatpush.msrb.mxu1 %v5631_v63 }
0x1c68   : > { %v5010_v48 = vpop.f32.mrf.mxu3 }
0x1c69   : > { %v5016_v42 = vmul.f32 0.35355338, %v5010_v48  ;;  %v5346_v44 = vpop.permute.xlu1 %5345 }
0x1c6a   : > { %7163 = vmatmul.msk.f32.vlgmr.msra.gmra.mxu1 %vm2212_vm1, %v5346_v44 }
0x1c6b   : > { %v5018_v53 = vsel %vm2538_vm4, %v5016_v42, -inf }
0x1c6c   : > { %5019 = vmax.xlane.f32.xlu2 %v5018_v53 }
0x1c70   : > { %v5013_v61 = vpop.f32.mrf.mxu3 }
0x1c71   : > { %v5017_v36 = vmul.f32 0.35355338, %v5013_v61 }
0x1c72   : > { %7164 = vmatmul.msk.f32.gmra.mxu1 %vm2212_vm1, %v5348_v56 }
0x1c73   : > { %v5021_v57 = vsel %vm2538_vm4, %v5017_v36, -inf }
0x1c74   : > { %5022 = vmax.xlane.f32.xlu2 %v5021_v57 }
0x1c7a   : > { %7171 = vmatmul.msk.f32.vlgmr.msrb.gmra.mxu1 %vm2065_vm0, %v10005_v47 }
0x1cd5   : > { %v5128_v4 = vpop.f32.mrf.mxu1 }
0x1cd6   : > { %v5134_v35 = vmul.f32 0.35355338, %v5128_v4 }
0x1cd8   : > { %v5136_v7 = vsel %vm2538_vm4, %v5134_v35, -inf }
0x1cd9   : > { %5137 = vmax.xlane.f32.xlu1 %v5136_v7 }
0x1cdf   : > { %v5131_v5 = vpop.f32.mrf.mxu1  ;;  %v5020_v52 = vpop.xlane.xlu2 %5019 }
0x1ce0   : > { %v5135_v6 = vmul.f32 0.35355338, %v5131_v5  ;;  %v5254_v2 = vpop.f32.mrf.mxu3  ;;  %v5024_v14 = vsub.f32 %v5016_v42, %v5020_v52 }
0x1ce1   : > { %v5260_v8 = vmul.f32 0.35355338, %v5254_v2 }
0x1ce2   : > { %v5139_v58 = vsel %vm2538_vm4, %v5135_v6, -inf  ;;  %v5026_v22 = vmul.f32 1.442695, %v5024_v14 }
0x1ce3   : > { %5140 = vmax.xlane.f32.xlu0 %v5139_v58  ;;  %v5262_v23 = vsel %vm2538_vm4, %v5260_v8, -inf }
0x1ce7   : > { %v5378_v9 = vpop.f32.mrf.mxu1  ;;  %v5023_v60 = vpop.xlane.xlu2 %5022 }
0x1ce8   : > { %v5384_v11 = vmul.f32 0.35355338, %v5378_v9  ;;  %v5025_v12 = vsub.f32 %v5017_v36, %v5023_v60  ;;  %v5257_v25 = vpop.f32.mrf.mxu3 }
0x1ce9   : > { %v5261_v17 = vmul.f32 0.35355338, %v5257_v25 }
0x1cea   : > { %v5028_v16 = vmul.f32 1.442695, %v5025_v12  ;;  %v5386_v21 = vsel %vm2538_vm4, %v5384_v11, -inf }
0x1ceb   : > { %5387 = vmax.xlane.f32.xlu1 %v5386_v21  ;;  %5263 = vmax.xlane.f32.xlu0 %v5262_v23  ;;  %v5265_v29 = vsel %vm2538_vm4, %v5261_v17, -inf }
0x1cec   : > { %7702 = vpow2.f32 %v5028_v16 }
0x1ced   : > { %7704 = vpow2.f32 %v5026_v22 }
0x1cef   : > { %v5381_v27 = vpop.f32.mrf.mxu1 }
0x1cf0   : > { %v5385_v54 = vmul.f32 0.35355338, %v5381_v27 }
0x1cf2   : > { %v10253_v59 = vpop.eup %7702  ;;  %v5389_v49 = vsel %vm2538_vm4, %v5385_v54, -inf }
0x1cf3   : > { %5266 = vmax.xlane.f32.xlu1 %v5265_v29  ;;  %5390 = vmax.xlane.f32.xlu2 %v5389_v49  ;;  %v5033_v30 = vsel %vm2538_vm4, %v10253_v59, 0.0  ;;  %v10259_v0 = vpop.eup %7704 }
0x1cf4   : > { %5034 = vadd.xlane.f32.xlu0 %v5033_v30  ;;  %v5030_v34 = vsel %vm2538_vm4, %v10259_v0, 0.0 }
0x1cf7   : > { %v5657_v18 = vpop.f32.mrf.mxu1 }
0x1cf8   : > { %v10261_v32 = vadd.f32 %v7566_v55, %v5657_v18 }
0x1cfa   : > { %7173 = vmatpush.xpose.msk.msrb.mxu3 %vm2212_vm1, %v10261_v32 }
0x1cfb   : > { %5031 = vadd.xlane.f32.xlu2 %v5030_v34 }
0x1d4c   : > { %v5138_v26 = vpop.xlane.xlu1 %5137 }
0x1d4d   : > { %v5142_v33 = vsub.f32 %v5134_v35, %v5138_v26 }
0x1d4f   : > { %v5144_v37 = vmul.f32 1.442695, %v5142_v33 }
0x1d51   : > { %7706 = vpow2.f32 %v5144_v37 }
0x1d56   : > { %v5141_v28 = vpop.xlane.xlu0 %5140 }
0x1d57   : > { %v10267_v39 = vpop.eup %7706  ;;  %v5143_v41 = vsub.f32 %v5135_v6, %v5141_v28 }
0x1d58   : > { %v5148_v31 = vsel %vm2538_vm4, %v10267_v39, 0.0 }
0x1d59   : > { %v5146_v10 = vmul.f32 1.442695, %v5143_v41  ;;  %5149 = vadd.xlane.f32.xlu0 %v5148_v31 }
0x1d5b   : > { %7708 = vpow2.f32 %v5146_v10 }
0x1d5e   : > { %v5388_v38 = vpop.xlane.xlu1 %5387  ;;  %v5264_v40 = vpop.xlane.xlu0 %5263 }
0x1d5f   : > { %v5392_v43 = vsub.f32 %v5384_v11, %v5388_v38  ;;  %v5268_v45 = vsub.f32 %v5260_v8, %v5264_v40 }
0x1d61   : > { %v10271_v46 = vpop.eup %7708  ;;  %v5394_v63 = vmul.f32 1.442695, %v5392_v43  ;;  %v5270_v50 = vmul.f32 1.442695, %v5268_v45 }
0x1d62   : > { %v5151_v51 = vsel %vm2538_vm4, %v10271_v46, 0.0 }
0x1d63   : > { %7710 = vpow2.f32 %v5394_v63  ;;  %5152 = vadd.xlane.f32.xlu1 %v5151_v51 }
0x1d64   : > { %7712 = vpow2.f32 %v5270_v50 }
0x1d66   : > { %v5267_v48 = vpop.xlane.xlu1 %5266  ;;  %v5391_v42 = vpop.xlane.xlu2 %5390 }
0x1d67   : > { %v5269_v44 = vsub.f32 %v5261_v17, %v5267_v48  ;;  %v5393_v53 = vsub.f32 %v5385_v54, %v5391_v42  ;;  %v5035_v61 = vpop.xlane.xlu0 %5034 }
0x1d68   : > { %7714 = vrcp.f32 %v5035_v61  ;;  %v5062_v22 = vand.u32 2147483648, %v5035_v61  ;;  %vm5056_vm2 = vweird.f32 %v5035_v61  ;;  %v5060_v54 = vand.u32 2147483647, %v5035_v61 }
0x1d69   : > { %v10275_v56 = vpop.eup %7710  ;;  %v5272_v36 = vmul.f32 1.442695, %v5269_v44  ;;  %v5396_v57 = vmul.f32 1.442695, %v5393_v53 }
0x1d6a   : > { %v10277_v62 = vpop.eup %7712  ;;  %v5398_v1 = vsel %vm2538_vm4, %v10275_v56, 0.0  ;;  %v5063_v49 = vor.u32 1.1754944e-38, %v5062_v22  ;;  %vm5061_vm6 = vcmp.eq.f32.partialorder %v5060_v54, 8.507059e+37 }
0x1d6b   : > { %7716 = vpow2.f32 %v5272_v36  ;;  %5399 = vadd.xlane.f32.xlu2 %v5398_v1  ;;  %v5274_v3 = vsel %vm2538_vm4, %v10277_v62, 0.0 }
0x1d6c   : > { %7718 = vpow2.f32 %v5396_v57  ;;  %5275 = vadd.xlane.f32.xlu0 %v5274_v3 }
0x1d6e   : > { %v5032_v4 = vpop.xlane.xlu2 %5031  ;;  %v7715_v35 = vpop.eup %7714 }
0x1d6f   : > { %7720 = vrcp.f32 %v5032_v4  ;;  %v5052_v5 = vmul.f32 %v7715_v35, %v5035_v61  ;;  %v5047_v60 = vand.u32 2147483648, %v5032_v4  ;;  %v5045_v14 = vand.u32 2147483647, %v5032_v4 }
0x1d70   : > { %vm5041_vm12 = vweird.f32 %v5032_v4  ;;  %vm5057_vm15 = vweird.f32 %v7715_v35 }
0x1d71   : > { %v10283_v7 = vpop.eup %7716  ;;  %v5053_v58 = vsub.f32 1.0, %v5052_v5  ;;  %v5048_v21 = vor.u32 1.1754944e-38, %v5047_v60  ;;  %vm5046_vm14 = vcmp.eq.f32.partialorder %v5045_v14, 8.507059e+37  ;;  %vm5058_vm3 = vmor %vm5056_vm2, %vm5057_vm15 }
0x1d72   : > { %v10285_v13 = vpop.eup %7718  ;;  %v5277_v52 = vsel %vm2538_vm4, %v10283_v7, 0.0 }
0x1d73   : > { %v5401_v6 = vsel %vm2538_vm4, %v10285_v13, 0.0  ;;  %v5054_v11 = vmul.f32 %v7715_v35, %v5053_v58 }
0x1d74   : > { %5402 = vadd.xlane.f32.xlu2 %v5401_v6  ;;  %5278 = vadd.xlane.f32.xlu0 %v5277_v52 }
0x1d75   : > { %v7721_v2 = vpop.eup %7720  ;;  %v5055_v25 = vadd.f32 %v7715_v35, %v5054_v11 }
0x1d76   : > { %v5037_v8 = vmul.f32 %v7721_v2, %v5032_v4  ;;  %vm5042_vm11 = vweird.f32 %v7721_v2 }
0x1d77   : > { %vm5043_vm13 = vmor %vm5041_vm12, %vm5042_vm11  ;;  %v5059_v29 = vsel %vm5058_vm3, %v7715_v35, %v5055_v25 }
0x1d78   : > { %v5038_v9 = vsub.f32 1.0, %v5037_v8  ;;  %v5064_v30 = vsel %vm5061_vm6, %v5063_v49, %v5059_v29 }
0x1d79   : > { %v5065_v55 = vmul.f32 %v10253_v59, %v5064_v30  ;;  %v5664_v30 = vld [vmem:[#allocation28 + $0x38] sm:$0xff] }
0x1d7a   : > { %v5039_v12 = vmul.f32 %v7721_v2, %v5038_v9 }
0x1d7c   : > { %v5040_v16 = vadd.f32 %v7721_v2, %v5039_v12  ;;  %7510 = vrot.lane.b32.xlu1 %v10222_v20, %s10828_s3 }
0x1d7e   : > { %v5044_v23 = vsel %vm5043_vm13, %v7721_v2, %v5040_v16  ;;  %v7567_v16 = vld [vmem:[#allocation30 + $0x1] ss:$0 sm:$0xff] }
0x1d7f   : > { %v5049_v17 = vsel %vm5046_vm14, %v5048_v21, %v5044_v23 }
0x1d80   : > { %v5050_v27 = vmul.f32 %v10259_v0, %v5049_v17 }
0x1d82   : > { %7147 = vmatmul.msk.f32.vlgmr.msra.gmra.mxu0 %vm2538_vm4, %v5050_v27 }
0x1d88   : > { %7520 = vrot.lane.b32.xlu0 %v10222_v20, %s10829_s5 }
0x1d8a   : > { %7148 = vmatmul.msk.f32.gmra.mxu0 %vm2538_vm4, %v5065_v55 }
0x1d8c   : > { %7515 = vrot.lane.b32.xlu2 %v10222_v20, %s10830_s6 }
0x1dcc   : > { %v5150_v18 = vpop.xlane.xlu0 %5149 }
0x1dcd   : > { %7722 = vrcp.f32 %v5150_v18  ;;  %v5165_v50 = vand.u32 2147483648, %v5150_v18  ;;  %vm5159_vm8 = vweird.f32 %v5150_v18  ;;  %v5163_v48 = vand.u32 2147483647, %v5150_v18 }
0x1dcf   : > { %v5166_v57 = vor.u32 1.1754944e-38, %v5165_v50  ;;  %vm5164_vm11 = vcmp.eq.f32.partialorder %v5163_v48, 8.507059e+37  ;;  %v5662_v50 = vld [vmem:[#allocation28 + $0x28] sm:$0xff] }
0x1dd3   : > { %v7723_v34 = vpop.eup %7722 }
0x1dd4   : > { %v5155_v26 = vmul.f32 %v7723_v34, %v5150_v18  ;;  %vm5160_vm7 = vweird.f32 %v7723_v34 }
0x1dd5   : > { %vm5161_vm9 = vmor %vm5159_vm8, %vm5160_vm7 }
0x1dd6   : > { %v10301_v0 = vpop.xlane.xlu1 %5152  ;;  %v5156_v59 = vsub.f32 1.0, %v5155_v26 }
0x1dd7   : > { %7724 = vrcp.f32 %v10301_v0  ;;  %v5180_v52 = vand.u32 2147483648, %v10301_v0  ;;  %vm5174_vm14 = vweird.f32 %v10301_v0  ;;  %v5178_v11 = vand.u32 2147483647, %v10301_v0 }
0x1dd8   : > { %v5157_v20 = vmul.f32 %v7723_v34, %v5156_v59 }
0x1dd9   : > { %v5181_v27 = vor.u32 1.1754944e-38, %v5180_v52  ;;  %vm5179_vm6 = vcmp.eq.f32.partialorder %v5178_v11, 8.507059e+37 }
0x1dda   : > { %v5158_v43 = vadd.f32 %v7723_v34, %v5157_v20 }
0x1ddc   : > { %v5162_v44 = vsel %vm5161_vm9, %v7723_v34, %v5158_v43  ;;  %v5663_v34 = vld [vmem:[#allocation28 + $0x30] sm:$0xff] }
0x1ddd   : > { %v10309_v28 = vpop.eup %7724  ;;  %v5167_v4 = vsel %vm5164_vm11, %v5166_v57, %v5162_v44 }
0x1dde   : > { %v10304_v33 = vpop.xlane.xlu2 %5399  ;;  %v5170_v31 = vmul.f32 %v10309_v28, %v10301_v0  ;;  %vm5175_vm12 = vweird.f32 %v10309_v28  ;;  %v5168_v14 = vmul.f32 %v10267_v39, %v5167_v4 }
0x1ddf   : > { %v10306_v37 = vpop.xlane.xlu0 %5275  ;;  %vm10345_vm15 = vmor %vm5174_vm14, %vm5175_vm12  ;;  %vm5409_vm9 = vweird.f32 %v10304_v33 }
0x1de0   : > { %7726 = vrcp.f32 %v10306_v37  ;;  %v5171_v45 = vsub.f32 1.0, %v5170_v31  ;;  %v5291_v12 = vand.u32 2147483648, %v10306_v37  ;;  %vm5285_vm2 = vweird.f32 %v10306_v37 }
0x1de1   : > { %7728 = vrcp.f32 %v10304_v33  ;;  %v5289_v21 = vand.u32 2147483647, %v10306_v37  ;;  %v5413_v31 = vand.u32 2147483647, %v10304_v33 }
0x1de2   : > { %v5172_v53 = vmul.f32 %v10309_v28, %v5171_v45  ;;  %v5292_v55 = vor.u32 1.1754944e-38, %v5291_v12 }
0x1de3   : > { %vm5290_vm8 = vcmp.eq.f32.partialorder %v5289_v21, 8.507059e+37 }
0x1de4   : > { %v5173_v5 = vadd.f32 %v10309_v28, %v5172_v53 }
0x1de6   : > { %v10311_v41 = vpop.eup %7726  ;;  %v5177_v39 = vsel %vm10345_vm15, %v10309_v28, %v5173_v5  ;;  %vm5414_vm15 = vcmp.eq.f32.partialorder %v5413_v31, 8.507059e+37 }
0x1de7   : > { %v10316_v10 = vpop.xlane.xlu0 %5278  ;;  %v5281_v38 = vmul.f32 %v10311_v41, %v10306_v37  ;;  %v10320_v40 = vpop.xlane.xlu2 %5402  ;;  %vm5286_vm13 = vweird.f32 %v10311_v41  ;;  %v5182_v0 = vsel %vm5179_vm6, %v5181_v27, %v5177_v39 }
0x1de8   : > { %7730 = vrcp.f32 %v10316_v10  ;;  %v10323_v63 = vpop.eup %7728  ;;  %vm10352_vm3 = vmor %vm5285_vm2, %vm5286_vm13  ;;  %v5183_v45 = vmul.f32 %v10271_v46, %v5182_v0  ;;  %vm5300_vm13 = vweird.f32 %v10316_v10  ;;  %v5304_v48 = vand.u32 2147483647, %v10316_v10 }
0x1de9   : > { %v5282_v51 = vsub.f32 1.0, %v5281_v38  ;;  %7732 = vrcp.f32 %v10320_v40  ;;  %v5405_v61 = vmul.f32 %v10323_v63, %v10304_v33  ;;  %vm5410_vm7 = vweird.f32 %v10323_v63 }
0x1dea   : > { %v5306_v38 = vand.u32 2147483648, %v10316_v10  ;;  %vm10377_vm12 = vmor %vm5409_vm9, %vm5410_vm7  ;;  %vm5305_vm2 = vcmp.eq.f32.partialorder %v5304_v48, 8.507059e+37  ;;  %vm5424_vm6 = vweird.f32 %v10320_v40 }
0x1deb   : > { %v5283_v1 = vmul.f32 %v10311_v41, %v5282_v51  ;;  %v5406_v6 = vsub.f32 1.0, %v5405_v61  ;;  %v5661_v61 = vld [vmem:[#allocation28 + $0x20] sm:$0xff] }
0x1ded   : > { %v5284_v8 = vadd.f32 %v10311_v41, %v5283_v1  ;;  %v5407_v25 = vmul.f32 %v10323_v63, %v5406_v6 }
0x1dee   : > { %v10326_v42 = vpop.eup %7730  ;;  %v7511_v36 = vpop.permute.xlu1 %7510 }
0x1def   : > { %v5296_v3 = vmul.f32 %v10326_v42, %v10316_v10  ;;  %v7512_v35 = vunpack.i.l.bf16 %v7511_v36  ;;  %v7516_v2 = vpop.permute.xlu2 %7515  ;;  %v10337_v58 = vpop.eup %7732  ;;  %v7513_v60 = vunpack.i.h.bf16 %v7511_v36  ;;  %v5288_v54 = vsel %vm10352_vm3, %v10311_v41, %v5284_v8  ;;  %v5594_v8 = vld [vmem:[#allocation22 + $0x30] sm:$0xff] }
0x1df0   : > { %v7517_v23 = vunpack.i.l.bf16 %v7516_v2  ;;  %v5420_v17 = vmul.f32 %v10337_v58, %v10320_v40  ;;  %v7518_v49 = vunpack.i.h.bf16 %v7516_v2  ;;  %v5408_v26 = vadd.f32 %v10323_v63, %v5407_v25 }
0x1df1   : > { %v5297_v9 = vsub.f32 1.0, %v5296_v3  ;;  %5212 = vmatpush.msra.mxu2 %v7512_v35  ;;  %v5293_v37 = vsel %vm5290_vm8, %v5292_v55, %v5288_v54  ;;  %v5415_v41 = vand.u32 2147483648, %v10304_v33  ;;  %vm5301_vm11 = vweird.f32 %v10326_v42 }
0x1df2   : > { %v5421_v59 = vsub.f32 1.0, %v5420_v17  ;;  %v5294_v33 = vmul.f32 %v10277_v62, %v5293_v37  ;;  %v5412_v44 = vsel %vm10377_vm12, %v10323_v63, %v5408_v26  ;;  %vm10388_vm14 = vmor %vm5300_vm13, %vm5301_vm11  ;;  %v5307_v10 = vor.u32 1.1754944e-38, %v5306_v38 }
0x1df3   : > { %5213 = vmatpush.msra.mxu2 %v7513_v60  ;;  %v5298_v29 = vmul.f32 %v10326_v42, %v5297_v9  ;;  %v5416_v36 = vor.u32 1.1754944e-38, %v5415_v41  ;;  %vm5425_vm3 = vweird.f32 %v10337_v58  ;;  %v5430_v3 = vand.u32 2147483648, %v10320_v40  ;;  %v5592_v60 = vld [vmem:[#allocation22 + $0x20] sm:$0xff] }
0x1df4   : > { %7153 = vmatmul.msk.f32.vlgmr.msra.gmra.mxu2 %vm2538_vm4, %v5168_v14  ;;  %v5422_v46 = vmul.f32 %v10337_v58, %v5421_v59  ;;  %v5428_v35 = vand.u32 2147483647, %v10320_v40  ;;  %vm5426_vm7 = vmor %vm5424_vm6, %vm5425_vm3  ;;  %v5595_v40 = vld [vmem:[#allocation22 + $0x38] sm:$0xff] }
0x1df5   : > { %5460 = vmatpush.msrb.mxu2 %v7517_v23  ;;  %v5299_v20 = vadd.f32 %v10326_v42, %v5298_v29  ;;  %v5417_v63 = vsel %vm5414_vm15, %v5416_v36, %v5412_v44  ;;  %v5431_v52 = vor.u32 1.1754944e-38, %v5430_v3 }
0x1df6   : > { %v5423_v57 = vadd.f32 %v10337_v58, %v5422_v46  ;;  %v5418_v4 = vmul.f32 %v10275_v56, %v5417_v63  ;;  %vm5429_vm8 = vcmp.eq.f32.partialorder %v5428_v35, 8.507059e+37 }
0x1df7   : > { %5461 = vmatpush.msrb.mxu2 %v7518_v49  ;;  %v5303_v62 = vsel %vm10388_vm14, %v10326_v42, %v5299_v20 }
0x1df8   : > { %v5308_v1 = vsel %vm5305_vm2, %v5307_v10, %v5303_v62  ;;  %v5427_v5 = vsel %vm5426_vm7, %v10337_v58, %v5423_v57 }
0x1df9   : > { %5682 = vmatpush.msra.mxu2 %v5664_v30  ;;  %v5309_v42 = vmul.f32 %v10283_v7, %v5308_v1  ;;  %v5432_v6 = vsel %vm5429_vm8, %v5431_v52, %v5427_v5  ;;  %v5593_v7 = vld [vmem:[#allocation22 + $0x28] sm:$0xff] }
0x1dfa   : > { %v7521_v18 = vpop.permute.xlu0 %7520  ;;  %v5433_v2 = vmul.f32 %v10285_v13, %v5432_v6 }
0x1dfb   : > { %v7522_v28 = vunpack.i.l.bf16 %v7521_v18  ;;  %v7523_v43 = vunpack.i.h.bf16 %v7521_v18  ;;  %5683 = vmatpush.msra.mxu2 %v5663_v34  ;;  %v7568_v34 = vld [vmem:[#allocation18 + $0x1] ss:$0 sm:$0xff] }
0x1dfc   : > { %7154 = vmatmul.msk.f32.gmra.mxu2 %vm2538_vm4, %v5183_v45 }
0x1dfd   : > { %5336 = vmatpush.msrb.mxu0 %v7522_v28  ;;  %5684 = vmatpush.msra.mxu2 %v5662_v50 }
0x1dff   : > { %5337 = vmatpush.msrb.mxu0 %v7523_v43  ;;  %5685 = vmatpush.msra.mxu2 %v5661_v61  ;;  %v5089_v56 = vpop.f32.mrf.mxu0 }
0x1e00   : > { %7159 = vmatmul.msk.f32.vlgmr.msrb.gmra.mxu0 %vm2538_vm4, %v5294_v33 }
0x1e01   : > { %5619 = vmatpush.msra.mxu0 %v5595_v40 }
0x1e03   : > { %5620 = vmatpush.msra.mxu0 %v5594_v8 }
0x1e04   : > { %7165 = vmatmul.msk.f32.vlgmr.msrb.gmra.mxu2 %vm2538_vm4, %v5418_v4 }
0x1e05   : > { %5621 = vmatpush.msra.mxu0 %v5593_v7  ;;  %v7570_v7 = vld [vmem:[#allocation21 + $0x1] ss:$0 sm:$0xff] }
0x1e07   : > { %v5092_v9 = vpop.f32.mrf.mxu0  ;;  %5622 = vmatpush.msra.mxu0 %v5592_v60 }
0x1e08   : > { %7160 = vmatmul.msk.f32.gmra.mxu0 %vm2538_vm4, %v5309_v42 }
0x1e0c   : > { %7166 = vmatmul.msk.f32.gmra.mxu2 %vm2538_vm4, %v5433_v2 }
0x1e14   : > { %7172 = vmatmul.msk.f32.vlgmr.msra.gmra.mxu2 %vm2065_vm0, %v10005_v47 }
0x1e77   : > { %v5215_v58 = vpop.f32.mrf.mxu2 }
0x1e78   : > { %5471 = vrot.lane.b32.xlu1 %v5215_v58, %s10832_s7 }
0x1e7d   : > { %v5339_v11 = vpop.f32.mrf.mxu0 }
0x1e7f   : > { %v5218_v13 = vpop.f32.mrf.mxu2 }
0x1e80   : > { %5473 = vrot.lane.b32.xlu2 %v5218_v13, %s10832_s7  ;;  %5479 = vrot.lane.b32.xlu1 %v5339_v11, %s10833_s9 }
0x1e85   : > { %v5342_v47 = vpop.f32.mrf.mxu0 }
0x1e87   : > { %v5463_v12 = vpop.f32.mrf.mxu2 }
0x1e88   : > { %5487 = vrot.lane.b32.xlu0 %v5463_v12, %s10834_s10  ;;  %5481 = vrot.lane.b32.xlu1 %v5342_v47, %s10833_s9 }
0x1e8f   : > { %v5466_v14 = vpop.f32.mrf.mxu2 }
0x1e90   : > { %5489 = vrot.lane.b32.xlu0 %v5466_v14, %s10834_s10 }
0x1e97   : > { %v5687_v21 = vpop.f32.mrf.mxu2 }
0x1e98   : > { %v10417_v23 = vadd.f32 %v7567_v16, %v5687_v21 }
0x1e9a   : > { %5800 = vmatpush.msrb.mxu0 %v10417_v23 }
0x1eda   : > { %v5474_v29 = vpop.permute.xlu2 %5473 }
0x1edb   : > { %v5494_v30 = vsel %vm2212_vm1, %v5092_v9, %v5474_v29 }
0x1eea   : > { %v5472_v25 = vpop.permute.xlu1 %5471 }
0x1eeb   : > { %v5493_v17 = vsel %vm2212_vm1, %v5089_v56, %v5472_v25  ;;  %v7569_v56 = vld [vmem:[#allocation19 + $0x1] ss:$0 sm:$0xff]  ;;  %v7571_v25 = vld [vmem:[#allocation24 + $0x1] ss:$0 sm:$0xff] }
0x1ef2   : > { %v5480_v22 = vpop.permute.xlu1 %5479 }
0x1ef3   : > { %v5495_v39 = vsel %vm2538_vm4, %v5493_v17, %v5480_v22 }
0x1efa   : > { %v5488_v27 = vpop.permute.xlu0 %5487  ;;  %v5482_v49 = vpop.permute.xlu1 %5481 }
0x1efb   : > { %v5497_v54 = vsel %vm2540_vm5, %v5495_v39, %v5488_v27  ;;  %v5496_v55 = vsel %vm2538_vm4, %v5494_v30, %v5482_v49 }
0x1efc   : > { %7167 = vmatmul.msk.f32.vlgmr.msra.gmra.mxu3 %vm2065_vm0, %v5497_v54 }
0x1f02   : > { %v5490_v18 = vpop.permute.xlu0 %5489 }
0x1f03   : > { %v5498_v0 = vsel %vm2540_vm5, %v5496_v55, %v5490_v18 }
0x1f04   : > { %7168 = vmatmul.msk.f32.gmra.mxu3 %vm2065_vm0, %v5498_v0 }
0x1f7f   : > { %v5525_v26 = vpop.f32.mrf.mxu3 }
0x1f80   : > { %v5526_v37 = vadd.f32 %v7568_v34, %v5525_v26 }
0x1f82   : > { %v5531_v59 = vadd.f32 %v5526_v37, %v10198_v15 }
0x1f84   : > { %v5537_v28 = vsel %vm2065_vm0, %v5531_v59, 0.0 }
0x1f85   : > { %5538 = vadd.xlane.f32.xlu2 %v5537_v28 }
0x1f87   : > { %v5528_v41 = vpop.f32.mrf.mxu3 }
0x1f88   : > { %v5529_v20 = vadd.f32 %v7568_v34, %v5528_v41 }
0x1f8a   : > { %v5532_v31 = vadd.f32 %v5529_v20, %v10207_v19 }
0x1f8c   : > { %v5540_v38 = vsel %vm2065_vm0, %v5532_v31, 0.0 }
0x1f8d   : > { %5541 = vadd.xlane.f32.xlu1 %v5540_v38 }
0x1fa6   : > { %5812 = vrot.lane.b32.xlu1 %v10261_v32, %s10828_s3 }
0x1fae   : > { %6047 = vrot.lane.b32.xlu1 %v10261_v32, %s10830_s6 }
0x1ff8   : > { %v5539_v43 = vpop.xlane.xlu2 %5538 }
0x1ff9   : > { %v5543_v45 = vmul.f32 %v5539_v43, %v9652_v24 }
0x1ffb   : > { %v5545_v15 = vsub.f32 %v5531_v59, %v5543_v45 }
0x1ffd   : > { %v5547_v50 = vmul.f32 %v5545_v15, %v5545_v15 }
0x1fff   : > { %v5549_v51 = vsel %vm2065_vm0, %v5547_v50, 0.0 }
0x2000   : > { %5550 = vadd.xlane.f32.xlu0 %v5549_v51  ;;  %v5542_v48 = vpop.xlane.xlu1 %5541 }
0x2001   : > { %v5544_v19 = vmul.f32 %v5542_v48, %v9652_v24 }
0x2003   : > { %v5546_v33 = vsub.f32 %v5532_v31, %v5544_v19 }
0x2005   : > { %v5548_v44 = vmul.f32 %v5546_v33, %v5546_v33 }
0x2007   : > { %v5552_v46 = vsel %vm2065_vm0, %v5548_v44, 0.0 }
0x2008   : > { %5553 = vadd.xlane.f32.xlu2 %v5552_v46 }
0x2018   : > { %v5813_v53 = vpop.permute.xlu1 %5812 }
0x2019   : > { %7178 = vmatpush.xpose.msk.msra.mxu1 %vm2212_vm1, %v5813_v53 }
0x2020   : > { %v6048_v61 = vpop.permute.xlu1 %6047 }
0x2021   : > { %7188 = vmatpush.xpose.msk.msrb.mxu1 %vm2212_vm1, %v6048_v61 }
0x2073   : > { %v5551_v36 = vpop.xlane.xlu0 %5550 }
0x2074   : > { %v5555_v62 = vmul.f32 %v5551_v36, %v9652_v24 }
0x2076   : > { %v5557_v10 = vadd.f32 1e-05, %v5555_v62 }
0x2078   : > { %7734 = vrsqrt.f32 %v5557_v10  ;;  %vm5565_vm11 = vweird.f32 %v5557_v10 }
0x207b   : > { %v5554_v63 = vpop.xlane.xlu2 %5553 }
0x207c   : > { %v5556_v57 = vmul.f32 %v5554_v63, %v9652_v24 }
0x207e   : > { %v7735_v1 = vpop.eup %7734  ;;  %v5558_v3 = vadd.f32 1e-05, %v5556_v57 }
0x207f   : > { %v5560_v4 = vmul.f32 %v7735_v1, %v5557_v10  ;;  %vm5566_vm9 = vweird.f32 %v7735_v1 }
0x2080   : > { %7736 = vrsqrt.f32 %v5558_v3  ;;  %vm5567_vm12 = vmor %vm5565_vm11, %vm5566_vm9  ;;  %vm5575_vm14 = vweird.f32 %v5558_v3 }
0x2081   : > { %v5561_v35 = vmul.f32 %v7735_v1, %v5560_v4 }
0x2083   : > { %v5562_v42 = vmul.f32 0.5, %v5561_v35 }
0x2085   : > { %v5563_v5 = vsub.f32 1.5, %v5562_v42 }
0x2086   : > { %v7737_v52 = vpop.eup %7736 }
0x2087   : > { %v5564_v6 = vmul.f32 %v7735_v1, %v5563_v5  ;;  %v5570_v2 = vmul.f32 %v7737_v52, %v5558_v3  ;;  %vm5576_vm13 = vweird.f32 %v7737_v52 }
0x2088   : > { %vm5577_vm15 = vmor %vm5575_vm14, %vm5576_vm13 }
0x2089   : > { %v5568_v40 = vsel %vm5567_vm12, %v7735_v1, %v5564_v6  ;;  %v5571_v8 = vmul.f32 %v7737_v52, %v5570_v2 }
0x208a   : > { %v5579_v9 = vmul.f32 %v5568_v40, %v5545_v15 }
0x208b   : > { %v5572_v58 = vmul.f32 0.5, %v5571_v8 }
0x208c   : > { %v5584_v60 = vmul.f32 %v7569_v56, %v5579_v9 }
0x208d   : > { %v5573_v11 = vsub.f32 1.5, %v5572_v58 }
0x208e   : > { %v10444_v13 = vadd.f32 %v7570_v7, %v5584_v60 }
0x208f   : > { %v5574_v47 = vmul.f32 %v7737_v52, %v5573_v11 }
0x2090   : > { %7169 = vmatmul.msk.f32.vlgmr.msra.gmra.mxu0 %vm2065_vm0, %v10444_v13 }
0x2091   : > { %v5578_v12 = vsel %vm5577_vm15, %v7737_v52, %v5574_v47 }
0x2092   : > { %v5580_v14 = vmul.f32 %v5578_v12, %v5546_v33 }
0x2094   : > { %v5585_v16 = vmul.f32 %v7569_v56, %v5580_v14 }
0x2096   : > { %v10448_v21 = vadd.f32 %v7570_v7, %v5585_v16 }
0x2098   : > { %7170 = vmatmul.msk.f32.gmra.mxu0 %vm2065_vm0, %v10448_v21 }
0x210d   : > { %v5624_v22 = vpop.f32.mrf.mxu0 }
0x210e   : > { %v5625_v17 = vadd.f32 %v7571_v25, %v5624_v22 }
0x2110   : > { %5808 = vrot.lane.b32.xlu0 %v5625_v17, %s10828_s3  ;;  %7174 = vmatmul.msk.f32.vlgmr.msrb.gmra.mxu3 %vm2212_vm1, %v5625_v17 }
0x2115   : > { %v5627_v39 = vpop.f32.mrf.mxu0 }
0x2116   : > { %v5628_v27 = vadd.f32 %v7571_v25, %v5627_v39 }
0x2118   : > { %5928 = vrot.lane.b32.xlu1 %v5628_v27, %s10829_s5  ;;  %5810 = vrot.lane.b32.xlu2 %v5628_v27, %s10828_s3 }
0x2119   : > { %5930 = vrot.lane.b32.xlu0 %v10261_v32, %s10829_s5  ;;  %7175 = vmatmul.msk.f32.gmra.mxu3 %vm2212_vm1, %v5628_v27 }
0x2120   : > { %5926 = vrot.lane.b32.xlu2 %v5625_v17, %s10829_s5 }
0x2121   : > { %6043 = vrot.lane.b32.xlu0 %v5625_v17, %s10830_s6 }
0x2128   : > { %6045 = vrot.lane.b32.xlu2 %v5628_v27, %s10830_s6 }
0x2172   : > { %v5811_v29 = vpop.permute.xlu2 %5810 }
0x217a   : > { %v5927_v30 = vpop.permute.xlu2 %5926 }
0x2182   : > { %v5809_v54 = vpop.permute.xlu0 %5808  ;;  %v6046_v26 = vpop.permute.xlu2 %6045 }
0x2183   : > { %7179 = vmatmul.msk.f32.vlgmr.msra.gmra.mxu1 %vm2212_vm1, %v5809_v54 }
0x218a   : > { %v5929_v0 = vpop.permute.xlu1 %5928 }
0x218b   : > { %v5931_v49 = vpop.permute.xlu0 %5930  ;;  %7180 = vmatmul.msk.f32.gmra.mxu1 %vm2212_vm1, %v5811_v29 }
0x218c   : > { %7183 = vmatpush.xpose.msk.msra.mxu3 %vm2212_vm1, %v5931_v49 }
0x218f   : > { %7184 = vmatmul.msk.f32.vlgmr.msra.gmra.mxu3 %vm2212_vm1, %v5927_v30 }
0x2193   : > { %v6044_v32 = vpop.permute.xlu0 %6043  ;;  %v5723_v55 = vpop.f32.mrf.mxu3 }
0x2194   : > { %v5729_v18 = vmul.f32 0.35355338, %v5723_v55  ;;  %7189 = vmatmul.msk.f32.vlgmr.msrb.gmra.mxu1 %vm2212_vm1, %v6044_v32 }
0x2196   : > { %v5731_v34 = vsel %vm2212_vm1, %v5729_v18, -inf }
0x2197   : > { %7185 = vmatmul.msk.f32.gmra.mxu3 %vm2212_vm1, %v5929_v0  ;;  %5732 = vmax.xlane.f32.xlu1 %v5731_v34 }
0x219c   : > { %7190 = vmatmul.msk.f32.gmra.mxu1 %vm2212_vm1, %v6046_v26  ;;  %v5726_v41 = vpop.f32.mrf.mxu3 }
0x219d   : > { %v5730_v20 = vmul.f32 0.35355338, %v5726_v41 }
0x219f   : > { %v5734_v45 = vsel %vm2212_vm1, %v5730_v20, -inf }
0x2200   : > { %v5837_v37 = vpop.f32.mrf.mxu1 }
0x2201   : > { %v5843_v59 = vmul.f32 0.35355338, %v5837_v37 }
0x2203   : > { %v5845_v28 = vsel %vm2212_vm1, %v5843_v59, -inf }
0x2204   : > { %5846 = vmax.xlane.f32.xlu0 %v5845_v28 }
0x2208   : > { %v5840_v31 = vpop.f32.mrf.mxu1 }
0x2209   : > { %v5844_v38 = vmul.f32 0.35355338, %v5840_v31 }
0x220a   : > { %v5733_v15 = vpop.xlane.xlu1 %5732 }
0x220b   : > { %v5848_v43 = vsel %vm2212_vm1, %v5844_v38, -inf  ;;  %v5737_v19 = vsub.f32 %v5729_v18, %v5733_v15 }
0x220c   : > { %5849 = vmax.xlane.f32.xlu2 %v5848_v43  ;;  %5735 = vmax.xlane.f32.xlu0 %v5734_v45 }
0x220d   : > { %v5739_v53 = vmul.f32 1.442695, %v5737_v19 }
0x220f   : > { %7738 = vpow2.f32 %v5739_v53 }
0x2211   : > { %v6072_v50 = vpop.f32.mrf.mxu1 }
0x2212   : > { %v6078_v51 = vmul.f32 0.35355338, %v6072_v50  ;;  %v5955_v48 = vpop.f32.mrf.mxu3 }
0x2213   : > { %v5961_v33 = vmul.f32 0.35355338, %v5955_v48 }
0x2214   : > { %v6080_v44 = vsel %vm2212_vm1, %v6078_v51, -inf }
0x2215   : > { %6081 = vmax.xlane.f32.xlu1 %v6080_v44  ;;  %v5963_v46 = vsel %vm2212_vm1, %v5961_v33, -inf  ;;  %v10477_v1 = vpop.eup %7738 }
0x2216   : > { %5964 = vmax.xlane.f32.xlu2 %v5963_v46  ;;  %v5743_v3 = vsel %vm2212_vm1, %v10477_v1, 0.0 }
0x2219   : > { %v6075_v61 = vpop.f32.mrf.mxu1 }
0x221a   : > { %v6079_v36 = vmul.f32 0.35355338, %v6075_v61  ;;  %v5958_v62 = vpop.f32.mrf.mxu3 }
0x221b   : > { %v5962_v10 = vmul.f32 0.35355338, %v5958_v62 }
0x221c   : > { %v6083_v63 = vsel %vm2212_vm1, %v6079_v36, -inf }
0x221d   : > { %6084 = vmax.xlane.f32.xlu0 %v6083_v63  ;;  %v5966_v57 = vsel %vm2212_vm1, %v5962_v10, -inf }
0x221e   : > { %5967 = vmax.xlane.f32.xlu1 %v5966_v57 }
0x2225   : > { %5744 = vadd.xlane.f32.xlu0 %v5743_v3 }
0x2277   : > { %v5847_v4 = vpop.xlane.xlu0 %5846 }
0x2278   : > { %v5851_v56 = vsub.f32 %v5843_v59, %v5847_v4 }
0x227a   : > { %v5853_v40 = vmul.f32 1.442695, %v5851_v56 }
0x227f   : > { %v5850_v35 = vpop.xlane.xlu2 %5849  ;;  %v5736_v42 = vpop.xlane.xlu0 %5735 }
0x2280   : > { %v5852_v5 = vsub.f32 %v5844_v38, %v5850_v35  ;;  %v5738_v52 = vsub.f32 %v5730_v20, %v5736_v42 }
0x2282   : > { %v5855_v6 = vmul.f32 1.442695, %v5852_v5  ;;  %v5741_v2 = vmul.f32 1.442695, %v5738_v52 }
0x2284   : > { %7740 = vpow2.f32 %v5855_v6 }
0x2285   : > { %7742 = vpow2.f32 %v5741_v2 }
0x2286   : > { %7744 = vpow2.f32 %v5853_v40 }
0x2288   : > { %v6082_v8 = vpop.xlane.xlu1 %6081 }
0x2289   : > { %v6086_v7 = vsub.f32 %v6078_v51, %v6082_v8  ;;  %v5965_v9 = vpop.xlane.xlu2 %5964 }
0x228a   : > { %v10481_v58 = vpop.eup %7740  ;;  %v5969_v47 = vsub.f32 %v5961_v33, %v5965_v9 }
0x228b   : > { %v10483_v60 = vpop.eup %7742  ;;  %v6088_v11 = vmul.f32 1.442695, %v6086_v7  ;;  %v5860_v12 = vsel %vm2212_vm1, %v10481_v58, 0.0 }
0x228c   : > { %5861 = vadd.xlane.f32.xlu1 %v5860_v12  ;;  %v5746_v14 = vsel %vm2212_vm1, %v10483_v60, 0.0  ;;  %v5971_v16 = vmul.f32 1.442695, %v5969_v47  ;;  %v10489_v22 = vpop.eup %7744 }
0x228d   : > { %7746 = vpow2.f32 %v6088_v11  ;;  %5747 = vadd.xlane.f32.xlu2 %v5746_v14  ;;  %v5857_v30 = vsel %vm2212_vm1, %v10489_v22, 0.0 }
0x228e   : > { %7748 = vpow2.f32 %v5971_v16 }
0x2290   : > { %v6085_v25 = vpop.xlane.xlu0 %6084 }
0x2291   : > { %v6087_v17 = vsub.f32 %v6079_v36, %v6085_v25  ;;  %v5968_v39 = vpop.xlane.xlu1 %5967 }
0x2292   : > { %v5970_v29 = vsub.f32 %v5962_v10, %v5968_v39 }
0x2293   : > { %v10491_v27 = vpop.eup %7746  ;;  %v6090_v54 = vmul.f32 1.442695, %v6087_v17 }
0x2294   : > { %v6092_v49 = vsel %vm2212_vm1, %v10491_v27, 0.0  ;;  %v5973_v32 = vmul.f32 1.442695, %v5970_v29  ;;  %v10497_v18 = vpop.eup %7748 }
0x2295   : > { %7750 = vpow2.f32 %v6090_v54  ;;  %6093 = vadd.xlane.f32.xlu0 %v6092_v49  ;;  %5858 = vadd.xlane.f32.xlu2 %v5857_v30  ;;  %v5975_v34 = vsel %vm2212_vm1, %v10497_v18, 0.0 }
0x2298   : > { %v5745_v55 = vpop.xlane.xlu0 %5744 }
0x2299   : > { %7752 = vrcp.f32 %v5745_v55  ;;  %v5760_v20 = vand.u32 2147483648, %v5745_v55  ;;  %v5758_v38 = vand.u32 2147483647, %v5745_v55  ;;  %vm5754_vm3 = vweird.f32 %v5745_v55 }
0x229a   : > { %7754 = vpow2.f32 %v5973_v32 }
0x229b   : > { %v10499_v0 = vpop.eup %7750  ;;  %v5761_v15 = vor.u32 1.1754944e-38, %v5760_v20  ;;  %vm5759_vm7 = vcmp.eq.f32.partialorder %v5758_v38, 8.507059e+37 }
0x229c   : > { %v6095_v26 = vsel %vm2212_vm1, %v10499_v0, 0.0 }
0x229d   : > { %5976 = vadd.xlane.f32.xlu2 %v5975_v34  ;;  %6096 = vadd.xlane.f32.xlu0 %v6095_v26 }
0x229f   : > { %v7753_v37 = vpop.eup %7752 }
0x22a0   : > { %v5750_v59 = vmul.f32 %v7753_v37, %v5745_v55  ;;  %v10505_v28 = vpop.eup %7754  ;;  %vm5755_vm2 = vweird.f32 %v7753_v37 }
0x22a1   : > { %v5978_v43 = vsel %vm2212_vm1, %v10505_v28, 0.0  ;;  %vm5756_vm6 = vmor %vm5754_vm3, %vm5755_vm2 }
0x22a2   : > { %v5751_v41 = vsub.f32 1.0, %v5750_v59 }
0x22a4   : > { %v5752_v31 = vmul.f32 %v7753_v37, %v5751_v41 }
0x22a5   : > { %5979 = vadd.xlane.f32.xlu2 %v5978_v43  ;;  %5894 = vrot.lane.b32.xlu1 %v10417_v23, %s10828_s3 }
0x22a6   : > { %v5753_v45 = vadd.f32 %v7753_v37, %v5752_v31 }
0x22a8   : > { %v5757_v50 = vsel %vm5756_vm6, %v7753_v37, %v5753_v45 }
0x22a9   : > { %v5762_v51 = vsel %vm5759_vm7, %v5761_v15, %v5757_v50 }
0x22aa   : > { %v5763_v48 = vmul.f32 %v10477_v1, %v5762_v51 }
0x22ac   : > { %7176 = vmatmul.msk.f32.vlgmr.msrb.gmra.mxu0 %vm2212_vm1, %v5763_v48 }
0x22b1   : > { %6128 = vrot.lane.b32.xlu0 %v10417_v23, %s10830_s6  ;;  %s10852_s6 = sshll.u32 %s10854_s0, 4 }
0x22bd   : > { %6011 = vrot.lane.b32.xlu2 %v10417_v23, %s10829_s5 }
0x22ff   : > { %v10517_v19 = vpop.xlane.xlu1 %5861 }
0x2300   : > { %v5748_v33 = vpop.xlane.xlu2 %5747  ;;  %vm5883_vm6 = vweird.f32 %v10517_v19  ;;  %v5889_v55 = vand.u32 2147483648, %v10517_v19  ;;  %v5887_v37 = vand.u32 2147483647, %v10517_v19 }
0x2301   : > { %7756 = vrcp.f32 %v5748_v33  ;;  %v5773_v57 = vand.u32 2147483647, %v5748_v33  ;;  %v5775_v1 = vand.u32 2147483648, %v5748_v33  ;;  %vm5769_vm9 = vweird.f32 %v5748_v33 }
0x2302   : > { %7758 = vrcp.f32 %v10517_v19  ;;  %v5890_v50 = vor.u32 1.1754944e-38, %v5889_v55 }
0x2303   : > { %vm5774_vm12 = vcmp.eq.f32.partialorder %v5773_v57, 8.507059e+37  ;;  %v5776_v56 = vor.u32 1.1754944e-38, %v5775_v1 }
0x2307   : > { %v7757_v44 = vpop.eup %7756 }
0x2308   : > { %v10520_v46 = vpop.eup %7758  ;;  %v5765_v53 = vmul.f32 %v7757_v44, %v5748_v33  ;;  %v5859_v61 = vpop.xlane.xlu2 %5858  ;;  %vm5770_vm8 = vweird.f32 %v7757_v44 }
0x2309   : > { %v10522_v36 = vpop.xlane.xlu0 %6093  ;;  %7760 = vrcp.f32 %v5859_v61  ;;  %v5879_v10 = vmul.f32 %v10520_v46, %v10517_v19  ;;  %vm10527_vm11 = vmor %vm5769_vm9, %vm5770_vm8  ;;  %v5872_v7 = vand.u32 2147483647, %v5859_v61  ;;  %v5874_v9 = vand.u32 2147483648, %v5859_v61 }
0x230a   : > { %v5766_v62 = vsub.f32 1.0, %v5765_v53  ;;  %7762 = vrcp.f32 %v10522_v36  ;;  %vm5868_vm14 = vweird.f32 %v5859_v61  ;;  %vm5884_vm15 = vweird.f32 %v10520_v46 }
0x230b   : > { %v5880_v4 = vsub.f32 1.0, %v5879_v10  ;;  %v5875_v39 = vor.u32 1.1754944e-38, %v5874_v9  ;;  %vm5873_vm3 = vcmp.eq.f32.partialorder %v5872_v7, 8.507059e+37  ;;  %vm10553_vm7 = vmor %vm5883_vm6, %vm5884_vm15  ;;  %vm5888_vm9 = vcmp.eq.f32.partialorder %v5887_v37, 8.507059e+37 }
0x230c   : > { %v5767_v23 = vmul.f32 %v7757_v44, %v5766_v62  ;;  %vm6103_vm15 = vweird.f32 %v10522_v36 }
0x230d   : > { %v5881_v8 = vmul.f32 %v10520_v46, %v5880_v4 }
0x230e   : > { %v5768_v63 = vadd.f32 %v7757_v44, %v5767_v23  ;;  %v6107_v23 = vand.u32 2147483647, %v10522_v36 }
0x230f   : > { %v7761_v3 = vpop.eup %7760  ;;  %v5882_v17 = vadd.f32 %v10520_v46, %v5881_v8 }
0x2310   : > { %v5864_v42 = vmul.f32 %v7761_v3, %v5859_v61  ;;  %v5977_v5 = vpop.xlane.xlu2 %5976  ;;  %v10533_v6 = vpop.eup %7762  ;;  %v5772_v2 = vsel %vm10527_vm11, %v7757_v44, %v5768_v63  ;;  %vm5869_vm13 = vweird.f32 %v7761_v3  ;;  %v6109_v61 = vand.u32 2147483648, %v10522_v36 }
0x2311   : > { %v10531_v52 = vpop.xlane.xlu0 %6096  ;;  %7764 = vrcp.f32 %v5977_v5  ;;  %v6099_v47 = vmul.f32 %v10533_v6, %v10522_v36  ;;  %v5777_v12 = vsel %vm5774_vm12, %v5776_v56, %v5772_v2  ;;  %vm5870_vm2 = vmor %vm5868_vm14, %vm5869_vm13  ;;  %v5990_v20 = vand.u32 2147483647, %v5977_v5 }
0x2312   : > { %v5865_v40 = vsub.f32 1.0, %v5864_v42  ;;  %7766 = vrcp.f32 %v10531_v52  ;;  %v5778_v14 = vmul.f32 %v10483_v60, %v5777_v12  ;;  %v5992_v31 = vand.u32 2147483648, %v5977_v5 }
0x2313   : > { %v6100_v49 = vsub.f32 1.0, %v6099_v47  ;;  %v5886_v38 = vsel %vm10553_vm7, %v10520_v46, %v5882_v17  ;;  %vm5986_vm11 = vweird.f32 %v5977_v5  ;;  %vm6104_vm12 = vweird.f32 %v10533_v6 }
0x2314   : > { %v5866_v11 = vmul.f32 %v7761_v3, %v5865_v40  ;;  %7177 = vmatmul.msk.f32.gmra.mxu0 %vm2212_vm1, %v5778_v14  ;;  %v5993_v51 = vor.u32 1.1754944e-38, %v5992_v31  ;;  %v5891_v48 = vsel %vm5888_vm9, %v5890_v50, %v5886_v38  ;;  %vm5991_vm14 = vcmp.eq.f32.partialorder %v5990_v20, 8.507059e+37  ;;  %v7572_v50 = vld [vmem:[#allocation33 + $0x1] ss:$0 sm:$0xff] }
0x2315   : > { %v6101_v43 = vmul.f32 %v10533_v6, %v6100_v49  ;;  %v5892_v57 = vmul.f32 %v10481_v58, %v5891_v48  ;;  %v6110_v36 = vor.u32 1.1754944e-38, %v6109_v61  ;;  %vm6108_vm6 = vcmp.eq.f32.partialorder %v6107_v23, 8.507059e+37  ;;  %v5694_v49 = vld [vmem:[#allocation31 + $0x38] sm:$0xff] }
0x2316   : > { %v5867_v16 = vadd.f32 %v7761_v3, %v5866_v11  ;;  %v6124_v40 = vand.u32 2147483648, %v10531_v52  ;;  %v6122_v9 = vand.u32 2147483647, %v10531_v52  ;;  %6211 = vmatpush.msrb.mxu3 %v5694_v49 }
0x2317   : > { %v7765_v25 = vpop.eup %7764  ;;  %v5895_v54 = vpop.permute.xlu1 %5894  ;;  %v6102_v33 = vadd.f32 %v10533_v6, %v6101_v43 }
0x2318   : > { %v5871_v29 = vsel %vm5870_vm2, %v7761_v3, %v5867_v16  ;;  %v5982_v30 = vmul.f32 %v7765_v25, %v5977_v5  ;;  %v10545_v32 = vpop.xlane.xlu2 %5979  ;;  %5918 = vmatpush.msrb.mxu2 %v5895_v54  ;;  %v10547_v60 = vpop.eup %7766  ;;  %vm5987_vm8 = vweird.f32 %v7765_v25  ;;  %vm6105_vm2 = vmor %vm6103_vm15, %vm6104_vm12  ;;  %vm6118_vm12 = vweird.f32 %v10531_v52 }
0x2319   : > { %v5876_v34 = vsel %vm5873_vm3, %v5875_v39, %v5871_v29  ;;  %7768 = vrcp.f32 %v10545_v32  ;;  %v6114_v15 = vmul.f32 %v10547_v60, %v10531_v52  ;;  %vm5988_vm13 = vmor %vm5986_vm11, %vm5987_vm8  ;;  %v6106_v4 = vsel %vm6105_vm2, %v10533_v6, %v6102_v33 }
0x231a   : > { %v5877_v59 = vmul.f32 %v10489_v22, %v5876_v34  ;;  %v5983_v41 = vsub.f32 1.0, %v5982_v30  ;;  %v6007_v42 = vand.u32 2147483648, %v10545_v32  ;;  %v6005_v58 = vand.u32 2147483647, %v10545_v32  ;;  %v5693_v30 = vld [vmem:[#allocation31 + $0x30] sm:$0xff] }
0x231b   : > { %v6115_v46 = vsub.f32 1.0, %v6114_v15  ;;  %vm6001_vm7 = vweird.f32 %v10545_v32  ;;  %vm6119_vm8 = vweird.f32 %v10547_v60  ;;  %v6125_v14 = vor.u32 1.1754944e-38, %v6124_v40  ;;  %6212 = vmatpush.msrb.mxu3 %v5693_v30 }
0x231c   : > { %v5984_v45 = vmul.f32 %v7765_v25, %v5983_v41  ;;  %7181 = vmatmul.msk.f32.vlgmr.msrb.gmra.mxu2 %vm2212_vm1, %v5877_v59  ;;  %v6008_v56 = vor.u32 1.1754944e-38, %v6007_v42  ;;  %vm6006_vm11 = vcmp.eq.f32.partialorder %v6005_v58, 8.507059e+37  ;;  %v6284_v42 = vld [vmem:[#allocation37 + $0x28] sm:$0xff] }
0x231d   : > { %v6116_v35 = vmul.f32 %v10547_v60, %v6115_v46 }
0x231e   : > { %v5985_v22 = vadd.f32 %v7765_v25, %v5984_v45 }
0x231f   : > { %v7769_v19 = vpop.eup %7768  ;;  %v6117_v6 = vadd.f32 %v10547_v60, %v6116_v35  ;;  %v6285_v35 = vld [vmem:[#allocation37 + $0x30] sm:$0xff] }
0x2320   : > { %v5989_v44 = vsel %vm5988_vm13, %v7765_v25, %v5985_v22  ;;  %v6012_v53 = vpop.permute.xlu2 %6011  ;;  %v5997_v10 = vmul.f32 %v7769_v19, %v10545_v32  ;;  %vm6002_vm3 = vweird.f32 %v7769_v19  ;;  %vm6120_vm13 = vmor %vm6118_vm12, %vm6119_vm8  ;;  %v5692_v32 = vld [vmem:[#allocation31 + $0x28] sm:$0xff] }
0x2321   : > { %v5994_v62 = vsel %vm5991_vm14, %v5993_v51, %v5989_v44  ;;  %6035 = vmatpush.msra.mxu0 %v6012_v53  ;;  %vm6003_vm9 = vmor %vm6001_vm7, %vm6002_vm3  ;;  %v6121_v12 = vsel %vm6120_vm13, %v10547_v60, %v6117_v6  ;;  %vm6123_vm14 = vcmp.eq.f32.partialorder %v6122_v9, 8.507059e+37  ;;  %6213 = vmatpush.msrb.mxu3 %v5692_v32  ;;  %v5691_v60 = vld [vmem:[#allocation31 + $0x20] sm:$0xff]  ;;  %v7203_v6 = vld [vmem:[%s10839_s4 + $0x70] sm:$0xff] }
0x2322   : > { %v5995_v63 = vmul.f32 %v10497_v18, %v5994_v62  ;;  %v5998_v1 = vsub.f32 1.0, %v5997_v10  ;;  %v6111_v18 = vsel %vm6108_vm6, %v6110_v36, %v6106_v4  ;;  %v6126_v16 = vsel %vm6123_vm14, %v6125_v14, %v6121_v12  ;;  %v6286_v4 = vld [vmem:[#allocation37 + $0x38] sm:$0xff]  ;;  %v6283_v36 = vld [vmem:[#allocation37 + $0x20] sm:$0xff] }
0x2323   : > { %v6129_v3 = vpop.permute.xlu0 %6128  ;;  %v6112_v7 = vmul.f32 %v10491_v27, %v6111_v18  ;;  %v6127_v25 = vmul.f32 %v10499_v0, %v6126_v16  ;;  %6214 = vmatpush.msrb.mxu3 %v5691_v60  ;;  %6310 = vmatpush.msrb.mxu0 %v6286_v4 }
0x2324   : > { %7182 = vmatmul.msk.f32.gmra.mxu2 %vm2212_vm1, %v5892_v57  ;;  %7186 = vmatmul.msk.f32.vlgmr.msra.gmra.mxu0 %vm2212_vm1, %v5995_v63  ;;  %v5999_v5 = vmul.f32 %v7769_v19, %v5998_v1 }
0x2325   : > { %6152 = vmatpush.msra.mxu2 %v6129_v3  ;;  %6311 = vmatpush.msrb.mxu0 %v6285_v35 }
0x2326   : > { %v6000_v2 = vadd.f32 %v7769_v19, %v5999_v5 }
0x2327   : > { %6312 = vmatpush.msrb.mxu0 %v6284_v42 }
0x2328   : > { %v6004_v8 = vsel %vm6003_vm9, %v7769_v19, %v6000_v2  ;;  %v7204_v2 = vld [vmem:[%s10839_s4 + $0x78] sm:$0xff] }
0x2329   : > { %v6009_v11 = vsel %vm6006_vm11, %v6008_v56, %v6004_v8  ;;  %v5802_v27 = vpop.f32.mrf.mxu0  ;;  %6313 = vmatpush.msrb.mxu0 %v6283_v36  ;;  %6351 = vmatpush.msra.mxu1 %v7204_v2  ;;  %v7202_v56 = vld [vmem:[%s10839_s4 + $0x68] sm:$0xff] }
0x232a   : > { %v6010_v47 = vmul.f32 %v10505_v28, %v6009_v11 }
0x232b   : > { %6352 = vmatpush.msra.mxu1 %v7203_v6 }
0x232c   : > { %7191 = vmatmul.msk.f32.vlgmr.msra.gmra.mxu2 %vm2212_vm1, %v6112_v7  ;;  %7187 = vmatmul.msk.f32.gmra.mxu0 %vm2212_vm1, %v6010_v47  ;;  %v7201_v7 = vld [vmem:[%s10839_s4 + $0x60] sm:$0xff]  ;;  %v7200_v47 = vld [vmem:[%s10839_s4 + $0x58] sm:$0xff] }
0x232d   : > { %6353 = vmatpush.msra.mxu1 %v7202_v56 }
0x232f   : > { %6354 = vmatpush.msra.mxu1 %v7201_v7 }
0x2331   : > { %6355 = vmatpush.msra.mxu1 %v7200_v47 }
0x2334   : > { %7192 = vmatmul.msk.f32.gmra.mxu2 %vm2212_vm1, %v6127_v25 }
0x2391   : > { %v5805_v17 = vpop.f32.mrf.mxu0 }
0x239f   : > { %v5920_v52 = vpop.f32.mrf.mxu2 }
0x23a0   : > { %6162 = vrot.lane.b32.xlu1 %v5920_v52, %s10832_s7 }
0x23a1   : > { %v6037_v39 = vpop.f32.mrf.mxu0 }
0x23a7   : > { %v5923_v28 = vpop.f32.mrf.mxu2 }
0x23a8   : > { %6170 = vrot.lane.b32.xlu1 %v6037_v39, %s10833_s9  ;;  %v7573_v39 = vld [vmem:[#allocation34 + $0x1] ss:$0 sm:$0xff] }
0x23a9   : > { %v6040_v54 = vpop.f32.mrf.mxu0 }
0x23aa   : > { %6172 = vrot.lane.b32.xlu2 %v6040_v54, %s10833_s9 }
0x23af   : > { %v6154_v29 = vpop.f32.mrf.mxu2 }
0x23b0   : > { %6164 = vrot.lane.b32.xlu1 %v5923_v28, %s10832_s7  ;;  %6178 = vrot.lane.b32.xlu0 %v6154_v29, %s10834_s10  ;;  %v7574_v29 = vld [vmem:[#allocation36 + $0x1] ss:$0 sm:$0xff]  ;;  %s2055_s7 = scalar_lea.vmem %s9055_s12, %s10852_s6 }
0x23b7   : > { %v6157_v0 = vpop.f32.mrf.mxu2 }
0x23b8   : > { %6180 = vrot.lane.b32.xlu0 %v6157_v0, %s10834_s10 }
0x2404   : > { %v6173_v38 = vpop.permute.xlu2 %6172 }
0x2412   : > { %v6163_v55 = vpop.permute.xlu1 %6162 }
0x2413   : > { %v6184_v26 = vsel %vm2212_vm1, %v5802_v27, %v6163_v55 }
0x241a   : > { %v6171_v34 = vpop.permute.xlu1 %6170 }
0x241b   : > { %v6186_v37 = vsel %vm2538_vm4, %v6184_v26, %v6171_v34 }
0x2422   : > { %v6179_v59 = vpop.permute.xlu0 %6178  ;;  %v6165_v20 = vpop.permute.xlu1 %6164 }
0x2423   : > { %v6188_v41 = vsel %vm2540_vm5, %v6186_v37, %v6179_v59  ;;  %v6185_v31 = vsel %vm2212_vm1, %v5805_v17, %v6165_v20  ;;  %v7198_v20 = vld [vmem:[%s10839_s4 + $0x48] sm:$0xff] }
0x2424   : > { %7193 = vmatmul.msk.f32.vlgmr.msrb.gmra.mxu3 %vm2065_vm0, %v6188_v41  ;;  %v6187_v43 = vsel %vm2538_vm4, %v6185_v31, %v6173_v38  ;;  %v7199_v41 = vld [vmem:[%s10839_s4 + $0x50] sm:$0xff]  ;;  %v7197_v31 = vld [vmem:[%s10839_s4 + $0x40] sm:$0xff] }
0x2425   : > { %6356 = vmatpush.msra.mxu1 %v7199_v41  ;;  %v7575_v38 = vld [vmem:[#allocation39 + $0x1] ss:$0 sm:$0xff] }
0x2427   : > { %6357 = vmatpush.msra.mxu1 %v7198_v20 }
0x2429   : > { %6358 = vmatpush.msra.mxu1 %v7197_v31 }
0x242a   : > { %v6181_v45 = vpop.permute.xlu0 %6180 }
0x242b   : > { %v6189_v15 = vsel %vm2540_vm5, %v6187_v43, %v6181_v45 }
0x242c   : > { %7194 = vmatmul.msk.f32.gmra.mxu3 %vm2065_vm0, %v6189_v15 }
0x24a7   : > { %v6216_v22 = vpop.f32.mrf.mxu3 }
0x24a8   : > { %v6217_v51 = vadd.f32 %v7572_v50, %v6216_v22 }
0x24aa   : > { %v6222_v48 = vadd.f32 %v6217_v51, %v10444_v13 }
0x24ac   : > { %v6228_v19 = vsel %vm2065_vm0, %v6222_v48, 0.0 }
0x24ad   : > { %6229 = vadd.xlane.f32.xlu1 %v6228_v19 }
0x24af   : > { %v6219_v33 = vpop.f32.mrf.mxu3 }
0x24b0   : > { %v6220_v44 = vadd.f32 %v7572_v50, %v6219_v33 }
0x24b2   : > { %v6223_v46 = vadd.f32 %v6220_v44, %v10448_v21 }
0x24b4   : > { %v6231_v53 = vsel %vm2065_vm0, %v6223_v46, 0.0 }
0x24b5   : > { %6232 = vadd.xlane.f32.xlu2 %v6231_v53 }
0x2520   : > { %v6230_v61 = vpop.xlane.xlu1 %6229 }
0x2521   : > { %v6234_v62 = vmul.f32 %v6230_v61, %v9652_v24 }
0x2523   : > { %v6236_v10 = vsub.f32 %v6222_v48, %v6234_v62  ;;  %v7576_v48 = vld [vmem:[#allocation40 + $0x1] ss:$0 sm:$0xff] }
0x2525   : > { %v6238_v23 = vmul.f32 %v6236_v10, %v6236_v10 }
0x2527   : > { %v6240_v63 = vsel %vm2065_vm0, %v6238_v23, 0.0 }
0x2528   : > { %6241 = vadd.xlane.f32.xlu0 %v6240_v63  ;;  %v6233_v57 = vpop.xlane.xlu2 %6232 }
0x2529   : > { %v6235_v13 = vmul.f32 %v6233_v57, %v9652_v24 }
0x252b   : > { %v6237_v1 = vsub.f32 %v6223_v46, %v6235_v13 }
0x252d   : > { %v6239_v3 = vmul.f32 %v6237_v1, %v6237_v1 }
0x252f   : > { %v6243_v21 = vsel %vm2065_vm0, %v6239_v3, 0.0 }
0x2530   : > { %6244 = vadd.xlane.f32.xlu1 %v6243_v21 }
0x259b   : > { %v6242_v5 = vpop.xlane.xlu0 %6241 }
0x259c   : > { %v6246_v58 = vmul.f32 %v6242_v5, %v9652_v24 }
0x259e   : > { %v6248_v18 = vadd.f32 1e-05, %v6246_v58 }
0x25a0   : > { %7770 = vrsqrt.f32 %v6248_v18  ;;  %vm6256_vm4 = vweird.f32 %v6248_v18 }
0x25a3   : > { %v6245_v40 = vpop.xlane.xlu1 %6244 }
0x25a4   : > { %v6247_v8 = vmul.f32 %v6245_v40, %v9652_v24 }
0x25a6   : > { %v7771_v9 = vpop.eup %7770  ;;  %v6249_v11 = vadd.f32 1e-05, %v6247_v8 }
0x25a7   : > { %v6251_v12 = vmul.f32 %v7771_v9, %v6248_v18  ;;  %vm6257_vm1 = vweird.f32 %v7771_v9 }
0x25a8   : > { %7772 = vrsqrt.f32 %v6249_v11  ;;  %vm6258_vm5 = vmor %vm6256_vm4, %vm6257_vm1  ;;  %vm6266_vm2 = vweird.f32 %v6249_v11 }
0x25a9   : > { %v6252_v14 = vmul.f32 %v7771_v9, %v6251_v12 }
0x25ab   : > { %v6253_v16 = vmul.f32 0.5, %v6252_v14  ;;  %v7577_v14 = vld [vmem:[#allocation42 + $0x1] ss:$0 sm:$0xff] }
0x25ad   : > { %v6254_v25 = vsub.f32 1.5, %v6253_v16 }
0x25ae   : > { %v7773_v27 = vpop.eup %7772 }
0x25af   : > { %v6255_v17 = vmul.f32 %v7771_v9, %v6254_v25  ;;  %v6261_v52 = vmul.f32 %v7773_v27, %v6249_v11  ;;  %vm6267_vm15 = vweird.f32 %v7773_v27 }
0x25b0   : > { %vm6268_vm3 = vmor %vm6266_vm2, %vm6267_vm15 }
0x25b1   : > { %v6259_v28 = vsel %vm6258_vm5, %v7771_v9, %v6255_v17  ;;  %v6262_v54 = vmul.f32 %v7773_v27, %v6261_v52  ;;  %v7578_v17 = vld [vmem:[#allocation43 + $0x1] ss:$0 sm:$0xff] }
0x25b2   : > { %v6270_v0 = vmul.f32 %v6259_v28, %v6236_v10 }
0x25b3   : > { %v6263_v49 = vmul.f32 0.5, %v6262_v54 }
0x25b4   : > { %v6275_v30 = vmul.f32 %v7573_v39, %v6270_v0 }
0x25b5   : > { %v6264_v32 = vsub.f32 1.5, %v6263_v49 }
0x25b6   : > { %v6280_v60 = vadd.f32 %v7574_v29, %v6275_v30 }
0x25b7   : > { %v6265_v55 = vmul.f32 %v7773_v27, %v6264_v32 }
0x25b8   : > { %7195 = vmatmul.msk.f32.vlgmr.msrb.gmra.mxu0 %vm2065_vm0, %v6280_v60 }
0x25b9   : > { %v6269_v34 = vsel %vm6268_vm3, %v7773_v27, %v6265_v55 }
0x25ba   : > { %v6271_v26 = vmul.f32 %v6269_v34, %v6237_v1 }
0x25bc   : > { %v6276_v37 = vmul.f32 %v7573_v39, %v6271_v26 }
0x25be   : > { %v6281_v59 = vadd.f32 %v7574_v29, %v6276_v37 }
0x25c0   : > { %7196 = vmatmul.msk.f32.gmra.mxu0 %vm2065_vm0, %v6281_v59 }
0x2635   : > { %v6315_v43 = vpop.f32.mrf.mxu0 }
0x2636   : > { %v6316_v45 = vadd.f32 %v7575_v38, %v6315_v43 }
0x2638   : > { %v6321_v15 = vmax.f32 %v6316_v45, 0.0 }
0x263a   : > { %7205 = vmatmul.msk.f32.vlgmr.msra.gmra.mxu1 %vm2652_vm10, %v6321_v15  ;;  %v6485_v15 = vld [vmem:[%s9045_s19 + $0x18] sm:$0xff] }
0x263b   : > { %6508 = vmatpush.msrb.mxu2 %v6485_v15 }
0x263d   : > { %v6318_v50 = vpop.f32.mrf.mxu0 }
0x263e   : > { %v6319_v22 = vadd.f32 %v7575_v38, %v6318_v50  ;;  %v6484_v50 = vld [vmem:[%s9045_s19 + $0x10] sm:$0xff] }
0x263f   : > { %6509 = vmatpush.msrb.mxu2 %v6484_v50 }
0x2640   : > { %v6322_v51 = vmax.f32 %v6319_v22, 0.0  ;;  %v6483_v22 = vld [vmem:[%s9045_s19 + $0x8] sm:$0xff] }
0x2641   : > { %6510 = vmatpush.msrb.mxu2 %v6483_v22 }
0x2642   : > { %7206 = vmatmul.msk.f32.gmra.mxu1 %vm2652_vm10, %v6322_v51  ;;  %v6482_v51 = vld [vmem:[%s9045_s19] sm:$0xff] }
0x2643   : > { %6511 = vmatpush.msrb.mxu2 %v6482_v51 }
0x26b7   : > { %v6360_v19 = vpop.f32.mrf.mxu1 }
0x26b8   : > { %v6361_v33 = vadd.f32 %v7576_v48, %v6360_v19 }
0x26ba   : > { %v6366_v44 = vadd.f32 %v6361_v33, %v6280_v60 }
0x26bc   : > { %v6372_v46 = vsel %vm2065_vm0, %v6366_v44, 0.0 }
0x26bd   : > { %6373 = vadd.xlane.f32.xlu2 %v6372_v46 }
0x26bf   : > { %v6363_v53 = vpop.f32.mrf.mxu1 }
0x26c0   : > { %v6364_v61 = vadd.f32 %v7576_v48, %v6363_v53 }
0x26c2   : > { %v6367_v62 = vadd.f32 %v6364_v61, %v6281_v59 }
0x26c4   : > { %v6375_v10 = vsel %vm2065_vm0, %v6367_v62, 0.0 }
0x26c5   : > { %6376 = vadd.xlane.f32.xlu0 %v6375_v10 }
0x2730   : > { %v6374_v23 = vpop.xlane.xlu2 %6373 }
0x2731   : > { %v6378_v63 = vmul.f32 %v6374_v23, %v9652_v24 }
0x2733   : > { %v6380_v57 = vsub.f32 %v6366_v44, %v6378_v63 }
0x2735   : > { %v6382_v13 = vmul.f32 %v6380_v57, %v6380_v57 }
0x2737   : > { %v6384_v1 = vsel %vm2065_vm0, %v6382_v13, 0.0 }
0x2738   : > { %v6377_v3 = vpop.xlane.xlu0 %6376  ;;  %6385 = vadd.xlane.f32.xlu1 %v6384_v1 }
0x2739   : > { %v6379_v21 = vmul.f32 %v6377_v3, %v9652_v24  ;;  %v7579_v3 = vld [vmem:[#allocation45] ss:$0 sm:$0xff] }
0x273b   : > { %v6381_v4 = vsub.f32 %v6367_v62, %v6379_v21 }
0x273d   : > { %v6383_v35 = vmul.f32 %v6381_v4, %v6381_v4 }
0x273f   : > { %v6387_v42 = vsel %vm2065_vm0, %v6383_v35, 0.0  ;;  %v7580_v35 = vld [vmem:[#allocation46] ss:$0 sm:$0xff] }
0x2740   : > { %6388 = vadd.xlane.f32.xlu2 %v6387_v42 }
0x27ab   : > { %v6386_v36 = vpop.xlane.xlu1 %6385 }
0x27ac   : > { %v6390_v5 = vmul.f32 %v6386_v36, %v9652_v24 }
0x27ae   : > { %v6392_v58 = vadd.f32 1e-05, %v6390_v5 }
0x27b0   : > { %7774 = vrsqrt.f32 %v6392_v58  ;;  %vm6400_vm6 = vweird.f32 %v6392_v58 }
0x27b3   : > { %v6389_v18 = vpop.xlane.xlu2 %6388 }
0x27b4   : > { %v6391_v2 = vmul.f32 %v6389_v18, %v9652_v24 }
0x27b6   : > { %v7775_v6 = vpop.eup %7774  ;;  %v6393_v56 = vadd.f32 1e-05, %v6391_v2 }
0x27b7   : > { %v6395_v40 = vmul.f32 %v7775_v6, %v6392_v58  ;;  %vm6401_vm10 = vweird.f32 %v7775_v6 }
0x27b8   : > { %7776 = vrsqrt.f32 %v6393_v56  ;;  %vm6402_vm7 = vmor %vm6400_vm6, %vm6401_vm10  ;;  %vm6410_vm9 = vweird.f32 %v6393_v56 }
0x27b9   : > { %v6396_v8 = vmul.f32 %v7775_v6, %v6395_v40 }
0x27bb   : > { %v6397_v7 = vmul.f32 0.5, %v6396_v8  ;;  %v7581_v8 = vld [vmem:[%s9050_s20] ss:$0 sm:$0xff] }
0x27bd   : > { %v6398_v9 = vsub.f32 1.5, %v6397_v7 }
0x27be   : > { %v7777_v11 = vpop.eup %7776 }
0x27bf   : > { %v6399_v47 = vmul.f32 %v7775_v6, %v6398_v9  ;;  %v6405_v12 = vmul.f32 %v7777_v11, %v6393_v56  ;;  %vm6411_vm8 = vweird.f32 %v7777_v11 }
0x27c0   : > { %vm6412_vm11 = vmor %vm6410_vm9, %vm6411_vm8 }
0x27c1   : > { %v6406_v16 = vmul.f32 %v7777_v11, %v6405_v12  ;;  %v6403_v25 = vsel %vm6402_vm7, %v7775_v6, %v6399_v47 }
0x27c2   : > { %v6414_v27 = vmul.f32 %v6403_v25, %v6380_v57 }
0x27c3   : > { %v6407_v52 = vmul.f32 0.5, %v6406_v16 }
0x27c4   : > { %v6419_v39 = vmul.f32 %v7577_v14, %v6414_v27 }
0x27c5   : > { %v6408_v28 = vsub.f32 1.5, %v6407_v52 }
0x27c6   : > { %v6424_v54 = vadd.f32 %v7578_v17, %v6419_v39 }
0x27c7   : > { %v6409_v29 = vmul.f32 %v7777_v11, %v6408_v28 }
0x27c8   : > { %v6428_v0 = vsel %vm2065_vm0, %v6424_v54, 0.0 }
0x27c9   : > { %6429 = vadd.xlane.f32.xlu0 %v6428_v0  ;;  %v6413_v49 = vsel %vm6412_vm11, %v7777_v11, %v6409_v29 }
0x27ca   : > { %v6415_v30 = vmul.f32 %v6413_v49, %v6381_v4 }
0x27cc   : > { %v6420_v32 = vmul.f32 %v7577_v14, %v6415_v30 }
0x27ce   : > { %v6425_v60 = vadd.f32 %v7578_v17, %v6420_v32 }
0x27d0   : > { %v6431_v55 = vsel %vm2065_vm0, %v6425_v60, 0.0 }
0x27d1   : > { %6432 = vadd.xlane.f32.xlu1 %v6431_v55 }
0x283c   : > { %v6430_v34 = vpop.xlane.xlu0 %6429 }
0x283d   : > { %v6434_v26 = vmul.f32 %v6430_v34, %v9652_v24 }
0x283f   : > { %v6436_v37 = vsub.f32 %v6424_v54, %v6434_v26 }
0x2841   : > { %v6438_v59 = vmul.f32 %v6436_v37, %v6436_v37 }
0x2843   : > { %v6440_v41 = vsel %vm2065_vm0, %v6438_v59, 0.0 }
0x2844   : > { %6441 = vadd.xlane.f32.xlu2 %v6440_v41  ;;  %v6433_v20 = vpop.xlane.xlu1 %6432 }
0x2845   : > { %v6435_v31 = vmul.f32 %v6433_v20, %v9652_v24 }
0x2847   : > { %v6437_v38 = vsub.f32 %v6425_v60, %v6435_v31 }
0x2849   : > { %v6439_v43 = vmul.f32 %v6437_v38, %v6437_v38 }
0x284b   : > { %v6443_v45 = vsel %vm2065_vm0, %v6439_v43, 0.0 }
0x284c   : > { %6444 = vadd.xlane.f32.xlu0 %v6443_v45 }
0x28b7   : > { %v6442_v48 = vpop.xlane.xlu2 %6441 }
0x28b8   : > { %v6446_v19 = vmul.f32 %v6442_v48, %v9652_v24 }
0x28ba   : > { %v6448_v33 = vadd.f32 1e-05, %v6446_v19 }
0x28bc   : > { %7778 = vrsqrt.f32 %v6448_v33  ;;  %vm6456_vm13 = vweird.f32 %v6448_v33 }
0x28bf   : > { %v6445_v44 = vpop.xlane.xlu0 %6444 }
0x28c0   : > { %v6447_v46 = vmul.f32 %v6445_v44, %v9652_v24 }
0x28c2   : > { %v7779_v53 = vpop.eup %7778  ;;  %v6449_v61 = vadd.f32 1e-05, %v6447_v46 }
0x28c3   : > { %v6451_v62 = vmul.f32 %v7779_v53, %v6448_v33  ;;  %vm6457_vm12 = vweird.f32 %v7779_v53 }
0x28c4   : > { %7780 = vrsqrt.f32 %v6449_v61  ;;  %vm6458_vm14 = vmor %vm6456_vm13, %vm6457_vm12  ;;  %vm6466_vm4 = vweird.f32 %v6449_v61 }
0x28c5   : > { %v6452_v10 = vmul.f32 %v7779_v53, %v6451_v62 }
0x28c7   : > { %v6453_v23 = vmul.f32 0.5, %v6452_v10 }
0x28c9   : > { %v6454_v63 = vsub.f32 1.5, %v6453_v23 }
0x28ca   : > { %v7781_v57 = vpop.eup %7780 }
0x28cb   : > { %v6455_v13 = vmul.f32 %v7779_v53, %v6454_v63  ;;  %v6461_v1 = vmul.f32 %v7781_v57, %v6449_v61  ;;  %vm6467_vm1 = vweird.f32 %v7781_v57 }
0x28cc   : > { %vm6468_vm5 = vmor %vm6466_vm4, %vm6467_vm1 }
0x28cd   : > { %v6459_v21 = vsel %vm6458_vm14, %v7779_v53, %v6455_v13  ;;  %v6462_v4 = vmul.f32 %v7781_v57, %v6461_v1 }
0x28ce   : > { %v6470_v42 = vmul.f32 %v6459_v21, %v6436_v37 }
0x28cf   : > { %v6463_v24 = vmul.f32 0.5, %v6462_v4 }
0x28d0   : > { %v6475_v36 = vmul.f32 %v7579_v3, %v6470_v42 }
0x28d1   : > { %v6464_v5 = vsub.f32 1.5, %v6463_v24 }
0x28d2   : > { %v6480_v58 = vadd.f32 %v7580_v35, %v6475_v36 }
0x28d3   : > { %v6465_v18 = vmul.f32 %v7781_v57, %v6464_v5 }
0x28d4   : > { %7207 = vmatmul.msk.f32.vlgmr.msrb.gmra.mxu2 %vm2065_vm0, %v6480_v58 }
0x28d5   : > { %v6469_v2 = vsel %vm6468_vm5, %v7781_v57, %v6465_v18 }
0x28d6   : > { %v6471_v6 = vmul.f32 %v6469_v2, %v6437_v38 }
0x28d8   : > { %v6476_v56 = vmul.f32 %v7579_v3, %v6471_v6 }
0x28da   : > { %v6481_v40 = vadd.f32 %v7580_v35, %v6476_v56 }
0x28dc   : > { %7208 = vmatmul.msk.f32.gmra.mxu2 %vm2065_vm0, %v6481_v40 }
0x2957   : > { %v6513_v7 = vpop.f32.mrf.mxu2 }
0x2958   : > { %v6514_v9 = vadd.f32 %v7581_v8, %v6513_v7 }
0x295a   : > { %6519 = vst [vmem:[%s2055_s7] sm:$0xff] %v6514_v9 }
0x295f   : > { %v6516_v11 = vpop.f32.mrf.mxu2 }
0x2960   : > { %v6517_v47 = vadd.f32 %v7581_v8, %v6516_v11 }
0x2962   : > { %6520 = vst [vmem:[%s2055_s7 + $0x8] sm:$0xff] %v6517_v47 }
0x2963 PF: > { %s131_s28 = sadd.s32 1, %s8692_s28  }
0x2964   : > { %p128_p3 = scmp.ge.s32.totalorder %s131_s28, 4  }
0x2966   :  { %130 = sbr.rel (!%p128_p3) target bundleno = 114 (0x72), region = 476 }
0x296b   :  { %6542 = vsyncpa [#allocation3], 1 }
0x296c   :  { %6544 = vsyncpa [#allocation3 + $0x1], 1 }
0x296d   :  { %6545 = vsyncpa [#allocation5], 1 }
0x296e   :  { %6546 = vsyncpa [#allocation8], 1 }
0x296f   :  { %6547 = vsyncpa [#allocation11], 1 }
0x2970   :  { %6548 = vsyncpa [#allocation14], 1 }
0x2971   :  { %6549 = vsyncpa [#allocation17], 1 }
0x2972   :  { %6550 = vsyncpa [#allocation20], 1 }
0x2973   :  { %6551 = vsyncpa [#allocation23], 1 }
0x2974   :  { %6552 = vsyncpa [#allocation26], 1 }
0x2975   :  { %6553 = vsyncpa [#allocation29], 1 }
0x2976   :  { %6554 = vsyncpa [#allocation32], 1 }
0x2977   :  { %6555 = vsyncpa [#allocation35], 1 }
0x2978   :  { %6556 = vsyncpa [#allocation38], 1 }
0x2979   :  { %6557 = vsyncpa [#allocation41], 1 }
0x297a   :  { %6558 = vsyncpa [#allocation44], 1 }
0x297b   :  { %6559 = vsyncpa [#allocation47], 1 }

</bundles_post_ra>
